<compile_context>
chip_gen: v7x
topology: tpu7x:2x2x1
jax: 0.10.0
libtpu: 0.0.40
codegen_flags: <defaults>
</compile_context>

<pallas_src>
import jax
import jax.numpy as jnp
from jax.experimental import pallas as pl
from jax.experimental.pallas import tpu as pltpu

NOISE_SIZE = 128
INPUT_SIZE = 500
OUT_PAD = 512            # lane-dense padded head width (multiple of 128)
HIDDEN = (256, 512, 1024, 2048)
LEAKY_SLOPE = 0.2
BN_EPS = 0.8

# Packed small-vector operand: (NUM_VEC, VEC_WIDTH) f32, one row per vector,
# zero-padded on the lane axis.
VEC_WIDTH = 2048
(ROW_B1, ROW_G2, ROW_BE2, ROW_G3, ROW_BE3,
 ROW_G4, ROW_BE4, ROW_B5, ROW_S3, ROW_S4, ROW_S5) = range(11)
NUM_VEC = 11


def _leaky_relu(x):
    return jnp.where(x >= 0, x, LEAKY_SLOPE * x)


def _batchnorm_train(x, gamma, beta):
    # Training-mode BatchNorm1d: batch mean / biased batch variance, eps=0.8.
    mean = jnp.mean(x, axis=0, keepdims=True)
    var = jnp.mean((x - mean) ** 2, axis=0, keepdims=True)
    return (x - mean) * jax.lax.rsqrt(var + BN_EPS) * gamma + beta


def generator_kernel(z_ref, w1_ref, w2_ref, w3_ref, w4_ref, w5_ref, vec_ref,
                     out_ref):
    d1, d2, d3, d4 = HIDDEN

    x = z_ref[...].astype(jnp.bfloat16)

    # block 1: Linear(128, 256) + bias + LeakyReLU  (bf16 weight, f32 accum)
    h = jnp.dot(x, w1_ref[...], preferred_element_type=jnp.float32)
    h = _leaky_relu(h + vec_ref[ROW_B1:ROW_B1 + 1, :d1])

    # block 2: Linear(256, 512) + BN + LeakyReLU
    # (bias dropped: exactly cancelled by training-mode BN mean subtraction)
    h = jnp.dot(h.astype(jnp.bfloat16), w2_ref[...],
                preferred_element_type=jnp.float32)
    h = _leaky_relu(_batchnorm_train(h,
                                     vec_ref[ROW_G2:ROW_G2 + 1, :d2],
                                     vec_ref[ROW_BE2:ROW_BE2 + 1, :d2]))

    # block 3: Linear(512, 1024) + BN + LeakyReLU
    # int8 weight -> bf16 dequant on VPU, per-column scale folded post-matmul.
    h = jnp.dot(h.astype(jnp.bfloat16), w3_ref[...].astype(jnp.bfloat16),
                preferred_element_type=jnp.float32)
    h = h * vec_ref[ROW_S3:ROW_S3 + 1, :d3]
    h = _leaky_relu(_batchnorm_train(h,
                                     vec_ref[ROW_G3:ROW_G3 + 1, :d3],
                                     vec_ref[ROW_BE3:ROW_BE3 + 1, :d3]))

    # block 4: Linear(1024, 2048) + BN + LeakyReLU  (int8 weight)
    h = jnp.dot(h.astype(jnp.bfloat16), w4_ref[...].astype(jnp.bfloat16),
                preferred_element_type=jnp.float32)
    h = h * vec_ref[ROW_S4:ROW_S4 + 1, :d4]
    h = _leaky_relu(_batchnorm_train(h,
                                     vec_ref[ROW_G4:ROW_G4 + 1, :d4],
                                     vec_ref[ROW_BE4:ROW_BE4 + 1, :d4]))

    # head: Linear(2048, 512-padded) + bias + Tanh  (int8 weight)
    h = jnp.dot(h.astype(jnp.bfloat16), w5_ref[...].astype(jnp.bfloat16),
                preferred_element_type=jnp.float32)
    h = h * vec_ref[ROW_S5:ROW_S5 + 1, :OUT_PAD] \
        + vec_ref[ROW_B5:ROW_B5 + 1, :OUT_PAD]
    out_ref[...] = jnp.tanh(h).astype(out_ref.dtype)


def init_params(key):
    """PyTorch-equivalent parameters (f32, unpadded, W as (in, out)):
    Linear: U(-1/sqrt(fan_in), +1/sqrt(fan_in)) for W and b; BN gamma=1, beta=0."""
    dims = [NOISE_SIZE] + list(HIDDEN) + [INPUT_SIZE]
    params = []
    for idx, (din, dout) in enumerate(zip(dims[:-1], dims[1:])):
        key, wk, bk = jax.random.split(key, 3)
        bound = 1.0 / (din ** 0.5)
        w = jax.random.uniform(wk, (din, dout), jnp.float32, -bound, bound)
        b = jax.random.uniform(bk, (1, dout), jnp.float32, -bound, bound)
        params += [w, b]
        if 0 < idx < len(HIDDEN):   # blocks 2..4 carry BatchNorm
            params += [jnp.ones((1, dout), jnp.float32),
                       jnp.zeros((1, dout), jnp.float32)]
    return params


def _quantize_int8(w):
    """Weight-only, per-output-channel symmetric int8 quantization."""
    scale = jnp.max(jnp.abs(w), axis=0, keepdims=True) / 127.0
    scale = jnp.maximum(scale, 1e-8)
    wq = jnp.clip(jnp.round(w / scale), -127.0, 127.0).astype(jnp.int8)
    return wq, scale.astype(jnp.float32)


def prepare_kernel_params(params):
    """Convert PyTorch-style params into kernel operands:
      - drop b2/b3/b4 (exactly cancelled by the following training-mode BN),
      - W1/W2 -> bf16, W3/W4/W5 -> int8 + per-column f32 scales,
      - zero-pad the head (W5, b5) from 500 to 512 output lanes,
      - pack all (1, N) vectors + scales into one (11, 2048) f32 operand."""
    (w1, b1,
     w2, _b2, g2, be2,
     w3, _b3, g3, be3,
     w4, _b4, g4, be4,
     w5, b5) = params

    pad = OUT_PAD - INPUT_SIZE
    w5p = jnp.pad(w5, ((0, 0), (0, pad)))
    b5p = jnp.pad(b5, ((0, 0), (0, pad)))

    w3q, s3 = _quantize_int8(w3)
    w4q, s4 = _quantize_int8(w4)
    w5q, s5 = _quantize_int8(w5p)

    rows = [b1, g2, be2, g3, be3, g4, be4, b5p, s3, s4, s5]
    vec = jnp.zeros((NUM_VEC, VEC_WIDTH), jnp.float32)
    for i, r in enumerate(rows):
        vec = vec.at[i, :r.shape[-1]].set(r[0])

    return [w1.astype(jnp.bfloat16),
            w2.astype(jnp.bfloat16),
            w3q, w4q, w5q,
            vec]


def generator_forward(z, kernel_params):
    batch = z.shape[0]
    operands = [z] + list(kernel_params)

    # Whole arrays resident in VMEM, no grid -> no double-buffering and no
    # pipeline prologue/epilogue.  Operand footprint: ~0.3 MiB bf16 +
    # ~3.5 MiB int8 + ~0.1 MiB vectors; peak VMEM (with bf16 dequant temps)
    # well under 16 MiB.  Batch can be raised to 128-256 with no change
    # (weights are the entire cost and are amortized over the batch).
    vspec = pl.BlockSpec(memory_space=pltpu.MemorySpace.VMEM)

    out = pl.pallas_call(
        generator_kernel,
        out_shape=jax.ShapeDtypeStruct((batch, OUT_PAD), jnp.float32),
        in_specs=[vspec for _ in operands],
        out_specs=vspec,
        compiler_params=pltpu.CompilerParams(
            # Comfortably above need, within physical VMEM on every
            # generation (v7x: 64 MiB, v5e/v6e: 128 MiB).
            vmem_limit_bytes=32 << 20,
        ),
    )(*operands)

    # Slice the lane-padded head back to the real 500-wide output.
    return out[:, :INPUT_SIZE]


def generator_reference(z, params):
    """Pure-JAX f32 reference (PyTorch-equivalent, no quantization)."""
    (w1, b1,
     w2, b2, g2, be2,
     w3, b3, g3, be3,
     w4, b4, g4, be4,
     w5, b5) = params

    h = _leaky_relu(z @ w1 + b1)
    h = _leaky_relu(_batchnorm_train(h @ w2 + b2, g2, be2))
    h = _leaky_relu(_batchnorm_train(h @ w3 + b3, g3, be3))
    h = _leaky_relu(_batchnorm_train(h @ w4 + b4, g4, be4))
    return jnp.tanh(h @ w5 + b5)


if __name__ == "__main__":
    key = jax.random.PRNGKey(0)
    pkey, zkey = jax.random.split(key)

    params = init_params(pkey)
    kparams = prepare_kernel_params(params)

    batch = 8
    z = jax.random.normal(zkey, (batch, NOISE_SIZE), dtype=jnp.float32)

    img = jax.block_until_ready(generator_forward(z, kparams))

    assert img.shape == (batch, INPUT_SIZE), img.shape
    assert img.dtype == jnp.float32
    assert bool(jnp.all(jnp.isfinite(img)))
    assert bool(jnp.all(jnp.abs(img) <= 1.0))        # tanh range

    # Loose tolerance vs the f32 reference: bf16 activations + int8
    # (per-channel) weights deviate at the ~1e-2 level, which is the point of
    # the weight-only quantization.
    ref = generator_reference(z, params)
    max_err = float(jnp.max(jnp.abs(img - ref)))
    assert max_err < 0.1, f"max abs error vs f32 reference: {max_err}"

    print("KERNEL_OK")
</pallas_src>

<mosaic_0001>
module attributes {stable_mosaic.version = 11 : i64} {
  func.func @generator_kernel(%arg0: memref<8x128xf32, #tpu.memory_space<vmem>>, %arg1: memref<128x256xbf16, #tpu.memory_space<vmem>>, %arg2: memref<256x512xbf16, #tpu.memory_space<vmem>>, %arg3: memref<512x1024xi8, #tpu.memory_space<vmem>>, %arg4: memref<1024x2048xi8, #tpu.memory_space<vmem>>, %arg5: memref<2048x512xi8, #tpu.memory_space<vmem>>, %arg6: memref<11x2048xf32, #tpu.memory_space<vmem>>, %arg7: memref<8x512xf32, #tpu.memory_space<vmem>>) attributes {dimension_semantics = [], scalar_prefetch = 0 : i64, scratch_operands = 0 : i64, tpu.core_type = #tpu.core_type<tc>} {
    %c0 = arith.constant 0 : index
    %c0_0 = arith.constant 0 : index
    %0 = vector.load %arg0[%c0, %c0_0] : memref<8x128xf32, #tpu.memory_space<vmem>>, vector<8x128xf32>
    %1 = arith.truncf %0 : vector<8x128xf32> to vector<8x128xbf16>
    %c0_1 = arith.constant 0 : index
    %c0_2 = arith.constant 0 : index
    %2 = vector.load %arg1[%c0_1, %c0_2] : memref<128x256xbf16, #tpu.memory_space<vmem>>, vector<128x256xbf16>
    %cst = arith.constant dense<0.000000e+00> : vector<8x256xf32>
    %3 = tpu.matmul %1, %2, %cst {dimension_numbers = #tpu.dot_dimension_numbers<[1], [0], [0], [1], [0, 0, 1, 1], [], []>} : vector<8x128xbf16>, vector<128x256xbf16>, vector<8x256xf32> -> vector<8x256xf32>
    %c0_3 = arith.constant 0 : index
    %c0_4 = arith.constant 0 : index
    %4 = vector.load %arg6[%c0_3, %c0_4] : memref<11x2048xf32, #tpu.memory_space<vmem>>, vector<1x256xf32>
    %5 = vector.broadcast %4 : vector<1x256xf32> to vector<8x256xf32>
    %6 = arith.addf %3, %5 : vector<8x256xf32>
    %cst_5 = arith.constant 0.000000e+00 : f32
    %7 = vector.broadcast %cst_5 : f32 to vector<8x256xf32>
    %8 = arith.cmpf oge, %6, %7 : vector<8x256xf32>
    %cst_6 = arith.constant 2.000000e-01 : f32
    %9 = vector.broadcast %cst_6 : f32 to vector<8x256xf32>
    %10 = arith.mulf %9, %6 : vector<8x256xf32>
    %11 = arith.select %8, %6, %10 : vector<8x256xi1>, vector<8x256xf32>
    %12 = arith.truncf %11 : vector<8x256xf32> to vector<8x256xbf16>
    %c0_7 = arith.constant 0 : index
    %c0_8 = arith.constant 0 : index
    %13 = vector.load %arg2[%c0_7, %c0_8] : memref<256x512xbf16, #tpu.memory_space<vmem>>, vector<256x512xbf16>
    %cst_9 = arith.constant dense<0.000000e+00> : vector<8x512xf32>
    %14 = tpu.matmul %12, %13, %cst_9 {dimension_numbers = #tpu.dot_dimension_numbers<[1], [0], [0], [1], [0, 0, 1, 1], [], []>} : vector<8x256xbf16>, vector<256x512xbf16>, vector<8x512xf32> -> vector<8x512xf32>
    %c1 = arith.constant 1 : index
    %c0_10 = arith.constant 0 : index
    %15 = vector.load %arg6[%c1, %c0_10] : memref<11x2048xf32, #tpu.memory_space<vmem>>, vector<1x512xf32>
    %c2 = arith.constant 2 : index
    %c0_11 = arith.constant 0 : index
    %16 = vector.load %arg6[%c2, %c0_11] : memref<11x2048xf32, #tpu.memory_space<vmem>>, vector<1x512xf32>
    %cst_12 = arith.constant dense<0.000000e+00> : vector<512xf32>
    %17 = vector.multi_reduction <add>, %14, %cst_12 [0] : vector<8x512xf32> to vector<512xf32>
    %18 = vector.shape_cast %17 : vector<512xf32> to vector<1x512xf32>
    %cst_13 = arith.constant 8.000000e+00 : f32
    %19 = vector.broadcast %cst_13 : f32 to vector<1x512xf32>
    %20 = arith.divf %18, %19 : vector<1x512xf32>
    %21 = vector.broadcast %20 : vector<1x512xf32> to vector<8x512xf32>
    %22 = arith.subf %14, %21 : vector<8x512xf32>
    %23 = arith.mulf %22, %22 : vector<8x512xf32>
    %cst_14 = arith.constant dense<0.000000e+00> : vector<512xf32>
    %24 = vector.multi_reduction <add>, %23, %cst_14 [0] : vector<8x512xf32> to vector<512xf32>
    %25 = vector.shape_cast %24 : vector<512xf32> to vector<1x512xf32>
    %cst_15 = arith.constant 8.000000e+00 : f32
    %26 = vector.broadcast %cst_15 : f32 to vector<1x512xf32>
    %27 = arith.divf %25, %26 : vector<1x512xf32>
    %28 = vector.broadcast %20 : vector<1x512xf32> to vector<8x512xf32>
    %29 = arith.subf %14, %28 : vector<8x512xf32>
    %cst_16 = arith.constant 8.000000e-01 : f32
    %30 = vector.broadcast %cst_16 : f32 to vector<1x512xf32>
    %31 = arith.addf %27, %30 : vector<1x512xf32>
    %32 = math.rsqrt %31 : vector<1x512xf32>
    %33 = vector.broadcast %32 : vector<1x512xf32> to vector<8x512xf32>
    %34 = arith.mulf %29, %33 : vector<8x512xf32>
    %35 = vector.broadcast %15 : vector<1x512xf32> to vector<8x512xf32>
    %36 = arith.mulf %34, %35 : vector<8x512xf32>
    %37 = vector.broadcast %16 : vector<1x512xf32> to vector<8x512xf32>
    %38 = arith.addf %36, %37 : vector<8x512xf32>
    %cst_17 = arith.constant 0.000000e+00 : f32
    %39 = vector.broadcast %cst_17 : f32 to vector<8x512xf32>
    %40 = arith.cmpf oge, %38, %39 : vector<8x512xf32>
    %cst_18 = arith.constant 2.000000e-01 : f32
    %41 = vector.broadcast %cst_18 : f32 to vector<8x512xf32>
    %42 = arith.mulf %41, %38 : vector<8x512xf32>
    %43 = arith.select %40, %38, %42 : vector<8x512xi1>, vector<8x512xf32>
    %44 = arith.truncf %43 : vector<8x512xf32> to vector<8x512xbf16>
    %c0_19 = arith.constant 0 : index
    %c0_20 = arith.constant 0 : index
    %45 = vector.load %arg3[%c0_19, %c0_20] : memref<512x1024xi8, #tpu.memory_space<vmem>>, vector<512x1024xi8>
    %46 = arith.sitofp %45 : vector<512x1024xi8> to vector<512x1024xbf16>
    %cst_21 = arith.constant dense<0.000000e+00> : vector<8x1024xf32>
    %47 = tpu.matmul %44, %46, %cst_21 {dimension_numbers = #tpu.dot_dimension_numbers<[1], [0], [0], [1], [0, 0, 1, 1], [], []>} : vector<8x512xbf16>, vector<512x1024xbf16>, vector<8x1024xf32> -> vector<8x1024xf32>
    %c8 = arith.constant 8 : index
    %c0_22 = arith.constant 0 : index
    %48 = vector.load %arg6[%c8, %c0_22] : memref<11x2048xf32, #tpu.memory_space<vmem>>, vector<1x1024xf32>
    %49 = vector.broadcast %48 : vector<1x1024xf32> to vector<8x1024xf32>
    %50 = arith.mulf %47, %49 : vector<8x1024xf32>
    %c3 = arith.constant 3 : index
    %c0_23 = arith.constant 0 : index
    %51 = vector.load %arg6[%c3, %c0_23] : memref<11x2048xf32, #tpu.memory_space<vmem>>, vector<1x1024xf32>
    %c4 = arith.constant 4 : index
    %c0_24 = arith.constant 0 : index
    %52 = vector.load %arg6[%c4, %c0_24] : memref<11x2048xf32, #tpu.memory_space<vmem>>, vector<1x1024xf32>
    %cst_25 = arith.constant dense<0.000000e+00> : vector<1024xf32>
    %53 = vector.multi_reduction <add>, %50, %cst_25 [0] : vector<8x1024xf32> to vector<1024xf32>
    %54 = vector.shape_cast %53 : vector<1024xf32> to vector<1x1024xf32>
    %cst_26 = arith.constant 8.000000e+00 : f32
    %55 = vector.broadcast %cst_26 : f32 to vector<1x1024xf32>
    %56 = arith.divf %54, %55 : vector<1x1024xf32>
    %57 = vector.broadcast %56 : vector<1x1024xf32> to vector<8x1024xf32>
    %58 = arith.subf %50, %57 : vector<8x1024xf32>
    %59 = arith.mulf %58, %58 : vector<8x1024xf32>
    %cst_27 = arith.constant dense<0.000000e+00> : vector<1024xf32>
    %60 = vector.multi_reduction <add>, %59, %cst_27 [0] : vector<8x1024xf32> to vector<1024xf32>
    %61 = vector.shape_cast %60 : vector<1024xf32> to vector<1x1024xf32>
    %cst_28 = arith.constant 8.000000e+00 : f32
    %62 = vector.broadcast %cst_28 : f32 to vector<1x1024xf32>
    %63 = arith.divf %61, %62 : vector<1x1024xf32>
    %64 = vector.broadcast %56 : vector<1x1024xf32> to vector<8x1024xf32>
    %65 = arith.subf %50, %64 : vector<8x1024xf32>
    %cst_29 = arith.constant 8.000000e-01 : f32
    %66 = vector.broadcast %cst_29 : f32 to vector<1x1024xf32>
    %67 = arith.addf %63, %66 : vector<1x1024xf32>
    %68 = math.rsqrt %67 : vector<1x1024xf32>
    %69 = vector.broadcast %68 : vector<1x1024xf32> to vector<8x1024xf32>
    %70 = arith.mulf %65, %69 : vector<8x1024xf32>
    %71 = vector.broadcast %51 : vector<1x1024xf32> to vector<8x1024xf32>
    %72 = arith.mulf %70, %71 : vector<8x1024xf32>
    %73 = vector.broadcast %52 : vector<1x1024xf32> to vector<8x1024xf32>
    %74 = arith.addf %72, %73 : vector<8x1024xf32>
    %cst_30 = arith.constant 0.000000e+00 : f32
    %75 = vector.broadcast %cst_30 : f32 to vector<8x1024xf32>
    %76 = arith.cmpf oge, %74, %75 : vector<8x1024xf32>
    %cst_31 = arith.constant 2.000000e-01 : f32
    %77 = vector.broadcast %cst_31 : f32 to vector<8x1024xf32>
    %78 = arith.mulf %77, %74 : vector<8x1024xf32>
    %79 = arith.select %76, %74, %78 : vector<8x1024xi1>, vector<8x1024xf32>
    %80 = arith.truncf %79 : vector<8x1024xf32> to vector<8x1024xbf16>
    %c0_32 = arith.constant 0 : index
    %c0_33 = arith.constant 0 : index
    %81 = vector.load %arg4[%c0_32, %c0_33] : memref<1024x2048xi8, #tpu.memory_space<vmem>>, vector<1024x2048xi8>
    %82 = arith.sitofp %81 : vector<1024x2048xi8> to vector<1024x2048xbf16>
    %cst_34 = arith.constant dense<0.000000e+00> : vector<8x2048xf32>
    %83 = tpu.matmul %80, %82, %cst_34 {dimension_numbers = #tpu.dot_dimension_numbers<[1], [0], [0], [1], [0, 0, 1, 1], [], []>} : vector<8x1024xbf16>, vector<1024x2048xbf16>, vector<8x2048xf32> -> vector<8x2048xf32>
    %c9 = arith.constant 9 : index
    %c0_35 = arith.constant 0 : index
    %84 = vector.load %arg6[%c9, %c0_35] : memref<11x2048xf32, #tpu.memory_space<vmem>>, vector<1x2048xf32>
    %85 = vector.broadcast %84 : vector<1x2048xf32> to vector<8x2048xf32>
    %86 = arith.mulf %83, %85 : vector<8x2048xf32>
    %c5 = arith.constant 5 : index
    %c0_36 = arith.constant 0 : index
    %87 = vector.load %arg6[%c5, %c0_36] : memref<11x2048xf32, #tpu.memory_space<vmem>>, vector<1x2048xf32>
    %c6 = arith.constant 6 : index
    %c0_37 = arith.constant 0 : index
    %88 = vector.load %arg6[%c6, %c0_37] : memref<11x2048xf32, #tpu.memory_space<vmem>>, vector<1x2048xf32>
    %cst_38 = arith.constant dense<0.000000e+00> : vector<2048xf32>
    %89 = vector.multi_reduction <add>, %86, %cst_38 [0] : vector<8x2048xf32> to vector<2048xf32>
    %90 = vector.shape_cast %89 : vector<2048xf32> to vector<1x2048xf32>
    %cst_39 = arith.constant 8.000000e+00 : f32
    %91 = vector.broadcast %cst_39 : f32 to vector<1x2048xf32>
    %92 = arith.divf %90, %91 : vector<1x2048xf32>
    %93 = vector.broadcast %92 : vector<1x2048xf32> to vector<8x2048xf32>
    %94 = arith.subf %86, %93 : vector<8x2048xf32>
    %95 = arith.mulf %94, %94 : vector<8x2048xf32>
    %cst_40 = arith.constant dense<0.000000e+00> : vector<2048xf32>
    %96 = vector.multi_reduction <add>, %95, %cst_40 [0] : vector<8x2048xf32> to vector<2048xf32>
    %97 = vector.shape_cast %96 : vector<2048xf32> to vector<1x2048xf32>
    %cst_41 = arith.constant 8.000000e+00 : f32
    %98 = vector.broadcast %cst_41 : f32 to vector<1x2048xf32>
    %99 = arith.divf %97, %98 : vector<1x2048xf32>
    %100 = vector.broadcast %92 : vector<1x2048xf32> to vector<8x2048xf32>
    %101 = arith.subf %86, %100 : vector<8x2048xf32>
    %cst_42 = arith.constant 8.000000e-01 : f32
    %102 = vector.broadcast %cst_42 : f32 to vector<1x2048xf32>
    %103 = arith.addf %99, %102 : vector<1x2048xf32>
    %104 = math.rsqrt %103 : vector<1x2048xf32>
    %105 = vector.broadcast %104 : vector<1x2048xf32> to vector<8x2048xf32>
    %106 = arith.mulf %101, %105 : vector<8x2048xf32>
    %107 = vector.broadcast %87 : vector<1x2048xf32> to vector<8x2048xf32>
    %108 = arith.mulf %106, %107 : vector<8x2048xf32>
    %109 = vector.broadcast %88 : vector<1x2048xf32> to vector<8x2048xf32>
    %110 = arith.addf %108, %109 : vector<8x2048xf32>
    %cst_43 = arith.constant 0.000000e+00 : f32
    %111 = vector.broadcast %cst_43 : f32 to vector<8x2048xf32>
    %112 = arith.cmpf oge, %110, %111 : vector<8x2048xf32>
    %cst_44 = arith.constant 2.000000e-01 : f32
    %113 = vector.broadcast %cst_44 : f32 to vector<8x2048xf32>
    %114 = arith.mulf %113, %110 : vector<8x2048xf32>
    %115 = arith.select %112, %110, %114 : vector<8x2048xi1>, vector<8x2048xf32>
    %116 = arith.truncf %115 : vector<8x2048xf32> to vector<8x2048xbf16>
    %c0_45 = arith.constant 0 : index
    %c0_46 = arith.constant 0 : index
    %117 = vector.load %arg5[%c0_45, %c0_46] : memref<2048x512xi8, #tpu.memory_space<vmem>>, vector<2048x512xi8>
    %118 = arith.sitofp %117 : vector<2048x512xi8> to vector<2048x512xbf16>
    %cst_47 = arith.constant dense<0.000000e+00> : vector<8x512xf32>
    %119 = tpu.matmul %116, %118, %cst_47 {dimension_numbers = #tpu.dot_dimension_numbers<[1], [0], [0], [1], [0, 0, 1, 1], [], []>} : vector<8x2048xbf16>, vector<2048x512xbf16>, vector<8x512xf32> -> vector<8x512xf32>
    %c10 = arith.constant 10 : index
    %c0_48 = arith.constant 0 : index
    %120 = vector.load %arg6[%c10, %c0_48] : memref<11x2048xf32, #tpu.memory_space<vmem>>, vector<1x512xf32>
    %121 = vector.broadcast %120 : vector<1x512xf32> to vector<8x512xf32>
    %122 = arith.mulf %119, %121 : vector<8x512xf32>
    %c7 = arith.constant 7 : index
    %c0_49 = arith.constant 0 : index
    %123 = vector.load %arg6[%c7, %c0_49] : memref<11x2048xf32, #tpu.memory_space<vmem>>, vector<1x512xf32>
    %124 = vector.broadcast %123 : vector<1x512xf32> to vector<8x512xf32>
    %125 = arith.addf %122, %124 : vector<8x512xf32>
    %126 = math.tanh %125 : vector<8x512xf32>
    %c0_50 = arith.constant 0 : index
    %c0_51 = arith.constant 0 : index
    %127 = vector.load %arg7[%c0_50, %c0_51] : memref<8x512xf32, #tpu.memory_space<vmem>>, vector<8x512xf32>
    tpu.vector_store %arg7[%c0_50, %c0_51], %126 {strides = array<i32>} : memref<8x512xf32, #tpu.memory_space<vmem>>, vector<8x512xf32>,
    return
  }
}

</mosaic_0001>

<bundles_post_ra>
// kernel: tpu_custom_call.1
= control target key start
LH: loop header
LB: loop body
LE: loop exit
PB: predicated region body
PF: predicated region fallthrough
CT: control target
= control target key end

     0   :  { %12 = vsyncpa [#allocation3], 0  ;;  %s8368_s0 = inlined_call_operand.hbm [shape: f32[8,128], index: 0, kind: input, shape index: {}]   ;;  %s8369_s1 = inlined_call_operand.hbm [shape: bf16[128,256], index: 1, kind: input, shape index: {}]   ;;  %s8370_s2 = inlined_call_operand.hbm [shape: bf16[256,512], index: 2, kind: input, shape index: {}]   ;;  %s8371_s3 = inlined_call_operand.hbm [shape: s8[512,1024], index: 3, kind: input, shape index: {}]   ;;  %s8372_s4 = inlined_call_operand.hbm [shape: s8[1024,2048], index: 4, kind: input, shape index: {}]   ;;  %s8373_s5 = inlined_call_operand.hbm [shape: s8[2048,512], index: 5, kind: input, shape index: {}]   ;;  %s8374_s6 = inlined_call_operand.hbm [shape: f32[11,2048], index: 6, kind: input, shape index: {}]   ;;  %s8375_s7 = inlined_call_operand.hbm [shape: f32[8,512], index: 7, kind: output, shape index: {}]  }
   0x1   :  { %13 = vsyncpa [#allocation6], 0 }
   0x2   :  { %14 = vsyncpa [#allocation9], 0 }
   0x3   :  { %15 = vsyncpa [#allocation12], 0 }
   0x4   :  { %16 = vsyncpa [#allocation4], 0  ;;  %s7622_s24 = smov [#allocation5]   ;;  %s7436_s28 = scalar_lea.hbm %s8369_s1, 2048 }
   0x5   :  { %s32_s25 = sshll.u32 %s7622_s24, 4  ;;  %p7437_p0 = scmp.ne.s32.totalorder %s8369_s1, %s7436_s28  ;;  %s33_s25 = int_to_ptr.vmem [resolvable:$true] %s32_s25 }
   0x6   :  { %p7440_p1 = scmp.lt.u32.totalorder %s7436_s28, %s8369_s1 }
   0x8   :  { %p7442_p2 = pnand %p7440_p1, %p7437_p0 }
   0xa   :  { %7445 = shalt.err (!%p7442_p2)
}
   0xb   :  { %s7446_s10 = scalar_lea.vmem %s33_s25, 2048  ;;  %p7451_p4 = scmp.lt.s32.totalorder %s33_s25, %s33_s25 }
   0xc   :  { %p7447_p3 = scmp.ne.s32.totalorder %s33_s25, %s7446_s10  ;;  %p7452_p5 = scmp.lt.s32.totalorder %s7446_s10, %s7446_s10 }
   0xe   :  { %p7453_p6 = por %p7452_p5, %p7451_p4 }
  0x10   :  { %p7454_p7 = pnand %p7453_p6, %p7447_p3 }
  0x12   :  { %7457 = shalt.err (!%p7454_p7)
}
  0x13   :  { %s7623_s11 = smov 128   ;;  %s7624_s12 = smov 8  }
  0x14   :  { %38 = dma.hbm_to_vmem [thread:$0]  %s8369_s1, 2048, %s33_s25, [#allocation6], %s7623_s11, %s7623_s11, %s7624_s12  }
  0x15   :  { %s7625_s15 = smov [#allocation8]   ;;  %s7458_s19 = scalar_lea.hbm %s8371_s3, 16384 }
  0x16   :  { %s56_s16 = sshll.u32 %s7625_s15, 4  ;;  %p7459_p8 = scmp.ne.s32.totalorder %s8371_s3, %s7458_s19  ;;  %s57_s16 = int_to_ptr.vmem [resolvable:$true] %s56_s16 }
  0x17   :  { %p7462_p9 = scmp.lt.u32.totalorder %s7458_s19, %s8371_s3 }
  0x19   :  { %p7464_p10 = pnand %p7462_p9, %p7459_p8 }
  0x1b   :  { %7467 = shalt.err (!%p7464_p10)
}
  0x1c   :  { %s7468_s24 = scalar_lea.vmem %s57_s16, 16384  ;;  %p7473_p12 = scmp.lt.s32.totalorder %s57_s16, %s57_s16 }
  0x1d   :  { %p7469_p11 = scmp.ne.s32.totalorder %s57_s16, %s7468_s24  ;;  %p7474_p13 = scmp.lt.s32.totalorder %s7468_s24, %s7468_s24 }
  0x1f   :  { %p7475_p0 = por %p7474_p13, %p7473_p12 }
  0x21   :  { %p7476_p1 = pnand %p7475_p0, %p7469_p11 }
  0x23   :  { %7479 = shalt.err (!%p7476_p1)
}
  0x24   :  { %s7626_s1 = smov 1024   ;;  %s7627_s25 = smov 64  }
  0x25   :  { %62 = dma.hbm_to_vmem [thread:$0]  %s8371_s3, 16384, %s57_s16, [#allocation9], %s7626_s1, %s7626_s1, %s7627_s25  }
  0x26   :  { %s7628_s28 = smov [#allocation11]   ;;  %s7480_s9 = scalar_lea.hbm %s8373_s5, 32768 }
  0x27   :  { %s80_s29 = sshll.u32 %s7628_s28, 4  ;;  %p7481_p2 = scmp.ne.s32.totalorder %s8373_s5, %s7480_s9  ;;  %s81_s29 = int_to_ptr.vmem [resolvable:$true] %s80_s29 }
  0x28   :  { %p7484_p3 = scmp.lt.u32.totalorder %s7480_s9, %s8373_s5 }
  0x2a   :  { %p7486_p4 = pnand %p7484_p3, %p7481_p2 }
  0x2c   :  { %7489 = shalt.err (!%p7486_p4)
}
  0x2d   :  { %s7490_s15 = scalar_lea.vmem %s81_s29, 32768  ;;  %p7495_p6 = scmp.lt.s32.totalorder %s81_s29, %s81_s29 }
  0x2e   :  { %p7491_p5 = scmp.ne.s32.totalorder %s81_s29, %s7490_s15  ;;  %p7496_p7 = scmp.lt.s32.totalorder %s7490_s15, %s7490_s15 }
  0x30   :  { %p7497_p8 = por %p7496_p7, %p7495_p6 }
  0x32   :  { %p7498_p9 = pnand %p7497_p8, %p7491_p5 }
  0x34   :  { %7501 = shalt.err (!%p7498_p9)
}
  0x35   :  { %s7629_s3 = smov 512   ;;  %s7630_s16 = smov 32  }
  0x36   :  { %86 = dma.hbm_to_vmem [thread:$0]  %s8373_s5, 32768, %s81_s29, [#allocation12], %s7629_s3, %s7629_s3, %s7630_s16  }
  0x37   :  { %s7631_s19 = smov [#allocation2]   ;;  %s7632_s21 = smov [#allocation7]  }
  0x38   :  { %s23_s20 = sshll.u32 %s7631_s19, 4  ;;  %s44_s22 = sshll.u32 %s7632_s21, 4  ;;  %s24_s20 = int_to_ptr.vmem [resolvable:$true] %s23_s20  ;;  %s45_s22 = int_to_ptr.vmem [resolvable:$true] %s44_s22 }
  0x39   :  { %s7502_s1 = scalar_lea.hbm %s8368_s0, 128 }
  0x3a   :  { %p7503_p10 = scmp.ne.s32.totalorder %s8368_s0, %s7502_s1  ;;  %p7506_p11 = scmp.lt.u32.totalorder %s7502_s1, %s8368_s0 }
  0x3c   :  { %p7508_p12 = pnand %p7506_p11, %p7503_p10 }
  0x3e   :  { %7511 = shalt.err (!%p7508_p12)
}
  0x3f   :  { %s7512_s5 = scalar_lea.vmem %s24_s20, 128  ;;  %p7517_p0 = scmp.lt.s32.totalorder %s24_s20, %s24_s20 }
  0x40   :  { %p7513_p13 = scmp.ne.s32.totalorder %s24_s20, %s7512_s5  ;;  %p7518_p1 = scmp.lt.s32.totalorder %s7512_s5, %s7512_s5 }
  0x42   :  { %p7519_p2 = por %p7518_p1, %p7517_p0 }
  0x44   :  { %p7520_p3 = pnand %p7519_p2, %p7513_p13 }
  0x46   :  { %7523 = shalt.err (!%p7520_p3)
}
  0x47   :  { %26 = dma.hbm_to_vmem [thread:$0]  %s8368_s0, 128, %s24_s20, [#allocation3]  }
  0x48   :  { %s7524_s10 = scalar_lea.hbm %s8370_s2, 8192 }
  0x49   :  { %p7525_p4 = scmp.ne.s32.totalorder %s8370_s2, %s7524_s10  ;;  %p7528_p5 = scmp.lt.u32.totalorder %s7524_s10, %s8370_s2 }
  0x4b   :  { %p7530_p6 = pnand %p7528_p5, %p7525_p4 }
  0x4d   :  { %7533 = shalt.err (!%p7530_p6)
}
  0x4e   :  { %s7534_s3 = scalar_lea.vmem %s45_s22, 8192  ;;  %p7539_p8 = scmp.lt.s32.totalorder %s45_s22, %s45_s22 }
  0x4f   :  { %p7535_p7 = scmp.ne.s32.totalorder %s45_s22, %s7534_s3  ;;  %p7540_p9 = scmp.lt.s32.totalorder %s7534_s3, %s7534_s3 }
  0x51   :  { %p7541_p10 = por %p7540_p9, %p7539_p8 }
  0x53   :  { %p7542_p11 = pnand %p7541_p10, %p7535_p7 }
  0x55   :  { %7545 = shalt.err (!%p7542_p11)
}
  0x56   :  { %s7633_s0 = smov 256   ;;  %s7634_s16 = smov 16  }
  0x57   :  { %50 = dma.hbm_to_vmem [thread:$0]  %s8370_s2, 8192, %s45_s22, [#allocation6], %s7633_s0, %s7633_s0, %s7634_s16  }
  0x58   :  { %s7635_s19 = smov [#allocation10]   ;;  %s7546_s24 = scalar_lea.hbm %s8372_s4, 65536 }
  0x59   :  { %s68_s20 = sshll.u32 %s7635_s19, 4  ;;  %p7547_p12 = scmp.ne.s32.totalorder %s8372_s4, %s7546_s24  ;;  %s69_s20 = int_to_ptr.vmem [resolvable:$true] %s68_s20 }
  0x5a   :  { %p7550_p13 = scmp.lt.u32.totalorder %s7546_s24, %s8372_s4 }
  0x5c   :  { %p7552_p0 = pnand %p7550_p13, %p7547_p12 }
  0x5e   :  { %7555 = shalt.err (!%p7552_p0)
}
  0x5f   :  { %s7556_s28 = scalar_lea.vmem %s69_s20, 65536  ;;  %p7561_p2 = scmp.lt.s32.totalorder %s69_s20, %s69_s20 }
  0x60   :  { %p7557_p1 = scmp.ne.s32.totalorder %s69_s20, %s7556_s28  ;;  %p7562_p3 = scmp.lt.s32.totalorder %s7556_s28, %s7556_s28 }
  0x62   :  { %p7563_p4 = por %p7562_p3, %p7561_p2 }
  0x64   :  { %p7564_p5 = pnand %p7563_p4, %p7557_p1 }
  0x66   :  { %7567 = shalt.err (!%p7564_p5)
}
  0x67   :  { %s7636_s2 = smov 2048   ;;  %s7637_s29 = smov [#allocation13]  }
  0x68   :  { %74 = dma.hbm_to_vmem [thread:$0]  %s8372_s4, 65536, %s69_s20, [#allocation9], %s7636_s2, %s7636_s2, %s7623_s11  }
  0x69   :  { %s92_s30 = sshll.u32 %s7637_s29, 4  ;;  %s7568_s10 = scalar_lea.hbm %s8374_s6, 4096  ;;  %s93_s30 = int_to_ptr.vmem [resolvable:$true] %s92_s30 }
  0x6a   :  { %p7569_p6 = scmp.ne.s32.totalorder %s8374_s6, %s7568_s10  ;;  %p7572_p7 = scmp.lt.u32.totalorder %s7568_s10, %s8374_s6 }
  0x6c   :  { %p7574_p8 = pnand %p7572_p7, %p7569_p6 }
  0x6e   :  { %7577 = shalt.err (!%p7574_p8)
}
  0x6f   :  { %s7578_s3 = scalar_lea.vmem %s93_s30, 4096  ;;  %p7583_p10 = scmp.lt.s32.totalorder %s93_s30, %s93_s30 }
  0x70   :  { %p7579_p9 = scmp.ne.s32.totalorder %s93_s30, %s7578_s3  ;;  %p7584_p11 = scmp.lt.s32.totalorder %s7578_s3, %s7578_s3 }
  0x72   :  { %p7585_p12 = por %p7584_p11, %p7583_p10 }
  0x74   :  { %p7586_p13 = pnand %p7585_p12, %p7579_p9 }
  0x76   :  { %7589 = shalt.err (!%p7586_p13)
}
  0x77   :  { %98 = dma.hbm_to_vmem [thread:$0]  %s8374_s6, 4096, %s93_s30, [#allocation12], %s7636_s2, %s7636_s2, %s7623_s11  }
  0x78   :  { %7612 = dma.done.wait [#allocation3], 128  }
  0x79   :  { %7613 = vsyncadd [#allocation3], 4294967168 }
  0x7a   :  { %7614 = dma.done.wait [#allocation6], 10240  }
  0x7b   :  { %7615 = vsyncadd [#allocation6], 4294957056 }
  0x7c   :  { %7616 = dma.done.wait [#allocation9], 81920  }
  0x7d   :  { %7617 = vsyncadd [#allocation9], 4294885376 }
  0x7e   :  { %7618 = dma.done.wait [#allocation12], 36864  }
  0x7f   :  { %7619 = vsyncadd [#allocation12], 4294930432  ;;  %v7638_v0 = vmov 0   ;;  %v7252_v1 = vld [vmem:[#allocation5 + $0x4] ss:$8 sps:$4 sm:$0xff]   ;;  %v121_v26 = vld [vmem:[#allocation2] sm:$0xff] }
  0x80   :  { %263 = vmatprep.mubr.bf16.mxu0 %v7638_v0  ;;  %v7254_v2 = vld [vmem:[#allocation5] ss:$8 sps:$4 sm:$0xff]   ;;  %231 = vmatprep.subr.bf16.mxu0 %v7252_v1  ;;  %v7255_v3 = vld [vmem:[#allocation5 + $0x14] ss:$8 sps:$4 sm:$0xff]   ;;  %v7257_v4 = vld [vmem:[#allocation5 + $0x10] ss:$8 sps:$4 sm:$0xff]   ;;  %v122_v30 = vpack.c.bf16 %v121_v26, %v121_v26 }
  0x81   :  { %232 = vmatpush1.bf16.msra.mxu0 %v7254_v2  ;;  %v7258_v5 = vld [vmem:[#allocation5 + $0x24] ss:$8 sps:$4 sm:$0xff]   ;;  %v7260_v6 = vld [vmem:[#allocation5 + $0x20] ss:$8 sps:$4 sm:$0xff]   ;;  %v7261_v7 = vld [vmem:[#allocation5 + $0x34] ss:$8 sps:$4 sm:$0xff]  }
  0x82   :  { %233 = vmatprep.subr.bf16.mxu0 %v7255_v3  ;;  %v7263_v8 = vld [vmem:[#allocation5 + $0x30] ss:$8 sps:$4 sm:$0xff]   ;;  %v7276_v9 = vld [vmem:[#allocation7 + $0x4] ss:$16 sps:$4 sm:$0xff]   ;;  %v7266_v13 = vld [vmem:[#allocation5 + $0x40] ss:$8 sps:$4 sm:$0xff]  }
  0x83   :  { %v7264_v10 = vld [vmem:[#allocation5 + $0x44] ss:$8 sps:$4 sm:$0xff]   ;;  %664 = vmatprep.subr.bf16.mxu1 %v7276_v9  ;;  %v7281_v11 = vld [vmem:[#allocation7] ss:$16 sps:$4 sm:$0xff]   ;;  %v7267_v14 = vld [vmem:[#allocation5 + $0x54] ss:$8 sps:$4 sm:$0xff]  }
  0x84   :  { %v7282_v12 = vld [vmem:[#allocation7 + $0x24] ss:$16 sps:$4 sm:$0xff]   ;;  %665 = vmatpush1.bf16.msra.mxu1 %v7281_v11  ;;  %v7287_v15 = vld [vmem:[#allocation7 + $0x20] ss:$16 sps:$4 sm:$0xff]   ;;  %v7280_v27 = vld [vmem:[#allocation7 + $0xc] ss:$16 sps:$4 sm:$0xff]  }
  0x85   :  { %234 = vmatpush1.bf16.msra.mxu0 %v7257_v4  ;;  %666 = vmatprep.subr.bf16.mxu1 %v7282_v12  ;;  %v7288_v16 = vld [vmem:[#allocation7 + $0x44] ss:$16 sps:$4 sm:$0xff]   ;;  %v7269_v17 = vld [vmem:[#allocation5 + $0x50] ss:$8 sps:$4 sm:$0xff]   ;;  %v7272_v21 = vld [vmem:[#allocation5 + $0x60] ss:$8 sps:$4 sm:$0xff]  }
  0x86   :  { %235 = vmatprep.subr.bf16.mxu0 %v7258_v5  ;;  %v7270_v18 = vld [vmem:[#allocation5 + $0x64] ss:$8 sps:$4 sm:$0xff]   ;;  %v7293_v19 = vld [vmem:[#allocation7 + $0x40] ss:$16 sps:$4 sm:$0xff]   ;;  %v7273_v22 = vld [vmem:[#allocation5 + $0x74] ss:$8 sps:$4 sm:$0xff]  }
  0x87   :  { %v7294_v20 = vld [vmem:[#allocation7 + $0x64] ss:$16 sps:$4 sm:$0xff]   ;;  %v7299_v23 = vld [vmem:[#allocation7 + $0x60] ss:$16 sps:$4 sm:$0xff]   ;;  %v7278_v31 = vld [vmem:[#allocation7 + $0x8] ss:$16 sps:$4 sm:$0xff]  }
  0x88   :  { %667 = vmatpush1.bf16.msra.mxu1 %v7287_v15  ;;  %v7300_v24 = vld [vmem:[#allocation7 + $0x84] ss:$16 sps:$4 sm:$0xff]   ;;  %v7275_v25 = vld [vmem:[#allocation5 + $0x70] ss:$8 sps:$4 sm:$0xff]   ;;  %v7286_v32 = vld [vmem:[#allocation7 + $0x2c] ss:$16 sps:$4 sm:$0xff]  }
  0x89   :  { %236 = vmatpush1.bf16.msra.mxu0 %v7260_v6  ;;  %668 = vmatprep.subr.bf16.mxu1 %v7288_v16  ;;  %v7305_v28 = vld [vmem:[#allocation7 + $0x80] ss:$16 sps:$4 sm:$0xff]   ;;  %v7306_v29 = vld [vmem:[#allocation7 + $0xa4] ss:$16 sps:$4 sm:$0xff]   ;;  %v7284_v35 = vld [vmem:[#allocation7 + $0x28] ss:$16 sps:$4 sm:$0xff]  }
  0x8a   :  { %237 = vmatprep.subr.bf16.mxu0 %v7261_v7  ;;  %v7311_v33 = vld [vmem:[#allocation7 + $0xa0] ss:$16 sps:$4 sm:$0xff]   ;;  %v7312_v34 = vld [vmem:[#allocation7 + $0xc4] ss:$16 sps:$4 sm:$0xff]   ;;  %v7292_v36 = vld [vmem:[#allocation7 + $0x4c] ss:$16 sps:$4 sm:$0xff]  }
  0x8b   :  { %v7317_v37 = vld [vmem:[#allocation7 + $0xc0] ss:$16 sps:$4 sm:$0xff]   ;;  %v7318_v38 = vld [vmem:[#allocation7 + $0xe4] ss:$16 sps:$4 sm:$0xff]   ;;  %v7290_v39 = vld [vmem:[#allocation7 + $0x48] ss:$16 sps:$4 sm:$0xff]  }
  0x8c   :  { %669 = vmatpush1.bf16.msra.mxu1 %v7293_v19  ;;  %v7298_v40 = vld [vmem:[#allocation7 + $0x6c] ss:$16 sps:$4 sm:$0xff]   ;;  %v7323_v41 = vld [vmem:[#allocation7 + $0xe0] ss:$16 sps:$4 sm:$0xff]   ;;  %v7324_v42 = vld [vmem:[#allocation7 + $0x104] ss:$16 sps:$4 sm:$0xff]  }
  0x8d   :  { %238 = vmatpush1.bf16.msra.mxu0 %v7263_v8  ;;  %670 = vmatprep.subr.bf16.mxu1 %v7294_v20  ;;  %v7296_v43 = vld [vmem:[#allocation7 + $0x68] ss:$16 sps:$4 sm:$0xff]   ;;  %v7304_v44 = vld [vmem:[#allocation7 + $0x8c] ss:$16 sps:$4 sm:$0xff]   ;;  %v7329_v45 = vld [vmem:[#allocation7 + $0x100] ss:$16 sps:$4 sm:$0xff]  }
  0x8e   :  { %239 = vmatprep.subr.bf16.mxu0 %v7264_v10  ;;  %v7330_v46 = vld [vmem:[#allocation7 + $0x124] ss:$16 sps:$4 sm:$0xff]   ;;  %v7302_v47 = vld [vmem:[#allocation7 + $0x88] ss:$16 sps:$4 sm:$0xff]   ;;  %v7335_v48 = vld [vmem:[#allocation7 + $0x120] ss:$16 sps:$4 sm:$0xff]  }
  0x8f   :  { %v7310_v49 = vld [vmem:[#allocation7 + $0xac] ss:$16 sps:$4 sm:$0xff]   ;;  %v7336_v50 = vld [vmem:[#allocation7 + $0x144] ss:$16 sps:$4 sm:$0xff]   ;;  %v7308_v51 = vld [vmem:[#allocation7 + $0xa8] ss:$16 sps:$4 sm:$0xff]  }
  0x90   :  { %671 = vmatpush1.bf16.msra.mxu1 %v7299_v23  ;;  %v7341_v52 = vld [vmem:[#allocation7 + $0x140] ss:$16 sps:$4 sm:$0xff]   ;;  %v7316_v53 = vld [vmem:[#allocation7 + $0xcc] ss:$16 sps:$4 sm:$0xff]   ;;  %v7342_v54 = vld [vmem:[#allocation7 + $0x164] ss:$16 sps:$4 sm:$0xff]   ;;  %v141_v23 = vlaneseq }
  0x91   :  { %240 = vmatpush1.bf16.msra.mxu0 %v7266_v13  ;;  %672 = vmatprep.subr.bf16.mxu1 %v7300_v24  ;;  %v7314_v55 = vld [vmem:[#allocation7 + $0xc8] ss:$16 sps:$4 sm:$0xff]   ;;  %v7347_v56 = vld [vmem:[#allocation7 + $0x160] ss:$16 sps:$4 sm:$0xff]   ;;  %v7322_v57 = vld [vmem:[#allocation7 + $0xec] ss:$16 sps:$4 sm:$0xff]  }
  0x92   :  { %241 = vmatprep.subr.bf16.mxu0 %v7267_v14  ;;  %v7348_v58 = vld [vmem:[#allocation7 + $0x184] ss:$16 sps:$4 sm:$0xff]   ;;  %v7320_v59 = vld [vmem:[#allocation7 + $0xe8] ss:$16 sps:$4 sm:$0xff]   ;;  %v7353_v60 = vld [vmem:[#allocation7 + $0x180] ss:$16 sps:$4 sm:$0xff]  }
  0x93   :  { %v7328_v61 = vld [vmem:[#allocation7 + $0x10c] ss:$16 sps:$4 sm:$0xff]   ;;  %v7354_v62 = vld [vmem:[#allocation7 + $0x1a4] ss:$16 sps:$4 sm:$0xff]   ;;  %v7326_v63 = vld [vmem:[#allocation7 + $0x108] ss:$16 sps:$4 sm:$0xff]  }
  0x94   :  { %673 = vmatpush1.bf16.msra.mxu1 %v7305_v28  ;;  %v7359_v0 = vld [vmem:[#allocation7 + $0x1a0] ss:$16 sps:$4 sm:$0xff]   ;;  %v7334_v1 = vld [vmem:[#allocation7 + $0x12c] ss:$16 sps:$4 sm:$0xff]   ;;  %v7332_v2 = vld [vmem:[#allocation7 + $0x128] ss:$16 sps:$4 sm:$0xff]  }
  0x95   :  { %242 = vmatpush1.bf16.msra.mxu0 %v7269_v17  ;;  %674 = vmatprep.subr.bf16.mxu1 %v7306_v29  ;;  %v7340_v3 = vld [vmem:[#allocation7 + $0x14c] ss:$16 sps:$4 sm:$0xff]   ;;  %v7338_v4 = vld [vmem:[#allocation7 + $0x148] ss:$16 sps:$4 sm:$0xff]   ;;  %v7360_v11 = vld [vmem:[#allocation7 + $0x1c4] ss:$16 sps:$4 sm:$0xff]  }
  0x96   :  { %243 = vmatprep.subr.bf16.mxu0 %v7270_v18  ;;  %v7346_v5 = vld [vmem:[#allocation7 + $0x16c] ss:$16 sps:$4 sm:$0xff]   ;;  %v7344_v6 = vld [vmem:[#allocation7 + $0x168] ss:$16 sps:$4 sm:$0xff]   ;;  %v7365_v14 = vld [vmem:[#allocation7 + $0x1c0] ss:$16 sps:$4 sm:$0xff]  }
  0x97   :  { %v7352_v7 = vld [vmem:[#allocation7 + $0x18c] ss:$16 sps:$4 sm:$0xff]   ;;  %v7350_v8 = vld [vmem:[#allocation7 + $0x188] ss:$16 sps:$4 sm:$0xff]   ;;  %v7366_v15 = vld [vmem:[#allocation7 + $0x1e4] ss:$16 sps:$4 sm:$0xff]  }
  0x98   :  { %675 = vmatpush1.bf16.msra.mxu1 %v7311_v33  ;;  %v7358_v9 = vld [vmem:[#allocation7 + $0x1ac] ss:$16 sps:$4 sm:$0xff]   ;;  %v7356_v10 = vld [vmem:[#allocation7 + $0x1a8] ss:$16 sps:$4 sm:$0xff]   ;;  %v7371_v18 = vld [vmem:[#allocation7 + $0x1e0] ss:$16 sps:$4 sm:$0xff]  }
  0x99   :  { %244 = vmatpush1.bf16.msra.mxu0 %v7272_v21  ;;  %676 = vmatprep.subr.bf16.mxu1 %v7312_v34  ;;  %v7364_v12 = vld [vmem:[#allocation7 + $0x1cc] ss:$16 sps:$4 sm:$0xff]   ;;  %v7362_v13 = vld [vmem:[#allocation7 + $0x1c8] ss:$16 sps:$4 sm:$0xff]   ;;  %v7768_v24 = vshrl.u32 %v141_v23, 7  ;;  %s7639_s6 = smov [#allocation14]  }
  0x9a   :  { %245 = vmatprep.subr.bf16.mxu0 %v7273_v22  ;;  %v7368_v16 = vld [vmem:[#allocation7 + $0x1e8] ss:$16 sps:$4 sm:$0xff]   ;;  %v7370_v17 = vld [vmem:[#allocation7 + $0x1ec] ss:$16 sps:$4 sm:$0xff]   ;;  %s6974_s11 = sshll.u32 %s7639_s6, 4  ;;  %s6975_s11 = int_to_ptr.vmem [resolvable:$true] %s6974_s11 }
  0x9b   :  { %v894_v19 = vld [vmem:[#allocation8 + $0x8] sm:$0xff]  ;;  %v896_v20 = vld [vmem:[#allocation8 + $0x18] sm:$0xff]  ;;  %s7590_s16 = scalar_lea.vmem %s6975_s11, 512  ;;  %p7595_p1 = scmp.lt.s32.totalorder %s6975_s11, %s6975_s11 }
  0x9c   :  { %677 = vmatpush1.bf16.msra.mxu1 %v7317_v37  ;;  %v1022_v21 = vunpack.c.l.s8.bf16 %v894_v19  ;;  %v1024_v22 = vunpack.c.l.s8.bf16 %v896_v20  ;;  %v139_v26 = vld [vmem:[#allocation13] ss:$8 sm:$0x3]  ;;  %v928_v23 = vld [vmem:[#allocation8 + $0x118] sm:$0xff]  ;;  %p7591_p0 = scmp.ne.s32.totalorder %s6975_s11, %s7590_s16  ;;  %p7596_p2 = scmp.lt.s32.totalorder %s7590_s16, %s7590_s16 }
  0x9d   :  { %246 = vmatpush1.bf16.msra.mxu0 %v7275_v25  ;;  %678 = vmatprep.subr.bf16.mxu1 %v7318_v38  ;;  %v7771_v25 = vsub.s32 0, %v7768_v24  ;;  %v893_v38 = vld [vmem:[#allocation8] sm:$0xff] }
  0x9e   :  { %705 = vmatprep.subr.bf16.mxu0 %v7280_v27  ;;  %v7774_v27 = vsub.s32 1, %v7768_v24  ;;  %p7597_p3 = por %p7596_p2, %p7595_p1 }
  0x9f   :  { %v144_v28 = vrot.slane %v139_v26, %v7771_v25 }
  0xa0   :  { %264 = vmatmul.mubr.bf16.vlgmr.msra.gmra.mrb[0].mxu0 %v122_v30  ;;  %679 = vmatpush1.bf16.msra.mxu1 %v7323_v41  ;;  %v148_v29 = vrot.slane %v139_v26, %v7774_v27  ;;  %p7598_p4 = pnand %p7597_p3, %p7591_p0 }
  0xa1   :  { %706 = vmatpush1.bf16.msra.mxu0 %v7278_v31  ;;  %680 = vmatprep.subr.bf16.mxu1 %v7324_v42 }
  0xa2   :  { %707 = vmatprep.subr.bf16.mxu0 %v7286_v32 }
  0xa4   :  { %681 = vmatpush1.bf16.msra.mxu1 %v7329_v45 }
  0xa5   :  { %708 = vmatpush1.bf16.msra.mxu0 %v7284_v35  ;;  %682 = vmatprep.subr.bf16.mxu1 %v7330_v46  ;;  %v1030_v46 = vunpack.c.h.s8.bf16 %v894_v19 }
  0xa6   :  { %709 = vmatprep.subr.bf16.mxu0 %v7292_v36 }
  0xa8   :  { %683 = vmatpush1.bf16.msra.mxu1 %v7335_v48  ;;  %v1029_v48 = vunpack.c.h.s8.bf16 %v893_v38 }
  0xa9   :  { %710 = vmatpush1.bf16.msra.mxu0 %v7290_v39  ;;  %684 = vmatprep.subr.bf16.mxu1 %v7336_v50  ;;  %v895_v39 = vld [vmem:[#allocation8 + $0x10] sm:$0xff]  ;;  %v902_v50 = vld [vmem:[#allocation8 + $0x48] sm:$0xff] }
  0xaa   :  { %711 = vmatprep.subr.bf16.mxu0 %v7298_v40 }
  0xac   :  { %685 = vmatpush1.bf16.msra.mxu1 %v7341_v52  ;;  %v1038_v52 = vunpack.c.l.s8.bf16 %v902_v50 }
  0xad   :  { %712 = vmatpush1.bf16.msra.mxu0 %v7296_v43  ;;  %686 = vmatprep.subr.bf16.mxu1 %v7342_v54  ;;  %v1021_v43 = vunpack.c.l.s8.bf16 %v893_v38  ;;  %v901_v54 = vld [vmem:[#allocation8 + $0x40] sm:$0xff]  ;;  %v936_v38 = vld [vmem:[#allocation8 + $0x158] sm:$0xff] }
  0xae   :  { %713 = vmatprep.subr.bf16.mxu0 %v7304_v44  ;;  %v1023_v44 = vunpack.c.l.s8.bf16 %v895_v39 }
  0xb0   :  { %687 = vmatpush1.bf16.msra.mxu1 %v7347_v56  ;;  %v1037_v56 = vunpack.c.l.s8.bf16 %v901_v54 }
  0xb1   :  { %714 = vmatpush1.bf16.msra.mxu0 %v7302_v47  ;;  %688 = vmatprep.subr.bf16.mxu1 %v7348_v58  ;;  %v1032_v47 = vunpack.c.h.s8.bf16 %v896_v20  ;;  %v1046_v58 = vunpack.c.h.s8.bf16 %v902_v50  ;;  %v944_v50 = vld [vmem:[#allocation8 + $0x198] sm:$0xff] }
  0xb2   :  { %715 = vmatprep.subr.bf16.mxu0 %v7310_v49  ;;  %v1031_v49 = vunpack.c.h.s8.bf16 %v895_v39 }
  0xb4   :  { %689 = vmatpush1.bf16.msra.mxu1 %v7353_v60  ;;  %v1045_v60 = vunpack.c.h.s8.bf16 %v901_v54  ;;  %v943_v54 = vld [vmem:[#allocation8 + $0x190] sm:$0xff] }
  0xb5   :  { %716 = vmatpush1.bf16.msra.mxu0 %v7308_v51  ;;  %690 = vmatprep.subr.bf16.mxu1 %v7354_v62  ;;  %v904_v51 = vld [vmem:[#allocation8 + $0x58] sm:$0xff]  ;;  %v910_v62 = vld [vmem:[#allocation8 + $0x88] sm:$0xff] }
  0xb6   :  { %717 = vmatprep.subr.bf16.mxu0 %v7316_v53  ;;  %v1040_v53 = vunpack.c.l.s8.bf16 %v904_v51 }
  0xb8   :  { %691 = vmatpush1.bf16.msra.mxu1 %v7359_v0  ;;  %v1054_v0 = vunpack.c.l.s8.bf16 %v910_v62 }
  0xb9   :  { %718 = vmatpush1.bf16.msra.mxu0 %v7314_v55  ;;  %692 = vmatprep.subr.bf16.mxu1 %v7360_v11  ;;  %v903_v55 = vld [vmem:[#allocation8 + $0x50] sm:$0xff]  ;;  %v920_v11 = vld [vmem:[#allocation8 + $0xd8] sm:$0xff] }
  0xba   :  { %719 = vmatprep.subr.bf16.mxu0 %v7322_v57  ;;  %v1039_v57 = vunpack.c.l.s8.bf16 %v903_v55  ;;  %v1080_v19 = vunpack.c.h.s8.bf16 %v920_v11 }
  0xbc   :  { %693 = vmatpush1.bf16.msra.mxu1 %v7365_v14  ;;  %v917_v14 = vld [vmem:[#allocation8 + $0xc0] sm:$0xff] }
  0xbd   :  { %720 = vmatpush1.bf16.msra.mxu0 %v7320_v59  ;;  %694 = vmatprep.subr.bf16.mxu1 %v7366_v15  ;;  %v1048_v59 = vunpack.c.h.s8.bf16 %v904_v51  ;;  %v919_v15 = vld [vmem:[#allocation8 + $0xd0] sm:$0xff]  ;;  %v1077_v20 = vunpack.c.h.s8.bf16 %v917_v14 }
  0xbe   :  { %721 = vmatprep.subr.bf16.mxu0 %v7328_v61  ;;  %v1047_v61 = vunpack.c.h.s8.bf16 %v903_v55 }
  0xc0   :  { %695 = vmatpush1.bf16.msra.mxu1 %v7371_v18 }
  0xc1   :  { %722 = vmatpush1.bf16.msra.mxu0 %v7326_v63  ;;  %1277 = vmatprep.subr.bf16.mxu1 %v1022_v21  ;;  %v912_v63 = vld [vmem:[#allocation8 + $0x98] sm:$0xff]  ;;  %v1079_v21 = vunpack.c.h.s8.bf16 %v919_v15 }
  0xc2   :  { %723 = vmatprep.subr.bf16.mxu0 %v7334_v1  ;;  %v1056_v1 = vunpack.c.l.s8.bf16 %v912_v63 }
  0xc5   :  { %724 = vmatpush1.bf16.msra.mxu0 %v7332_v2  ;;  %v909_v2 = vld [vmem:[#allocation8 + $0x80] sm:$0xff] }
  0xc6   :  { %725 = vmatprep.subr.bf16.mxu0 %v7340_v3  ;;  %v911_v3 = vld [vmem:[#allocation8 + $0x90] sm:$0xff] }
  0xc9   :  { %726 = vmatpush1.bf16.msra.mxu0 %v7338_v4  ;;  %v1053_v4 = vunpack.c.l.s8.bf16 %v909_v2 }
  0xca   :  { %727 = vmatprep.subr.bf16.mxu0 %v7346_v5  ;;  %v1055_v5 = vunpack.c.l.s8.bf16 %v911_v3 }
  0xcd   :  { %728 = vmatpush1.bf16.msra.mxu0 %v7344_v6  ;;  %v1062_v6 = vunpack.c.h.s8.bf16 %v910_v62  ;;  %v952_v62 = vld [vmem:[#allocation8 + $0x1d8] sm:$0xff] }
  0xce   :  { %729 = vmatprep.subr.bf16.mxu0 %v7352_v7  ;;  %v1064_v7 = vunpack.c.h.s8.bf16 %v912_v63 }
  0xd1   :  { %730 = vmatpush1.bf16.msra.mxu0 %v7350_v8  ;;  %v1061_v8 = vunpack.c.h.s8.bf16 %v909_v2  ;;  %v951_v2 = vld [vmem:[#allocation8 + $0x1d0] sm:$0xff] }
  0xd2   :  { %731 = vmatprep.subr.bf16.mxu0 %v7358_v9  ;;  %v1063_v9 = vunpack.c.h.s8.bf16 %v911_v3 }
  0xd5   :  { %732 = vmatpush1.bf16.msra.mxu0 %v7356_v10  ;;  %v918_v10 = vld [vmem:[#allocation8 + $0xc8] sm:$0xff] }
  0xd6   :  { %733 = vmatprep.subr.bf16.mxu0 %v7364_v12  ;;  %v1070_v12 = vunpack.c.l.s8.bf16 %v918_v10  ;;  %v1078_v18 = vunpack.c.h.s8.bf16 %v918_v10  ;;  %v7780_v10 = vld [vmem:[#allocation8 + $0x218] sm:$0xff] }
  0xd9   :  { %734 = vmatpush1.bf16.msra.mxu0 %v7362_v13  ;;  %v1072_v13 = vunpack.c.l.s8.bf16 %v920_v11 }
  0xda   :  { %735 = vmatprep.subr.bf16.mxu0 %v7370_v17  ;;  %v1071_v17 = vunpack.c.l.s8.bf16 %v919_v15 }
  0xdd   :  { %736 = vmatpush1.bf16.msra.mxu0 %v7368_v16  ;;  %v1069_v16 = vunpack.c.l.s8.bf16 %v917_v14 }
  0xde   :  { %1359 = vmatprep.subr.bf16.mxu0 %v1024_v22  ;;  %v926_v22 = vld [vmem:[#allocation8 + $0x108] sm:$0xff] }
  0xdf   :  { %v1086_v26 = vunpack.c.l.s8.bf16 %v926_v22 }
 0x173   :  { %v265_v30 = vpop.f32.mrb[0].mxu0 }
 0x174   :  { %v266_v31 = vadd.f32 %v265_v30, %v144_v28  ;;  %v267_v32 = vpop.f32.mrb[1].mxu0  ;;  %v1088_v28 = vunpack.c.l.s8.bf16 %v928_v23  ;;  %v927_v30 = vld [vmem:[#allocation8 + $0x110] sm:$0xff] }
 0x175   :  { %v268_v33 = vadd.f32 %v267_v32, %v148_v29  ;;  %v269_v34 = vpop.f32.mrb[2].mxu0  ;;  %v925_v29 = vld [vmem:[#allocation8 + $0x100] sm:$0xff]  ;;  %v1087_v32 = vunpack.c.l.s8.bf16 %v927_v30 }
 0x176   :  { %vm272_vm0 = vcmp.ge.f32.partialorder %v266_v31, 0.0  ;;  %v274_v35 = vmul.f32 0.2, %v266_v31  ;;  %v270_v36 = vpop.f32.mrb[3].mxu0  ;;  %v1096_v34 = vunpack.c.h.s8.bf16 %v928_v23 }
 0x177   :  { %v275_v37 = vmul.f32 0.2, %v268_v33  ;;  %vm273_vm1 = vcmp.ge.f32.partialorder %v268_v33, 0.0  ;;  %v1095_v36 = vunpack.c.h.s8.bf16 %v927_v30 }
 0x178   :  { %v276_v40 = vsel %vm272_vm0, %v266_v31, %v274_v35  ;;  %v1085_v31 = vunpack.c.l.s8.bf16 %v925_v29  ;;  %v1093_v35 = vunpack.c.h.s8.bf16 %v925_v29 }
 0x179   :  { %v277_v41 = vsel %vm273_vm1, %v268_v33, %v275_v37  ;;  %v278_v45 = vpack.c.bf16 %v276_v40, %v276_v40  ;;  %v1094_v33 = vunpack.c.h.s8.bf16 %v926_v22  ;;  %v934_v37 = vld [vmem:[#allocation8 + $0x148] sm:$0xff]  ;;  %v1104_v40 = vunpack.c.l.s8.bf16 %v936_v38 }
 0x17a   :  { %v279_v42 = vpack.c.bf16 %v277_v41, %v277_v41  ;;  %v1102_v39 = vunpack.c.l.s8.bf16 %v934_v37  ;;  %v933_v41 = vld [vmem:[#allocation8 + $0x140] sm:$0xff] }
 0x17c   :  { %696 = vmatprep.mubr.bf16.mxu1 %v279_v42  ;;  %737 = vmatprep.mubr.bf16.mxu0 %v279_v42  ;;  %v935_v42 = vld [vmem:[#allocation8 + $0x150] sm:$0xff] }
 0x17d   :  { %697 = vmatmul.mubr.bf16.vlgmr.msra.gmra.mrb[0].mxu1 %v278_v45  ;;  %738 = vmatmul.mubr.bf16.vlgmr.msra.gmra.mrb[4].mxu0 %v278_v45  ;;  %v1110_v45 = vunpack.c.h.s8.bf16 %v934_v37 }
 0x17e   :  { %1278 = vmatpush1.bf16.msra.mxu1 %v1021_v43  ;;  %1360 = vmatpush1.bf16.msra.mxu0 %v1023_v44  ;;  %v1101_v43 = vunpack.c.l.s8.bf16 %v933_v41  ;;  %v1103_v44 = vunpack.c.l.s8.bf16 %v935_v42 }
 0x17f   :  { %1279 = vmatprep.subr.bf16.mxu1 %v1030_v46  ;;  %1361 = vmatprep.subr.bf16.mxu0 %v1032_v47  ;;  %v1112_v46 = vunpack.c.h.s8.bf16 %v936_v38  ;;  %v1109_v47 = vunpack.c.h.s8.bf16 %v933_v41 }
 0x182   :  { %1280 = vmatpush1.bf16.msra.mxu1 %v1029_v48  ;;  %1362 = vmatpush1.bf16.msra.mxu0 %v1031_v49  ;;  %v1111_v48 = vunpack.c.h.s8.bf16 %v935_v42  ;;  %v942_v49 = vld [vmem:[#allocation8 + $0x188] sm:$0xff] }
 0x183   :  { %1281 = vmatprep.subr.bf16.mxu1 %v1038_v52  ;;  %1363 = vmatprep.subr.bf16.mxu0 %v1040_v53  ;;  %v1118_v51 = vunpack.c.l.s8.bf16 %v942_v49  ;;  %v1120_v52 = vunpack.c.l.s8.bf16 %v944_v50  ;;  %v941_v53 = vld [vmem:[#allocation8 + $0x180] sm:$0xff] }
 0x184   :  { %v1117_v55 = vunpack.c.l.s8.bf16 %v941_v53 }
 0x186   :  { %1282 = vmatpush1.bf16.msra.mxu1 %v1037_v56  ;;  %1364 = vmatpush1.bf16.msra.mxu0 %v1039_v57  ;;  %v1119_v56 = vunpack.c.l.s8.bf16 %v943_v54  ;;  %v1126_v57 = vunpack.c.h.s8.bf16 %v942_v49 }
 0x187   :  { %1283 = vmatprep.subr.bf16.mxu1 %v1046_v58  ;;  %1365 = vmatprep.subr.bf16.mxu0 %v1048_v59  ;;  %v1128_v58 = vunpack.c.h.s8.bf16 %v944_v50  ;;  %v1125_v59 = vunpack.c.h.s8.bf16 %v941_v53 }
 0x18a   :  { %1284 = vmatpush1.bf16.msra.mxu1 %v1045_v60  ;;  %1366 = vmatpush1.bf16.msra.mxu0 %v1047_v61  ;;  %v1127_v60 = vunpack.c.h.s8.bf16 %v943_v54  ;;  %v950_v61 = vld [vmem:[#allocation8 + $0x1c8] sm:$0xff] }
 0x18b   :  { %1285 = vmatprep.subr.bf16.mxu1 %v1054_v0  ;;  %1367 = vmatprep.subr.bf16.mxu0 %v1056_v1  ;;  %v1134_v63 = vunpack.c.l.s8.bf16 %v950_v61  ;;  %v1136_v0 = vunpack.c.l.s8.bf16 %v952_v62  ;;  %v949_v1 = vld [vmem:[#allocation8 + $0x1c0] sm:$0xff] }
 0x18c   :  { %v1133_v3 = vunpack.c.l.s8.bf16 %v949_v1 }
 0x18e   :  { %1286 = vmatpush1.bf16.msra.mxu1 %v1053_v4  ;;  %1368 = vmatpush1.bf16.msra.mxu0 %v1055_v5  ;;  %v1135_v4 = vunpack.c.l.s8.bf16 %v951_v2  ;;  %v1142_v5 = vunpack.c.h.s8.bf16 %v950_v61 }
 0x18f   :  { %1287 = vmatprep.subr.bf16.mxu1 %v1062_v6  ;;  %1369 = vmatprep.subr.bf16.mxu0 %v1064_v7  ;;  %v1144_v6 = vunpack.c.h.s8.bf16 %v952_v62  ;;  %v1141_v7 = vunpack.c.h.s8.bf16 %v949_v1 }
 0x192   :  { %1288 = vmatpush1.bf16.msra.mxu1 %v1061_v8  ;;  %1370 = vmatpush1.bf16.msra.mxu0 %v1063_v9  ;;  %v1143_v8 = vunpack.c.h.s8.bf16 %v951_v2  ;;  %v7778_v9 = vld [vmem:[#allocation8 + $0x208] sm:$0xff] }
 0x193   :  { %1289 = vmatprep.subr.bf16.mxu1 %v1070_v12  ;;  %1371 = vmatprep.subr.bf16.mxu0 %v1072_v13  ;;  %v1150_v11 = vunpack.c.l.s8.bf16 %v7778_v9  ;;  %v1152_v12 = vunpack.c.l.s8.bf16 %v7780_v10 }
 0x196   :  { %1290 = vmatpush1.bf16.msra.mxu1 %v1069_v16  ;;  %1372 = vmatpush1.bf16.msra.mxu0 %v1071_v17 }
 0x197   :  { %1291 = vmatprep.subr.bf16.mxu1 %v1078_v18  ;;  %1373 = vmatprep.subr.bf16.mxu0 %v1080_v19 }
 0x19a   :  { %1292 = vmatpush1.bf16.msra.mxu1 %v1077_v20  ;;  %1374 = vmatpush1.bf16.msra.mxu0 %v1079_v21 }
 0x19b   :  { %1293 = vmatprep.subr.bf16.mxu1 %v1086_v26  ;;  %1375 = vmatprep.subr.bf16.mxu0 %v1088_v28 }
 0x19e   :  { %1294 = vmatpush1.bf16.msra.mxu1 %v1085_v31  ;;  %1376 = vmatpush1.bf16.msra.mxu0 %v1087_v32 }
 0x19f   :  { %1295 = vmatprep.subr.bf16.mxu1 %v1094_v33  ;;  %1377 = vmatprep.subr.bf16.mxu0 %v1096_v34 }
 0x1a2   :  { %1296 = vmatpush1.bf16.msra.mxu1 %v1093_v35  ;;  %1378 = vmatpush1.bf16.msra.mxu0 %v1095_v36 }
 0x1a3   :  { %1297 = vmatprep.subr.bf16.mxu1 %v1102_v39  ;;  %1379 = vmatprep.subr.bf16.mxu0 %v1104_v40 }
 0x1a6   :  { %1298 = vmatpush1.bf16.msra.mxu1 %v1101_v43  ;;  %1380 = vmatpush1.bf16.msra.mxu0 %v1103_v44 }
 0x1a7   :  { %1299 = vmatprep.subr.bf16.mxu1 %v1110_v45  ;;  %1381 = vmatprep.subr.bf16.mxu0 %v1112_v46 }
 0x1aa   :  { %1300 = vmatpush1.bf16.msra.mxu1 %v1109_v47  ;;  %1382 = vmatpush1.bf16.msra.mxu0 %v1111_v48 }
 0x1ab   :  { %1301 = vmatprep.subr.bf16.mxu1 %v1118_v51  ;;  %1383 = vmatprep.subr.bf16.mxu0 %v1120_v52 }
 0x1ae   :  { %1302 = vmatpush1.bf16.msra.mxu1 %v1117_v55  ;;  %1384 = vmatpush1.bf16.msra.mxu0 %v1119_v56 }
 0x1af   :  { %1303 = vmatprep.subr.bf16.mxu1 %v1126_v57  ;;  %1385 = vmatprep.subr.bf16.mxu0 %v1128_v58 }
 0x1b2   :  { %1304 = vmatpush1.bf16.msra.mxu1 %v1125_v59  ;;  %1386 = vmatpush1.bf16.msra.mxu0 %v1127_v60 }
 0x1b3   :  { %1305 = vmatprep.subr.bf16.mxu1 %v1134_v63  ;;  %1387 = vmatprep.subr.bf16.mxu0 %v1136_v0 }
 0x1b6   :  { %1306 = vmatpush1.bf16.msra.mxu1 %v1133_v3  ;;  %1388 = vmatpush1.bf16.msra.mxu0 %v1135_v4 }
 0x1b7   :  { %1307 = vmatprep.subr.bf16.mxu1 %v1142_v5  ;;  %1389 = vmatprep.subr.bf16.mxu0 %v1144_v6 }
 0x1ba   :  { %1308 = vmatpush1.bf16.msra.mxu1 %v1141_v7  ;;  %1390 = vmatpush1.bf16.msra.mxu0 %v1143_v8 }
 0x1bb   :  { %1318 = vmatprep.subr.bf16.mxu1 %v1150_v11  ;;  %1400 = vmatprep.subr.bf16.mxu0 %v1152_v12 }
 0x250   :  { %v698_v13 = vpop.f32.mrb[0].mxu1  ;;  %v739_v14 = vpop.f32.mrb[4].mxu0 }
 0x251   :  { %v750_v15 = vrot.slane %v698_v13, 4  ;;  %v762_v16 = vrot.slane %v739_v14, 4  ;;  %v700_v17 = vpop.f32.mrb[1].mxu1  ;;  %v741_v18 = vpop.f32.mrb[5].mxu0 }
 0x252   :  { %v756_v19 = vrot.slane %v700_v17, 4  ;;  %v768_v20 = vrot.slane %v741_v18, 4  ;;  %v702_v21 = vpop.f32.mrb[2].mxu1  ;;  %v743_v22 = vpop.f32.mrb[6].mxu0 }
 0x253   :  { %v751_v23 = vadd.f32 %v750_v15, %v698_v13  ;;  %v763_v26 = vadd.f32 %v762_v16, %v739_v14  ;;  %v703_v28 = vpop.f32.mrb[3].mxu1  ;;  %v744_v29 = vpop.f32.mrb[7].mxu0 }
 0x254   :  { %v757_v30 = vadd.f32 %v756_v19, %v700_v17  ;;  %v769_v31 = vadd.f32 %v768_v20, %v741_v18 }
 0x255   :  { %v752_v32 = vrot.slane %v751_v23, 2  ;;  %v764_v33 = vrot.slane %v763_v26, 2 }
 0x256   :  { %v758_v34 = vrot.slane %v757_v30, 2  ;;  %v770_v35 = vrot.slane %v769_v31, 2 }
 0x257   :  { %v753_v36 = vadd.f32 %v752_v32, %v751_v23  ;;  %v765_v37 = vadd.f32 %v764_v33, %v763_v26  ;;  %v747_v33 = vld [vmem:[#allocation13 + $0x1] ss:$8 sm:$0xf] }
 0x258   :  { %v759_v38 = vadd.f32 %v758_v34, %v757_v30  ;;  %v771_v39 = vadd.f32 %v770_v35, %v769_v31  ;;  %v7785_v34 = vsub.s32 2, %v7768_v24  ;;  %v749_v35 = vld [vmem:[#allocation13 + $0x2] ss:$8 sm:$0xf] }
 0x259   :  { %v754_v40 = vrot.slane %v753_v36, 1  ;;  %v766_v41 = vrot.slane %v765_v37, 1 }
 0x25a   :  { %v760_v42 = vrot.slane %v759_v38, 1  ;;  %v772_v43 = vrot.slane %v771_v39, 1 }
 0x25b   :  { %v755_v44 = vadd.f32 %v754_v40, %v753_v36  ;;  %v767_v45 = vadd.f32 %v766_v41, %v765_v37  ;;  %v7788_v36 = vsub.s32 3, %v7768_v24  ;;  %v831_v37 = vrot.slane %v747_v33, %v7771_v25 }
 0x25c   :  { %v761_v46 = vadd.f32 %v760_v42, %v759_v38  ;;  %v773_v47 = vadd.f32 %v772_v43, %v771_v39  ;;  %v839_v39 = vrot.slane %v747_v33, %v7785_v34  ;;  %v856_v42 = vrot.slane %v749_v35, %v7771_v25 }
 0x25d   :  { %v775_v48 = vmul.f32 0.125, %v755_v44  ;;  %v777_v49 = vmul.f32 0.125, %v767_v45  ;;  %v835_v43 = vrot.slane %v747_v33, %v7774_v27 }
 0x25e   :  { %v776_v50 = vmul.f32 0.125, %v761_v46  ;;  %v778_v51 = vmul.f32 0.125, %v773_v47  ;;  %v864_v46 = vrot.slane %v749_v35, %v7785_v34  ;;  %v843_v47 = vrot.slane %v747_v33, %v7788_v36  ;;  %v973_v33 = vld [vmem:[#allocation8 + $0x280] sm:$0xff] }
 0x25f   :  { %v779_v52 = vsub.f32 %v698_v13, %v775_v48  ;;  %v781_v53 = vsub.f32 %v739_v14, %v777_v49 }
 0x260   :  { %v780_v54 = vsub.f32 %v700_v17, %v776_v50  ;;  %v782_v55 = vsub.f32 %v741_v18, %v778_v51  ;;  %v860_v51 = vrot.slane %v749_v35, %v7774_v27 }
 0x261   :  { %v783_v56 = vmul.f32 %v779_v52, %v779_v52  ;;  %v785_v57 = vmul.f32 %v781_v53, %v781_v53 }
 0x262   :  { %v784_v58 = vmul.f32 %v780_v54, %v780_v54  ;;  %v786_v59 = vmul.f32 %v782_v55, %v782_v55 }
 0x263   :  { %v787_v60 = vrot.slane %v783_v56, 4  ;;  %v799_v61 = vrot.slane %v785_v57, 4 }
 0x264   :  { %v793_v62 = vrot.slane %v784_v58, 4  ;;  %v805_v63 = vrot.slane %v786_v59, 4 }
 0x265   :  { %v788_v0 = vadd.f32 %v787_v60, %v783_v56  ;;  %v800_v1 = vadd.f32 %v799_v61, %v785_v57 }
 0x266   :  { %v794_v2 = vadd.f32 %v793_v62, %v784_v58  ;;  %v806_v3 = vadd.f32 %v805_v63, %v786_v59  ;;  %v868_v58 = vrot.slane %v749_v35, %v7788_v36  ;;  %v975_v35 = vld [vmem:[#allocation8 + $0x290] sm:$0xff] }
 0x267   :  { %v789_v4 = vrot.slane %v788_v0, 2  ;;  %v801_v5 = vrot.slane %v800_v1, 2 }
 0x268   :  { %v795_v6 = vrot.slane %v794_v2, 2  ;;  %v807_v7 = vrot.slane %v806_v3, 2 }
 0x269   :  { %v790_v8 = vadd.f32 %v789_v4, %v788_v0  ;;  %v802_v11 = vadd.f32 %v801_v5, %v800_v1  ;;  %v957_v1 = vld [vmem:[#allocation8 + $0x200] sm:$0xff] }
 0x26a   :  { %v796_v12 = vadd.f32 %v795_v6, %v794_v2  ;;  %v808_v13 = vadd.f32 %v807_v7, %v806_v3  ;;  %v959_v2 = vld [vmem:[#allocation8 + $0x210] sm:$0xff]  ;;  %v1149_v5 = vunpack.c.l.s8.bf16 %v957_v1 }
 0x26b   :  { %v791_v14 = vrot.slane %v790_v8, 1  ;;  %v803_v15 = vrot.slane %v802_v11, 1  ;;  %v1151_v6 = vunpack.c.l.s8.bf16 %v959_v2 }
 0x26c   :  { %v797_v16 = vrot.slane %v796_v12, 1  ;;  %v809_v17 = vrot.slane %v808_v13, 1 }
 0x26d   :  { %v792_v18 = vadd.f32 %v791_v14, %v790_v8  ;;  %v804_v19 = vadd.f32 %v803_v15, %v802_v11  ;;  %v1158_v11 = vunpack.c.h.s8.bf16 %v7778_v9  ;;  %v968_v14 = vld [vmem:[#allocation8 + $0x258] sm:$0xff] }
 0x26e   :  { %v798_v20 = vadd.f32 %v797_v16, %v796_v12  ;;  %v810_v21 = vadd.f32 %v809_v17, %v808_v13  ;;  %v1160_v12 = vunpack.c.h.s8.bf16 %v7780_v10  ;;  %v966_v13 = vld [vmem:[#allocation8 + $0x248] sm:$0xff]  ;;  %v1157_v16 = vunpack.c.h.s8.bf16 %v957_v1  ;;  %v967_v10 = vld [vmem:[#allocation8 + $0x250] sm:$0xff] }
 0x26f   :  { %v811_v22 = vmul.f32 0.125, %v792_v18  ;;  %v813_v23 = vmul.f32 0.125, %v804_v19  ;;  %v1159_v17 = vunpack.c.h.s8.bf16 %v959_v2  ;;  %v1166_v18 = vunpack.c.l.s8.bf16 %v966_v13  ;;  %v965_v19 = vld [vmem:[#allocation8 + $0x240] sm:$0xff] }
 0x270   :  { %v812_v26 = vmul.f32 0.125, %v798_v20  ;;  %v814_v28 = vmul.f32 0.125, %v810_v21  ;;  %v1168_v9 = vunpack.c.l.s8.bf16 %v968_v14  ;;  %v1165_v20 = vunpack.c.l.s8.bf16 %v965_v19 }
 0x271   :  { %v815_v29 = vadd.f32 0.8, %v811_v22  ;;  %v817_v30 = vadd.f32 0.8, %v813_v23  ;;  %v1167_v21 = vunpack.c.l.s8.bf16 %v967_v10  ;;  %v1174_v22 = vunpack.c.h.s8.bf16 %v966_v13  ;;  %v999_v13 = vld [vmem:[#allocation8 + $0x350] sm:$0xff] }
 0x272   :  { %v816_v31 = vadd.f32 0.8, %v812_v26  ;;  %v818_v32 = vadd.f32 0.8, %v814_v28  ;;  %v1176_v23 = vunpack.c.h.s8.bf16 %v968_v14  ;;  %v974_v26 = vld [vmem:[#allocation8 + $0x288] sm:$0xff]  ;;  %v976_v28 = vld [vmem:[#allocation8 + $0x298] sm:$0xff] }
 0x273   :  { %7372 = vrsqrt.f32 %v815_v29  ;;  %v1173_v29 = vunpack.c.h.s8.bf16 %v965_v19  ;;  %v1008_v19 = vld [vmem:[#allocation8 + $0x398] sm:$0xff] }
 0x274   :  { %7374 = vrsqrt.f32 %v817_v30  ;;  %v1175_v30 = vunpack.c.h.s8.bf16 %v967_v10 }
 0x275   :  { %7376 = vrsqrt.f32 %v816_v31  ;;  %v1182_v31 = vunpack.c.l.s8.bf16 %v974_v26 }
 0x276   :  { %7378 = vrsqrt.f32 %v818_v32  ;;  %v1184_v32 = vunpack.c.l.s8.bf16 %v976_v28 }
 0x27d   :  { %v7373_v38 = vpop.eup %7372 }
 0x27e   :  { %v7375_v40 = vpop.eup %7374  ;;  %v823_v41 = vmul.f32 %v7373_v38, %v779_v52  ;;  %v1183_v38 = vunpack.c.l.s8.bf16 %v975_v35 }
 0x27f   :  { %v7377_v44 = vpop.eup %7376  ;;  %v825_v45 = vmul.f32 %v7375_v40, %v781_v53  ;;  %v1192_v40 = vunpack.c.h.s8.bf16 %v976_v28 }
 0x280   :  { %v7379_v48 = vpop.eup %7378  ;;  %v848_v49 = vmul.f32 %v831_v37, %v823_v41  ;;  %v824_v50 = vmul.f32 %v7377_v44, %v780_v54  ;;  %v1181_v37 = vunpack.c.l.s8.bf16 %v973_v33  ;;  %v982_v41 = vld [vmem:[#allocation8 + $0x2c8] sm:$0xff]  ;;  %v1191_v44 = vunpack.c.h.s8.bf16 %v975_v35 }
 0x281   :  { %v850_v56 = vmul.f32 %v839_v39, %v825_v45  ;;  %v826_v57 = vmul.f32 %v7379_v48, %v782_v55  ;;  %v1190_v39 = vunpack.c.h.s8.bf16 %v974_v26  ;;  %v1198_v45 = vunpack.c.l.s8.bf16 %v982_v41  ;;  %v983_v48 = vld [vmem:[#allocation8 + $0x2d0] sm:$0xff] }
 0x282   :  { %v873_v52 = vadd.f32 %v856_v42, %v848_v49  ;;  %v849_v59 = vmul.f32 %v835_v43, %v824_v50  ;;  %v984_v42 = vld [vmem:[#allocation8 + $0x2d8] sm:$0xff]  ;;  %v1189_v43 = vunpack.c.h.s8.bf16 %v973_v33  ;;  %v1199_v50 = vunpack.c.l.s8.bf16 %v983_v48  ;;  %v1007_v26 = vld [vmem:[#allocation8 + $0x390] sm:$0xff] }
 0x283   :  { %v7798_v60 = vadd.f32 %v864_v46, %v850_v56  ;;  %v851_v61 = vmul.f32 %v843_v47, %v826_v57  ;;  %v1200_v46 = vunpack.c.l.s8.bf16 %v984_v42  ;;  %v981_v47 = vld [vmem:[#allocation8 + $0x2c0] sm:$0xff]  ;;  %v1208_v56 = vunpack.c.h.s8.bf16 %v984_v42  ;;  %v990_v57 = vld [vmem:[#allocation8 + $0x308] sm:$0xff]  ;;  %v1016_v33 = vld [vmem:[#allocation8 + $0x3d8] sm:$0xff] }
 0x284   :  { %v874_v62 = vadd.f32 %v860_v51, %v849_v59  ;;  %vm877_vm2 = vcmp.ge.f32.partialorder %v873_v52, 0.0  ;;  %v881_v53 = vmul.f32 0.2, %v873_v52  ;;  %v1197_v49 = vunpack.c.l.s8.bf16 %v981_v47 }
 0x285   :  { %v876_v63 = vadd.f32 %v868_v58, %v851_v61  ;;  %v1206_v51 = vunpack.c.h.s8.bf16 %v982_v41  ;;  %v992_v58 = vld [vmem:[#allocation8 + $0x318] sm:$0xff]  ;;  %v1207_v59 = vunpack.c.h.s8.bf16 %v983_v48  ;;  %v1214_v61 = vunpack.c.l.s8.bf16 %v990_v57  ;;  %v1015_v41 = vld [vmem:[#allocation8 + $0x3d0] sm:$0xff] }
 0x286   :  { %vm878_vm3 = vcmp.ge.f32.partialorder %v874_v62, 0.0  ;;  %v882_v0 = vmul.f32 0.2, %v874_v62  ;;  %v885_v54 = vsel %vm877_vm2, %v873_v52, %v881_v53  ;;  %v1205_v52 = vunpack.c.h.s8.bf16 %v981_v47  ;;  %v989_v53 = vld [vmem:[#allocation8 + $0x300] sm:$0xff]  ;;  %v898_v47 = vld [vmem:[#allocation8 + $0x28] sm:$0xff]  ;;  %v900_v48 = vld [vmem:[#allocation8 + $0x38] sm:$0xff] }
 0x287   :  { %vm880_vm4 = vcmp.ge.f32.partialorder %v876_v63, 0.0  ;;  %v884_v3 = vmul.f32 0.2, %v876_v63  ;;  %v7802_v8 = vpack.c.bf16 %v885_v54, %v885_v54  ;;  %v1222_v2 = vunpack.c.h.s8.bf16 %v990_v57  ;;  %v897_v57 = vld [vmem:[#allocation8 + $0x20] sm:$0xff] }
 0x288   :  { %v886_v4 = vsel %vm878_vm3, %v874_v62, %v882_v0  ;;  %v1216_v62 = vunpack.c.l.s8.bf16 %v992_v58  ;;  %v1213_v0 = vunpack.c.l.s8.bf16 %v989_v53  ;;  %v1224_v54 = vunpack.c.h.s8.bf16 %v992_v58 }
 0x289   :  { %v7800_v55 = vpack.c.bf16 %v886_v4, %v886_v4  ;;  %v888_v7 = vsel %vm880_vm4, %v876_v63, %v884_v3  ;;  %v991_v63 = vld [vmem:[#allocation8 + $0x310] sm:$0xff]  ;;  %v998_v3 = vld [vmem:[#allocation8 + $0x348] sm:$0xff]  ;;  %v1000_v4 = vld [vmem:[#allocation8 + $0x358] sm:$0xff]  ;;  %vm879_vm5 = vcmp.ge.f32.partialorder %v7798_v60, 0.0 }
 0x28a   :  { %v7810_v15 = vpack.c.bf16 %v888_v7, %v888_v7  ;;  %v1215_v1 = vunpack.c.l.s8.bf16 %v991_v63  ;;  %v1230_v7 = vunpack.c.l.s8.bf16 %v998_v3 }
 0x28b   :  { %1309 = vmatprep.mubr.bf16.mxu1 %v7800_v55  ;;  %1391 = vmatprep.mubr.bf16.mxu0 %v7800_v55 }
 0x28c   :  { %1310 = vmatmul.mubr.bf16.vlgmr.msra.gmra.mrb[4].mxu1 %v7802_v8  ;;  %1392 = vmatmul.mubr.bf16.vlgmr.msra.gmra.mrb[8].mxu0 %v7802_v8 }
 0x28d   :  { %1319 = vmatpush1.bf16.msra.mxu1 %v1149_v5  ;;  %1401 = vmatpush1.bf16.msra.mxu0 %v1151_v6  ;;  %v1221_v5 = vunpack.c.h.s8.bf16 %v989_v53  ;;  %v1223_v6 = vunpack.c.h.s8.bf16 %v991_v63  ;;  %v1034_v53 = vunpack.c.h.s8.bf16 %v898_v47  ;;  %v1036_v63 = vunpack.c.h.s8.bf16 %v900_v48 }
 0x28e   :  { %1350 = vmatprep.mubr.bf16.mxu1 %v7810_v15  ;;  %1432 = vmatprep.mubr.bf16.mxu0 %v7810_v15 }
 0x28f   :  { %1320 = vmatprep.subr.bf16.mxu1 %v1158_v11  ;;  %1402 = vmatprep.subr.bf16.mxu0 %v1160_v12  ;;  %v1232_v11 = vunpack.c.l.s8.bf16 %v1000_v4  ;;  %v997_v12 = vld [vmem:[#allocation8 + $0x340] sm:$0xff] }
 0x290   :  { %v1229_v14 = vunpack.c.l.s8.bf16 %v997_v12  ;;  %v1237_v10 = vunpack.c.h.s8.bf16 %v997_v12 }
 0x291   :  { %1321 = vmatpush1.bf16.msra.mxu1 %v1157_v16  ;;  %1403 = vmatpush1.bf16.msra.mxu0 %v1159_v17  ;;  %v1231_v16 = vunpack.c.l.s8.bf16 %v999_v13  ;;  %v1238_v17 = vunpack.c.h.s8.bf16 %v998_v3  ;;  %v905_v3 = vld [vmem:[#allocation8 + $0x60] sm:$0xff] }
 0x292   :  { %1322 = vmatprep.subr.bf16.mxu1 %v1166_v18  ;;  %1404 = vmatprep.subr.bf16.mxu0 %v1168_v9  ;;  %v1240_v18 = vunpack.c.h.s8.bf16 %v1000_v4  ;;  %v1006_v9 = vld [vmem:[#allocation8 + $0x388] sm:$0xff] }
 0x295   :  { %1323 = vmatpush1.bf16.msra.mxu1 %v1165_v20  ;;  %1405 = vmatpush1.bf16.msra.mxu0 %v1167_v21  ;;  %v1239_v20 = vunpack.c.h.s8.bf16 %v999_v13  ;;  %v1246_v21 = vunpack.c.l.s8.bf16 %v1006_v9  ;;  %v914_v13 = vld [vmem:[#allocation8 + $0xa8] sm:$0xff] }
 0x296   :  { %1324 = vmatprep.subr.bf16.mxu1 %v1174_v22  ;;  %1406 = vmatprep.subr.bf16.mxu0 %v1176_v23  ;;  %v1248_v22 = vunpack.c.l.s8.bf16 %v1008_v19  ;;  %v1005_v23 = vld [vmem:[#allocation8 + $0x380] sm:$0xff] }
 0x297   :  { %v1245_v28 = vunpack.c.l.s8.bf16 %v1005_v23  ;;  %v1253_v35 = vunpack.c.h.s8.bf16 %v1005_v23  ;;  %v922_v23 = vld [vmem:[#allocation8 + $0xe8] sm:$0xff] }
 0x299   :  { %1325 = vmatpush1.bf16.msra.mxu1 %v1173_v29  ;;  %1407 = vmatpush1.bf16.msra.mxu0 %v1175_v30  ;;  %v1247_v29 = vunpack.c.l.s8.bf16 %v1007_v26  ;;  %v1254_v30 = vunpack.c.h.s8.bf16 %v1006_v9 }
 0x29a   :  { %1326 = vmatprep.subr.bf16.mxu1 %v1182_v31  ;;  %1408 = vmatprep.subr.bf16.mxu0 %v1184_v32  ;;  %v1256_v31 = vunpack.c.h.s8.bf16 %v1008_v19  ;;  %v1014_v32 = vld [vmem:[#allocation8 + $0x3c8] sm:$0xff]  ;;  %v915_v19 = vld [vmem:[#allocation8 + $0xb0] sm:$0xff] }
 0x29d   :  { %1327 = vmatpush1.bf16.msra.mxu1 %v1181_v37  ;;  %1409 = vmatpush1.bf16.msra.mxu0 %v1183_v38  ;;  %v1255_v37 = vunpack.c.h.s8.bf16 %v1007_v26  ;;  %v1262_v38 = vunpack.c.l.s8.bf16 %v1014_v32  ;;  %v924_v26 = vld [vmem:[#allocation8 + $0xf8] sm:$0xff] }
 0x29e   :  { %1328 = vmatprep.subr.bf16.mxu1 %v1190_v39  ;;  %1410 = vmatprep.subr.bf16.mxu0 %v1192_v40  ;;  %v1264_v39 = vunpack.c.l.s8.bf16 %v1016_v33  ;;  %v1013_v40 = vld [vmem:[#allocation8 + $0x3c0] sm:$0xff] }
 0x29f   :  { %v1261_v42 = vunpack.c.l.s8.bf16 %v1013_v40 }
 0x2a1   :  { %1329 = vmatpush1.bf16.msra.mxu1 %v1189_v43  ;;  %1411 = vmatpush1.bf16.msra.mxu0 %v1191_v44  ;;  %v1263_v43 = vunpack.c.l.s8.bf16 %v1015_v41  ;;  %v1270_v44 = vunpack.c.h.s8.bf16 %v1014_v32  ;;  %v1076_v32 = vunpack.c.l.s8.bf16 %v924_v26 }
 0x2a2   :  { %1330 = vmatprep.subr.bf16.mxu1 %v1198_v45  ;;  %1412 = vmatprep.subr.bf16.mxu0 %v1200_v46  ;;  %v1272_v45 = vunpack.c.h.s8.bf16 %v1016_v33  ;;  %v883_v46 = vmul.f32 0.2, %v7798_v60  ;;  %v923_v33 = vld [vmem:[#allocation8 + $0xf0] sm:$0xff] }
 0x2a4   :  { %v887_v58 = vsel %vm879_vm5, %v7798_v60, %v883_v46  ;;  %v1033_v60 = vunpack.c.h.s8.bf16 %v897_v57 }
 0x2a5   :  { %1331 = vmatpush1.bf16.msra.mxu1 %v1197_v49  ;;  %1413 = vmatpush1.bf16.msra.mxu0 %v1199_v50  ;;  %v1269_v49 = vunpack.c.h.s8.bf16 %v1013_v40  ;;  %v1271_v50 = vunpack.c.h.s8.bf16 %v1015_v41  ;;  %v930_v40 = vld [vmem:[#allocation8 + $0x128] sm:$0xff]  ;;  %v932_v41 = vld [vmem:[#allocation8 + $0x138] sm:$0xff] }
 0x2a6   :  { %1332 = vmatprep.subr.bf16.mxu1 %v1206_v51  ;;  %1414 = vmatprep.subr.bf16.mxu0 %v1208_v56  ;;  %v1026_v51 = vunpack.c.l.s8.bf16 %v898_v47  ;;  %v1028_v56 = vunpack.c.l.s8.bf16 %v900_v48  ;;  %v1092_v46 = vunpack.c.l.s8.bf16 %v932_v41  ;;  %v931_v47 = vld [vmem:[#allocation8 + $0x130] sm:$0xff] }
 0x2a9   :  { %1333 = vmatpush1.bf16.msra.mxu1 %v1205_v52  ;;  %1415 = vmatpush1.bf16.msra.mxu0 %v1207_v59  ;;  %v899_v52 = vld [vmem:[#allocation8 + $0x30] sm:$0xff]  ;;  %v1025_v59 = vunpack.c.l.s8.bf16 %v897_v57  ;;  %v940_v57 = vld [vmem:[#allocation8 + $0x178] sm:$0xff] }
 0x2aa   :  { %1334 = vmatprep.subr.bf16.mxu1 %v1214_v61  ;;  %1416 = vmatprep.subr.bf16.mxu0 %v1216_v62  ;;  %v7817_v61 = vpack.c.bf16 %v887_v58, %v887_v58  ;;  %v1027_v62 = vunpack.c.l.s8.bf16 %v899_v52 }
 0x2ad   :  { %1335 = vmatpush1.bf16.msra.mxu1 %v1213_v0  ;;  %1417 = vmatpush1.bf16.msra.mxu0 %v1215_v1  ;;  %v906_v0 = vld [vmem:[#allocation8 + $0x68] sm:$0xff]  ;;  %v908_v1 = vld [vmem:[#allocation8 + $0x78] sm:$0xff] }
 0x2ae   :  { %1336 = vmatprep.subr.bf16.mxu1 %v1222_v2  ;;  %1418 = vmatprep.subr.bf16.mxu0 %v1224_v54  ;;  %v1035_v2 = vunpack.c.h.s8.bf16 %v899_v52  ;;  %v1042_v54 = vunpack.c.l.s8.bf16 %v906_v0  ;;  %v1044_v4 = vunpack.c.l.s8.bf16 %v908_v1  ;;  %v1052_v12 = vunpack.c.h.s8.bf16 %v908_v1 }
 0x2af   :  { %v1099_v52 = vunpack.c.h.s8.bf16 %v931_v47 }
 0x2b1   :  { %1337 = vmatpush1.bf16.msra.mxu1 %v1221_v5  ;;  %1419 = vmatpush1.bf16.msra.mxu0 %v1223_v6  ;;  %v907_v5 = vld [vmem:[#allocation8 + $0x70] sm:$0xff]  ;;  %v1041_v6 = vunpack.c.l.s8.bf16 %v905_v3 }
 0x2b2   :  { %1338 = vmatprep.subr.bf16.mxu1 %v1230_v7  ;;  %1420 = vmatprep.subr.bf16.mxu0 %v1232_v11  ;;  %v1043_v7 = vunpack.c.l.s8.bf16 %v907_v5  ;;  %v1050_v11 = vunpack.c.h.s8.bf16 %v906_v0 }
 0x2b5   :  { %1339 = vmatpush1.bf16.msra.mxu1 %v1229_v14  ;;  %1421 = vmatpush1.bf16.msra.mxu0 %v1231_v16  ;;  %v916_v14 = vld [vmem:[#allocation8 + $0xb8] sm:$0xff]  ;;  %v1049_v16 = vunpack.c.h.s8.bf16 %v905_v3 }
 0x2b6   :  { %1340 = vmatprep.subr.bf16.mxu1 %v1238_v17  ;;  %1422 = vmatprep.subr.bf16.mxu0 %v1240_v18  ;;  %v1058_v17 = vunpack.c.l.s8.bf16 %v914_v13  ;;  %v913_v18 = vld [vmem:[#allocation8 + $0xa0] sm:$0xff]  ;;  %v1060_v9 = vunpack.c.l.s8.bf16 %v916_v14  ;;  %v948_v3 = vld [vmem:[#allocation8 + $0x1b8] sm:$0xff] }
 0x2b9   :  { %1341 = vmatpush1.bf16.msra.mxu1 %v1237_v10  ;;  %1423 = vmatpush1.bf16.msra.mxu0 %v1239_v20  ;;  %v1057_v10 = vunpack.c.l.s8.bf16 %v913_v18  ;;  %v1059_v20 = vunpack.c.l.s8.bf16 %v915_v19 }
 0x2ba   :  { %1342 = vmatprep.subr.bf16.mxu1 %v1246_v21  ;;  %1424 = vmatprep.subr.bf16.mxu0 %v1248_v22  ;;  %v1066_v21 = vunpack.c.h.s8.bf16 %v914_v13  ;;  %v1068_v22 = vunpack.c.h.s8.bf16 %v916_v14 }
 0x2bd   :  { %1343 = vmatpush1.bf16.msra.mxu1 %v1245_v28  ;;  %1425 = vmatpush1.bf16.msra.mxu0 %v1247_v29  ;;  %v1065_v28 = vunpack.c.h.s8.bf16 %v913_v18  ;;  %v1067_v29 = vunpack.c.h.s8.bf16 %v915_v19  ;;  %v956_v18 = vld [vmem:[#allocation8 + $0x1f8] sm:$0xff] }
 0x2be   :  { %1344 = vmatprep.subr.bf16.mxu1 %v1254_v30  ;;  %1426 = vmatprep.subr.bf16.mxu0 %v1256_v31  ;;  %v1074_v30 = vunpack.c.l.s8.bf16 %v922_v23  ;;  %v921_v31 = vld [vmem:[#allocation8 + $0xe0] sm:$0xff] }
 0x2c1   :  { %1345 = vmatpush1.bf16.msra.mxu1 %v1253_v35  ;;  %1427 = vmatpush1.bf16.msra.mxu0 %v1255_v37  ;;  %v1073_v35 = vunpack.c.l.s8.bf16 %v921_v31  ;;  %v1075_v37 = vunpack.c.l.s8.bf16 %v923_v33 }
 0x2c2   :  { %1346 = vmatprep.subr.bf16.mxu1 %v1262_v38  ;;  %1428 = vmatprep.subr.bf16.mxu0 %v1264_v39  ;;  %v1082_v38 = vunpack.c.h.s8.bf16 %v922_v23  ;;  %v1084_v39 = vunpack.c.h.s8.bf16 %v924_v26 }
 0x2c5   :  { %1347 = vmatpush1.bf16.msra.mxu1 %v1261_v42  ;;  %1429 = vmatpush1.bf16.msra.mxu0 %v1263_v43  ;;  %v1081_v42 = vunpack.c.h.s8.bf16 %v921_v31  ;;  %v1083_v43 = vunpack.c.h.s8.bf16 %v923_v33  ;;  %v964_v31 = vld [vmem:[#allocation8 + $0x238] sm:$0xff] }
 0x2c6   :  { %1348 = vmatprep.subr.bf16.mxu1 %v1270_v44  ;;  %1430 = vmatprep.subr.bf16.mxu0 %v1272_v45  ;;  %v1090_v44 = vunpack.c.l.s8.bf16 %v930_v40  ;;  %v929_v45 = vld [vmem:[#allocation8 + $0x120] sm:$0xff] }
 0x2c7   :  { %v1089_v48 = vunpack.c.l.s8.bf16 %v929_v45  ;;  %v1097_v58 = vunpack.c.h.s8.bf16 %v929_v45  ;;  %v972_v45 = vld [vmem:[#allocation8 + $0x278] sm:$0xff] }
 0x2c9   :  { %1349 = vmatpush1.bf16.msra.mxu1 %v1269_v49  ;;  %1431 = vmatpush1.bf16.msra.mxu0 %v1271_v50  ;;  %v1091_v49 = vunpack.c.l.s8.bf16 %v931_v47  ;;  %v1098_v50 = vunpack.c.h.s8.bf16 %v930_v40 }
 0x2ca   :  { %1441 = vmatprep.subr.bf16.mxu1 %v1026_v51  ;;  %1523 = vmatprep.subr.bf16.mxu0 %v1028_v56  ;;  %v1100_v51 = vunpack.c.h.s8.bf16 %v932_v41  ;;  %v938_v56 = vld [vmem:[#allocation8 + $0x168] sm:$0xff] }
 0x2cc   :  { %1351 = vmatmul.mubr.bf16.vlgmr.msra.gmra.mrb[4].mxu1 %v7817_v61  ;;  %1433 = vmatmul.mubr.bf16.vlgmr.msra.gmra.mrb[8].mxu0 %v7817_v61 }
 0x2cd   :  { %1442 = vmatpush1.bf16.msra.mxu1 %v1025_v59  ;;  %1473 = vmatprep.mubr.bf16.mxu1 %v7800_v55  ;;  %v1106_v59 = vunpack.c.l.s8.bf16 %v938_v56 }
 0x2ce   :  { %1524 = vmatpush1.bf16.msra.mxu0 %v1027_v62  ;;  %1555 = vmatprep.mubr.bf16.mxu0 %v7800_v55  ;;  %v1051_v55 = vunpack.c.h.s8.bf16 %v907_v5  ;;  %v937_v62 = vld [vmem:[#allocation8 + $0x160] sm:$0xff] }
 0x2cf   :  { %1443 = vmatprep.subr.bf16.mxu1 %v1034_v53  ;;  %1525 = vmatprep.subr.bf16.mxu0 %v1036_v63  ;;  %v1108_v53 = vunpack.c.l.s8.bf16 %v940_v57  ;;  %v939_v63 = vld [vmem:[#allocation8 + $0x170] sm:$0xff]  ;;  %v1105_v0 = vunpack.c.l.s8.bf16 %v937_v62 }
 0x2d0   :  { %v1107_v1 = vunpack.c.l.s8.bf16 %v939_v63  ;;  %v1115_v5 = vunpack.c.h.s8.bf16 %v939_v63  ;;  %v977_v63 = vld [vmem:[#allocation8 + $0x2a0] sm:$0xff] }
 0x2d1   :  { %1444 = vmatpush1.bf16.msra.mxu1 %v1033_v60  ;;  %v1114_v60 = vunpack.c.h.s8.bf16 %v938_v56 }
 0x2d2   :  { %1526 = vmatpush1.bf16.msra.mxu0 %v1035_v2  ;;  %1445 = vmatprep.subr.bf16.mxu1 %v1042_v54  ;;  %v1116_v2 = vunpack.c.h.s8.bf16 %v940_v57  ;;  %v946_v54 = vld [vmem:[#allocation8 + $0x1a8] sm:$0xff] }
 0x2d3   :  { %1527 = vmatprep.subr.bf16.mxu0 %v1044_v4  ;;  %v1113_v4 = vunpack.c.h.s8.bf16 %v937_v62 }
 0x2d5   :  { %1446 = vmatpush1.bf16.msra.mxu1 %v1041_v6  ;;  %v1122_v6 = vunpack.c.l.s8.bf16 %v946_v54 }
 0x2d6   :  { %1528 = vmatpush1.bf16.msra.mxu0 %v1043_v7  ;;  %1447 = vmatprep.subr.bf16.mxu1 %v1050_v11  ;;  %v945_v7 = vld [vmem:[#allocation8 + $0x1a0] sm:$0xff]  ;;  %v1124_v11 = vunpack.c.l.s8.bf16 %v948_v3 }
 0x2d7   :  { %1529 = vmatprep.subr.bf16.mxu0 %v1052_v12  ;;  %v947_v12 = vld [vmem:[#allocation8 + $0x1b0] sm:$0xff]  ;;  %v1121_v13 = vunpack.c.l.s8.bf16 %v945_v7 }
 0x2d8   :  { %v1123_v14 = vunpack.c.l.s8.bf16 %v947_v12  ;;  %v1131_v19 = vunpack.c.h.s8.bf16 %v947_v12  ;;  %v985_v12 = vld [vmem:[#allocation8 + $0x2e0] sm:$0xff] }
 0x2d9   :  { %1448 = vmatpush1.bf16.msra.mxu1 %v1049_v16  ;;  %v1130_v16 = vunpack.c.h.s8.bf16 %v946_v54 }
 0x2da   :  { %1530 = vmatpush1.bf16.msra.mxu0 %v1051_v55  ;;  %1449 = vmatprep.subr.bf16.mxu1 %v1058_v17  ;;  %v1132_v55 = vunpack.c.h.s8.bf16 %v948_v3  ;;  %v954_v17 = vld [vmem:[#allocation8 + $0x1e8] sm:$0xff] }
 0x2db   :  { %1531 = vmatprep.subr.bf16.mxu0 %v1060_v9  ;;  %v1129_v9 = vunpack.c.h.s8.bf16 %v945_v7 }
 0x2dd   :  { %1450 = vmatpush1.bf16.msra.mxu1 %v1057_v10  ;;  %v1138_v10 = vunpack.c.l.s8.bf16 %v954_v17 }
 0x2de   :  { %1532 = vmatpush1.bf16.msra.mxu0 %v1059_v20  ;;  %1451 = vmatprep.subr.bf16.mxu1 %v1066_v21  ;;  %v953_v20 = vld [vmem:[#allocation8 + $0x1e0] sm:$0xff]  ;;  %v1140_v21 = vunpack.c.l.s8.bf16 %v956_v18 }
 0x2df   :  { %1533 = vmatprep.subr.bf16.mxu0 %v1068_v22  ;;  %v955_v22 = vld [vmem:[#allocation8 + $0x1f0] sm:$0xff]  ;;  %v1137_v23 = vunpack.c.l.s8.bf16 %v953_v20 }
 0x2e0   :  { %v1139_v26 = vunpack.c.l.s8.bf16 %v955_v22  ;;  %v1147_v33 = vunpack.c.h.s8.bf16 %v955_v22  ;;  %v993_v22 = vld [vmem:[#allocation8 + $0x320] sm:$0xff] }
 0x2e1   :  { %1452 = vmatpush1.bf16.msra.mxu1 %v1065_v28  ;;  %v1146_v28 = vunpack.c.h.s8.bf16 %v954_v17 }
 0x2e2   :  { %1534 = vmatpush1.bf16.msra.mxu0 %v1067_v29  ;;  %1453 = vmatprep.subr.bf16.mxu1 %v1074_v30  ;;  %v1148_v29 = vunpack.c.h.s8.bf16 %v956_v18  ;;  %v962_v30 = vld [vmem:[#allocation8 + $0x228] sm:$0xff] }
 0x2e3   :  { %1535 = vmatprep.subr.bf16.mxu0 %v1076_v32  ;;  %v1145_v32 = vunpack.c.h.s8.bf16 %v953_v20 }
 0x2e5   :  { %1454 = vmatpush1.bf16.msra.mxu1 %v1073_v35  ;;  %v1154_v35 = vunpack.c.l.s8.bf16 %v962_v30 }
 0x2e6   :  { %1536 = vmatpush1.bf16.msra.mxu0 %v1075_v37  ;;  %1455 = vmatprep.subr.bf16.mxu1 %v1082_v38  ;;  %v961_v37 = vld [vmem:[#allocation8 + $0x220] sm:$0xff]  ;;  %v1156_v38 = vunpack.c.l.s8.bf16 %v964_v31 }
 0x2e7   :  { %1537 = vmatprep.subr.bf16.mxu0 %v1084_v39  ;;  %v963_v39 = vld [vmem:[#allocation8 + $0x230] sm:$0xff]  ;;  %v1153_v40 = vunpack.c.l.s8.bf16 %v961_v37 }
 0x2e8   :  { %v1155_v41 = vunpack.c.l.s8.bf16 %v963_v39  ;;  %v1163_v47 = vunpack.c.h.s8.bf16 %v963_v39  ;;  %v1001_v39 = vld [vmem:[#allocation8 + $0x360] sm:$0xff] }
 0x2e9   :  { %1456 = vmatpush1.bf16.msra.mxu1 %v1081_v42  ;;  %v1162_v42 = vunpack.c.h.s8.bf16 %v962_v30 }
 0x2ea   :  { %1538 = vmatpush1.bf16.msra.mxu0 %v1083_v43  ;;  %1457 = vmatprep.subr.bf16.mxu1 %v1090_v44  ;;  %v970_v43 = vld [vmem:[#allocation8 + $0x268] sm:$0xff]  ;;  %v1164_v44 = vunpack.c.h.s8.bf16 %v964_v31 }
 0x2eb   :  { %1539 = vmatprep.subr.bf16.mxu0 %v1092_v46  ;;  %v1161_v46 = vunpack.c.h.s8.bf16 %v961_v37 }
 0x2ed   :  { %1458 = vmatpush1.bf16.msra.mxu1 %v1089_v48  ;;  %v1170_v48 = vunpack.c.l.s8.bf16 %v970_v43 }
 0x2ee   :  { %1540 = vmatpush1.bf16.msra.mxu0 %v1091_v49  ;;  %1459 = vmatprep.subr.bf16.mxu1 %v1098_v50  ;;  %v969_v49 = vld [vmem:[#allocation8 + $0x260] sm:$0xff]  ;;  %v1172_v50 = vunpack.c.l.s8.bf16 %v972_v45 }
 0x2ef   :  { %1541 = vmatprep.subr.bf16.mxu0 %v1100_v51  ;;  %v971_v51 = vld [vmem:[#allocation8 + $0x270] sm:$0xff]  ;;  %v1169_v56 = vunpack.c.l.s8.bf16 %v969_v49  ;;  %v1177_v62 = vunpack.c.h.s8.bf16 %v969_v49 }
 0x2f0   :  { %v1171_v57 = vunpack.c.l.s8.bf16 %v971_v51 }
 0x2f1   :  { %1460 = vmatpush1.bf16.msra.mxu1 %v1097_v58  ;;  %v1180_v58 = vunpack.c.h.s8.bf16 %v972_v45 }
 0x2f2   :  { %1542 = vmatpush1.bf16.msra.mxu0 %v1099_v52  ;;  %1461 = vmatprep.subr.bf16.mxu1 %v1106_v59  ;;  %v978_v52 = vld [vmem:[#allocation8 + $0x2a8] sm:$0xff]  ;;  %v980_v59 = vld [vmem:[#allocation8 + $0x2b8] sm:$0xff] }
 0x2f3   :  { %1543 = vmatprep.subr.bf16.mxu0 %v1108_v53  ;;  %v1179_v53 = vunpack.c.h.s8.bf16 %v971_v51  ;;  %v1194_v54 = vunpack.c.h.s8.bf16 %v978_v52  ;;  %v1196_v3 = vunpack.c.h.s8.bf16 %v980_v59  ;;  %v1009_v51 = vld [vmem:[#allocation8 + $0x3a0] sm:$0xff] }
 0x2f5   :  { %1462 = vmatpush1.bf16.msra.mxu1 %v1105_v0  ;;  %v1188_v0 = vunpack.c.l.s8.bf16 %v980_v59 }
 0x2f6   :  { %1544 = vmatpush1.bf16.msra.mxu0 %v1107_v1  ;;  %1463 = vmatprep.subr.bf16.mxu1 %v1114_v60  ;;  %v979_v1 = vld [vmem:[#allocation8 + $0x2b0] sm:$0xff]  ;;  %v1185_v60 = vunpack.c.l.s8.bf16 %v977_v63 }
 0x2f7   :  { %1545 = vmatprep.subr.bf16.mxu0 %v1116_v2  ;;  %v1187_v2 = vunpack.c.l.s8.bf16 %v979_v1  ;;  %v1195_v7 = vunpack.c.h.s8.bf16 %v979_v1  ;;  %v1017_v1 = vld [vmem:[#allocation8 + $0x3e0] sm:$0xff] }
 0x2f9   :  { %1464 = vmatpush1.bf16.msra.mxu1 %v1113_v4  ;;  %v986_v4 = vld [vmem:[#allocation8 + $0x2e8] sm:$0xff] }
 0x2fa   :  { %1546 = vmatpush1.bf16.msra.mxu0 %v1115_v5  ;;  %1465 = vmatprep.subr.bf16.mxu1 %v1122_v6  ;;  %v988_v5 = vld [vmem:[#allocation8 + $0x2f8] sm:$0xff]  ;;  %v1193_v6 = vunpack.c.h.s8.bf16 %v977_v63  ;;  %v1210_v17 = vunpack.c.h.s8.bf16 %v986_v4 }
 0x2fb   :  { %1547 = vmatprep.subr.bf16.mxu0 %v1124_v11  ;;  %v1202_v11 = vunpack.c.l.s8.bf16 %v986_v4  ;;  %v1212_v18 = vunpack.c.h.s8.bf16 %v988_v5 }
 0x2fd   :  { %1466 = vmatpush1.bf16.msra.mxu1 %v1121_v13  ;;  %v1204_v13 = vunpack.c.l.s8.bf16 %v988_v5 }
 0x2fe   :  { %1548 = vmatpush1.bf16.msra.mxu0 %v1123_v14  ;;  %1467 = vmatprep.subr.bf16.mxu1 %v1130_v16  ;;  %v987_v14 = vld [vmem:[#allocation8 + $0x2f0] sm:$0xff]  ;;  %v1201_v16 = vunpack.c.l.s8.bf16 %v985_v12 }
 0x2ff   :  { %1549 = vmatprep.subr.bf16.mxu0 %v1132_v55  ;;  %v1203_v55 = vunpack.c.l.s8.bf16 %v987_v14  ;;  %v1211_v20 = vunpack.c.h.s8.bf16 %v987_v14  ;;  %v1948_v14 = vld [vmem:[#allocation10] sm:$0xff] }
 0x301   :  { %1468 = vmatpush1.bf16.msra.mxu1 %v1129_v9  ;;  %v994_v9 = vld [vmem:[#allocation8 + $0x328] sm:$0xff] }
 0x302   :  { %1550 = vmatpush1.bf16.msra.mxu0 %v1131_v19  ;;  %1469 = vmatprep.subr.bf16.mxu1 %v1138_v10  ;;  %v996_v19 = vld [vmem:[#allocation8 + $0x338] sm:$0xff]  ;;  %v1209_v10 = vunpack.c.h.s8.bf16 %v985_v12  ;;  %v1226_v30 = vunpack.c.h.s8.bf16 %v994_v9 }
 0x303   :  { %1551 = vmatprep.subr.bf16.mxu0 %v1140_v21  ;;  %v1218_v21 = vunpack.c.l.s8.bf16 %v994_v9  ;;  %v1228_v31 = vunpack.c.h.s8.bf16 %v996_v19 }
 0x305   :  { %1470 = vmatpush1.bf16.msra.mxu1 %v1137_v23  ;;  %v1220_v23 = vunpack.c.l.s8.bf16 %v996_v19 }
 0x306   :  { %1552 = vmatpush1.bf16.msra.mxu0 %v1139_v26  ;;  %1471 = vmatprep.subr.bf16.mxu1 %v1146_v28  ;;  %v995_v26 = vld [vmem:[#allocation8 + $0x330] sm:$0xff]  ;;  %v1217_v28 = vunpack.c.l.s8.bf16 %v993_v22 }
 0x307   :  { %1553 = vmatprep.subr.bf16.mxu0 %v1148_v29  ;;  %v1219_v29 = vunpack.c.l.s8.bf16 %v995_v26  ;;  %v1227_v37 = vunpack.c.h.s8.bf16 %v995_v26  ;;  %v1964_v26 = vld [vmem:[#allocation10 + $0x80] sm:$0xff] }
 0x309   :  { %1472 = vmatpush1.bf16.msra.mxu1 %v1145_v32  ;;  %v1002_v32 = vld [vmem:[#allocation8 + $0x368] sm:$0xff] }
 0x30a   :  { %1554 = vmatpush1.bf16.msra.mxu0 %v1147_v33  ;;  %1482 = vmatprep.subr.bf16.mxu1 %v1154_v35  ;;  %v1004_v33 = vld [vmem:[#allocation8 + $0x378] sm:$0xff]  ;;  %v1225_v35 = vunpack.c.h.s8.bf16 %v993_v22 }
 0x30b   :  { %1564 = vmatprep.subr.bf16.mxu0 %v1156_v38  ;;  %v1234_v38 = vunpack.c.l.s8.bf16 %v1002_v32  ;;  %v1244_v45 = vunpack.c.h.s8.bf16 %v1004_v33 }
 0x30c   :  { %1474 = vmatmul.mubr.bf16.vlgmr.msra.gmra.mrb[8].mxu1 %v7802_v8 }
 0x30d   :  { %1556 = vmatmul.mubr.bf16.vlgmr.msra.gmra.mrb[12].mxu0 %v7802_v8  ;;  %1483 = vmatpush1.bf16.msra.mxu1 %v1153_v40  ;;  %v1178_v8 = vunpack.c.h.s8.bf16 %v970_v43  ;;  %v1236_v40 = vunpack.c.l.s8.bf16 %v1004_v33 }
 0x30e   :  { %1514 = vmatprep.mubr.bf16.mxu1 %v7810_v15  ;;  %1565 = vmatpush1.bf16.msra.mxu0 %v1155_v41  ;;  %v1003_v41 = vld [vmem:[#allocation8 + $0x370] sm:$0xff] }
 0x30f   :  { %1596 = vmatprep.mubr.bf16.mxu0 %v7810_v15  ;;  %1484 = vmatprep.subr.bf16.mxu1 %v1162_v42  ;;  %v1186_v15 = vunpack.c.l.s8.bf16 %v978_v52  ;;  %v1233_v42 = vunpack.c.l.s8.bf16 %v1001_v39  ;;  %v1235_v43 = vunpack.c.l.s8.bf16 %v1003_v41  ;;  %v1243_v49 = vunpack.c.h.s8.bf16 %v1003_v41 }
 0x310   :  { %1566 = vmatprep.subr.bf16.mxu0 %v1164_v44  ;;  %v1242_v44 = vunpack.c.h.s8.bf16 %v1002_v32 }
 0x311   :  { %1485 = vmatpush1.bf16.msra.mxu1 %v1161_v46  ;;  %v1010_v46 = vld [vmem:[#allocation8 + $0x3a8] sm:$0xff] }
 0x312   :  { %1567 = vmatpush1.bf16.msra.mxu0 %v1163_v47  ;;  %1486 = vmatprep.subr.bf16.mxu1 %v1170_v48  ;;  %v1012_v47 = vld [vmem:[#allocation8 + $0x3b8] sm:$0xff]  ;;  %v1241_v48 = vunpack.c.h.s8.bf16 %v1001_v39  ;;  %v1258_v52 = vunpack.c.h.s8.bf16 %v1010_v46 }
 0x313   :  { %1568 = vmatprep.subr.bf16.mxu0 %v1172_v50  ;;  %v1250_v50 = vunpack.c.l.s8.bf16 %v1010_v46  ;;  %v1260_v59 = vunpack.c.h.s8.bf16 %v1012_v47 }
 0x315   :  { %1487 = vmatpush1.bf16.msra.mxu1 %v1169_v56  ;;  %v1252_v56 = vunpack.c.l.s8.bf16 %v1012_v47  ;;  %v1997_v47 = vld [vmem:[#allocation10 + $0x188] sm:$0xff] }
 0x316   :  { %1569 = vmatpush1.bf16.msra.mxu0 %v1171_v57  ;;  %1488 = vmatprep.subr.bf16.mxu1 %v1178_v8  ;;  %v1011_v57 = vld [vmem:[#allocation8 + $0x3b0] sm:$0xff]  ;;  %v1249_v8 = vunpack.c.l.s8.bf16 %v1009_v51 }
 0x317   :  { %1570 = vmatprep.subr.bf16.mxu0 %v1180_v58  ;;  %v1251_v58 = vunpack.c.l.s8.bf16 %v1011_v57  ;;  %v1259_v63 = vunpack.c.h.s8.bf16 %v1011_v57 }
 0x319   :  { %1489 = vmatpush1.bf16.msra.mxu1 %v1177_v62  ;;  %v1018_v62 = vld [vmem:[#allocation8 + $0x3e8] sm:$0xff] }
 0x31a   :  { %1571 = vmatpush1.bf16.msra.mxu0 %v1179_v53  ;;  %1490 = vmatprep.subr.bf16.mxu1 %v1186_v15  ;;  %v1020_v53 = vld [vmem:[#allocation8 + $0x3f8] sm:$0xff]  ;;  %v1257_v15 = vunpack.c.h.s8.bf16 %v1009_v51  ;;  %v1274_v4 = vunpack.c.h.s8.bf16 %v1018_v62  ;;  %v2557_v51 = vunpack.c.l.s8.bf16 %v1997_v47 }
 0x31b   :  { %1572 = vmatprep.subr.bf16.mxu0 %v1188_v0  ;;  %v1266_v0 = vunpack.c.l.s8.bf16 %v1018_v62  ;;  %v1276_v5 = vunpack.c.h.s8.bf16 %v1020_v53 }
 0x31d   :  { %1491 = vmatpush1.bf16.msra.mxu1 %v1185_v60  ;;  %v1268_v60 = vunpack.c.l.s8.bf16 %v1020_v53  ;;  %v2013_v53 = vld [vmem:[#allocation10 + $0x208] sm:$0xff] }
 0x31e   :  { %1573 = vmatpush1.bf16.msra.mxu0 %v1187_v2  ;;  %1492 = vmatprep.subr.bf16.mxu1 %v1194_v54  ;;  %v1019_v2 = vld [vmem:[#allocation8 + $0x3f0] sm:$0xff]  ;;  %v1265_v54 = vunpack.c.l.s8.bf16 %v1017_v1 }
 0x31f   :  { %1574 = vmatprep.subr.bf16.mxu0 %v1196_v3  ;;  %v1267_v3 = vunpack.c.l.s8.bf16 %v1019_v2  ;;  %v1275_v12 = vunpack.c.h.s8.bf16 %v1019_v2 }
 0x321   :  { %1493 = vmatpush1.bf16.msra.mxu1 %v1193_v6  ;;  %v1949_v6 = vld [vmem:[#allocation10 + $0x8] sm:$0xff] }
 0x322   :  { %1575 = vmatpush1.bf16.msra.mxu0 %v1195_v7  ;;  %1494 = vmatprep.subr.bf16.mxu1 %v1202_v11  ;;  %v1951_v7 = vld [vmem:[#allocation10 + $0x18] sm:$0xff]  ;;  %v1273_v11 = vunpack.c.h.s8.bf16 %v1017_v1  ;;  %v2477_v9 = vunpack.c.h.s8.bf16 %v1949_v6  ;;  %v2589_v1 = vunpack.c.l.s8.bf16 %v2013_v53 }
 0x323   :  { %1576 = vmatprep.subr.bf16.mxu0 %v1204_v13  ;;  %v2461_v13 = vunpack.c.l.s8.bf16 %v1949_v6  ;;  %v2479_v19 = vunpack.c.h.s8.bf16 %v1951_v7 }
 0x325   :  { %1495 = vmatpush1.bf16.msra.mxu1 %v1201_v16  ;;  %v2463_v16 = vunpack.c.l.s8.bf16 %v1951_v7  ;;  %v2029_v7 = vld [vmem:[#allocation10 + $0x288] sm:$0xff] }
 0x326   :  { %1577 = vmatpush1.bf16.msra.mxu0 %v1203_v55  ;;  %1496 = vmatprep.subr.bf16.mxu1 %v1210_v17  ;;  %v1950_v55 = vld [vmem:[#allocation10 + $0x10] sm:$0xff]  ;;  %v2460_v17 = vunpack.c.l.s8.bf16 %v1948_v14 }
 0x327   :  { %1578 = vmatprep.subr.bf16.mxu0 %v1212_v18  ;;  %v2462_v18 = vunpack.c.l.s8.bf16 %v1950_v55  ;;  %v2478_v22 = vunpack.c.h.s8.bf16 %v1950_v55 }
 0x329   :  { %1497 = vmatpush1.bf16.msra.mxu1 %v1209_v10  ;;  %v1965_v10 = vld [vmem:[#allocation10 + $0x88] sm:$0xff] }
 0x32a   :  { %1579 = vmatpush1.bf16.msra.mxu0 %v1211_v20  ;;  %1498 = vmatprep.subr.bf16.mxu1 %v1218_v21  ;;  %v1967_v20 = vld [vmem:[#allocation10 + $0x98] sm:$0xff]  ;;  %v2476_v21 = vunpack.c.h.s8.bf16 %v1948_v14  ;;  %v2509_v32 = vunpack.c.h.s8.bf16 %v1965_v10  ;;  %v2621_v14 = vunpack.c.l.s8.bf16 %v2029_v7 }
 0x32b   :  { %1580 = vmatprep.subr.bf16.mxu0 %v1220_v23  ;;  %v2493_v23 = vunpack.c.l.s8.bf16 %v1965_v10  ;;  %v2511_v33 = vunpack.c.h.s8.bf16 %v1967_v20 }
 0x32d   :  { %1499 = vmatpush1.bf16.msra.mxu1 %v1217_v28  ;;  %v2495_v28 = vunpack.c.l.s8.bf16 %v1967_v20  ;;  %v2045_v20 = vld [vmem:[#allocation10 + $0x308] sm:$0xff] }
 0x32e   :  { %1581 = vmatpush1.bf16.msra.mxu0 %v1219_v29  ;;  %1500 = vmatprep.subr.bf16.mxu1 %v1226_v30  ;;  %v1966_v29 = vld [vmem:[#allocation10 + $0x90] sm:$0xff]  ;;  %v2492_v30 = vunpack.c.l.s8.bf16 %v1964_v26 }
 0x32f   :  { %1582 = vmatprep.subr.bf16.mxu0 %v1228_v31  ;;  %v2494_v31 = vunpack.c.l.s8.bf16 %v1966_v29 }
 0x331   :  { %1501 = vmatpush1.bf16.msra.mxu1 %v1225_v35  ;;  %v1981_v35 = vld [vmem:[#allocation10 + $0x108] sm:$0xff] }
 0x332   :  { %1583 = vmatpush1.bf16.msra.mxu0 %v1227_v37  ;;  %1502 = vmatprep.subr.bf16.mxu1 %v1234_v38  ;;  %v2508_v37 = vunpack.c.h.s8.bf16 %v1964_v26  ;;  %v2510_v38 = vunpack.c.h.s8.bf16 %v1966_v29  ;;  %v2525_v39 = vunpack.c.l.s8.bf16 %v1981_v35  ;;  %v2653_v26 = vunpack.c.l.s8.bf16 %v2045_v20 }
 0x333   :  { %1584 = vmatprep.subr.bf16.mxu0 %v1236_v40  ;;  %v1980_v40 = vld [vmem:[#allocation10 + $0x100] sm:$0xff] }
 0x335   :  { %1503 = vmatpush1.bf16.msra.mxu1 %v1233_v42  ;;  %v1982_v42 = vld [vmem:[#allocation10 + $0x110] sm:$0xff] }
 0x336   :  { %1585 = vmatpush1.bf16.msra.mxu0 %v1235_v43  ;;  %1504 = vmatprep.subr.bf16.mxu1 %v1242_v44  ;;  %v2524_v43 = vunpack.c.l.s8.bf16 %v1980_v40  ;;  %v2526_v44 = vunpack.c.l.s8.bf16 %v1982_v42 }
 0x337   :  { %1586 = vmatprep.subr.bf16.mxu0 %v1244_v45  ;;  %v2541_v45 = vunpack.c.h.s8.bf16 %v1981_v35 }
 0x339   :  { %1505 = vmatpush1.bf16.msra.mxu1 %v1241_v48  ;;  %v1999_v48 = vld [vmem:[#allocation10 + $0x198] sm:$0xff] }
 0x33a   :  { %1587 = vmatpush1.bf16.msra.mxu0 %v1243_v49  ;;  %1506 = vmatprep.subr.bf16.mxu1 %v1250_v50  ;;  %v2540_v49 = vunpack.c.h.s8.bf16 %v1980_v40  ;;  %v2542_v50 = vunpack.c.h.s8.bf16 %v1982_v42  ;;  %v2559_v57 = vunpack.c.l.s8.bf16 %v1999_v48  ;;  %v2575_v62 = vunpack.c.h.s8.bf16 %v1999_v48  ;;  %v7829_v48 = vld [vmem:[#allocation10 + $0x408] sm:$0xff] }
 0x33b   :  { %1588 = vmatprep.subr.bf16.mxu0 %v1252_v56  ;;  %v1996_v56 = vld [vmem:[#allocation10 + $0x180] sm:$0xff] }
 0x33d   :  { %1507 = vmatpush1.bf16.msra.mxu1 %v1249_v8  ;;  %v1998_v8 = vld [vmem:[#allocation10 + $0x190] sm:$0xff] }
 0x33e   :  { %1589 = vmatpush1.bf16.msra.mxu0 %v1251_v58  ;;  %1508 = vmatprep.subr.bf16.mxu1 %v1258_v52  ;;  %v2556_v58 = vunpack.c.l.s8.bf16 %v1996_v56  ;;  %v2558_v52 = vunpack.c.l.s8.bf16 %v1998_v8 }
 0x33f   :  { %1590 = vmatprep.subr.bf16.mxu0 %v1260_v59  ;;  %v2573_v59 = vunpack.c.h.s8.bf16 %v1997_v47 }
 0x341   :  { %1509 = vmatpush1.bf16.msra.mxu1 %v1257_v15  ;;  %v2015_v15 = vld [vmem:[#allocation10 + $0x218] sm:$0xff] }
 0x342   :  { %1591 = vmatpush1.bf16.msra.mxu0 %v1259_v63  ;;  %1510 = vmatprep.subr.bf16.mxu1 %v1266_v0  ;;  %v2572_v63 = vunpack.c.h.s8.bf16 %v1996_v56  ;;  %v2574_v0 = vunpack.c.h.s8.bf16 %v1998_v8  ;;  %v2591_v2 = vunpack.c.l.s8.bf16 %v2015_v15  ;;  %v2607_v6 = vunpack.c.h.s8.bf16 %v2015_v15  ;;  %v1606_v8 = vld [vmem:[#allocation13 + $0x80] ss:$8 sm:$0xf] }
 0x343   :  { %1592 = vmatprep.subr.bf16.mxu0 %v1268_v60  ;;  %v2012_v60 = vld [vmem:[#allocation10 + $0x200] sm:$0xff]  ;;  %v2717_v56 = vunpack.c.l.s8.bf16 %v7829_v48 }
 0x345   :  { %1511 = vmatpush1.bf16.msra.mxu1 %v1265_v54  ;;  %v2014_v54 = vld [vmem:[#allocation10 + $0x210] sm:$0xff] }
 0x346   :  { %1593 = vmatpush1.bf16.msra.mxu0 %v1267_v3  ;;  %1512 = vmatprep.subr.bf16.mxu1 %v1274_v4  ;;  %v2588_v3 = vunpack.c.l.s8.bf16 %v2012_v60  ;;  %v2590_v4 = vunpack.c.l.s8.bf16 %v2014_v54 }
 0x347   :  { %1594 = vmatprep.subr.bf16.mxu0 %v1276_v5  ;;  %v2605_v5 = vunpack.c.h.s8.bf16 %v2013_v53 }
 0x349   :  { %1513 = vmatpush1.bf16.msra.mxu1 %v1273_v11  ;;  %v2031_v11 = vld [vmem:[#allocation10 + $0x298] sm:$0xff] }
 0x34a   :  { %1595 = vmatpush1.bf16.msra.mxu0 %v1275_v12  ;;  %3484 = vmatprep.subr.bf16.mxu1 %v2461_v13  ;;  %v2604_v12 = vunpack.c.h.s8.bf16 %v2012_v60  ;;  %v2606_v13 = vunpack.c.h.s8.bf16 %v2014_v54  ;;  %v2623_v55 = vunpack.c.l.s8.bf16 %v2031_v11  ;;  %v2639_v10 = vunpack.c.h.s8.bf16 %v2031_v11 }
 0x34b   :  { %3648 = vmatprep.subr.bf16.mxu0 %v2463_v16  ;;  %v2028_v16 = vld [vmem:[#allocation10 + $0x280] sm:$0xff] }
 0x34c   :  { %1515 = vmatmul.mubr.bf16.vlgmr.msra.gmra.mrb[8].mxu1 %v7817_v61 }
 0x34d   :  { %1597 = vmatmul.mubr.bf16.vlgmr.msra.gmra.mrb[12].mxu0 %v7817_v61  ;;  %3485 = vmatpush1.bf16.msra.mxu1 %v2460_v17  ;;  %v1983_v61 = vld [vmem:[#allocation10 + $0x118] sm:$0xff]  ;;  %v2030_v17 = vld [vmem:[#allocation10 + $0x290] sm:$0xff] }
 0x34e   :  { %3649 = vmatpush1.bf16.msra.mxu0 %v2462_v18  ;;  %3486 = vmatprep.subr.bf16.mxu1 %v2477_v9  ;;  %v2527_v41 = vunpack.c.l.s8.bf16 %v1983_v61  ;;  %v2543_v46 = vunpack.c.h.s8.bf16 %v1983_v61  ;;  %v2620_v18 = vunpack.c.l.s8.bf16 %v2028_v16  ;;  %v2622_v9 = vunpack.c.l.s8.bf16 %v2030_v17  ;;  %v2061_v61 = vld [vmem:[#allocation10 + $0x388] sm:$0xff] }
 0x34f   :  { %3650 = vmatprep.subr.bf16.mxu0 %v2479_v19  ;;  %v2637_v19 = vunpack.c.h.s8.bf16 %v2029_v7  ;;  %v2685_v40 = vunpack.c.l.s8.bf16 %v2061_v61 }
 0x351   :  { %3487 = vmatpush1.bf16.msra.mxu1 %v2476_v21  ;;  %v2047_v21 = vld [vmem:[#allocation10 + $0x318] sm:$0xff] }
 0x352   :  { %3651 = vmatpush1.bf16.msra.mxu0 %v2478_v22  ;;  %3488 = vmatprep.subr.bf16.mxu1 %v2493_v23  ;;  %v2636_v22 = vunpack.c.h.s8.bf16 %v2028_v16  ;;  %v2638_v23 = vunpack.c.h.s8.bf16 %v2030_v17  ;;  %v2655_v29 = vunpack.c.l.s8.bf16 %v2047_v21  ;;  %v2671_v35 = vunpack.c.h.s8.bf16 %v2047_v21 }
 0x353   :  { %3652 = vmatprep.subr.bf16.mxu0 %v2495_v28  ;;  %v2044_v28 = vld [vmem:[#allocation10 + $0x300] sm:$0xff] }
 0x355   :  { %3489 = vmatpush1.bf16.msra.mxu1 %v2492_v30  ;;  %v2046_v30 = vld [vmem:[#allocation10 + $0x310] sm:$0xff] }
 0x356   :  { %3653 = vmatpush1.bf16.msra.mxu0 %v2494_v31  ;;  %3490 = vmatprep.subr.bf16.mxu1 %v2509_v32  ;;  %v2652_v31 = vunpack.c.l.s8.bf16 %v2044_v28  ;;  %v2654_v32 = vunpack.c.l.s8.bf16 %v2046_v30 }
 0x357   :  { %3654 = vmatprep.subr.bf16.mxu0 %v2511_v33  ;;  %v2669_v33 = vunpack.c.h.s8.bf16 %v2045_v20 }
 0x359   :  { %3491 = vmatpush1.bf16.msra.mxu1 %v2508_v37  ;;  %v2063_v37 = vld [vmem:[#allocation10 + $0x398] sm:$0xff] }
 0x35a   :  { %3655 = vmatpush1.bf16.msra.mxu0 %v2510_v38  ;;  %3492 = vmatprep.subr.bf16.mxu1 %v2525_v39  ;;  %v2668_v38 = vunpack.c.h.s8.bf16 %v2044_v28  ;;  %v2670_v39 = vunpack.c.h.s8.bf16 %v2046_v30  ;;  %v2687_v42 = vunpack.c.l.s8.bf16 %v2063_v37  ;;  %v2703_v47 = vunpack.c.h.s8.bf16 %v2063_v37 }
 0x35b   :  { %3656 = vmatprep.subr.bf16.mxu0 %v2527_v41  ;;  %v2060_v41 = vld [vmem:[#allocation10 + $0x380] sm:$0xff] }
 0x35d   :  { %3493 = vmatpush1.bf16.msra.mxu1 %v2524_v43  ;;  %v2062_v43 = vld [vmem:[#allocation10 + $0x390] sm:$0xff] }
 0x35e   :  { %3657 = vmatpush1.bf16.msra.mxu0 %v2526_v44  ;;  %3494 = vmatprep.subr.bf16.mxu1 %v2541_v45  ;;  %v2684_v44 = vunpack.c.l.s8.bf16 %v2060_v41  ;;  %v2686_v45 = vunpack.c.l.s8.bf16 %v2062_v43 }
 0x35f   :  { %3658 = vmatprep.subr.bf16.mxu0 %v2543_v46  ;;  %v2701_v46 = vunpack.c.h.s8.bf16 %v2061_v61 }
 0x361   :  { %3495 = vmatpush1.bf16.msra.mxu1 %v2540_v49  ;;  %v7831_v49 = vld [vmem:[#allocation10 + $0x418] sm:$0xff] }
 0x362   :  { %3659 = vmatpush1.bf16.msra.mxu0 %v2542_v50  ;;  %3496 = vmatprep.subr.bf16.mxu1 %v2557_v51  ;;  %v2700_v50 = vunpack.c.h.s8.bf16 %v2060_v41  ;;  %v2702_v51 = vunpack.c.h.s8.bf16 %v2062_v43 }
 0x363   :  { %3660 = vmatprep.subr.bf16.mxu0 %v2559_v57  ;;  %v2719_v57 = vunpack.c.l.s8.bf16 %v7831_v49 }
 0x365   :  { %3497 = vmatpush1.bf16.msra.mxu1 %v2556_v58  ;;  %v1607_v58 = vld [vmem:[#allocation13 + $0x80] ss:$8 sm:$0xf0] }
 0x366   :  { %3661 = vmatpush1.bf16.msra.mxu0 %v2558_v52  ;;  %3498 = vmatprep.subr.bf16.mxu1 %v2573_v59  ;;  %v7835_v52 = vor.u32 %v1607_v58, %v1606_v8 }
 0x367   :  { %3662 = vmatprep.subr.bf16.mxu0 %v2575_v62 }
 0x368   :  { %v1613_v59 = vrot.slane %v7835_v52, %v7771_v25  ;;  %v1617_v62 = vrot.slane %v7835_v52, %v7774_v27  ;;  %v1625_v53 = vrot.slane %v7835_v52, %v7788_v36  ;;  %v1621_v30 = vrot.slane %v7835_v52, %v7785_v34 }
 0x369   :  { %3499 = vmatpush1.bf16.msra.mxu1 %v2572_v63 }
 0x36a   :  { %3663 = vmatpush1.bf16.msra.mxu0 %v2574_v0  ;;  %3500 = vmatprep.subr.bf16.mxu1 %v2589_v1 }
 0x36b   :  { %3664 = vmatprep.subr.bf16.mxu0 %v2591_v2 }
 0x36d   :  { %3501 = vmatpush1.bf16.msra.mxu1 %v2588_v3 }
 0x36e   :  { %3665 = vmatpush1.bf16.msra.mxu0 %v2590_v4  ;;  %3502 = vmatprep.subr.bf16.mxu1 %v2605_v5 }
 0x36f   :  { %3666 = vmatprep.subr.bf16.mxu0 %v2607_v6 }
 0x371   :  { %3503 = vmatpush1.bf16.msra.mxu1 %v2604_v12 }
 0x372   :  { %3667 = vmatpush1.bf16.msra.mxu0 %v2606_v13  ;;  %3504 = vmatprep.subr.bf16.mxu1 %v2621_v14 }
 0x373   :  { %3668 = vmatprep.subr.bf16.mxu0 %v2623_v55 }
 0x375   :  { %3505 = vmatpush1.bf16.msra.mxu1 %v2620_v18 }
 0x376   :  { %3669 = vmatpush1.bf16.msra.mxu0 %v2622_v9  ;;  %3506 = vmatprep.subr.bf16.mxu1 %v2637_v19 }
 0x377   :  { %3670 = vmatprep.subr.bf16.mxu0 %v2639_v10 }
 0x379   :  { %3507 = vmatpush1.bf16.msra.mxu1 %v2636_v22 }
 0x37a   :  { %3671 = vmatpush1.bf16.msra.mxu0 %v2638_v23  ;;  %3508 = vmatprep.subr.bf16.mxu1 %v2653_v26 }
 0x37b   :  { %3672 = vmatprep.subr.bf16.mxu0 %v2655_v29 }
 0x37d   :  { %3509 = vmatpush1.bf16.msra.mxu1 %v2652_v31 }
 0x37e   :  { %3673 = vmatpush1.bf16.msra.mxu0 %v2654_v32  ;;  %3510 = vmatprep.subr.bf16.mxu1 %v2669_v33 }
 0x37f   :  { %3674 = vmatprep.subr.bf16.mxu0 %v2671_v35 }
 0x381   :  { %3511 = vmatpush1.bf16.msra.mxu1 %v2668_v38 }
 0x382   :  { %3675 = vmatpush1.bf16.msra.mxu0 %v2670_v39  ;;  %3512 = vmatprep.subr.bf16.mxu1 %v2685_v40 }
 0x383   :  { %3676 = vmatprep.subr.bf16.mxu0 %v2687_v42 }
 0x385   :  { %3513 = vmatpush1.bf16.msra.mxu1 %v2684_v44 }
 0x386   :  { %3677 = vmatpush1.bf16.msra.mxu0 %v2686_v45  ;;  %3514 = vmatprep.subr.bf16.mxu1 %v2701_v46 }
 0x387   :  { %3678 = vmatprep.subr.bf16.mxu0 %v2703_v47 }
 0x389   :  { %3515 = vmatpush1.bf16.msra.mxu1 %v2700_v50 }
 0x38a   :  { %3679 = vmatpush1.bf16.msra.mxu0 %v2702_v51  ;;  %3525 = vmatprep.subr.bf16.mxu1 %v2717_v56 }
 0x38b   :  { %3689 = vmatprep.subr.bf16.mxu0 %v2719_v57 }
 0x39f   :  { %v1352_v15 = vpop.f32.mrb[4].mxu1  ;;  %v1434_v63 = vpop.f32.mrb[8].mxu0 }
 0x3a0   :  { %v1650_v0 = vmul.f32 %v1613_v59, %v1352_v15  ;;  %v1354_v1 = vpop.f32.mrb[5].mxu1  ;;  %v1436_v60 = vpop.f32.mrb[9].mxu0  ;;  %v1652_v38 = vmul.f32 %v1621_v30, %v1434_v63 }
 0x3a1   :  { %v1651_v2 = vmul.f32 %v1617_v62, %v1354_v1  ;;  %v1653_v54 = vmul.f32 %v1625_v53, %v1436_v60  ;;  %v1356_v3 = vpop.f32.mrb[6].mxu1  ;;  %v1438_v4 = vpop.f32.mrb[10].mxu0 }
 0x3a2   :  { %v1666_v5 = vrot.slane %v1650_v0, 4  ;;  %v1357_v6 = vpop.f32.mrb[7].mxu1  ;;  %v1439_v7 = vpop.f32.mrb[11].mxu0  ;;  %v1678_v45 = vrot.slane %v1652_v38, 4 }
 0x3a3   :  { %v1672_v11 = vrot.slane %v1651_v2, 4  ;;  %v1684_v12 = vrot.slane %v1653_v54, 4 }
 0x3a4   :  { %v1667_v13 = vadd.f32 %v1666_v5, %v1650_v0  ;;  %v1679_v8 = vadd.f32 %v1678_v45, %v1652_v38 }
 0x3a5   :  { %v1673_v14 = vadd.f32 %v1672_v11, %v1651_v2  ;;  %v1685_v16 = vadd.f32 %v1684_v12, %v1653_v54  ;;  %v1659_v11 = vld [vmem:[#allocation13 + $0x3] ss:$8 sm:$0xf] }
 0x3a6   :  { %v1668_v55 = vrot.slane %v1667_v13, 2  ;;  %v1660_v12 = vld [vmem:[#allocation13 + $0x3] ss:$8 sm:$0xf0] }
 0x3a7   :  { %v1674_v17 = vrot.slane %v1673_v14, 2  ;;  %v1686_v18 = vrot.slane %v1685_v16, 2 }
 0x3a8   :  { %v1669_v9 = vadd.f32 %v1668_v55, %v1667_v13  ;;  %v7845_v55 = vor.u32 %v1660_v12, %v1659_v11  ;;  %v2109_v12 = vld [vmem:[#allocation10 + $0x508] sm:$0xff] }
 0x3a9   :  { %v1675_v19 = vadd.f32 %v1674_v17, %v1673_v14  ;;  %v1687_v10 = vadd.f32 %v1686_v18, %v1685_v16  ;;  %v1663_v14 = vld [vmem:[#allocation13 + $0x4] ss:$8 sm:$0xf] }
 0x3aa   :  { %v1670_v20 = vrot.slane %v1669_v9, 1  ;;  %v1664_v16 = vld [vmem:[#allocation13 + $0x4] ss:$8 sm:$0xf0] }
 0x3ab   :  { %v1676_v21 = vrot.slane %v1675_v19, 1  ;;  %v1688_v22 = vrot.slane %v1687_v10, 1  ;;  %v7847_v17 = vor.u32 %v1664_v16, %v1663_v14 }
 0x3ac   :  { %v1671_v23 = vadd.f32 %v1670_v20, %v1669_v9  ;;  %v1822_v9 = vrot.slane %v7845_v55, %v7771_v25 }
 0x3ad   :  { %v1677_v26 = vadd.f32 %v1676_v21, %v1675_v19  ;;  %v1689_v28 = vadd.f32 %v1688_v22, %v1687_v10  ;;  %v1871_v20 = vrot.slane %v7847_v17, %v7771_v25  ;;  %v1826_v22 = vrot.slane %v7845_v55, %v7774_v27 }
 0x3ae   :  { %v1714_v29 = vmul.f32 0.125, %v1671_v23 }
 0x3af   :  { %v1715_v31 = vmul.f32 0.125, %v1677_v26  ;;  %v1717_v32 = vmul.f32 0.125, %v1689_v28  ;;  %v1834_v26 = vrot.slane %v7845_v55, %v7788_v36 }
 0x3b0   :  { %v1722_v33 = vsub.f32 %v1650_v0, %v1714_v29  ;;  %v1680_v0 = vrot.slane %v1679_v8, 2 }
 0x3b1   :  { %v1723_v35 = vsub.f32 %v1651_v2, %v1715_v31  ;;  %v1725_v61 = vsub.f32 %v1653_v54, %v1717_v32  ;;  %v1875_v31 = vrot.slane %v7847_v17, %v7774_v27 }
 0x3b2   :  { %v1730_v37 = vmul.f32 %v1722_v33, %v1722_v33  ;;  %v1681_v5 = vadd.f32 %v1680_v0, %v1679_v8 }
 0x3b3   :  { %v1731_v39 = vmul.f32 %v1723_v35, %v1723_v35  ;;  %v1733_v40 = vmul.f32 %v1725_v61, %v1725_v61 }
 0x3b4   :  { %v1738_v41 = vrot.slane %v1730_v37, 4  ;;  %v1682_v13 = vrot.slane %v1681_v5, 1 }
 0x3b5   :  { %v1744_v42 = vrot.slane %v1731_v39, 4  ;;  %v1756_v43 = vrot.slane %v1733_v40, 4 }
 0x3b6   :  { %v1739_v44 = vadd.f32 %v1738_v41, %v1730_v37  ;;  %v1683_v18 = vadd.f32 %v1682_v13, %v1681_v5  ;;  %v2111_v13 = vld [vmem:[#allocation10 + $0x518] sm:$0xff] }
 0x3b7   :  { %v1745_v46 = vadd.f32 %v1744_v42, %v1731_v39  ;;  %v1757_v47 = vadd.f32 %v1756_v43, %v1733_v40 }
 0x3b8   :  { %v1740_v50 = vrot.slane %v1739_v44, 2  ;;  %v1716_v21 = vmul.f32 0.125, %v1683_v18 }
 0x3b9   :  { %v1746_v51 = vrot.slane %v1745_v46, 2  ;;  %v1758_v56 = vrot.slane %v1757_v47, 2 }
 0x3ba   :  { %v1741_v57 = vadd.f32 %v1740_v50, %v1739_v44  ;;  %v7861_v39 = vsub.f32 %v1652_v38, %v1716_v21 }
 0x3bb   :  { %v1747_v58 = vadd.f32 %v1746_v51, %v1745_v46  ;;  %v1759_v59 = vadd.f32 %v1758_v56, %v1757_v47  ;;  %v2076_v46 = vld [vmem:[#allocation10 + $0x400] sm:$0xff]  ;;  %v2078_v47 = vld [vmem:[#allocation10 + $0x410] sm:$0xff] }
 0x3bc   :  { %v1742_v62 = vrot.slane %v1741_v57, 1  ;;  %v1732_v45 = vmul.f32 %v7861_v39, %v7861_v39  ;;  %v2718_v8 = vunpack.c.l.s8.bf16 %v2078_v47 }
 0x3bd   :  { %v1748_v53 = vrot.slane %v1747_v58, 1  ;;  %v1760_v15 = vrot.slane %v1759_v59, 1 }
 0x3be   :  { %v1743_v63 = vadd.f32 %v1742_v62, %v1741_v57  ;;  %v2716_v57 = vunpack.c.l.s8.bf16 %v2076_v46  ;;  %v2733_v62 = vunpack.c.h.s8.bf16 %v7829_v48 }
 0x3bf   :  { %v1749_v1 = vadd.f32 %v1748_v53, %v1747_v58  ;;  %v1761_v60 = vadd.f32 %v1760_v15, %v1759_v59  ;;  %v1750_v59 = vrot.slane %v1732_v45, 4  ;;  %v2735_v53 = vunpack.c.h.s8.bf16 %v7831_v49  ;;  %v2093_v15 = vld [vmem:[#allocation10 + $0x488] sm:$0xff]  ;;  %v2092_v49 = vld [vmem:[#allocation10 + $0x480] sm:$0xff] }
 0x3c0   :  { %v1786_v2 = vmul.f32 0.125, %v1743_v63  ;;  %v2095_v63 = vld [vmem:[#allocation10 + $0x498] sm:$0xff]  ;;  %v2749_v48 = vunpack.c.l.s8.bf16 %v2093_v15  ;;  %v2764_v14 = vunpack.c.h.s8.bf16 %v2092_v49 }
 0x3c1   :  { %v1787_v54 = vmul.f32 0.125, %v1749_v1  ;;  %v1789_v3 = vmul.f32 0.125, %v1761_v60  ;;  %v2732_v1 = vunpack.c.h.s8.bf16 %v2076_v46  ;;  %v2734_v60 = vunpack.c.h.s8.bf16 %v2078_v47  ;;  %v2141_v47 = vld [vmem:[#allocation10 + $0x608] sm:$0xff] }
 0x3c2   :  { %v1794_v4 = vadd.f32 0.8, %v1786_v2  ;;  %v1751_v2 = vadd.f32 %v1750_v59, %v1732_v45  ;;  %v2767_v11 = vunpack.c.h.s8.bf16 %v2095_v63  ;;  %v2140_v59 = vld [vmem:[#allocation10 + $0x600] sm:$0xff] }
 0x3c3   :  { %v1795_v6 = vadd.f32 0.8, %v1787_v54  ;;  %v1797_v7 = vadd.f32 0.8, %v1789_v3  ;;  %v2751_v54 = vunpack.c.l.s8.bf16 %v2095_v63  ;;  %v2094_v3 = vld [vmem:[#allocation10 + $0x490] sm:$0xff]  ;;  %v2861_v63 = vunpack.c.h.s8.bf16 %v2141_v47 }
 0x3c4   :  { %7380 = vrsqrt.f32 %v1794_v4  ;;  %v2748_v4 = vunpack.c.l.s8.bf16 %v2092_v49  ;;  %v2750_v5 = vunpack.c.l.s8.bf16 %v2094_v3  ;;  %v2766_v16 = vunpack.c.h.s8.bf16 %v2094_v3 }
 0x3c5   :  { %7382 = vrsqrt.f32 %v1795_v6  ;;  %v1752_v6 = vrot.slane %v1751_v2, 2 }
 0x3c6   :  { %7384 = vrsqrt.f32 %v1797_v7  ;;  %v2765_v7 = vunpack.c.h.s8.bf16 %v2093_v15 }
 0x3c7   :  { %v1753_v18 = vadd.f32 %v1752_v6, %v1751_v2  ;;  %v2159_v2 = vld [vmem:[#allocation10 + $0x698] sm:$0xff] }
 0x3c8   :  { %v2879_v3 = vunpack.c.l.s8.bf16 %v2159_v2 }
 0x3ce   :  { %v7381_v19 = vpop.eup %7380 }
 0x3cf   :  { %v1810_v10 = vmul.f32 %v7381_v19, %v1722_v33  ;;  %v7383_v23 = vpop.eup %7382  ;;  %v1883_v33 = vrot.slane %v7847_v17, %v7788_v36  ;;  %v2783_v19 = vunpack.c.l.s8.bf16 %v2111_v13 }
 0x3d0   :  { %v7385_v28 = vpop.eup %7384  ;;  %v1811_v30 = vmul.f32 %v7383_v23, %v1723_v35  ;;  %v1754_v23 = vrot.slane %v1753_v18, 1 }
 0x3d1   :  { %v1859_v29 = vmul.f32 %v1822_v9, %v1810_v10  ;;  %v1813_v32 = vmul.f32 %v7385_v28, %v1725_v61  ;;  %v2781_v9 = vunpack.c.l.s8.bf16 %v2109_v12  ;;  %v2108_v10 = vld [vmem:[#allocation10 + $0x500] sm:$0xff]  ;;  %v2799_v28 = vunpack.c.h.s8.bf16 %v2111_v13  ;;  %v2173_v13 = vld [vmem:[#allocation10 + $0x708] sm:$0xff] }
 0x3d2   :  { %v1860_v40 = vmul.f32 %v1826_v22, %v1811_v30  ;;  %v2780_v21 = vunpack.c.l.s8.bf16 %v2108_v10  ;;  %v2127_v30 = vld [vmem:[#allocation10 + $0x598] sm:$0xff] }
 0x3d3   :  { %v1908_v37 = vadd.f32 %v1871_v20, %v1859_v29  ;;  %v1862_v41 = vmul.f32 %v1834_v26, %v1813_v32  ;;  %v2110_v20 = vld [vmem:[#allocation10 + $0x510] sm:$0xff]  ;;  %v2797_v26 = vunpack.c.h.s8.bf16 %v2109_v12  ;;  %v2125_v29 = vld [vmem:[#allocation10 + $0x588] sm:$0xff]  ;;  %v2831_v46 = vunpack.c.h.s8.bf16 %v2127_v30 }
 0x3d4   :  { %v1909_v43 = vadd.f32 %v1875_v31, %v1860_v40  ;;  %v2782_v22 = vunpack.c.l.s8.bf16 %v2110_v20  ;;  %v2796_v31 = vunpack.c.h.s8.bf16 %v2108_v10  ;;  %v2798_v32 = vunpack.c.h.s8.bf16 %v2110_v20  ;;  %v2172_v20 = vld [vmem:[#allocation10 + $0x700] sm:$0xff] }
 0x3d5   :  { %vm1916_vm6 = vcmp.ge.f32.partialorder %v1908_v37, 0.0  ;;  %v1924_v42 = vmul.f32 0.2, %v1908_v37  ;;  %v1911_v44 = vadd.f32 %v1883_v33, %v1862_v41  ;;  %v1755_v33 = vadd.f32 %v1754_v23, %v1753_v18  ;;  %v2124_v41 = vld [vmem:[#allocation10 + $0x580] sm:$0xff] }
 0x3d6   :  { %vm1917_vm7 = vcmp.ge.f32.partialorder %v1909_v43, 0.0  ;;  %v1925_v35 = vmul.f32 0.2, %v1909_v43  ;;  %v2815_v40 = vunpack.c.l.s8.bf16 %v2127_v30  ;;  %v2895_v12 = vunpack.c.h.s8.bf16 %v2159_v2 }
 0x3d7   :  { %v1932_v61 = vsel %vm1916_vm6, %v1908_v37, %v1924_v42  ;;  %vm1919_vm8 = vcmp.ge.f32.partialorder %v1911_v44, 0.0  ;;  %v1927_v50 = vmul.f32 0.2, %v1911_v44  ;;  %v2813_v37 = vunpack.c.l.s8.bf16 %v2125_v29  ;;  %v2126_v42 = vld [vmem:[#allocation10 + $0x590] sm:$0xff] }
 0x3d8   :  { %v1933_v51 = vsel %vm1917_vm7, %v1909_v43, %v1925_v35  ;;  %v7867_v58 = vpack.c.bf16 %v1932_v61, %v1932_v61  ;;  %v2812_v43 = vunpack.c.l.s8.bf16 %v2124_v41  ;;  %v1788_v45 = vmul.f32 0.125, %v1755_v33  ;;  %v2143_v61 = vld [vmem:[#allocation10 + $0x618] sm:$0xff]  ;;  %v2189_v33 = vld [vmem:[#allocation10 + $0x788] sm:$0xff] }
 0x3d9   :  { %v7865_v56 = vpack.c.bf16 %v1933_v51, %v1933_v51  ;;  %v1935_v38 = vsel %vm1919_vm8, %v1911_v44, %v1927_v50  ;;  %v2814_v44 = vunpack.c.l.s8.bf16 %v2126_v42  ;;  %v2829_v35 = vunpack.c.h.s8.bf16 %v2125_v29 }
 0x3da   :  { %v7873_v0 = vpack.c.bf16 %v1935_v38, %v1935_v38  ;;  %v2828_v50 = vunpack.c.h.s8.bf16 %v2124_v41  ;;  %v2830_v51 = vunpack.c.h.s8.bf16 %v2126_v42  ;;  %v1796_v38 = vadd.f32 0.8, %v1788_v45 }
 0x3db   :  { %3516 = vmatprep.mubr.bf16.mxu1 %v7865_v56  ;;  %3680 = vmatprep.mubr.bf16.mxu0 %v7865_v56  ;;  %v1830_v23 = vrot.slane %v7845_v55, %v7785_v34  ;;  %v2925_v29 = vunpack.c.h.s8.bf16 %v2173_v13  ;;  %v2941_v41 = vunpack.c.l.s8.bf16 %v2189_v33 }
 0x3dc   :  { %3517 = vmatmul.mubr.bf16.vlgmr.msra.gmra.mrb[12].mxu1 %v7867_v58  ;;  %3681 = vmatmul.mubr.bf16.vlgmr.msra.gmra.mrb[16].mxu0 %v7867_v58  ;;  %7386 = vrsqrt.f32 %v1796_v38  ;;  %v2207_v38 = vld [vmem:[#allocation10 + $0x818] sm:$0xff] }
 0x3dd   :  { %3526 = vmatpush1.bf16.msra.mxu1 %v2716_v57  ;;  %3690 = vmatpush1.bf16.msra.mxu0 %v2718_v8  ;;  %v2845_v57 = vunpack.c.l.s8.bf16 %v2141_v47  ;;  %v2847_v8 = vunpack.c.l.s8.bf16 %v2143_v61  ;;  %v2957_v47 = vunpack.c.h.s8.bf16 %v2189_v33 }
 0x3de   :  { %3557 = vmatprep.mubr.bf16.mxu1 %v7873_v0  ;;  %3721 = vmatprep.mubr.bf16.mxu0 %v7873_v0 }
 0x3df   :  { %3527 = vmatprep.subr.bf16.mxu1 %v2733_v62  ;;  %3691 = vmatprep.subr.bf16.mxu0 %v2735_v53  ;;  %v2142_v62 = vld [vmem:[#allocation10 + $0x610] sm:$0xff]  ;;  %v2844_v53 = vunpack.c.l.s8.bf16 %v2140_v59 }
 0x3e0   :  { %v2846_v15 = vunpack.c.l.s8.bf16 %v2142_v62 }
 0x3e1   :  { %3528 = vmatpush1.bf16.msra.mxu1 %v2732_v1  ;;  %3692 = vmatpush1.bf16.msra.mxu0 %v2734_v60  ;;  %v2863_v1 = vunpack.c.h.s8.bf16 %v2143_v61  ;;  %v2157_v60 = vld [vmem:[#allocation10 + $0x688] sm:$0xff] }
 0x3e2   :  { %3529 = vmatprep.subr.bf16.mxu1 %v2749_v48  ;;  %3693 = vmatprep.subr.bf16.mxu0 %v2751_v54  ;;  %v2860_v48 = vunpack.c.h.s8.bf16 %v2140_v59  ;;  %v2862_v54 = vunpack.c.h.s8.bf16 %v2142_v62  ;;  %v2877_v49 = vunpack.c.l.s8.bf16 %v2157_v60  ;;  %v2975_v62 = vunpack.c.l.s8.bf16 %v2207_v38 }
 0x3e5   :  { %3530 = vmatpush1.bf16.msra.mxu1 %v2748_v4  ;;  %3694 = vmatpush1.bf16.msra.mxu0 %v2750_v5  ;;  %v2156_v4 = vld [vmem:[#allocation10 + $0x680] sm:$0xff]  ;;  %v2158_v5 = vld [vmem:[#allocation10 + $0x690] sm:$0xff] }
 0x3e6   :  { %3531 = vmatprep.subr.bf16.mxu1 %v2765_v7  ;;  %3695 = vmatprep.subr.bf16.mxu0 %v2767_v11  ;;  %v2876_v6 = vunpack.c.l.s8.bf16 %v2156_v4  ;;  %v2878_v7 = vunpack.c.l.s8.bf16 %v2158_v5  ;;  %v2893_v11 = vunpack.c.h.s8.bf16 %v2157_v60  ;;  %v2892_v18 = vunpack.c.h.s8.bf16 %v2156_v4 }
 0x3e7   :  { %v7888_v60 = vsub.s32 5, %v7768_v24  ;;  %v2991_v4 = vunpack.c.h.s8.bf16 %v2207_v38 }
 0x3e9   :  { %3532 = vmatpush1.bf16.msra.mxu1 %v2764_v14  ;;  %3696 = vmatpush1.bf16.msra.mxu0 %v2766_v16  ;;  %v2175_v14 = vld [vmem:[#allocation10 + $0x718] sm:$0xff]  ;;  %v7387_v16 = vpop.eup %7386 }
 0x3ea   :  { %3533 = vmatprep.subr.bf16.mxu1 %v2781_v9  ;;  %3697 = vmatprep.subr.bf16.mxu0 %v2783_v19  ;;  %v2894_v9 = vunpack.c.h.s8.bf16 %v2158_v5  ;;  %v2909_v19 = vunpack.c.l.s8.bf16 %v2173_v13  ;;  %v2911_v10 = vunpack.c.l.s8.bf16 %v2175_v14  ;;  %v2927_v30 = vunpack.c.h.s8.bf16 %v2175_v14 }
 0x3ed   :  { %3534 = vmatpush1.bf16.msra.mxu1 %v2780_v21  ;;  %3698 = vmatpush1.bf16.msra.mxu0 %v2782_v22  ;;  %v2174_v21 = vld [vmem:[#allocation10 + $0x710] sm:$0xff]  ;;  %v1812_v22 = vmul.f32 %v7387_v16, %v7861_v39  ;;  %v2924_v39 = vunpack.c.h.s8.bf16 %v2172_v20 }
 0x3ee   :  { %3535 = vmatprep.subr.bf16.mxu1 %v2797_v26  ;;  %3699 = vmatprep.subr.bf16.mxu0 %v2799_v28  ;;  %v2908_v26 = vunpack.c.l.s8.bf16 %v2172_v20  ;;  %v2910_v28 = vunpack.c.l.s8.bf16 %v2174_v21 }
 0x3f1   :  { %3536 = vmatpush1.bf16.msra.mxu1 %v2796_v31  ;;  %3700 = vmatpush1.bf16.msra.mxu0 %v2798_v32  ;;  %v1861_v31 = vmul.f32 %v1830_v23, %v1812_v22  ;;  %v1879_v32 = vrot.slane %v7847_v17, %v7785_v34 }
 0x3f2   :  { %3537 = vmatprep.subr.bf16.mxu1 %v2813_v37  ;;  %3701 = vmatprep.subr.bf16.mxu0 %v2815_v40  ;;  %v2191_v37 = vld [vmem:[#allocation10 + $0x798] sm:$0xff]  ;;  %v2926_v40 = vunpack.c.h.s8.bf16 %v2174_v21 }
 0x3f3   :  { %v2943_v42 = vunpack.c.l.s8.bf16 %v2191_v37  ;;  %v1910_v45 = vadd.f32 %v1879_v32, %v1861_v31  ;;  %v2959_v61 = vunpack.c.h.s8.bf16 %v2191_v37 }
 0x3f5   :  { %3538 = vmatpush1.bf16.msra.mxu1 %v2812_v43  ;;  %3702 = vmatpush1.bf16.msra.mxu0 %v2814_v44  ;;  %v2188_v43 = vld [vmem:[#allocation10 + $0x780] sm:$0xff]  ;;  %v2190_v44 = vld [vmem:[#allocation10 + $0x790] sm:$0xff]  ;;  %vm1918_vm9 = vcmp.ge.f32.partialorder %v1910_v45, 0.0 }
 0x3f6   :  { %3539 = vmatprep.subr.bf16.mxu1 %v2829_v35  ;;  %3703 = vmatprep.subr.bf16.mxu0 %v2831_v46  ;;  %v2940_v35 = vunpack.c.l.s8.bf16 %v2188_v43  ;;  %v2942_v46 = vunpack.c.l.s8.bf16 %v2190_v44 }
 0x3f9   :  { %3540 = vmatpush1.bf16.msra.mxu1 %v2828_v50  ;;  %3704 = vmatpush1.bf16.msra.mxu0 %v2830_v51  ;;  %v1926_v50 = vmul.f32 0.2, %v1910_v45  ;;  %v2205_v51 = vld [vmem:[#allocation10 + $0x808] sm:$0xff] }
 0x3fa   :  { %3541 = vmatprep.subr.bf16.mxu1 %v2845_v57  ;;  %3705 = vmatprep.subr.bf16.mxu0 %v2847_v8  ;;  %v2956_v57 = vunpack.c.h.s8.bf16 %v2188_v43  ;;  %v2958_v8 = vunpack.c.h.s8.bf16 %v2190_v44  ;;  %v2973_v59 = vunpack.c.l.s8.bf16 %v2205_v51 }
 0x3fd   :  { %3542 = vmatpush1.bf16.msra.mxu1 %v2844_v53  ;;  %3706 = vmatpush1.bf16.msra.mxu0 %v2846_v15  ;;  %v2204_v53 = vld [vmem:[#allocation10 + $0x800] sm:$0xff]  ;;  %v2206_v15 = vld [vmem:[#allocation10 + $0x810] sm:$0xff] }
 0x3fe   :  { %3543 = vmatprep.subr.bf16.mxu1 %v2861_v63  ;;  %3707 = vmatprep.subr.bf16.mxu0 %v2863_v1  ;;  %v1934_v63 = vsel %vm1918_vm9, %v1910_v45, %v1926_v50  ;;  %v7885_v1 = vsub.s32 4, %v7768_v24  ;;  %v2972_v2 = vunpack.c.l.s8.bf16 %v2204_v53  ;;  %v2988_v13 = vunpack.c.h.s8.bf16 %v2204_v53  ;;  %v2237_v45 = vld [vmem:[#allocation10 + $0x908] sm:$0xff] }
 0x3ff   :  { %v2990_v14 = vunpack.c.h.s8.bf16 %v2206_v15 }
 0x400   :  { %v1629_v5 = vrot.slane %v7835_v52, %v7885_v1 }
 0x401   :  { %3544 = vmatpush1.bf16.msra.mxu1 %v2860_v48  ;;  %3708 = vmatpush1.bf16.msra.mxu0 %v2862_v54  ;;  %v2974_v48 = vunpack.c.l.s8.bf16 %v2206_v15  ;;  %v7891_v54 = vsub.s32 7, %v7768_v24 }
 0x402   :  { %3545 = vmatprep.subr.bf16.mxu1 %v2877_v49  ;;  %3709 = vmatprep.subr.bf16.mxu0 %v2879_v3  ;;  %v7893_v49 = vpack.c.bf16 %v1934_v63, %v1934_v63  ;;  %v2989_v3 = vunpack.c.h.s8.bf16 %v2205_v51 }
 0x405   :  { %3546 = vmatpush1.bf16.msra.mxu1 %v2876_v6  ;;  %3710 = vmatpush1.bf16.msra.mxu0 %v2878_v7  ;;  %v2221_v6 = vld [vmem:[#allocation10 + $0x888] sm:$0xff]  ;;  %v2223_v7 = vld [vmem:[#allocation10 + $0x898] sm:$0xff] }
 0x406   :  { %3547 = vmatprep.subr.bf16.mxu1 %v2893_v11  ;;  %3711 = vmatprep.subr.bf16.mxu0 %v2895_v12  ;;  %v1633_v11 = vrot.slane %v7835_v52, %v7888_v60  ;;  %v1641_v12 = vrot.slane %v7835_v52, %v7891_v54 }
 0x409   :  { %3548 = vmatpush1.bf16.msra.mxu1 %v2892_v18  ;;  %3712 = vmatpush1.bf16.msra.mxu0 %v2894_v9  ;;  %v3005_v18 = vunpack.c.l.s8.bf16 %v2221_v6  ;;  %v3007_v9 = vunpack.c.l.s8.bf16 %v2223_v7 }
 0x40a   :  { %3549 = vmatprep.subr.bf16.mxu1 %v2909_v19  ;;  %3713 = vmatprep.subr.bf16.mxu0 %v2911_v10  ;;  %v2220_v19 = vld [vmem:[#allocation10 + $0x880] sm:$0xff]  ;;  %v2222_v10 = vld [vmem:[#allocation10 + $0x890] sm:$0xff] }
 0x40b   :  { %v3004_v33 = vunpack.c.l.s8.bf16 %v2220_v19  ;;  %v3006_v37 = vunpack.c.l.s8.bf16 %v2222_v10  ;;  %v3020_v50 = vunpack.c.h.s8.bf16 %v2220_v19  ;;  %v3022_v51 = vunpack.c.h.s8.bf16 %v2222_v10 }
 0x40d   :  { %3550 = vmatpush1.bf16.msra.mxu1 %v2908_v26  ;;  %3714 = vmatpush1.bf16.msra.mxu0 %v2910_v28 }
 0x40e   :  { %3551 = vmatprep.subr.bf16.mxu1 %v2925_v29  ;;  %3715 = vmatprep.subr.bf16.mxu0 %v2927_v30 }
 0x411   :  { %3552 = vmatpush1.bf16.msra.mxu1 %v2924_v39  ;;  %3716 = vmatpush1.bf16.msra.mxu0 %v2926_v40 }
 0x412   :  { %3553 = vmatprep.subr.bf16.mxu1 %v2941_v41  ;;  %3717 = vmatprep.subr.bf16.mxu0 %v2943_v42  ;;  %v3021_v41 = vunpack.c.h.s8.bf16 %v2221_v6  ;;  %v3023_v42 = vunpack.c.h.s8.bf16 %v2223_v7  ;;  %v3053_v7 = vunpack.c.h.s8.bf16 %v2237_v45 }
 0x415   :  { %3554 = vmatpush1.bf16.msra.mxu1 %v2940_v35  ;;  %3718 = vmatpush1.bf16.msra.mxu0 %v2942_v46  ;;  %v2239_v35 = vld [vmem:[#allocation10 + $0x918] sm:$0xff] }
 0x416   :  { %3555 = vmatprep.subr.bf16.mxu1 %v2957_v47  ;;  %3719 = vmatprep.subr.bf16.mxu0 %v2959_v61 }
 0x419   :  { %3556 = vmatpush1.bf16.msra.mxu1 %v2956_v57  ;;  %3720 = vmatpush1.bf16.msra.mxu0 %v2958_v8  ;;  %v3037_v57 = vunpack.c.l.s8.bf16 %v2237_v45  ;;  %v3039_v8 = vunpack.c.l.s8.bf16 %v2239_v35 }
 0x41a   :  { %3566 = vmatprep.subr.bf16.mxu1 %v2973_v59  ;;  %3730 = vmatprep.subr.bf16.mxu0 %v2975_v62  ;;  %v2236_v59 = vld [vmem:[#allocation10 + $0x900] sm:$0xff]  ;;  %v2238_v62 = vld [vmem:[#allocation10 + $0x910] sm:$0xff] }
 0x41b   :  { %v3052_v10 = vunpack.c.h.s8.bf16 %v2236_v59 }
 0x41c   :  { %3558 = vmatmul.mubr.bf16.vlgmr.msra.gmra.mrb[12].mxu1 %v7893_v49  ;;  %3722 = vmatmul.mubr.bf16.vlgmr.msra.gmra.mrb[16].mxu0 %v7893_v49 }
 0x41d   :  { %3567 = vmatpush1.bf16.msra.mxu1 %v2972_v2  ;;  %3731 = vmatpush1.bf16.msra.mxu0 %v2974_v48 }
 0x41e   :  { %3568 = vmatprep.subr.bf16.mxu1 %v2989_v3  ;;  %3732 = vmatprep.subr.bf16.mxu0 %v2991_v4  ;;  %v3036_v3 = vunpack.c.l.s8.bf16 %v2236_v59  ;;  %v3038_v4 = vunpack.c.l.s8.bf16 %v2238_v62 }
 0x41f   :  { %v1516_v16 = vpop.f32.mrb[8].mxu1 }
 0x420   :  { %v7903_v20 = vmul.f32 %v1629_v5, %v1516_v16  ;;  %v7905_v21 = vpop.f32.mrb[12].mxu0  ;;  %v1518_v22 = vpop.f32.mrb[9].mxu1  ;;  %v7918_v5 = vsub.s32 6, %v7768_v24  ;;  %v2255_v16 = vld [vmem:[#allocation10 + $0x998] sm:$0xff] }
 0x421   :  { %v7907_v23 = vmul.f32 %v1633_v11, %v1518_v22  ;;  %v1600_v26 = vpop.f32.mrb[13].mxu0  ;;  %v1520_v28 = vpop.f32.mrb[10].mxu1  ;;  %3569 = vmatpush1.bf16.msra.mxu1 %v2988_v13  ;;  %3733 = vmatpush1.bf16.msra.mxu0 %v2990_v14  ;;  %v3055_v11 = vunpack.c.h.s8.bf16 %v2239_v35  ;;  %v2253_v14 = vld [vmem:[#allocation10 + $0x988] sm:$0xff]  ;;  %v3054_v22 = vunpack.c.h.s8.bf16 %v2238_v62  ;;  %v2268_v62 = vld [vmem:[#allocation10 + $0xa00] sm:$0xff] }
 0x422   :  { %v1690_v29 = vrot.slane %v7903_v20, 4  ;;  %v7910_v30 = vmul.f32 %v1641_v12, %v1600_v26  ;;  %v1602_v31 = vpop.f32.mrb[14].mxu0  ;;  %v1521_v32 = vpop.f32.mrb[11].mxu1  ;;  %3570 = vmatprep.subr.bf16.mxu1 %v3005_v18  ;;  %3734 = vmatprep.subr.bf16.mxu0 %v3007_v9  ;;  %v1637_v24 = vrot.slane %v7835_v52, %v7918_v5  ;;  %v3069_v28 = vunpack.c.l.s8.bf16 %v2253_v14 }
 0x423   :  { %v1696_v39 = vrot.slane %v7907_v23, 4  ;;  %v1603_v40 = vpop.f32.mrb[15].mxu0  ;;  %v2252_v31 = vld [vmem:[#allocation10 + $0x980] sm:$0xff]  ;;  %v2254_v32 = vld [vmem:[#allocation10 + $0x990] sm:$0xff] }
 0x424   :  { %v1691_v43 = vadd.f32 %v1690_v29, %v7903_v20  ;;  %v1708_v44 = vrot.slane %v7910_v30, 4  ;;  %v3071_v29 = vunpack.c.l.s8.bf16 %v2255_v16  ;;  %v3068_v52 = vunpack.c.l.s8.bf16 %v2252_v31 }
 0x425   :  { %v1697_v46 = vadd.f32 %v1696_v39, %v7907_v23  ;;  %3571 = vmatpush1.bf16.msra.mxu1 %v3004_v33  ;;  %3735 = vmatpush1.bf16.msra.mxu0 %v3006_v37 }
 0x426   :  { %v1692_v47 = vrot.slane %v1691_v43, 2  ;;  %v1709_v61 = vadd.f32 %v1708_v44, %v7910_v30  ;;  %3572 = vmatprep.subr.bf16.mxu1 %v3021_v41  ;;  %3736 = vmatprep.subr.bf16.mxu0 %v3023_v42  ;;  %v3070_v42 = vunpack.c.l.s8.bf16 %v2254_v32  ;;  %v3087_v44 = vunpack.c.h.s8.bf16 %v2255_v16 }
 0x427   :  { %v1698_v38 = vrot.slane %v1697_v46, 2 }
 0x428   :  { %v1693_v53 = vadd.f32 %v1692_v47, %v1691_v43  ;;  %v1710_v15 = vrot.slane %v1709_v61, 2  ;;  %v7934_v43 = vmul.f32 %v1637_v24, %v7905_v21  ;;  %v3084_v21 = vunpack.c.h.s8.bf16 %v2252_v31 }
 0x429   :  { %v1699_v63 = vadd.f32 %v1698_v38, %v1697_v46  ;;  %3573 = vmatpush1.bf16.msra.mxu1 %v3020_v50  ;;  %3737 = vmatpush1.bf16.msra.mxu0 %v3022_v51  ;;  %v2271_v46 = vld [vmem:[#allocation10 + $0xa18] sm:$0xff]  ;;  %v3086_v51 = vunpack.c.h.s8.bf16 %v2254_v32  ;;  %v3116_v24 = vunpack.c.h.s8.bf16 %v2268_v62 }
 0x42a   :  { %v1694_v2 = vrot.slane %v1693_v53, 1  ;;  %v1711_v48 = vadd.f32 %v1710_v15, %v1709_v61  ;;  %3574 = vmatprep.subr.bf16.mxu1 %v3037_v57  ;;  %3738 = vmatprep.subr.bf16.mxu0 %v3039_v8  ;;  %v1702_v38 = vrot.slane %v7934_v43, 4  ;;  %v3103_v59 = vunpack.c.l.s8.bf16 %v2271_v46 }
 0x42b   :  { %v1700_v6 = vrot.slane %v1699_v63, 1 }
 0x42c   :  { %v1695_v12 = vadd.f32 %v1694_v2, %v1693_v53  ;;  %v1712_v13 = vrot.slane %v1711_v48, 1  ;;  %v2270_v53 = vld [vmem:[#allocation10 + $0xa10] sm:$0xff] }
 0x42d   :  { %v1701_v18 = vadd.f32 %v1700_v6, %v1699_v63  ;;  %3575 = vmatpush1.bf16.msra.mxu1 %v3036_v3  ;;  %3739 = vmatpush1.bf16.msra.mxu0 %v3038_v4  ;;  %v3100_v4 = vunpack.c.l.s8.bf16 %v2268_v62  ;;  %v3102_v6 = vunpack.c.l.s8.bf16 %v2270_v53 }
 0x42e   :  { %v1718_v9 = vmul.f32 0.125, %v1695_v12  ;;  %v1713_v19 = vadd.f32 %v1712_v13, %v1711_v48  ;;  %3576 = vmatprep.subr.bf16.mxu1 %v3053_v7  ;;  %3740 = vmatprep.subr.bf16.mxu0 %v3055_v11  ;;  %v1703_v7 = vadd.f32 %v1702_v38, %v7934_v43  ;;  %v3119_v13 = vunpack.c.h.s8.bf16 %v2271_v46 }
 0x42f   :  { %v1719_v26 = vmul.f32 0.125, %v1701_v18  ;;  %v2285_v18 = vld [vmem:[#allocation10 + $0xa88] sm:$0xff] }
 0x430   :  { %v7923_v33 = vsub.f32 %v7903_v20, %v1718_v9  ;;  %v1721_v37 = vmul.f32 0.125, %v1713_v19  ;;  %v2287_v9 = vld [vmem:[#allocation10 + $0xa98] sm:$0xff]  ;;  %v3133_v31 = vunpack.c.l.s8.bf16 %v2285_v18 }
 0x431   :  { %v7926_v39 = vsub.f32 %v7907_v23, %v1719_v26  ;;  %3577 = vmatpush1.bf16.msra.mxu1 %v3052_v10  ;;  %3741 = vmatpush1.bf16.msra.mxu0 %v3054_v22  ;;  %v3085_v23 = vunpack.c.h.s8.bf16 %v2253_v14  ;;  %v3118_v26 = vunpack.c.h.s8.bf16 %v2270_v53  ;;  %v3135_v32 = vunpack.c.l.s8.bf16 %v2287_v9  ;;  %v2300_v53 = vld [vmem:[#allocation10 + $0xb00] sm:$0xff] }
 0x432   :  { %v1734_v40 = vmul.f32 %v7923_v33, %v7923_v33  ;;  %v7931_v41 = vsub.f32 %v7910_v30, %v1721_v37  ;;  %3578 = vmatprep.subr.bf16.mxu1 %v3069_v28  ;;  %3742 = vmatprep.subr.bf16.mxu0 %v3071_v29  ;;  %v2269_v30 = vld [vmem:[#allocation10 + $0xa08] sm:$0xff]  ;;  %v1704_v28 = vrot.slane %v1703_v7, 2  ;;  %v2284_v37 = vld [vmem:[#allocation10 + $0xa80] sm:$0xff] }
 0x433   :  { %v1735_v20 = vmul.f32 %v7926_v39, %v7926_v39  ;;  %v3101_v8 = vunpack.c.l.s8.bf16 %v2269_v30  ;;  %v3117_v12 = vunpack.c.h.s8.bf16 %v2269_v30  ;;  %v3148_v38 = vunpack.c.h.s8.bf16 %v2284_v37 }
 0x434   :  { %v1762_v45 = vrot.slane %v1734_v40, 4  ;;  %v1737_v35 = vmul.f32 %v7931_v41, %v7931_v41  ;;  %v1705_v30 = vadd.f32 %v1704_v28, %v1703_v7  ;;  %v2319_v7 = vld [vmem:[#allocation10 + $0xb98] sm:$0xff] }
 0x435   :  { %v1768_v47 = vrot.slane %v1735_v20, 4  ;;  %3579 = vmatpush1.bf16.msra.mxu1 %v3068_v52  ;;  %3743 = vmatpush1.bf16.msra.mxu0 %v3070_v42 }
 0x436   :  { %v1763_v61 = vadd.f32 %v1762_v45, %v1734_v40  ;;  %v1780_v50 = vrot.slane %v1737_v35, 4  ;;  %3580 = vmatprep.subr.bf16.mxu1 %v3085_v23  ;;  %3744 = vmatprep.subr.bf16.mxu0 %v3087_v44  ;;  %v2286_v40 = vld [vmem:[#allocation10 + $0xa90] sm:$0xff]  ;;  %v3132_v45 = vunpack.c.l.s8.bf16 %v2284_v37 }
 0x437   :  { %v1769_v57 = vadd.f32 %v1768_v47, %v1735_v20  ;;  %v3149_v47 = vunpack.c.h.s8.bf16 %v2285_v18 }
 0x438   :  { %v1764_v15 = vrot.slane %v1763_v61, 2  ;;  %v1781_v63 = vadd.f32 %v1780_v50, %v1737_v35  ;;  %v3134_v35 = vunpack.c.l.s8.bf16 %v2286_v40 }
 0x439   :  { %v1770_v2 = vrot.slane %v1769_v57, 2  ;;  %3581 = vmatpush1.bf16.msra.mxu1 %v3084_v21  ;;  %3745 = vmatpush1.bf16.msra.mxu0 %v3086_v51  ;;  %v2301_v21 = vld [vmem:[#allocation10 + $0xb08] sm:$0xff]  ;;  %v2303_v51 = vld [vmem:[#allocation10 + $0xb18] sm:$0xff] }
 0x43a   :  { %v1765_v48 = vadd.f32 %v1764_v15, %v1763_v61  ;;  %v1782_v3 = vrot.slane %v1781_v63, 2  ;;  %3582 = vmatprep.subr.bf16.mxu1 %v3101_v8  ;;  %3746 = vmatprep.subr.bf16.mxu0 %v3103_v59  ;;  %v3151_v61 = vunpack.c.h.s8.bf16 %v2287_v9  ;;  %v1706_v8 = vrot.slane %v1705_v30, 1  ;;  %v2302_v15 = vld [vmem:[#allocation10 + $0xb10] sm:$0xff] }
 0x43b   :  { %v1771_v11 = vadd.f32 %v1770_v2, %v1769_v57  ;;  %v3150_v57 = vunpack.c.h.s8.bf16 %v2286_v40  ;;  %v3165_v59 = vunpack.c.l.s8.bf16 %v2301_v21  ;;  %v3167_v62 = vunpack.c.l.s8.bf16 %v2303_v51 }
 0x43c   :  { %v1766_v14 = vrot.slane %v1765_v48, 1  ;;  %v1783_v16 = vadd.f32 %v1782_v3, %v1781_v63  ;;  %v3164_v63 = vunpack.c.l.s8.bf16 %v2300_v53  ;;  %v3166_v2 = vunpack.c.l.s8.bf16 %v2302_v15 }
 0x43d   :  { %v1772_v19 = vrot.slane %v1771_v11, 1  ;;  %3583 = vmatpush1.bf16.msra.mxu1 %v3100_v4  ;;  %3747 = vmatpush1.bf16.msra.mxu0 %v3102_v6  ;;  %v3181_v3 = vunpack.c.h.s8.bf16 %v2301_v21  ;;  %v3183_v4 = vunpack.c.h.s8.bf16 %v2303_v51  ;;  %v2317_v6 = vld [vmem:[#allocation10 + $0xb88] sm:$0xff]  ;;  %v3182_v18 = vunpack.c.h.s8.bf16 %v2302_v15 }
 0x43e   :  { %v1767_v10 = vadd.f32 %v1766_v14, %v1765_v48  ;;  %v1784_v22 = vrot.slane %v1783_v16, 1  ;;  %3584 = vmatprep.subr.bf16.mxu1 %v3117_v12  ;;  %3748 = vmatprep.subr.bf16.mxu0 %v3119_v13  ;;  %v1707_v48 = vadd.f32 %v1706_v8, %v1705_v30  ;;  %v1887_v13 = vrot.slane %v7847_v17, %v7885_v1  ;;  %v2333_v30 = vld [vmem:[#allocation10 + $0xc08] sm:$0xff] }
 0x43f   :  { %v1773_v29 = vadd.f32 %v1772_v19, %v1771_v11  ;;  %v1838_v11 = vrot.slane %v7845_v55, %v7885_v1  ;;  %v1842_v14 = vrot.slane %v7845_v55, %v7888_v60  ;;  %v1891_v40 = vrot.slane %v7847_v17, %v7888_v60 }
 0x440   :  { %v1790_v52 = vmul.f32 0.125, %v1767_v10  ;;  %v1785_v42 = vadd.f32 %v1784_v22, %v1783_v16  ;;  %v3180_v16 = vunpack.c.h.s8.bf16 %v2300_v53  ;;  %v1720_v19 = vmul.f32 0.125, %v1707_v48 }
 0x441   :  { %v1791_v20 = vmul.f32 0.125, %v1773_v29  ;;  %3585 = vmatpush1.bf16.msra.mxu1 %v3116_v24  ;;  %3749 = vmatpush1.bf16.msra.mxu0 %v3118_v26  ;;  %v3197_v10 = vunpack.c.l.s8.bf16 %v2317_v6  ;;  %v3199_v22 = vunpack.c.l.s8.bf16 %v2319_v7  ;;  %v2316_v24 = vld [vmem:[#allocation10 + $0xb80] sm:$0xff]  ;;  %v2318_v26 = vld [vmem:[#allocation10 + $0xb90] sm:$0xff]  ;;  %v1850_v29 = vrot.slane %v7845_v55, %v7891_v54 }
 0x442   :  { %v1798_v23 = vadd.f32 0.8, %v1790_v52  ;;  %v1793_v44 = vmul.f32 0.125, %v1785_v42  ;;  %3586 = vmatprep.subr.bf16.mxu1 %v3133_v31  ;;  %3750 = vmatprep.subr.bf16.mxu0 %v3135_v32  ;;  %v3196_v42 = vunpack.c.l.s8.bf16 %v2316_v24  ;;  %v3212_v21 = vunpack.c.h.s8.bf16 %v2316_v24  ;;  %v2348_v24 = vld [vmem:[#allocation10 + $0xc80] sm:$0xff] }
 0x443   :  { %v1799_v46 = vadd.f32 0.8, %v1791_v20  ;;  %v3198_v20 = vunpack.c.l.s8.bf16 %v2318_v26  ;;  %v3214_v51 = vunpack.c.h.s8.bf16 %v2318_v26  ;;  %v2350_v26 = vld [vmem:[#allocation10 + $0xc90] sm:$0xff] }
 0x444   :  { %7388 = vrsqrt.f32 %v1798_v23  ;;  %v1801_v50 = vadd.f32 0.8, %v1793_v44  ;;  %v3213_v23 = vunpack.c.h.s8.bf16 %v2317_v6 }
 0x445   :  { %7390 = vrsqrt.f32 %v1799_v46  ;;  %3587 = vmatpush1.bf16.msra.mxu1 %v3132_v45  ;;  %3751 = vmatpush1.bf16.msra.mxu0 %v3134_v35  ;;  %v7958_v45 = vsub.f32 %v7934_v43, %v1720_v19 }
 0x446   :  { %7392 = vrsqrt.f32 %v1801_v50  ;;  %3588 = vmatprep.subr.bf16.mxu1 %v3149_v47  ;;  %3752 = vmatprep.subr.bf16.mxu0 %v3151_v61  ;;  %v2335_v47 = vld [vmem:[#allocation10 + $0xc18] sm:$0xff] }
 0x447   :  { %v1736_v43 = vmul.f32 %v7958_v45, %v7958_v45  ;;  %v3231_v8 = vunpack.c.l.s8.bf16 %v2335_v47 }
 0x449   :  { %3589 = vmatpush1.bf16.msra.mxu1 %v3148_v38  ;;  %3753 = vmatpush1.bf16.msra.mxu0 %v3150_v57  ;;  %v3229_v38 = vunpack.c.l.s8.bf16 %v2333_v30 }
 0x44a   :  { %3590 = vmatprep.subr.bf16.mxu1 %v3165_v59  ;;  %3754 = vmatprep.subr.bf16.mxu0 %v3167_v62  ;;  %v2332_v59 = vld [vmem:[#allocation10 + $0xc00] sm:$0xff]  ;;  %v2334_v62 = vld [vmem:[#allocation10 + $0xc10] sm:$0xff] }
 0x44d   :  { %3591 = vmatpush1.bf16.msra.mxu1 %v3164_v63  ;;  %3755 = vmatpush1.bf16.msra.mxu0 %v3166_v2 }
 0x44e   :  { %v7389_v12 = vpop.eup %7388  ;;  %3592 = vmatprep.subr.bf16.mxu1 %v3181_v3  ;;  %3756 = vmatprep.subr.bf16.mxu0 %v3183_v4  ;;  %v3228_v3 = vunpack.c.l.s8.bf16 %v2332_v59  ;;  %v3230_v4 = vunpack.c.l.s8.bf16 %v2334_v62 }
 0x44f   :  { %v1814_v9 = vmul.f32 %v7389_v12, %v7923_v33  ;;  %v7391_v28 = vpop.eup %7390  ;;  %v1899_v33 = vrot.slane %v7847_v17, %v7891_v54  ;;  %v3247_v12 = vunpack.c.h.s8.bf16 %v2335_v47 }
 0x450   :  { %v7393_v31 = vpop.eup %7392  ;;  %v1815_v37 = vmul.f32 %v7391_v28, %v7926_v39  ;;  %v3215_v39 = vunpack.c.h.s8.bf16 %v2319_v7  ;;  %v1774_v7 = vrot.slane %v1736_v43, 4  ;;  %v3260_v28 = vunpack.c.l.s8.bf16 %v2348_v24 }
 0x451   :  { %v1863_v32 = vmul.f32 %v1838_v11, %v1814_v9  ;;  %v1817_v52 = vmul.f32 %v7393_v31, %v7931_v41  ;;  %3593 = vmatpush1.bf16.msra.mxu1 %v3180_v16  ;;  %3757 = vmatpush1.bf16.msra.mxu0 %v3182_v18  ;;  %v3245_v11 = vunpack.c.h.s8.bf16 %v2333_v30  ;;  %v3244_v18 = vunpack.c.h.s8.bf16 %v2332_v59  ;;  %v2380_v59 = vld [vmem:[#allocation10 + $0xd80] sm:$0xff] }
 0x452   :  { %v1864_v35 = vmul.f32 %v1842_v14, %v1815_v37  ;;  %3594 = vmatprep.subr.bf16.mxu1 %v3197_v10  ;;  %3758 = vmatprep.subr.bf16.mxu0 %v3199_v22  ;;  %v2351_v14 = vld [vmem:[#allocation10 + $0xc98] sm:$0xff]  ;;  %v3246_v9 = vunpack.c.h.s8.bf16 %v2334_v62  ;;  %v1775_v19 = vadd.f32 %v1774_v7, %v1736_v43  ;;  %v2382_v62 = vld [vmem:[#allocation10 + $0xd90] sm:$0xff] }
 0x453   :  { %v1912_v44 = vadd.f32 %v1887_v13, %v1863_v32  ;;  %v1866_v46 = vmul.f32 %v1850_v29, %v1817_v52  ;;  %v2349_v13 = vld [vmem:[#allocation10 + $0xc88] sm:$0xff]  ;;  %v3263_v22 = vunpack.c.l.s8.bf16 %v2351_v14  ;;  %v3262_v29 = vunpack.c.l.s8.bf16 %v2350_v26  ;;  %v2399_v7 = vld [vmem:[#allocation10 + $0xe18] sm:$0xff] }
 0x454   :  { %v1913_v50 = vadd.f32 %v1891_v40, %v1864_v35  ;;  %v3261_v10 = vunpack.c.l.s8.bf16 %v2349_v13  ;;  %v1776_v31 = vrot.slane %v1775_v19, 2  ;;  %v3277_v32 = vunpack.c.h.s8.bf16 %v2349_v13  ;;  %v2365_v40 = vld [vmem:[#allocation10 + $0xd08] sm:$0xff]  ;;  %v2364_v35 = vld [vmem:[#allocation10 + $0xd00] sm:$0xff] }
 0x455   :  { %vm1920_vm10 = vcmp.ge.f32.partialorder %v1912_v44, 0.0  ;;  %v1928_v61 = vmul.f32 0.2, %v1912_v44  ;;  %v1915_v41 = vadd.f32 %v1899_v33, %v1866_v46  ;;  %3595 = vmatpush1.bf16.msra.mxu1 %v3196_v42  ;;  %3759 = vmatpush1.bf16.msra.mxu0 %v3198_v20  ;;  %v3279_v37 = vunpack.c.h.s8.bf16 %v2351_v14  ;;  %v2367_v33 = vld [vmem:[#allocation10 + $0xd18] sm:$0xff] }
 0x456   :  { %vm1921_vm11 = vcmp.ge.f32.partialorder %v1913_v50, 0.0  ;;  %v1929_v57 = vmul.f32 0.2, %v1913_v50  ;;  %3596 = vmatprep.subr.bf16.mxu1 %v3213_v23  ;;  %3760 = vmatprep.subr.bf16.mxu0 %v3215_v39  ;;  %v3276_v52 = vunpack.c.h.s8.bf16 %v2348_v24  ;;  %v3278_v42 = vunpack.c.h.s8.bf16 %v2350_v26  ;;  %v2366_v39 = vld [vmem:[#allocation10 + $0xd10] sm:$0xff] }
 0x457   :  { %v1936_v53 = vsel %vm1920_vm10, %v1912_v44, %v1928_v61  ;;  %vm1923_vm12 = vcmp.ge.f32.partialorder %v1915_v41, 0.0  ;;  %v1931_v15 = vmul.f32 0.2, %v1915_v41  ;;  %v1777_v20 = vadd.f32 %v1776_v31, %v1775_v19  ;;  %v2398_v19 = vld [vmem:[#allocation10 + $0xe10] sm:$0xff] }
 0x458   :  { %v1937_v63 = vsel %vm1921_vm11, %v1913_v50, %v1929_v57  ;;  %v7965_v6 = vpack.c.bf16 %v1936_v53, %v1936_v53  ;;  %v3293_v23 = vunpack.c.l.s8.bf16 %v2365_v40  ;;  %v3295_v44 = vunpack.c.l.s8.bf16 %v2367_v33 }
 0x459   :  { %v7963_v2 = vpack.c.bf16 %v1937_v63, %v1937_v63  ;;  %v1939_v48 = vsel %vm1923_vm12, %v1915_v41, %v1931_v15  ;;  %3597 = vmatpush1.bf16.msra.mxu1 %v3212_v21  ;;  %3761 = vmatpush1.bf16.msra.mxu0 %v3214_v51  ;;  %v3292_v30 = vunpack.c.l.s8.bf16 %v2364_v35  ;;  %v3294_v46 = vunpack.c.l.s8.bf16 %v2366_v39  ;;  %v2381_v41 = vld [vmem:[#allocation10 + $0xd88] sm:$0xff]  ;;  %v2383_v21 = vld [vmem:[#allocation10 + $0xd98] sm:$0xff] }
 0x45a   :  { %3607 = vmatprep.subr.bf16.mxu1 %v3229_v38  ;;  %3771 = vmatprep.subr.bf16.mxu0 %v3231_v8  ;;  %v7969_v16 = vpack.c.bf16 %v1939_v48, %v1939_v48  ;;  %v1778_v47 = vrot.slane %v1777_v20, 1  ;;  %v3309_v61 = vunpack.c.h.s8.bf16 %v2365_v40  ;;  %v3311_v50 = vunpack.c.h.s8.bf16 %v2367_v33  ;;  %v2412_v33 = vld [vmem:[#allocation10 + $0xe80] sm:$0xff] }
 0x45b   :  { %3598 = vmatprep.mubr.bf16.mxu1 %v7963_v2  ;;  %3762 = vmatprep.mubr.bf16.mxu0 %v7963_v2  ;;  %v3308_v51 = vunpack.c.h.s8.bf16 %v2364_v35  ;;  %v3310_v38 = vunpack.c.h.s8.bf16 %v2366_v39  ;;  %v3325_v57 = vunpack.c.l.s8.bf16 %v2381_v41  ;;  %v3327_v8 = vunpack.c.l.s8.bf16 %v2383_v21  ;;  %v2429_v35 = vld [vmem:[#allocation10 + $0xf08] sm:$0xff]  ;;  %v2431_v39 = vld [vmem:[#allocation10 + $0xf18] sm:$0xff] }
 0x45c   :  { %3599 = vmatmul.mubr.bf16.vlgmr.msra.gmra.mrb[12].mxu1 %v7965_v6  ;;  %3763 = vmatmul.mubr.bf16.vlgmr.msra.gmra.mrb[16].mxu0 %v7965_v6  ;;  %v1779_v43 = vadd.f32 %v1778_v47, %v1777_v20  ;;  %v3324_v53 = vunpack.c.l.s8.bf16 %v2380_v59  ;;  %v3326_v15 = vunpack.c.l.s8.bf16 %v2382_v62  ;;  %v3341_v48 = vunpack.c.h.s8.bf16 %v2381_v41  ;;  %v2428_v41 = vld [vmem:[#allocation10 + $0xf00] sm:$0xff] }
 0x45d   :  { %3608 = vmatpush1.bf16.msra.mxu1 %v3228_v3  ;;  %3772 = vmatpush1.bf16.msra.mxu0 %v3230_v4  ;;  %v3343_v3 = vunpack.c.h.s8.bf16 %v2383_v21  ;;  %v2397_v4 = vld [vmem:[#allocation10 + $0xe08] sm:$0xff]  ;;  %v3375_v26 = vunpack.c.h.s8.bf16 %v2399_v7  ;;  %v2430_v21 = vld [vmem:[#allocation10 + $0xf10] sm:$0xff] }
 0x45e   :  { %3639 = vmatprep.mubr.bf16.mxu1 %v7969_v16  ;;  %3803 = vmatprep.mubr.bf16.mxu0 %v7969_v16  ;;  %v1792_v63 = vmul.f32 0.125, %v1779_v43  ;;  %v3357_v14 = vunpack.c.l.s8.bf16 %v2397_v4  ;;  %v3373_v24 = vunpack.c.h.s8.bf16 %v2397_v4  ;;  %v3420_v43 = vunpack.c.l.s8.bf16 %v2428_v41  ;;  %v2444_v4 = vld [vmem:[#allocation10 + $0xf80] sm:$0xff] }
 0x45f   :  { %3609 = vmatprep.subr.bf16.mxu1 %v3245_v11  ;;  %3773 = vmatprep.subr.bf16.mxu0 %v3247_v12  ;;  %v3340_v11 = vunpack.c.h.s8.bf16 %v2380_v59  ;;  %v3342_v12 = vunpack.c.h.s8.bf16 %v2382_v62  ;;  %v3439_v59 = vunpack.c.h.s8.bf16 %v2431_v39 }
 0x460   :  { %v1800_v13 = vadd.f32 0.8, %v1792_v63  ;;  %v2447_v63 = vld [vmem:[#allocation10 + $0xf98] sm:$0xff] }
 0x461   :  { %3610 = vmatpush1.bf16.msra.mxu1 %v3244_v18  ;;  %3774 = vmatpush1.bf16.msra.mxu0 %v3246_v9  ;;  %v3359_v18 = vunpack.c.l.s8.bf16 %v2399_v7  ;;  %v2396_v9 = vld [vmem:[#allocation10 + $0xe00] sm:$0xff]  ;;  %v2446_v7 = vld [vmem:[#allocation10 + $0xf90] sm:$0xff] }
 0x462   :  { %3611 = vmatprep.subr.bf16.mxu1 %v3261_v10  ;;  %3775 = vmatprep.subr.bf16.mxu0 %v3263_v22  ;;  %v3356_v10 = vunpack.c.l.s8.bf16 %v2396_v9  ;;  %v3358_v22 = vunpack.c.l.s8.bf16 %v2398_v19  ;;  %7394 = vrsqrt.f32 %v1800_v13  ;;  %v3372_v31 = vunpack.c.h.s8.bf16 %v2396_v9  ;;  %v1953_v9 = vld [vmem:[#allocation10 + $0x28] sm:$0xff] }
 0x463   :  { %v3454_v13 = vunpack.c.l.s8.bf16 %v2446_v7 }
 0x465   :  { %3612 = vmatpush1.bf16.msra.mxu1 %v3260_v28  ;;  %3776 = vmatpush1.bf16.msra.mxu0 %v3262_v29  ;;  %v2413_v28 = vld [vmem:[#allocation10 + $0xe88] sm:$0xff]  ;;  %v2415_v29 = vld [vmem:[#allocation10 + $0xe98] sm:$0xff] }
 0x466   :  { %3613 = vmatprep.subr.bf16.mxu1 %v3277_v32  ;;  %3777 = vmatprep.subr.bf16.mxu0 %v3279_v37  ;;  %v3374_v32 = vunpack.c.h.s8.bf16 %v2398_v19  ;;  %v3389_v37 = vunpack.c.l.s8.bf16 %v2413_v28  ;;  %v3391_v40 = vunpack.c.l.s8.bf16 %v2415_v29  ;;  %v1955_v19 = vld [vmem:[#allocation10 + $0x38] sm:$0xff] }
 0x469   :  { %3614 = vmatpush1.bf16.msra.mxu1 %v3276_v52  ;;  %3778 = vmatpush1.bf16.msra.mxu0 %v3278_v42  ;;  %v2414_v52 = vld [vmem:[#allocation10 + $0xe90] sm:$0xff]  ;;  %v3388_v42 = vunpack.c.l.s8.bf16 %v2412_v33 }
 0x46a   :  { %3615 = vmatprep.subr.bf16.mxu1 %v3293_v23  ;;  %3779 = vmatprep.subr.bf16.mxu0 %v3295_v44  ;;  %v3390_v20 = vunpack.c.l.s8.bf16 %v2414_v52  ;;  %v3405_v23 = vunpack.c.h.s8.bf16 %v2413_v28  ;;  %v3407_v44 = vunpack.c.h.s8.bf16 %v2415_v29  ;;  %v3406_v47 = vunpack.c.h.s8.bf16 %v2414_v52  ;;  %v1952_v28 = vld [vmem:[#allocation10 + $0x20] sm:$0xff] }
 0x46b   :  { %v2483_v52 = vunpack.c.h.s8.bf16 %v1955_v19 }
 0x46d   :  { %3616 = vmatpush1.bf16.msra.mxu1 %v3292_v30  ;;  %3780 = vmatpush1.bf16.msra.mxu0 %v3294_v46  ;;  %v7395_v30 = vpop.eup %7394  ;;  %v3404_v46 = vunpack.c.h.s8.bf16 %v2412_v33  ;;  %v2481_v33 = vunpack.c.h.s8.bf16 %v1953_v9 }
 0x46e   :  { %3617 = vmatprep.subr.bf16.mxu1 %v3309_v61  ;;  %3781 = vmatprep.subr.bf16.mxu0 %v3311_v50  ;;  %v3421_v61 = vunpack.c.l.s8.bf16 %v2429_v35  ;;  %v3423_v50 = vunpack.c.l.s8.bf16 %v2431_v39  ;;  %v1968_v39 = vld [vmem:[#allocation10 + $0xa0] sm:$0xff] }
 0x471   :  { %3618 = vmatpush1.bf16.msra.mxu1 %v3308_v51  ;;  %3782 = vmatpush1.bf16.msra.mxu0 %v3310_v38  ;;  %v1816_v51 = vmul.f32 %v7395_v30, %v7958_v45  ;;  %v1846_v38 = vrot.slane %v7845_v55, %v7918_v5  ;;  %v3436_v45 = vunpack.c.h.s8.bf16 %v2428_v41 }
 0x472   :  { %3619 = vmatprep.subr.bf16.mxu1 %v3325_v57  ;;  %3783 = vmatprep.subr.bf16.mxu0 %v3327_v8  ;;  %v3422_v57 = vunpack.c.l.s8.bf16 %v2430_v21  ;;  %v3437_v8 = vunpack.c.h.s8.bf16 %v2429_v35 }
 0x473   :  { %v1865_v62 = vmul.f32 %v1846_v38, %v1816_v51  ;;  %v1987_v51 = vld [vmem:[#allocation10 + $0x138] sm:$0xff]  ;;  %v2512_v38 = vunpack.c.h.s8.bf16 %v1968_v39 }
 0x475   :  { %3620 = vmatpush1.bf16.msra.mxu1 %v3324_v53  ;;  %3784 = vmatpush1.bf16.msra.mxu0 %v3326_v15  ;;  %v1895_v53 = vrot.slane %v7847_v17, %v7918_v5  ;;  %v2445_v15 = vld [vmem:[#allocation10 + $0xf88] sm:$0xff] }
 0x476   :  { %3621 = vmatprep.subr.bf16.mxu1 %v3341_v48  ;;  %3785 = vmatprep.subr.bf16.mxu0 %v3343_v3  ;;  %v3438_v48 = vunpack.c.h.s8.bf16 %v2430_v21  ;;  %v3453_v55 = vunpack.c.l.s8.bf16 %v2445_v15  ;;  %v3455_v3 = vunpack.c.l.s8.bf16 %v2447_v63  ;;  %v3469_v17 = vunpack.c.h.s8.bf16 %v2445_v15  ;;  %v1985_v21 = vld [vmem:[#allocation10 + $0x128] sm:$0xff] }
 0x479   :  { %3622 = vmatpush1.bf16.msra.mxu1 %v3340_v11  ;;  %3786 = vmatpush1.bf16.msra.mxu0 %v3342_v12  ;;  %v1914_v11 = vadd.f32 %v1895_v53, %v1865_v62  ;;  %v3452_v12 = vunpack.c.l.s8.bf16 %v2444_v4  ;;  %v1986_v62 = vld [vmem:[#allocation10 + $0x130] sm:$0xff] }
 0x47a   :  { %3623 = vmatprep.subr.bf16.mxu1 %v3357_v14  ;;  %3787 = vmatprep.subr.bf16.mxu0 %v3359_v18  ;;  %v3471_v14 = vunpack.c.h.s8.bf16 %v2447_v63  ;;  %v2530_v15 = vunpack.c.l.s8.bf16 %v1986_v62  ;;  %v2545_v63 = vunpack.c.h.s8.bf16 %v1985_v21 }
 0x47b   :  { %v1930_v18 = vmul.f32 0.2, %v1914_v11  ;;  %vm1922_vm13 = vcmp.ge.f32.partialorder %v1914_v11, 0.0 }
 0x47d   :  { %3624 = vmatpush1.bf16.msra.mxu1 %v3356_v10  ;;  %3788 = vmatpush1.bf16.msra.mxu0 %v3358_v22  ;;  %v3468_v10 = vunpack.c.h.s8.bf16 %v2444_v4  ;;  %v3470_v22 = vunpack.c.h.s8.bf16 %v2446_v7  ;;  %v1938_v29 = vsel %vm1922_vm13, %v1914_v11, %v1930_v18  ;;  %v2546_v4 = vunpack.c.h.s8.bf16 %v1986_v62  ;;  %v2000_v11 = vld [vmem:[#allocation10 + $0x1a0] sm:$0xff]  ;;  %v2050_v62 = vld [vmem:[#allocation10 + $0x330] sm:$0xff] }
 0x47e   :  { %3625 = vmatprep.subr.bf16.mxu1 %v3373_v24  ;;  %3789 = vmatprep.subr.bf16.mxu0 %v3375_v26  ;;  %v2465_v24 = vunpack.c.l.s8.bf16 %v1953_v9  ;;  %v2467_v26 = vunpack.c.l.s8.bf16 %v1955_v19  ;;  %v2017_v19 = vld [vmem:[#allocation10 + $0x228] sm:$0xff] }
 0x481   :  { %3626 = vmatpush1.bf16.msra.mxu1 %v3372_v31  ;;  %3790 = vmatpush1.bf16.msra.mxu0 %v3374_v32  ;;  %v1954_v31 = vld [vmem:[#allocation10 + $0x30] sm:$0xff]  ;;  %v2464_v32 = vunpack.c.l.s8.bf16 %v1952_v28 }
 0x482   :  { %3627 = vmatprep.subr.bf16.mxu1 %v3389_v37  ;;  %3791 = vmatprep.subr.bf16.mxu0 %v3391_v40  ;;  %v7980_v37 = vpack.c.bf16 %v1938_v29, %v1938_v29  ;;  %v2466_v40 = vunpack.c.l.s8.bf16 %v1954_v31 }
 0x485   :  { %3628 = vmatpush1.bf16.msra.mxu1 %v3388_v42  ;;  %3792 = vmatpush1.bf16.msra.mxu0 %v3390_v20  ;;  %v1969_v42 = vld [vmem:[#allocation10 + $0xa8] sm:$0xff]  ;;  %v1971_v20 = vld [vmem:[#allocation10 + $0xb8] sm:$0xff] }
 0x486   :  { %3629 = vmatprep.subr.bf16.mxu1 %v3405_v23  ;;  %3793 = vmatprep.subr.bf16.mxu0 %v3407_v44  ;;  %v2480_v23 = vunpack.c.h.s8.bf16 %v1952_v28  ;;  %v2482_v44 = vunpack.c.h.s8.bf16 %v1954_v31  ;;  %v2497_v35 = vunpack.c.l.s8.bf16 %v1969_v42  ;;  %v2499_v30 = vunpack.c.l.s8.bf16 %v1971_v20  ;;  %v2016_v28 = vld [vmem:[#allocation10 + $0x220] sm:$0xff]  ;;  %v2018_v31 = vld [vmem:[#allocation10 + $0x230] sm:$0xff] }
 0x487   :  { %v2515_v41 = vunpack.c.h.s8.bf16 %v1971_v20  ;;  %v2035_v20 = vld [vmem:[#allocation10 + $0x2b8] sm:$0xff] }
 0x489   :  { %3630 = vmatpush1.bf16.msra.mxu1 %v3404_v46  ;;  %3794 = vmatpush1.bf16.msra.mxu0 %v3406_v47  ;;  %v1970_v46 = vld [vmem:[#allocation10 + $0xb0] sm:$0xff]  ;;  %v2496_v47 = vunpack.c.l.s8.bf16 %v1968_v39  ;;  %v2032_v39 = vld [vmem:[#allocation10 + $0x2a0] sm:$0xff] }
 0x48a   :  { %3631 = vmatprep.subr.bf16.mxu1 %v3421_v61  ;;  %3795 = vmatprep.subr.bf16.mxu0 %v3423_v50  ;;  %v2498_v61 = vunpack.c.l.s8.bf16 %v1970_v46  ;;  %v2513_v50 = vunpack.c.h.s8.bf16 %v1969_v42  ;;  %v2033_v42 = vld [vmem:[#allocation10 + $0x2a8] sm:$0xff] }
 0x48d   :  { %3632 = vmatpush1.bf16.msra.mxu1 %v3420_v43  ;;  %3796 = vmatpush1.bf16.msra.mxu0 %v3422_v57  ;;  %v2514_v43 = vunpack.c.h.s8.bf16 %v1970_v46  ;;  %v2529_v57 = vunpack.c.l.s8.bf16 %v1985_v21  ;;  %v2034_v46 = vld [vmem:[#allocation10 + $0x2b0] sm:$0xff]  ;;  %v2049_v21 = vld [vmem:[#allocation10 + $0x328] sm:$0xff] }
 0x48e   :  { %3633 = vmatprep.subr.bf16.mxu1 %v3437_v8  ;;  %3797 = vmatprep.subr.bf16.mxu0 %v3439_v59  ;;  %v1984_v8 = vld [vmem:[#allocation10 + $0x120] sm:$0xff]  ;;  %v2531_v59 = vunpack.c.l.s8.bf16 %v1987_v51 }
 0x48f   :  { %v2528_v53 = vunpack.c.l.s8.bf16 %v1984_v8 }
 0x491   :  { %3634 = vmatpush1.bf16.msra.mxu1 %v3436_v45  ;;  %3798 = vmatpush1.bf16.msra.mxu0 %v3438_v48  ;;  %v2547_v45 = vunpack.c.h.s8.bf16 %v1987_v51  ;;  %v2001_v48 = vld [vmem:[#allocation10 + $0x1a8] sm:$0xff]  ;;  %v2051_v51 = vld [vmem:[#allocation10 + $0x338] sm:$0xff] }
 0x492   :  { %3635 = vmatprep.subr.bf16.mxu1 %v3453_v55  ;;  %3799 = vmatprep.subr.bf16.mxu0 %v3455_v3  ;;  %v2003_v55 = vld [vmem:[#allocation10 + $0x1b8] sm:$0xff]  ;;  %v2544_v3 = vunpack.c.h.s8.bf16 %v1984_v8  ;;  %v2561_v7 = vunpack.c.l.s8.bf16 %v2001_v48  ;;  %v2577_v18 = vunpack.c.h.s8.bf16 %v2001_v48  ;;  %v2048_v8 = vld [vmem:[#allocation10 + $0x320] sm:$0xff]  ;;  %v2065_v48 = vld [vmem:[#allocation10 + $0x3a8] sm:$0xff] }
 0x493   :  { %v2579_v9 = vunpack.c.h.s8.bf16 %v2003_v55 }
 0x495   :  { %3636 = vmatpush1.bf16.msra.mxu1 %v3452_v12  ;;  %3800 = vmatpush1.bf16.msra.mxu0 %v3454_v13  ;;  %v2563_v12 = vunpack.c.l.s8.bf16 %v2003_v55  ;;  %v2002_v13 = vld [vmem:[#allocation10 + $0x1b0] sm:$0xff]  ;;  %v2067_v55 = vld [vmem:[#allocation10 + $0x3b8] sm:$0xff] }
 0x496   :  { %3637 = vmatprep.subr.bf16.mxu1 %v3469_v17  ;;  %3801 = vmatprep.subr.bf16.mxu0 %v3471_v14  ;;  %v2560_v17 = vunpack.c.l.s8.bf16 %v2000_v11  ;;  %v2562_v14 = vunpack.c.l.s8.bf16 %v2002_v13 }
 0x499   :  { %3638 = vmatpush1.bf16.msra.mxu1 %v3468_v10  ;;  %3802 = vmatpush1.bf16.msra.mxu0 %v3470_v22  ;;  %v2019_v10 = vld [vmem:[#allocation10 + $0x238] sm:$0xff]  ;;  %v2576_v22 = vunpack.c.h.s8.bf16 %v2000_v11  ;;  %v2064_v11 = vld [vmem:[#allocation10 + $0x3a0] sm:$0xff] }
 0x49a   :  { %3812 = vmatprep.subr.bf16.mxu1 %v2465_v24  ;;  %3976 = vmatprep.subr.bf16.mxu0 %v2467_v26  ;;  %v2578_v24 = vunpack.c.h.s8.bf16 %v2002_v13  ;;  %v2593_v26 = vunpack.c.l.s8.bf16 %v2017_v19  ;;  %v2595_v29 = vunpack.c.l.s8.bf16 %v2019_v10  ;;  %v2066_v13 = vld [vmem:[#allocation10 + $0x3b0] sm:$0xff] }
 0x49c   :  { %3640 = vmatmul.mubr.bf16.vlgmr.msra.gmra.mrb[12].mxu1 %v7980_v37  ;;  %3804 = vmatmul.mubr.bf16.vlgmr.msra.gmra.mrb[16].mxu0 %v7980_v37 }
 0x49d   :  { %3813 = vmatpush1.bf16.msra.mxu1 %v2464_v32  ;;  %3844 = vmatprep.mubr.bf16.mxu1 %v7865_v56  ;;  %v2592_v32 = vunpack.c.l.s8.bf16 %v2016_v28 }
 0x49e   :  { %3977 = vmatpush1.bf16.msra.mxu0 %v2466_v40  ;;  %4008 = vmatprep.mubr.bf16.mxu0 %v7865_v56  ;;  %v2594_v40 = vunpack.c.l.s8.bf16 %v2018_v31 }
 0x49f   :  { %3814 = vmatprep.subr.bf16.mxu1 %v2481_v33  ;;  %3978 = vmatprep.subr.bf16.mxu0 %v2483_v52  ;;  %v2609_v33 = vunpack.c.h.s8.bf16 %v2017_v19  ;;  %v2611_v52 = vunpack.c.h.s8.bf16 %v2019_v10  ;;  %v2081_v19 = vld [vmem:[#allocation10 + $0x428] sm:$0xff]  ;;  %v2083_v10 = vld [vmem:[#allocation10 + $0x438] sm:$0xff] }
 0x4a1   :  { %3815 = vmatpush1.bf16.msra.mxu1 %v2480_v23  ;;  %v2608_v23 = vunpack.c.h.s8.bf16 %v2016_v28  ;;  %v2080_v28 = vld [vmem:[#allocation10 + $0x420] sm:$0xff] }
 0x4a2   :  { %3979 = vmatpush1.bf16.msra.mxu0 %v2482_v44  ;;  %3816 = vmatprep.subr.bf16.mxu1 %v2497_v35  ;;  %v2610_v44 = vunpack.c.h.s8.bf16 %v2018_v31  ;;  %v2625_v35 = vunpack.c.l.s8.bf16 %v2033_v42  ;;  %v2082_v31 = vld [vmem:[#allocation10 + $0x430] sm:$0xff] }
 0x4a3   :  { %3980 = vmatprep.subr.bf16.mxu0 %v2499_v30  ;;  %v2627_v30 = vunpack.c.l.s8.bf16 %v2035_v20 }
 0x4a5   :  { %3817 = vmatpush1.bf16.msra.mxu1 %v2496_v47  ;;  %v2624_v47 = vunpack.c.l.s8.bf16 %v2032_v39 }
 0x4a6   :  { %3981 = vmatpush1.bf16.msra.mxu0 %v2498_v61  ;;  %3818 = vmatprep.subr.bf16.mxu1 %v2513_v50  ;;  %v2626_v61 = vunpack.c.l.s8.bf16 %v2034_v46  ;;  %v2641_v50 = vunpack.c.h.s8.bf16 %v2033_v42  ;;  %v2739_v42 = vunpack.c.h.s8.bf16 %v2083_v10 }
 0x4a7   :  { %3982 = vmatprep.subr.bf16.mxu0 %v2515_v41  ;;  %v2643_v41 = vunpack.c.h.s8.bf16 %v2035_v20  ;;  %v2099_v20 = vld [vmem:[#allocation10 + $0x4b8] sm:$0xff] }
 0x4a9   :  { %3819 = vmatpush1.bf16.msra.mxu1 %v2512_v38  ;;  %v2640_v38 = vunpack.c.h.s8.bf16 %v2032_v39  ;;  %v2096_v39 = vld [vmem:[#allocation10 + $0x4a0] sm:$0xff] }
 0x4aa   :  { %3983 = vmatpush1.bf16.msra.mxu0 %v2514_v43  ;;  %3820 = vmatprep.subr.bf16.mxu1 %v2529_v57  ;;  %v2642_v43 = vunpack.c.h.s8.bf16 %v2034_v46  ;;  %v2657_v57 = vunpack.c.l.s8.bf16 %v2049_v21  ;;  %v2098_v46 = vld [vmem:[#allocation10 + $0x4b0] sm:$0xff] }
 0x4ab   :  { %3984 = vmatprep.subr.bf16.mxu0 %v2531_v59  ;;  %v2659_v59 = vunpack.c.l.s8.bf16 %v2051_v51 }
 0x4ad   :  { %3821 = vmatpush1.bf16.msra.mxu1 %v2528_v53  ;;  %v2656_v53 = vunpack.c.l.s8.bf16 %v2048_v8 }
 0x4ae   :  { %3985 = vmatpush1.bf16.msra.mxu0 %v2530_v15  ;;  %3822 = vmatprep.subr.bf16.mxu1 %v2545_v63  ;;  %v2658_v15 = vunpack.c.l.s8.bf16 %v2050_v62  ;;  %v2673_v63 = vunpack.c.h.s8.bf16 %v2049_v21  ;;  %v2113_v21 = vld [vmem:[#allocation10 + $0x528] sm:$0xff] }
 0x4af   :  { %3986 = vmatprep.subr.bf16.mxu0 %v2547_v45  ;;  %v2675_v45 = vunpack.c.h.s8.bf16 %v2051_v51  ;;  %v2115_v51 = vld [vmem:[#allocation10 + $0x538] sm:$0xff] }
 0x4b1   :  { %3823 = vmatpush1.bf16.msra.mxu1 %v2544_v3  ;;  %v2672_v3 = vunpack.c.h.s8.bf16 %v2048_v8  ;;  %v2112_v8 = vld [vmem:[#allocation10 + $0x520] sm:$0xff] }
 0x4b2   :  { %3987 = vmatpush1.bf16.msra.mxu0 %v2546_v4  ;;  %3824 = vmatprep.subr.bf16.mxu1 %v2561_v7  ;;  %v2674_v4 = vunpack.c.h.s8.bf16 %v2050_v62  ;;  %v2689_v7 = vunpack.c.l.s8.bf16 %v2065_v48  ;;  %v2114_v62 = vld [vmem:[#allocation10 + $0x530] sm:$0xff] }
 0x4b3   :  { %3988 = vmatprep.subr.bf16.mxu0 %v2563_v12  ;;  %v2691_v12 = vunpack.c.l.s8.bf16 %v2067_v55 }
 0x4b5   :  { %3825 = vmatpush1.bf16.msra.mxu1 %v2560_v17  ;;  %v2688_v17 = vunpack.c.l.s8.bf16 %v2064_v11 }
 0x4b6   :  { %3989 = vmatpush1.bf16.msra.mxu0 %v2562_v14  ;;  %3826 = vmatprep.subr.bf16.mxu1 %v2577_v18  ;;  %v2690_v14 = vunpack.c.l.s8.bf16 %v2066_v13  ;;  %v2705_v18 = vunpack.c.h.s8.bf16 %v2065_v48  ;;  %v2129_v48 = vld [vmem:[#allocation10 + $0x5a8] sm:$0xff] }
 0x4b7   :  { %3990 = vmatprep.subr.bf16.mxu0 %v2579_v9  ;;  %v2707_v9 = vunpack.c.h.s8.bf16 %v2067_v55  ;;  %v2131_v55 = vld [vmem:[#allocation10 + $0x5b8] sm:$0xff] }
 0x4b9   :  { %3827 = vmatpush1.bf16.msra.mxu1 %v2576_v22  ;;  %v2704_v22 = vunpack.c.h.s8.bf16 %v2064_v11  ;;  %v2128_v11 = vld [vmem:[#allocation10 + $0x5a0] sm:$0xff] }
 0x4ba   :  { %3991 = vmatpush1.bf16.msra.mxu0 %v2578_v24  ;;  %3828 = vmatprep.subr.bf16.mxu1 %v2593_v26  ;;  %v2706_v24 = vunpack.c.h.s8.bf16 %v2066_v13  ;;  %v2721_v26 = vunpack.c.l.s8.bf16 %v2081_v19  ;;  %v2130_v13 = vld [vmem:[#allocation10 + $0x5b0] sm:$0xff] }
 0x4bb   :  { %3992 = vmatprep.subr.bf16.mxu0 %v2595_v29  ;;  %v2723_v29 = vunpack.c.l.s8.bf16 %v2083_v10  ;;  %v2147_v10 = vld [vmem:[#allocation10 + $0x638] sm:$0xff] }
 0x4bd   :  { %3829 = vmatpush1.bf16.msra.mxu1 %v2592_v32  ;;  %v2720_v32 = vunpack.c.l.s8.bf16 %v2080_v28 }
 0x4be   :  { %3993 = vmatpush1.bf16.msra.mxu0 %v2594_v40  ;;  %3830 = vmatprep.subr.bf16.mxu1 %v2609_v33  ;;  %v2722_v40 = vunpack.c.l.s8.bf16 %v2082_v31  ;;  %v2737_v33 = vunpack.c.h.s8.bf16 %v2081_v19  ;;  %v2145_v19 = vld [vmem:[#allocation10 + $0x628] sm:$0xff] }
 0x4bf   :  { %3994 = vmatprep.subr.bf16.mxu0 %v2611_v52  ;;  %v2097_v52 = vld [vmem:[#allocation10 + $0x4a8] sm:$0xff] }
 0x4c1   :  { %3831 = vmatpush1.bf16.msra.mxu1 %v2608_v23  ;;  %v2736_v23 = vunpack.c.h.s8.bf16 %v2080_v28  ;;  %v2144_v28 = vld [vmem:[#allocation10 + $0x620] sm:$0xff] }
 0x4c2   :  { %3995 = vmatpush1.bf16.msra.mxu0 %v2610_v44  ;;  %3832 = vmatprep.subr.bf16.mxu1 %v2625_v35  ;;  %v2738_v44 = vunpack.c.h.s8.bf16 %v2082_v31  ;;  %v2753_v35 = vunpack.c.l.s8.bf16 %v2097_v52  ;;  %v2146_v31 = vld [vmem:[#allocation10 + $0x630] sm:$0xff] }
 0x4c3   :  { %3996 = vmatprep.subr.bf16.mxu0 %v2627_v30  ;;  %v2755_v30 = vunpack.c.l.s8.bf16 %v2099_v20 }
 0x4c5   :  { %3833 = vmatpush1.bf16.msra.mxu1 %v2624_v47  ;;  %v2752_v47 = vunpack.c.l.s8.bf16 %v2096_v39 }
 0x4c6   :  { %3997 = vmatpush1.bf16.msra.mxu0 %v2626_v61  ;;  %3834 = vmatprep.subr.bf16.mxu1 %v2641_v50  ;;  %v2754_v61 = vunpack.c.l.s8.bf16 %v2098_v46  ;;  %v2769_v50 = vunpack.c.h.s8.bf16 %v2097_v52  ;;  %v2867_v52 = vunpack.c.h.s8.bf16 %v2147_v10 }
 0x4c7   :  { %3998 = vmatprep.subr.bf16.mxu0 %v2643_v41  ;;  %v2771_v41 = vunpack.c.h.s8.bf16 %v2099_v20  ;;  %v2163_v20 = vld [vmem:[#allocation10 + $0x6b8] sm:$0xff] }
 0x4c9   :  { %3835 = vmatpush1.bf16.msra.mxu1 %v2640_v38  ;;  %v2768_v38 = vunpack.c.h.s8.bf16 %v2096_v39  ;;  %v2160_v39 = vld [vmem:[#allocation10 + $0x6a0] sm:$0xff] }
 0x4ca   :  { %3999 = vmatpush1.bf16.msra.mxu0 %v2642_v43  ;;  %3836 = vmatprep.subr.bf16.mxu1 %v2657_v57  ;;  %v2770_v43 = vunpack.c.h.s8.bf16 %v2098_v46  ;;  %v2785_v57 = vunpack.c.l.s8.bf16 %v2113_v21  ;;  %v2162_v46 = vld [vmem:[#allocation10 + $0x6b0] sm:$0xff] }
 0x4cb   :  { %4000 = vmatprep.subr.bf16.mxu0 %v2659_v59  ;;  %v2787_v59 = vunpack.c.l.s8.bf16 %v2115_v51 }
 0x4cd   :  { %3837 = vmatpush1.bf16.msra.mxu1 %v2656_v53  ;;  %v2784_v53 = vunpack.c.l.s8.bf16 %v2112_v8 }
 0x4ce   :  { %4001 = vmatpush1.bf16.msra.mxu0 %v2658_v15  ;;  %3838 = vmatprep.subr.bf16.mxu1 %v2673_v63  ;;  %v2786_v15 = vunpack.c.l.s8.bf16 %v2114_v62  ;;  %v2801_v63 = vunpack.c.h.s8.bf16 %v2113_v21  ;;  %v2177_v21 = vld [vmem:[#allocation10 + $0x728] sm:$0xff] }
 0x4cf   :  { %4002 = vmatprep.subr.bf16.mxu0 %v2675_v45  ;;  %v2803_v45 = vunpack.c.h.s8.bf16 %v2115_v51  ;;  %v2179_v51 = vld [vmem:[#allocation10 + $0x738] sm:$0xff] }
 0x4d1   :  { %3839 = vmatpush1.bf16.msra.mxu1 %v2672_v3  ;;  %v2800_v3 = vunpack.c.h.s8.bf16 %v2112_v8  ;;  %v2176_v8 = vld [vmem:[#allocation10 + $0x720] sm:$0xff] }
 0x4d2   :  { %4003 = vmatpush1.bf16.msra.mxu0 %v2674_v4  ;;  %3840 = vmatprep.subr.bf16.mxu1 %v2689_v7  ;;  %v2802_v4 = vunpack.c.h.s8.bf16 %v2114_v62  ;;  %v2817_v7 = vunpack.c.l.s8.bf16 %v2129_v48  ;;  %v2178_v62 = vld [vmem:[#allocation10 + $0x730] sm:$0xff] }
 0x4d3   :  { %4004 = vmatprep.subr.bf16.mxu0 %v2691_v12  ;;  %v2819_v12 = vunpack.c.l.s8.bf16 %v2131_v55 }
 0x4d5   :  { %3841 = vmatpush1.bf16.msra.mxu1 %v2688_v17  ;;  %v2816_v17 = vunpack.c.l.s8.bf16 %v2128_v11 }
 0x4d6   :  { %4005 = vmatpush1.bf16.msra.mxu0 %v2690_v14  ;;  %3842 = vmatprep.subr.bf16.mxu1 %v2705_v18  ;;  %v2818_v14 = vunpack.c.l.s8.bf16 %v2130_v13  ;;  %v2833_v18 = vunpack.c.h.s8.bf16 %v2129_v48  ;;  %v2193_v48 = vld [vmem:[#allocation10 + $0x7a8] sm:$0xff] }
 0x4d7   :  { %4006 = vmatprep.subr.bf16.mxu0 %v2707_v9  ;;  %v2835_v9 = vunpack.c.h.s8.bf16 %v2131_v55  ;;  %v2195_v55 = vld [vmem:[#allocation10 + $0x7b8] sm:$0xff] }
 0x4d9   :  { %3843 = vmatpush1.bf16.msra.mxu1 %v2704_v22  ;;  %v2832_v22 = vunpack.c.h.s8.bf16 %v2128_v11  ;;  %v2192_v11 = vld [vmem:[#allocation10 + $0x7a0] sm:$0xff] }
 0x4da   :  { %4007 = vmatpush1.bf16.msra.mxu0 %v2706_v24  ;;  %3853 = vmatprep.subr.bf16.mxu1 %v2721_v26  ;;  %v2834_v24 = vunpack.c.h.s8.bf16 %v2130_v13  ;;  %v2849_v26 = vunpack.c.l.s8.bf16 %v2145_v19  ;;  %v2194_v13 = vld [vmem:[#allocation10 + $0x7b0] sm:$0xff] }
 0x4db   :  { %4017 = vmatprep.subr.bf16.mxu0 %v2723_v29  ;;  %v2851_v29 = vunpack.c.l.s8.bf16 %v2147_v10  ;;  %v2211_v10 = vld [vmem:[#allocation10 + $0x838] sm:$0xff] }
 0x4dc   :  { %3845 = vmatmul.mubr.bf16.vlgmr.msra.gmra.mrb[16].mxu1 %v7867_v58 }
 0x4dd   :  { %4009 = vmatmul.mubr.bf16.vlgmr.msra.gmra.mrb[20].mxu0 %v7867_v58  ;;  %3854 = vmatpush1.bf16.msra.mxu1 %v2720_v32  ;;  %v2848_v32 = vunpack.c.l.s8.bf16 %v2144_v28 }
 0x4de   :  { %3885 = vmatprep.mubr.bf16.mxu1 %v7873_v0  ;;  %4018 = vmatpush1.bf16.msra.mxu0 %v2722_v40  ;;  %v2850_v40 = vunpack.c.l.s8.bf16 %v2146_v31 }
 0x4df   :  { %4049 = vmatprep.mubr.bf16.mxu0 %v7873_v0  ;;  %3855 = vmatprep.subr.bf16.mxu1 %v2737_v33  ;;  %v2865_v33 = vunpack.c.h.s8.bf16 %v2145_v19  ;;  %v2209_v19 = vld [vmem:[#allocation10 + $0x828] sm:$0xff] }
 0x4e0   :  { %4019 = vmatprep.subr.bf16.mxu0 %v2739_v42  ;;  %v2161_v42 = vld [vmem:[#allocation10 + $0x6a8] sm:$0xff] }
 0x4e1   :  { %3856 = vmatpush1.bf16.msra.mxu1 %v2736_v23  ;;  %v2864_v23 = vunpack.c.h.s8.bf16 %v2144_v28  ;;  %v2208_v28 = vld [vmem:[#allocation10 + $0x820] sm:$0xff] }
 0x4e2   :  { %4020 = vmatpush1.bf16.msra.mxu0 %v2738_v44  ;;  %3857 = vmatprep.subr.bf16.mxu1 %v2753_v35  ;;  %v2866_v44 = vunpack.c.h.s8.bf16 %v2146_v31  ;;  %v2881_v35 = vunpack.c.l.s8.bf16 %v2161_v42  ;;  %v2210_v31 = vld [vmem:[#allocation10 + $0x830] sm:$0xff] }
 0x4e3   :  { %4021 = vmatprep.subr.bf16.mxu0 %v2755_v30  ;;  %v2883_v30 = vunpack.c.l.s8.bf16 %v2163_v20 }
 0x4e5   :  { %3858 = vmatpush1.bf16.msra.mxu1 %v2752_v47  ;;  %v2880_v47 = vunpack.c.l.s8.bf16 %v2160_v39 }
 0x4e6   :  { %4022 = vmatpush1.bf16.msra.mxu0 %v2754_v61  ;;  %3859 = vmatprep.subr.bf16.mxu1 %v2769_v50  ;;  %v2882_v61 = vunpack.c.l.s8.bf16 %v2162_v46  ;;  %v2897_v50 = vunpack.c.h.s8.bf16 %v2161_v42  ;;  %v2995_v42 = vunpack.c.h.s8.bf16 %v2211_v10 }
 0x4e7   :  { %4023 = vmatprep.subr.bf16.mxu0 %v2771_v41  ;;  %v2899_v41 = vunpack.c.h.s8.bf16 %v2163_v20  ;;  %v2227_v20 = vld [vmem:[#allocation10 + $0x8b8] sm:$0xff] }
 0x4e9   :  { %3860 = vmatpush1.bf16.msra.mxu1 %v2768_v38  ;;  %v2896_v38 = vunpack.c.h.s8.bf16 %v2160_v39  ;;  %v2224_v39 = vld [vmem:[#allocation10 + $0x8a0] sm:$0xff] }
 0x4ea   :  { %4024 = vmatpush1.bf16.msra.mxu0 %v2770_v43  ;;  %3861 = vmatprep.subr.bf16.mxu1 %v2785_v57  ;;  %v2898_v43 = vunpack.c.h.s8.bf16 %v2162_v46  ;;  %v2913_v57 = vunpack.c.l.s8.bf16 %v2177_v21  ;;  %v2226_v46 = vld [vmem:[#allocation10 + $0x8b0] sm:$0xff] }
 0x4eb   :  { %4025 = vmatprep.subr.bf16.mxu0 %v2787_v59  ;;  %v2915_v59 = vunpack.c.l.s8.bf16 %v2179_v51 }
 0x4ed   :  { %3862 = vmatpush1.bf16.msra.mxu1 %v2784_v53  ;;  %v2912_v53 = vunpack.c.l.s8.bf16 %v2176_v8 }
 0x4ee   :  { %4026 = vmatpush1.bf16.msra.mxu0 %v2786_v15  ;;  %3863 = vmatprep.subr.bf16.mxu1 %v2801_v63  ;;  %v2914_v15 = vunpack.c.l.s8.bf16 %v2178_v62  ;;  %v2929_v63 = vunpack.c.h.s8.bf16 %v2177_v21  ;;  %v2241_v21 = vld [vmem:[#allocation10 + $0x928] sm:$0xff] }
 0x4ef   :  { %4027 = vmatprep.subr.bf16.mxu0 %v2803_v45  ;;  %v2931_v45 = vunpack.c.h.s8.bf16 %v2179_v51  ;;  %v2243_v51 = vld [vmem:[#allocation10 + $0x938] sm:$0xff] }
 0x4f1   :  { %3864 = vmatpush1.bf16.msra.mxu1 %v2800_v3  ;;  %v2928_v3 = vunpack.c.h.s8.bf16 %v2176_v8  ;;  %v2240_v8 = vld [vmem:[#allocation10 + $0x920] sm:$0xff] }
 0x4f2   :  { %4028 = vmatpush1.bf16.msra.mxu0 %v2802_v4  ;;  %3865 = vmatprep.subr.bf16.mxu1 %v2817_v7  ;;  %v2930_v4 = vunpack.c.h.s8.bf16 %v2178_v62  ;;  %v2945_v7 = vunpack.c.l.s8.bf16 %v2193_v48  ;;  %v2242_v62 = vld [vmem:[#allocation10 + $0x930] sm:$0xff] }
 0x4f3   :  { %4029 = vmatprep.subr.bf16.mxu0 %v2819_v12  ;;  %v2947_v12 = vunpack.c.l.s8.bf16 %v2195_v55 }
 0x4f5   :  { %3866 = vmatpush1.bf16.msra.mxu1 %v2816_v17  ;;  %v2944_v17 = vunpack.c.l.s8.bf16 %v2192_v11 }
 0x4f6   :  { %4030 = vmatpush1.bf16.msra.mxu0 %v2818_v14  ;;  %3867 = vmatprep.subr.bf16.mxu1 %v2833_v18  ;;  %v2946_v14 = vunpack.c.l.s8.bf16 %v2194_v13  ;;  %v2961_v18 = vunpack.c.h.s8.bf16 %v2193_v48  ;;  %v2257_v48 = vld [vmem:[#allocation10 + $0x9a8] sm:$0xff] }
 0x4f7   :  { %4031 = vmatprep.subr.bf16.mxu0 %v2835_v9  ;;  %v2963_v9 = vunpack.c.h.s8.bf16 %v2195_v55  ;;  %v2259_v55 = vld [vmem:[#allocation10 + $0x9b8] sm:$0xff] }
 0x4f9   :  { %3868 = vmatpush1.bf16.msra.mxu1 %v2832_v22  ;;  %v2960_v22 = vunpack.c.h.s8.bf16 %v2192_v11  ;;  %v2256_v11 = vld [vmem:[#allocation10 + $0x9a0] sm:$0xff] }
 0x4fa   :  { %4032 = vmatpush1.bf16.msra.mxu0 %v2834_v24  ;;  %3869 = vmatprep.subr.bf16.mxu1 %v2849_v26  ;;  %v2962_v24 = vunpack.c.h.s8.bf16 %v2194_v13  ;;  %v2977_v26 = vunpack.c.l.s8.bf16 %v2209_v19  ;;  %v2258_v13 = vld [vmem:[#allocation10 + $0x9b0] sm:$0xff] }
 0x4fb   :  { %4033 = vmatprep.subr.bf16.mxu0 %v2851_v29  ;;  %v2979_v29 = vunpack.c.l.s8.bf16 %v2211_v10  ;;  %v2275_v10 = vld [vmem:[#allocation10 + $0xa38] sm:$0xff] }
 0x4fd   :  { %3870 = vmatpush1.bf16.msra.mxu1 %v2848_v32  ;;  %v2976_v32 = vunpack.c.l.s8.bf16 %v2208_v28 }
 0x4fe   :  { %4034 = vmatpush1.bf16.msra.mxu0 %v2850_v40  ;;  %3871 = vmatprep.subr.bf16.mxu1 %v2865_v33  ;;  %v2978_v40 = vunpack.c.l.s8.bf16 %v2210_v31  ;;  %v2993_v33 = vunpack.c.h.s8.bf16 %v2209_v19  ;;  %v2273_v19 = vld [vmem:[#allocation10 + $0xa28] sm:$0xff] }
 0x4ff   :  { %4035 = vmatprep.subr.bf16.mxu0 %v2867_v52  ;;  %v2225_v52 = vld [vmem:[#allocation10 + $0x8a8] sm:$0xff] }
 0x501   :  { %3872 = vmatpush1.bf16.msra.mxu1 %v2864_v23  ;;  %v2992_v23 = vunpack.c.h.s8.bf16 %v2208_v28  ;;  %v2272_v28 = vld [vmem:[#allocation10 + $0xa20] sm:$0xff] }
 0x502   :  { %4036 = vmatpush1.bf16.msra.mxu0 %v2866_v44  ;;  %3873 = vmatprep.subr.bf16.mxu1 %v2881_v35  ;;  %v2994_v44 = vunpack.c.h.s8.bf16 %v2210_v31  ;;  %v3009_v35 = vunpack.c.l.s8.bf16 %v2225_v52  ;;  %v2274_v31 = vld [vmem:[#allocation10 + $0xa30] sm:$0xff] }
 0x503   :  { %4037 = vmatprep.subr.bf16.mxu0 %v2883_v30  ;;  %v3011_v30 = vunpack.c.l.s8.bf16 %v2227_v20 }
 0x505   :  { %3874 = vmatpush1.bf16.msra.mxu1 %v2880_v47  ;;  %v3008_v47 = vunpack.c.l.s8.bf16 %v2224_v39 }
 0x506   :  { %4038 = vmatpush1.bf16.msra.mxu0 %v2882_v61  ;;  %3875 = vmatprep.subr.bf16.mxu1 %v2897_v50  ;;  %v3010_v61 = vunpack.c.l.s8.bf16 %v2226_v46  ;;  %v3025_v50 = vunpack.c.h.s8.bf16 %v2225_v52  ;;  %v3123_v52 = vunpack.c.h.s8.bf16 %v2275_v10 }
 0x507   :  { %4039 = vmatprep.subr.bf16.mxu0 %v2899_v41  ;;  %v3027_v41 = vunpack.c.h.s8.bf16 %v2227_v20  ;;  %v2291_v20 = vld [vmem:[#allocation10 + $0xab8] sm:$0xff] }
 0x509   :  { %3876 = vmatpush1.bf16.msra.mxu1 %v2896_v38  ;;  %v3024_v38 = vunpack.c.h.s8.bf16 %v2224_v39  ;;  %v2288_v39 = vld [vmem:[#allocation10 + $0xaa0] sm:$0xff] }
 0x50a   :  { %4040 = vmatpush1.bf16.msra.mxu0 %v2898_v43  ;;  %3877 = vmatprep.subr.bf16.mxu1 %v2913_v57  ;;  %v3026_v43 = vunpack.c.h.s8.bf16 %v2226_v46  ;;  %v3041_v57 = vunpack.c.l.s8.bf16 %v2241_v21  ;;  %v2290_v46 = vld [vmem:[#allocation10 + $0xab0] sm:$0xff] }
 0x50b   :  { %4041 = vmatprep.subr.bf16.mxu0 %v2915_v59  ;;  %v3043_v59 = vunpack.c.l.s8.bf16 %v2243_v51 }
 0x50d   :  { %3878 = vmatpush1.bf16.msra.mxu1 %v2912_v53  ;;  %v3040_v53 = vunpack.c.l.s8.bf16 %v2240_v8 }
 0x50e   :  { %4042 = vmatpush1.bf16.msra.mxu0 %v2914_v15  ;;  %3879 = vmatprep.subr.bf16.mxu1 %v2929_v63  ;;  %v3042_v15 = vunpack.c.l.s8.bf16 %v2242_v62  ;;  %v3057_v63 = vunpack.c.h.s8.bf16 %v2241_v21  ;;  %v2305_v21 = vld [vmem:[#allocation10 + $0xb28] sm:$0xff] }
 0x50f   :  { %4043 = vmatprep.subr.bf16.mxu0 %v2931_v45  ;;  %v3059_v45 = vunpack.c.h.s8.bf16 %v2243_v51  ;;  %v2307_v51 = vld [vmem:[#allocation10 + $0xb38] sm:$0xff] }
 0x511   :  { %3880 = vmatpush1.bf16.msra.mxu1 %v2928_v3  ;;  %v3056_v3 = vunpack.c.h.s8.bf16 %v2240_v8  ;;  %v2304_v8 = vld [vmem:[#allocation10 + $0xb20] sm:$0xff] }
 0x512   :  { %4044 = vmatpush1.bf16.msra.mxu0 %v2930_v4  ;;  %3881 = vmatprep.subr.bf16.mxu1 %v2945_v7  ;;  %v3058_v4 = vunpack.c.h.s8.bf16 %v2242_v62  ;;  %v3073_v7 = vunpack.c.l.s8.bf16 %v2257_v48  ;;  %v2306_v62 = vld [vmem:[#allocation10 + $0xb30] sm:$0xff] }
 0x513   :  { %4045 = vmatprep.subr.bf16.mxu0 %v2947_v12  ;;  %v3075_v12 = vunpack.c.l.s8.bf16 %v2259_v55 }
 0x515   :  { %3882 = vmatpush1.bf16.msra.mxu1 %v2944_v17  ;;  %v3072_v17 = vunpack.c.l.s8.bf16 %v2256_v11 }
 0x516   :  { %4046 = vmatpush1.bf16.msra.mxu0 %v2946_v14  ;;  %3883 = vmatprep.subr.bf16.mxu1 %v2961_v18  ;;  %v3074_v14 = vunpack.c.l.s8.bf16 %v2258_v13  ;;  %v3089_v18 = vunpack.c.h.s8.bf16 %v2257_v48  ;;  %v2321_v48 = vld [vmem:[#allocation10 + $0xba8] sm:$0xff] }
 0x517   :  { %4047 = vmatprep.subr.bf16.mxu0 %v2963_v9  ;;  %v3091_v9 = vunpack.c.h.s8.bf16 %v2259_v55  ;;  %v2323_v55 = vld [vmem:[#allocation10 + $0xbb8] sm:$0xff] }
 0x519   :  { %3884 = vmatpush1.bf16.msra.mxu1 %v2960_v22  ;;  %v3088_v22 = vunpack.c.h.s8.bf16 %v2256_v11  ;;  %v2320_v11 = vld [vmem:[#allocation10 + $0xba0] sm:$0xff] }
 0x51a   :  { %4048 = vmatpush1.bf16.msra.mxu0 %v2962_v24  ;;  %3894 = vmatprep.subr.bf16.mxu1 %v2977_v26  ;;  %v3090_v24 = vunpack.c.h.s8.bf16 %v2258_v13  ;;  %v3105_v26 = vunpack.c.l.s8.bf16 %v2273_v19  ;;  %v2322_v13 = vld [vmem:[#allocation10 + $0xbb0] sm:$0xff] }
 0x51b   :  { %4058 = vmatprep.subr.bf16.mxu0 %v2979_v29  ;;  %v3107_v29 = vunpack.c.l.s8.bf16 %v2275_v10  ;;  %v2339_v10 = vld [vmem:[#allocation10 + $0xc38] sm:$0xff] }
 0x51c   :  { %3886 = vmatmul.mubr.bf16.vlgmr.msra.gmra.mrb[16].mxu1 %v7893_v49 }
 0x51d   :  { %4050 = vmatmul.mubr.bf16.vlgmr.msra.gmra.mrb[20].mxu0 %v7893_v49  ;;  %3895 = vmatpush1.bf16.msra.mxu1 %v2976_v32  ;;  %v3104_v32 = vunpack.c.l.s8.bf16 %v2272_v28 }
 0x51e   :  { %3926 = vmatprep.mubr.bf16.mxu1 %v7963_v2  ;;  %4059 = vmatpush1.bf16.msra.mxu0 %v2978_v40  ;;  %v3106_v40 = vunpack.c.l.s8.bf16 %v2274_v31 }
 0x51f   :  { %4090 = vmatprep.mubr.bf16.mxu0 %v7963_v2  ;;  %3896 = vmatprep.subr.bf16.mxu1 %v2993_v33  ;;  %v3121_v33 = vunpack.c.h.s8.bf16 %v2273_v19  ;;  %v2337_v19 = vld [vmem:[#allocation10 + $0xc28] sm:$0xff] }
 0x520   :  { %4060 = vmatprep.subr.bf16.mxu0 %v2995_v42  ;;  %v2289_v42 = vld [vmem:[#allocation10 + $0xaa8] sm:$0xff] }
 0x521   :  { %3897 = vmatpush1.bf16.msra.mxu1 %v2992_v23  ;;  %v3120_v23 = vunpack.c.h.s8.bf16 %v2272_v28  ;;  %v2336_v28 = vld [vmem:[#allocation10 + $0xc20] sm:$0xff] }
 0x522   :  { %4061 = vmatpush1.bf16.msra.mxu0 %v2994_v44  ;;  %3898 = vmatprep.subr.bf16.mxu1 %v3009_v35  ;;  %v3122_v44 = vunpack.c.h.s8.bf16 %v2274_v31  ;;  %v3137_v35 = vunpack.c.l.s8.bf16 %v2289_v42  ;;  %v2338_v31 = vld [vmem:[#allocation10 + $0xc30] sm:$0xff] }
 0x523   :  { %4062 = vmatprep.subr.bf16.mxu0 %v3011_v30  ;;  %v3139_v30 = vunpack.c.l.s8.bf16 %v2291_v20 }
 0x525   :  { %3899 = vmatpush1.bf16.msra.mxu1 %v3008_v47  ;;  %v3136_v47 = vunpack.c.l.s8.bf16 %v2288_v39 }
 0x526   :  { %4063 = vmatpush1.bf16.msra.mxu0 %v3010_v61  ;;  %3900 = vmatprep.subr.bf16.mxu1 %v3025_v50  ;;  %v3138_v61 = vunpack.c.l.s8.bf16 %v2290_v46  ;;  %v3153_v50 = vunpack.c.h.s8.bf16 %v2289_v42  ;;  %v3251_v42 = vunpack.c.h.s8.bf16 %v2339_v10 }
 0x527   :  { %4064 = vmatprep.subr.bf16.mxu0 %v3027_v41  ;;  %v3155_v41 = vunpack.c.h.s8.bf16 %v2291_v20  ;;  %v2355_v20 = vld [vmem:[#allocation10 + $0xcb8] sm:$0xff] }
 0x529   :  { %3901 = vmatpush1.bf16.msra.mxu1 %v3024_v38  ;;  %v3152_v38 = vunpack.c.h.s8.bf16 %v2288_v39  ;;  %v2352_v39 = vld [vmem:[#allocation10 + $0xca0] sm:$0xff] }
 0x52a   :  { %4065 = vmatpush1.bf16.msra.mxu0 %v3026_v43  ;;  %3902 = vmatprep.subr.bf16.mxu1 %v3041_v57  ;;  %v3154_v43 = vunpack.c.h.s8.bf16 %v2290_v46  ;;  %v3169_v57 = vunpack.c.l.s8.bf16 %v2305_v21  ;;  %v2354_v46 = vld [vmem:[#allocation10 + $0xcb0] sm:$0xff] }
 0x52b   :  { %4066 = vmatprep.subr.bf16.mxu0 %v3043_v59  ;;  %v3171_v59 = vunpack.c.l.s8.bf16 %v2307_v51 }
 0x52d   :  { %3903 = vmatpush1.bf16.msra.mxu1 %v3040_v53  ;;  %v3168_v53 = vunpack.c.l.s8.bf16 %v2304_v8 }
 0x52e   :  { %4067 = vmatpush1.bf16.msra.mxu0 %v3042_v15  ;;  %3904 = vmatprep.subr.bf16.mxu1 %v3057_v63  ;;  %v3170_v15 = vunpack.c.l.s8.bf16 %v2306_v62  ;;  %v3185_v63 = vunpack.c.h.s8.bf16 %v2305_v21  ;;  %v2369_v21 = vld [vmem:[#allocation10 + $0xd28] sm:$0xff] }
 0x52f   :  { %4068 = vmatprep.subr.bf16.mxu0 %v3059_v45  ;;  %v3187_v45 = vunpack.c.h.s8.bf16 %v2307_v51  ;;  %v2371_v51 = vld [vmem:[#allocation10 + $0xd38] sm:$0xff] }
 0x531   :  { %3905 = vmatpush1.bf16.msra.mxu1 %v3056_v3  ;;  %v3184_v3 = vunpack.c.h.s8.bf16 %v2304_v8  ;;  %v2368_v8 = vld [vmem:[#allocation10 + $0xd20] sm:$0xff] }
 0x532   :  { %4069 = vmatpush1.bf16.msra.mxu0 %v3058_v4  ;;  %3906 = vmatprep.subr.bf16.mxu1 %v3073_v7  ;;  %v3186_v4 = vunpack.c.h.s8.bf16 %v2306_v62  ;;  %v3201_v7 = vunpack.c.l.s8.bf16 %v2321_v48  ;;  %v2370_v62 = vld [vmem:[#allocation10 + $0xd30] sm:$0xff] }
 0x533   :  { %4070 = vmatprep.subr.bf16.mxu0 %v3075_v12  ;;  %v3203_v12 = vunpack.c.l.s8.bf16 %v2323_v55 }
 0x535   :  { %3907 = vmatpush1.bf16.msra.mxu1 %v3072_v17  ;;  %v3200_v17 = vunpack.c.l.s8.bf16 %v2320_v11 }
 0x536   :  { %4071 = vmatpush1.bf16.msra.mxu0 %v3074_v14  ;;  %3908 = vmatprep.subr.bf16.mxu1 %v3089_v18  ;;  %v3202_v14 = vunpack.c.l.s8.bf16 %v2322_v13  ;;  %v3217_v18 = vunpack.c.h.s8.bf16 %v2321_v48  ;;  %v2385_v48 = vld [vmem:[#allocation10 + $0xda8] sm:$0xff] }
 0x537   :  { %4072 = vmatprep.subr.bf16.mxu0 %v3091_v9  ;;  %v3219_v9 = vunpack.c.h.s8.bf16 %v2323_v55  ;;  %v2387_v55 = vld [vmem:[#allocation10 + $0xdb8] sm:$0xff] }
 0x539   :  { %3909 = vmatpush1.bf16.msra.mxu1 %v3088_v22  ;;  %v3216_v22 = vunpack.c.h.s8.bf16 %v2320_v11  ;;  %v2384_v11 = vld [vmem:[#allocation10 + $0xda0] sm:$0xff] }
 0x53a   :  { %4073 = vmatpush1.bf16.msra.mxu0 %v3090_v24  ;;  %3910 = vmatprep.subr.bf16.mxu1 %v3105_v26  ;;  %v3218_v24 = vunpack.c.h.s8.bf16 %v2322_v13  ;;  %v3233_v26 = vunpack.c.l.s8.bf16 %v2337_v19 }
 0x53b   :  { %4074 = vmatprep.subr.bf16.mxu0 %v3107_v29  ;;  %v3235_v29 = vunpack.c.l.s8.bf16 %v2339_v10 }
 0x53d   :  { %3911 = vmatpush1.bf16.msra.mxu1 %v3104_v32  ;;  %v3232_v32 = vunpack.c.l.s8.bf16 %v2336_v28 }
 0x53e   :  { %4075 = vmatpush1.bf16.msra.mxu0 %v3106_v40  ;;  %3912 = vmatprep.subr.bf16.mxu1 %v3121_v33  ;;  %v3234_v40 = vunpack.c.l.s8.bf16 %v2338_v31  ;;  %v3249_v33 = vunpack.c.h.s8.bf16 %v2337_v19 }
 0x53f   :  { %4076 = vmatprep.subr.bf16.mxu0 %v3123_v52  ;;  %v2353_v52 = vld [vmem:[#allocation10 + $0xca8] sm:$0xff] }
 0x541   :  { %3913 = vmatpush1.bf16.msra.mxu1 %v3120_v23  ;;  %v3248_v23 = vunpack.c.h.s8.bf16 %v2336_v28 }
 0x542   :  { %4077 = vmatpush1.bf16.msra.mxu0 %v3122_v44  ;;  %3914 = vmatprep.subr.bf16.mxu1 %v3137_v35  ;;  %v3250_v44 = vunpack.c.h.s8.bf16 %v2338_v31  ;;  %v3265_v35 = vunpack.c.l.s8.bf16 %v2353_v52  ;;  %v3347_v31 = vunpack.c.h.s8.bf16 %v2387_v55 }
 0x543   :  { %4078 = vmatprep.subr.bf16.mxu0 %v3139_v30  ;;  %v3267_v30 = vunpack.c.l.s8.bf16 %v2355_v20 }
 0x545   :  { %3915 = vmatpush1.bf16.msra.mxu1 %v3136_v47  ;;  %v3264_v47 = vunpack.c.l.s8.bf16 %v2352_v39 }
 0x546   :  { %4079 = vmatpush1.bf16.msra.mxu0 %v3138_v61  ;;  %3916 = vmatprep.subr.bf16.mxu1 %v3153_v50  ;;  %v3266_v61 = vunpack.c.l.s8.bf16 %v2354_v46  ;;  %v3281_v50 = vunpack.c.h.s8.bf16 %v2353_v52 }
 0x547   :  { %4080 = vmatprep.subr.bf16.mxu0 %v3155_v41  ;;  %v3283_v41 = vunpack.c.h.s8.bf16 %v2355_v20  ;;  %v2400_v20 = vld [vmem:[#allocation10 + $0xe20] sm:$0xff] }
 0x549   :  { %3917 = vmatpush1.bf16.msra.mxu1 %v3152_v38  ;;  %v3280_v38 = vunpack.c.h.s8.bf16 %v2352_v39 }
 0x54a   :  { %4081 = vmatpush1.bf16.msra.mxu0 %v3154_v43  ;;  %3918 = vmatprep.subr.bf16.mxu1 %v3169_v57  ;;  %v3282_v43 = vunpack.c.h.s8.bf16 %v2354_v46  ;;  %v3297_v57 = vunpack.c.l.s8.bf16 %v2369_v21 }
 0x54b   :  { %4082 = vmatprep.subr.bf16.mxu0 %v3171_v59  ;;  %v3299_v59 = vunpack.c.l.s8.bf16 %v2371_v51 }
 0x54d   :  { %3919 = vmatpush1.bf16.msra.mxu1 %v3168_v53  ;;  %v3296_v53 = vunpack.c.l.s8.bf16 %v2368_v8 }
 0x54e   :  { %4083 = vmatpush1.bf16.msra.mxu0 %v3170_v15  ;;  %3920 = vmatprep.subr.bf16.mxu1 %v3185_v63  ;;  %v3298_v15 = vunpack.c.l.s8.bf16 %v2370_v62  ;;  %v3313_v63 = vunpack.c.h.s8.bf16 %v2369_v21 }
 0x54f   :  { %4084 = vmatprep.subr.bf16.mxu0 %v3187_v45  ;;  %v3315_v45 = vunpack.c.h.s8.bf16 %v2371_v51  ;;  %v2416_v51 = vld [vmem:[#allocation10 + $0xea0] sm:$0xff] }
 0x551   :  { %3921 = vmatpush1.bf16.msra.mxu1 %v3184_v3  ;;  %v3312_v3 = vunpack.c.h.s8.bf16 %v2368_v8 }
 0x552   :  { %4085 = vmatpush1.bf16.msra.mxu0 %v3186_v4  ;;  %3922 = vmatprep.subr.bf16.mxu1 %v3201_v7  ;;  %v3314_v4 = vunpack.c.h.s8.bf16 %v2370_v62  ;;  %v3329_v7 = vunpack.c.l.s8.bf16 %v2385_v48 }
 0x553   :  { %4086 = vmatprep.subr.bf16.mxu0 %v3203_v12 }
 0x555   :  { %3923 = vmatpush1.bf16.msra.mxu1 %v3200_v17  ;;  %v3331_v17 = vunpack.c.l.s8.bf16 %v2387_v55  ;;  %v2432_v55 = vld [vmem:[#allocation10 + $0xf20] sm:$0xff] }
 0x556   :  { %4087 = vmatpush1.bf16.msra.mxu0 %v3202_v14  ;;  %3924 = vmatprep.subr.bf16.mxu1 %v3217_v18  ;;  %v2386_v14 = vld [vmem:[#allocation10 + $0xdb0] sm:$0xff] }
 0x557   :  { %4088 = vmatprep.subr.bf16.mxu0 %v3219_v9  ;;  %v3330_v28 = vunpack.c.l.s8.bf16 %v2386_v14  ;;  %v3346_v52 = vunpack.c.h.s8.bf16 %v2386_v14 }
 0x559   :  { %3925 = vmatpush1.bf16.msra.mxu1 %v3216_v22  ;;  %v3328_v22 = vunpack.c.l.s8.bf16 %v2384_v11 }
 0x55a   :  { %4089 = vmatpush1.bf16.msra.mxu0 %v3218_v24  ;;  %3935 = vmatprep.subr.bf16.mxu1 %v3233_v26 }
 0x55b   :  { %4099 = vmatprep.subr.bf16.mxu0 %v3235_v29  ;;  %v3345_v29 = vunpack.c.h.s8.bf16 %v2385_v48 }
 0x55c   :  { %3927 = vmatmul.mubr.bf16.vlgmr.msra.gmra.mrb[16].mxu1 %v7965_v6 }
 0x55d   :  { %4091 = vmatmul.mubr.bf16.vlgmr.msra.gmra.mrb[20].mxu0 %v7965_v6  ;;  %3936 = vmatpush1.bf16.msra.mxu1 %v3232_v32  ;;  %v2401_v32 = vld [vmem:[#allocation10 + $0xe28] sm:$0xff] }
 0x55e   :  { %3967 = vmatprep.mubr.bf16.mxu1 %v7969_v16  ;;  %4100 = vmatpush1.bf16.msra.mxu0 %v3234_v40  ;;  %v2403_v40 = vld [vmem:[#allocation10 + $0xe38] sm:$0xff] }
 0x55f   :  { %4131 = vmatprep.mubr.bf16.mxu0 %v7969_v16  ;;  %3937 = vmatprep.subr.bf16.mxu1 %v3249_v33  ;;  %v3344_v33 = vunpack.c.h.s8.bf16 %v2384_v11  ;;  %v3379_v46 = vunpack.c.h.s8.bf16 %v2403_v40 }
 0x560   :  { %4101 = vmatprep.subr.bf16.mxu0 %v3251_v42  ;;  %v3361_v42 = vunpack.c.l.s8.bf16 %v2401_v32 }
 0x561   :  { %3938 = vmatpush1.bf16.msra.mxu1 %v3248_v23  ;;  %v3363_v23 = vunpack.c.l.s8.bf16 %v2403_v40 }
 0x562   :  { %4102 = vmatpush1.bf16.msra.mxu0 %v3250_v44  ;;  %3939 = vmatprep.subr.bf16.mxu1 %v3265_v35  ;;  %v2402_v44 = vld [vmem:[#allocation10 + $0xe30] sm:$0xff]  ;;  %v3360_v35 = vunpack.c.l.s8.bf16 %v2400_v20 }
 0x563   :  { %4103 = vmatprep.subr.bf16.mxu0 %v3267_v30  ;;  %v3362_v39 = vunpack.c.l.s8.bf16 %v2402_v44  ;;  %v3377_v30 = vunpack.c.h.s8.bf16 %v2401_v32 }
 0x565   :  { %3940 = vmatpush1.bf16.msra.mxu1 %v3264_v47  ;;  %v2417_v47 = vld [vmem:[#allocation10 + $0xea8] sm:$0xff] }
 0x566   :  { %4104 = vmatpush1.bf16.msra.mxu0 %v3266_v61  ;;  %3941 = vmatprep.subr.bf16.mxu1 %v3281_v50  ;;  %v2419_v61 = vld [vmem:[#allocation10 + $0xeb8] sm:$0xff]  ;;  %v3376_v50 = vunpack.c.h.s8.bf16 %v2400_v20  ;;  %v3393_v21 = vunpack.c.l.s8.bf16 %v2417_v47 }
 0x567   :  { %4105 = vmatprep.subr.bf16.mxu0 %v3283_v41  ;;  %v3378_v41 = vunpack.c.h.s8.bf16 %v2402_v44  ;;  %v3411_v62 = vunpack.c.h.s8.bf16 %v2419_v61  ;;  %v1959_v20 = vld [vmem:[#allocation10 + $0x58] sm:$0xff] }
 0x569   :  { %3942 = vmatpush1.bf16.msra.mxu1 %v3280_v38  ;;  %v3395_v38 = vunpack.c.l.s8.bf16 %v2419_v61 }
 0x56a   :  { %4106 = vmatpush1.bf16.msra.mxu0 %v3282_v43  ;;  %3943 = vmatprep.subr.bf16.mxu1 %v3297_v57  ;;  %v2418_v43 = vld [vmem:[#allocation10 + $0xeb0] sm:$0xff]  ;;  %v3392_v57 = vunpack.c.l.s8.bf16 %v2416_v51 }
 0x56b   :  { %4107 = vmatprep.subr.bf16.mxu0 %v3299_v59  ;;  %v3394_v8 = vunpack.c.l.s8.bf16 %v2418_v43  ;;  %v3409_v59 = vunpack.c.h.s8.bf16 %v2417_v47 }
 0x56d   :  { %3944 = vmatpush1.bf16.msra.mxu1 %v3296_v53  ;;  %v2433_v53 = vld [vmem:[#allocation10 + $0xf28] sm:$0xff] }
 0x56e   :  { %4108 = vmatpush1.bf16.msra.mxu0 %v3298_v15  ;;  %3945 = vmatprep.subr.bf16.mxu1 %v3313_v63  ;;  %v2435_v15 = vld [vmem:[#allocation10 + $0xf38] sm:$0xff]  ;;  %v3408_v63 = vunpack.c.h.s8.bf16 %v2416_v51  ;;  %v3425_v48 = vunpack.c.l.s8.bf16 %v2433_v53 }
 0x56f   :  { %v7998_v12 = vpop.f32.mrb[12].mxu1  ;;  %v8000_v13 = vpop.f32.mrb[16].mxu0  ;;  %4109 = vmatprep.subr.bf16.mxu0 %v3315_v45  ;;  %v3410_v45 = vunpack.c.h.s8.bf16 %v2418_v43  ;;  %v3443_v14 = vunpack.c.h.s8.bf16 %v2435_v15  ;;  %v1975_v51 = vld [vmem:[#allocation10 + $0xd8] sm:$0xff] }
 0x570   :  { %v8002_v18 = vpop.f32.mrb[13].mxu1  ;;  %v8004_v9 = vpop.f32.mrb[17].mxu0 }
 0x571   :  { %v3645_v19 = vpop.f32.mrb[14].mxu1  ;;  %v3809_v10 = vpop.f32.mrb[18].mxu0  ;;  %3946 = vmatpush1.bf16.msra.mxu1 %v3312_v3  ;;  %v3427_v3 = vunpack.c.l.s8.bf16 %v2435_v15 }
 0x572   :  { %4110 = vmatpush1.bf16.msra.mxu0 %v3314_v4  ;;  %v3646_v24 = vpop.f32.mrb[15].mxu1  ;;  %v3810_v26 = vpop.f32.mrb[19].mxu0  ;;  %3947 = vmatprep.subr.bf16.mxu1 %v3329_v7  ;;  %v2434_v4 = vld [vmem:[#allocation10 + $0xf30] sm:$0xff]  ;;  %v3424_v7 = vunpack.c.l.s8.bf16 %v2432_v55  ;;  %v2449_v19 = vld [vmem:[#allocation10 + $0xfa8] sm:$0xff]  ;;  %v2451_v10 = vld [vmem:[#allocation10 + $0xfb8] sm:$0xff] }
 0x573   :  { %4111 = vmatprep.subr.bf16.mxu0 %v3331_v17  ;;  %v3426_v11 = vunpack.c.l.s8.bf16 %v2434_v4  ;;  %v3441_v17 = vunpack.c.h.s8.bf16 %v2433_v53  ;;  %v3442_v24 = vunpack.c.h.s8.bf16 %v2434_v4  ;;  %v3457_v26 = vunpack.c.l.s8.bf16 %v2449_v19 }
 0x575   :  { %3948 = vmatpush1.bf16.msra.mxu1 %v3328_v22  ;;  %v3440_v22 = vunpack.c.h.s8.bf16 %v2432_v55  ;;  %v1991_v55 = vld [vmem:[#allocation10 + $0x158] sm:$0xff] }
 0x576   :  { %4112 = vmatpush1.bf16.msra.mxu0 %v3330_v28  ;;  %3949 = vmatprep.subr.bf16.mxu1 %v3345_v29  ;;  %v2448_v28 = vld [vmem:[#allocation10 + $0xfa0] sm:$0xff]  ;;  %v3459_v29 = vunpack.c.l.s8.bf16 %v2451_v10 }
 0x577   :  { %4113 = vmatprep.subr.bf16.mxu0 %v3347_v31  ;;  %v2450_v31 = vld [vmem:[#allocation10 + $0xfb0] sm:$0xff]  ;;  %v3456_v32 = vunpack.c.l.s8.bf16 %v2448_v28 }
 0x578   :  { %v3458_v40 = vunpack.c.l.s8.bf16 %v2450_v31  ;;  %v3474_v44 = vunpack.c.h.s8.bf16 %v2450_v31 }
 0x579   :  { %3950 = vmatpush1.bf16.msra.mxu1 %v3344_v33  ;;  %v3473_v33 = vunpack.c.h.s8.bf16 %v2449_v19 }
 0x57a   :  { %4114 = vmatpush1.bf16.msra.mxu0 %v3346_v52  ;;  %3951 = vmatprep.subr.bf16.mxu1 %v3361_v42  ;;  %v3475_v52 = vunpack.c.h.s8.bf16 %v2451_v10  ;;  %v1957_v42 = vld [vmem:[#allocation10 + $0x48] sm:$0xff] }
 0x57b   :  { %4115 = vmatprep.subr.bf16.mxu0 %v3363_v23  ;;  %v3472_v23 = vunpack.c.h.s8.bf16 %v2448_v28  ;;  %v2007_v28 = vld [vmem:[#allocation10 + $0x1d8] sm:$0xff] }
 0x57d   :  { %3952 = vmatpush1.bf16.msra.mxu1 %v3360_v35  ;;  %v2469_v35 = vunpack.c.l.s8.bf16 %v1957_v42 }
 0x57e   :  { %4116 = vmatpush1.bf16.msra.mxu0 %v3362_v39  ;;  %3953 = vmatprep.subr.bf16.mxu1 %v3377_v30  ;;  %v1956_v39 = vld [vmem:[#allocation10 + $0x40] sm:$0xff]  ;;  %v2471_v30 = vunpack.c.l.s8.bf16 %v1959_v20 }
 0x57f   :  { %4117 = vmatprep.subr.bf16.mxu0 %v3379_v46  ;;  %v1958_v46 = vld [vmem:[#allocation10 + $0x50] sm:$0xff]  ;;  %v2468_v47 = vunpack.c.l.s8.bf16 %v1956_v39 }
 0x580   :  { %v2470_v61 = vunpack.c.l.s8.bf16 %v1958_v46  ;;  %v2486_v43 = vunpack.c.h.s8.bf16 %v1958_v46 }
 0x581   :  { %3954 = vmatpush1.bf16.msra.mxu1 %v3376_v50  ;;  %v2485_v50 = vunpack.c.h.s8.bf16 %v1957_v42 }
 0x582   :  { %4118 = vmatpush1.bf16.msra.mxu0 %v3378_v41  ;;  %3955 = vmatprep.subr.bf16.mxu1 %v3393_v21  ;;  %v1973_v41 = vld [vmem:[#allocation10 + $0xc8] sm:$0xff]  ;;  %v2487_v21 = vunpack.c.h.s8.bf16 %v1959_v20 }
 0x583   :  { %4119 = vmatprep.subr.bf16.mxu0 %v3395_v38  ;;  %v2484_v38 = vunpack.c.h.s8.bf16 %v1956_v39  ;;  %v2023_v39 = vld [vmem:[#allocation10 + $0x258] sm:$0xff] }
 0x585   :  { %3956 = vmatpush1.bf16.msra.mxu1 %v3392_v57  ;;  %v2501_v57 = vunpack.c.l.s8.bf16 %v1973_v41 }
 0x586   :  { %4120 = vmatpush1.bf16.msra.mxu0 %v3394_v8  ;;  %3957 = vmatprep.subr.bf16.mxu1 %v3409_v59  ;;  %v1972_v8 = vld [vmem:[#allocation10 + $0xc0] sm:$0xff]  ;;  %v2503_v59 = vunpack.c.l.s8.bf16 %v1975_v51 }
 0x587   :  { %4121 = vmatprep.subr.bf16.mxu0 %v3411_v62  ;;  %v1974_v62 = vld [vmem:[#allocation10 + $0xd0] sm:$0xff]  ;;  %v2500_v53 = vunpack.c.l.s8.bf16 %v1972_v8 }
 0x588   :  { %v2502_v15 = vunpack.c.l.s8.bf16 %v1974_v62  ;;  %v2518_v4 = vunpack.c.h.s8.bf16 %v1974_v62 }
 0x589   :  { %3958 = vmatpush1.bf16.msra.mxu1 %v3408_v63  ;;  %v2517_v63 = vunpack.c.h.s8.bf16 %v1973_v41  ;;  %v2022_v41 = vld [vmem:[#allocation10 + $0x250] sm:$0xff] }
 0x58a   :  { %4122 = vmatpush1.bf16.msra.mxu0 %v3410_v45  ;;  %3959 = vmatprep.subr.bf16.mxu1 %v3425_v48  ;;  %v2519_v45 = vunpack.c.h.s8.bf16 %v1975_v51  ;;  %v1989_v48 = vld [vmem:[#allocation10 + $0x148] sm:$0xff]  ;;  %v2598_v51 = vunpack.c.l.s8.bf16 %v2022_v41  ;;  %v2614_v62 = vunpack.c.h.s8.bf16 %v2022_v41 }
 0x58b   :  { %4123 = vmatprep.subr.bf16.mxu0 %v3427_v3  ;;  %v2516_v3 = vunpack.c.h.s8.bf16 %v1972_v8  ;;  %v2039_v8 = vld [vmem:[#allocation10 + $0x2d8] sm:$0xff] }
 0x58d   :  { %3960 = vmatpush1.bf16.msra.mxu1 %v3424_v7  ;;  %v2533_v7 = vunpack.c.l.s8.bf16 %v1989_v48 }
 0x58e   :  { %4124 = vmatpush1.bf16.msra.mxu0 %v3426_v11  ;;  %3961 = vmatprep.subr.bf16.mxu1 %v3441_v17  ;;  %v1988_v11 = vld [vmem:[#allocation10 + $0x140] sm:$0xff]  ;;  %v2535_v17 = vunpack.c.l.s8.bf16 %v1991_v55 }
 0x58f   :  { %4125 = vmatprep.subr.bf16.mxu0 %v3443_v14  ;;  %v1990_v14 = vld [vmem:[#allocation10 + $0x150] sm:$0xff]  ;;  %v2532_v19 = vunpack.c.l.s8.bf16 %v1988_v11 }
 0x590   :  { %v2534_v10 = vunpack.c.l.s8.bf16 %v1990_v14  ;;  %v2550_v31 = vunpack.c.h.s8.bf16 %v1990_v14 }
 0x591   :  { %3962 = vmatpush1.bf16.msra.mxu1 %v3440_v22  ;;  %v2549_v22 = vunpack.c.h.s8.bf16 %v1989_v48 }
 0x592   :  { %4126 = vmatpush1.bf16.msra.mxu0 %v3442_v24  ;;  %3963 = vmatprep.subr.bf16.mxu1 %v3457_v26  ;;  %v2551_v24 = vunpack.c.h.s8.bf16 %v1991_v55  ;;  %v2005_v26 = vld [vmem:[#allocation10 + $0x1c8] sm:$0xff] }
 0x593   :  { %4127 = vmatprep.subr.bf16.mxu0 %v3459_v29  ;;  %v2548_v29 = vunpack.c.h.s8.bf16 %v1988_v11  ;;  %v2055_v11 = vld [vmem:[#allocation10 + $0x358] sm:$0xff] }
 0x595   :  { %3964 = vmatpush1.bf16.msra.mxu1 %v3456_v32  ;;  %v2565_v32 = vunpack.c.l.s8.bf16 %v2005_v26 }
 0x596   :  { %4128 = vmatpush1.bf16.msra.mxu0 %v3458_v40  ;;  %3965 = vmatprep.subr.bf16.mxu1 %v3473_v33  ;;  %v2004_v40 = vld [vmem:[#allocation10 + $0x1c0] sm:$0xff]  ;;  %v2567_v33 = vunpack.c.l.s8.bf16 %v2007_v28 }
 0x597   :  { %4129 = vmatprep.subr.bf16.mxu0 %v3475_v52  ;;  %v2006_v52 = vld [vmem:[#allocation10 + $0x1d0] sm:$0xff]  ;;  %v2564_v42 = vunpack.c.l.s8.bf16 %v2004_v40 }
 0x598   :  { %v2566_v20 = vunpack.c.l.s8.bf16 %v2006_v52  ;;  %v2582_v46 = vunpack.c.h.s8.bf16 %v2006_v52 }
 0x599   :  { %3966 = vmatpush1.bf16.msra.mxu1 %v3472_v23  ;;  %v2581_v23 = vunpack.c.h.s8.bf16 %v2005_v26 }
 0x59a   :  { %4130 = vmatpush1.bf16.msra.mxu0 %v3474_v44  ;;  %4140 = vmatprep.subr.bf16.mxu1 %v2469_v35  ;;  %v2583_v44 = vunpack.c.h.s8.bf16 %v2007_v28  ;;  %v2021_v35 = vld [vmem:[#allocation10 + $0x248] sm:$0xff] }
 0x59b   :  { %4304 = vmatprep.subr.bf16.mxu0 %v2471_v30  ;;  %v2580_v30 = vunpack.c.h.s8.bf16 %v2004_v40  ;;  %v2071_v40 = vld [vmem:[#allocation10 + $0x3d8] sm:$0xff] }
 0x59c   :  { %3968 = vmatmul.mubr.bf16.vlgmr.msra.gmra.mrb[16].mxu1 %v7980_v37 }
 0x59d   :  { %4132 = vmatmul.mubr.bf16.vlgmr.msra.gmra.mrb[20].mxu0 %v7980_v37  ;;  %4141 = vmatpush1.bf16.msra.mxu1 %v2468_v47  ;;  %v2597_v47 = vunpack.c.l.s8.bf16 %v2021_v35 }
 0x59e   :  { %4172 = vmatprep.mubr.bf16.mxu1 %v7865_v56  ;;  %4305 = vmatpush1.bf16.msra.mxu0 %v2470_v61  ;;  %v2020_v61 = vld [vmem:[#allocation10 + $0x240] sm:$0xff] }
 0x59f   :  { %4336 = vmatprep.mubr.bf16.mxu0 %v7865_v56  ;;  %4142 = vmatprep.subr.bf16.mxu1 %v2485_v50  ;;  %v2599_v50 = vunpack.c.l.s8.bf16 %v2023_v39 }
 0x5a0   :  { %4306 = vmatprep.subr.bf16.mxu0 %v2487_v21  ;;  %v2596_v21 = vunpack.c.l.s8.bf16 %v2020_v61 }
 0x5a1   :  { %4143 = vmatpush1.bf16.msra.mxu1 %v2484_v38  ;;  %v2613_v38 = vunpack.c.h.s8.bf16 %v2021_v35 }
 0x5a2   :  { %4307 = vmatpush1.bf16.msra.mxu0 %v2486_v43  ;;  %4144 = vmatprep.subr.bf16.mxu1 %v2501_v57  ;;  %v2615_v43 = vunpack.c.h.s8.bf16 %v2023_v39  ;;  %v2037_v57 = vld [vmem:[#allocation10 + $0x2c8] sm:$0xff] }
 0x5a3   :  { %4308 = vmatprep.subr.bf16.mxu0 %v2503_v59  ;;  %v2612_v59 = vunpack.c.h.s8.bf16 %v2020_v61  ;;  %v2087_v61 = vld [vmem:[#allocation10 + $0x458] sm:$0xff] }
 0x5a5   :  { %4145 = vmatpush1.bf16.msra.mxu1 %v2500_v53  ;;  %v2629_v53 = vunpack.c.l.s8.bf16 %v2037_v57 }
 0x5a6   :  { %4309 = vmatpush1.bf16.msra.mxu0 %v2502_v15  ;;  %4146 = vmatprep.subr.bf16.mxu1 %v2517_v63  ;;  %v2036_v15 = vld [vmem:[#allocation10 + $0x2c0] sm:$0xff]  ;;  %v2631_v63 = vunpack.c.l.s8.bf16 %v2039_v8 }
 0x5a7   :  { %4310 = vmatprep.subr.bf16.mxu0 %v2519_v45  ;;  %v2038_v45 = vld [vmem:[#allocation10 + $0x2d0] sm:$0xff]  ;;  %v2628_v48 = vunpack.c.l.s8.bf16 %v2036_v15 }
 0x5a8   :  { %v2630_v55 = vunpack.c.l.s8.bf16 %v2038_v45  ;;  %v2646_v14 = vunpack.c.h.s8.bf16 %v2038_v45 }
 0x5a9   :  { %4147 = vmatpush1.bf16.msra.mxu1 %v2516_v3  ;;  %v2645_v3 = vunpack.c.h.s8.bf16 %v2037_v57 }
 0x5aa   :  { %4311 = vmatpush1.bf16.msra.mxu0 %v2518_v4  ;;  %4148 = vmatprep.subr.bf16.mxu1 %v2533_v7  ;;  %v2647_v4 = vunpack.c.h.s8.bf16 %v2039_v8  ;;  %v2053_v7 = vld [vmem:[#allocation10 + $0x348] sm:$0xff] }
 0x5ab   :  { %4312 = vmatprep.subr.bf16.mxu0 %v2535_v17  ;;  %v2644_v17 = vunpack.c.h.s8.bf16 %v2036_v15  ;;  %v2103_v15 = vld [vmem:[#allocation10 + $0x4d8] sm:$0xff] }
 0x5ad   :  { %4149 = vmatpush1.bf16.msra.mxu1 %v2532_v19  ;;  %v2661_v19 = vunpack.c.l.s8.bf16 %v2053_v7 }
 0x5ae   :  { %4313 = vmatpush1.bf16.msra.mxu0 %v2534_v10  ;;  %4150 = vmatprep.subr.bf16.mxu1 %v2549_v22  ;;  %v2052_v10 = vld [vmem:[#allocation10 + $0x340] sm:$0xff]  ;;  %v2663_v22 = vunpack.c.l.s8.bf16 %v2055_v11 }
 0x5af   :  { %4314 = vmatprep.subr.bf16.mxu0 %v2551_v24  ;;  %v2054_v24 = vld [vmem:[#allocation10 + $0x350] sm:$0xff]  ;;  %v2660_v26 = vunpack.c.l.s8.bf16 %v2052_v10 }
 0x5b0   :  { %v2662_v28 = vunpack.c.l.s8.bf16 %v2054_v24  ;;  %v2678_v52 = vunpack.c.h.s8.bf16 %v2054_v24 }
 0x5b1   :  { %4151 = vmatpush1.bf16.msra.mxu1 %v2548_v29  ;;  %v2677_v29 = vunpack.c.h.s8.bf16 %v2053_v7 }
 0x5b2   :  { %4315 = vmatpush1.bf16.msra.mxu0 %v2550_v31  ;;  %4152 = vmatprep.subr.bf16.mxu1 %v2565_v32  ;;  %v2679_v31 = vunpack.c.h.s8.bf16 %v2055_v11  ;;  %v2069_v32 = vld [vmem:[#allocation10 + $0x3c8] sm:$0xff] }
 0x5b3   :  { %4316 = vmatprep.subr.bf16.mxu0 %v2567_v33  ;;  %v2676_v33 = vunpack.c.h.s8.bf16 %v2052_v10  ;;  %v2119_v10 = vld [vmem:[#allocation10 + $0x558] sm:$0xff] }
 0x5b5   :  { %4153 = vmatpush1.bf16.msra.mxu1 %v2564_v42  ;;  %v2693_v42 = vunpack.c.l.s8.bf16 %v2069_v32 }
 0x5b6   :  { %4317 = vmatpush1.bf16.msra.mxu0 %v2566_v20  ;;  %4154 = vmatprep.subr.bf16.mxu1 %v2581_v23  ;;  %v2068_v20 = vld [vmem:[#allocation10 + $0x3c0] sm:$0xff]  ;;  %v2695_v23 = vunpack.c.l.s8.bf16 %v2071_v40 }
 0x5b7   :  { %4318 = vmatprep.subr.bf16.mxu0 %v2583_v44  ;;  %v2070_v44 = vld [vmem:[#allocation10 + $0x3d0] sm:$0xff]  ;;  %v2692_v35 = vunpack.c.l.s8.bf16 %v2068_v20 }
 0x5b8   :  { %v2694_v39 = vunpack.c.l.s8.bf16 %v2070_v44  ;;  %v2710_v41 = vunpack.c.h.s8.bf16 %v2070_v44 }
 0x5b9   :  { %4155 = vmatpush1.bf16.msra.mxu1 %v2580_v30  ;;  %v2709_v30 = vunpack.c.h.s8.bf16 %v2069_v32 }
 0x5ba   :  { %4319 = vmatpush1.bf16.msra.mxu0 %v2582_v46  ;;  %4156 = vmatprep.subr.bf16.mxu1 %v2597_v47  ;;  %v2711_v46 = vunpack.c.h.s8.bf16 %v2071_v40  ;;  %v2085_v47 = vld [vmem:[#allocation10 + $0x448] sm:$0xff] }
 0x5bb   :  { %4320 = vmatprep.subr.bf16.mxu0 %v2599_v50  ;;  %v2708_v50 = vunpack.c.h.s8.bf16 %v2068_v20  ;;  %v2135_v20 = vld [vmem:[#allocation10 + $0x5d8] sm:$0xff] }
 0x5bd   :  { %4157 = vmatpush1.bf16.msra.mxu1 %v2596_v21  ;;  %v2725_v21 = vunpack.c.l.s8.bf16 %v2085_v47 }
 0x5be   :  { %4321 = vmatpush1.bf16.msra.mxu0 %v2598_v51  ;;  %4158 = vmatprep.subr.bf16.mxu1 %v2613_v38  ;;  %v2084_v51 = vld [vmem:[#allocation10 + $0x440] sm:$0xff]  ;;  %v2727_v38 = vunpack.c.l.s8.bf16 %v2087_v61 }
 0x5bf   :  { %4322 = vmatprep.subr.bf16.mxu0 %v2615_v43  ;;  %v2086_v43 = vld [vmem:[#allocation10 + $0x450] sm:$0xff]  ;;  %v2724_v57 = vunpack.c.l.s8.bf16 %v2084_v51 }
 0x5c0   :  { %v2726_v8 = vunpack.c.l.s8.bf16 %v2086_v43  ;;  %v2742_v45 = vunpack.c.h.s8.bf16 %v2086_v43 }
 0x5c1   :  { %4159 = vmatpush1.bf16.msra.mxu1 %v2612_v59  ;;  %v2741_v59 = vunpack.c.h.s8.bf16 %v2085_v47 }
 0x5c2   :  { %4323 = vmatpush1.bf16.msra.mxu0 %v2614_v62  ;;  %4160 = vmatprep.subr.bf16.mxu1 %v2629_v53  ;;  %v2101_v62 = vld [vmem:[#allocation10 + $0x4c8] sm:$0xff]  ;;  %v2743_v53 = vunpack.c.h.s8.bf16 %v2087_v61 }
 0x5c3   :  { %4324 = vmatprep.subr.bf16.mxu0 %v2631_v63  ;;  %v2740_v63 = vunpack.c.h.s8.bf16 %v2084_v51  ;;  %v2151_v51 = vld [vmem:[#allocation10 + $0x658] sm:$0xff] }
 0x5c5   :  { %4161 = vmatpush1.bf16.msra.mxu1 %v2628_v48  ;;  %v2757_v48 = vunpack.c.l.s8.bf16 %v2101_v62 }
 0x5c6   :  { %4325 = vmatpush1.bf16.msra.mxu0 %v2630_v55  ;;  %4162 = vmatprep.subr.bf16.mxu1 %v2645_v3  ;;  %v2100_v55 = vld [vmem:[#allocation10 + $0x4c0] sm:$0xff]  ;;  %v2759_v3 = vunpack.c.l.s8.bf16 %v2103_v15 }
 0x5c7   :  { %4326 = vmatprep.subr.bf16.mxu0 %v2647_v4  ;;  %v2102_v4 = vld [vmem:[#allocation10 + $0x4d0] sm:$0xff]  ;;  %v2756_v7 = vunpack.c.l.s8.bf16 %v2100_v55 }
 0x5c8   :  { %v2758_v11 = vunpack.c.l.s8.bf16 %v2102_v4  ;;  %v2774_v24 = vunpack.c.h.s8.bf16 %v2102_v4 }
 0x5c9   :  { %4163 = vmatpush1.bf16.msra.mxu1 %v2644_v17  ;;  %v2773_v17 = vunpack.c.h.s8.bf16 %v2101_v62  ;;  %v2150_v62 = vld [vmem:[#allocation10 + $0x650] sm:$0xff] }
 0x5ca   :  { %4327 = vmatpush1.bf16.msra.mxu0 %v2646_v14  ;;  %4164 = vmatprep.subr.bf16.mxu1 %v2661_v19  ;;  %v2775_v14 = vunpack.c.h.s8.bf16 %v2103_v15  ;;  %v2117_v19 = vld [vmem:[#allocation10 + $0x548] sm:$0xff]  ;;  %v2854_v15 = vunpack.c.l.s8.bf16 %v2150_v62  ;;  %v2870_v4 = vunpack.c.h.s8.bf16 %v2150_v62 }
 0x5cb   :  { %4328 = vmatprep.subr.bf16.mxu0 %v2663_v22  ;;  %v2772_v22 = vunpack.c.h.s8.bf16 %v2100_v55  ;;  %v2167_v55 = vld [vmem:[#allocation10 + $0x6d8] sm:$0xff] }
 0x5cd   :  { %4165 = vmatpush1.bf16.msra.mxu1 %v2660_v26  ;;  %v2789_v26 = vunpack.c.l.s8.bf16 %v2117_v19 }
 0x5ce   :  { %4329 = vmatpush1.bf16.msra.mxu0 %v2662_v28  ;;  %4166 = vmatprep.subr.bf16.mxu1 %v2677_v29  ;;  %v2116_v28 = vld [vmem:[#allocation10 + $0x540] sm:$0xff]  ;;  %v2791_v29 = vunpack.c.l.s8.bf16 %v2119_v10 }
 0x5cf   :  { %4330 = vmatprep.subr.bf16.mxu0 %v2679_v31  ;;  %v2118_v31 = vld [vmem:[#allocation10 + $0x550] sm:$0xff]  ;;  %v2788_v32 = vunpack.c.l.s8.bf16 %v2116_v28 }
 0x5d0   :  { %v2790_v40 = vunpack.c.l.s8.bf16 %v2118_v31  ;;  %v2806_v44 = vunpack.c.h.s8.bf16 %v2118_v31 }
 0x5d1   :  { %4167 = vmatpush1.bf16.msra.mxu1 %v2676_v33  ;;  %v2805_v33 = vunpack.c.h.s8.bf16 %v2117_v19 }
 0x5d2   :  { %4331 = vmatpush1.bf16.msra.mxu0 %v2678_v52  ;;  %4168 = vmatprep.subr.bf16.mxu1 %v2693_v42  ;;  %v2807_v52 = vunpack.c.h.s8.bf16 %v2119_v10  ;;  %v2133_v42 = vld [vmem:[#allocation10 + $0x5c8] sm:$0xff] }
 0x5d3   :  { %4332 = vmatprep.subr.bf16.mxu0 %v2695_v23  ;;  %v2804_v23 = vunpack.c.h.s8.bf16 %v2116_v28  ;;  %v2183_v28 = vld [vmem:[#allocation10 + $0x758] sm:$0xff] }
 0x5d5   :  { %4169 = vmatpush1.bf16.msra.mxu1 %v2692_v35  ;;  %v2821_v35 = vunpack.c.l.s8.bf16 %v2133_v42 }
 0x5d6   :  { %4333 = vmatpush1.bf16.msra.mxu0 %v2694_v39  ;;  %4170 = vmatprep.subr.bf16.mxu1 %v2709_v30  ;;  %v2132_v39 = vld [vmem:[#allocation10 + $0x5c0] sm:$0xff]  ;;  %v2823_v30 = vunpack.c.l.s8.bf16 %v2135_v20 }
 0x5d7   :  { %4334 = vmatprep.subr.bf16.mxu0 %v2711_v46  ;;  %v2134_v46 = vld [vmem:[#allocation10 + $0x5d0] sm:$0xff]  ;;  %v2820_v47 = vunpack.c.l.s8.bf16 %v2132_v39 }
 0x5d8   :  { %v2822_v61 = vunpack.c.l.s8.bf16 %v2134_v46  ;;  %v2838_v43 = vunpack.c.h.s8.bf16 %v2134_v46 }
 0x5d9   :  { %4171 = vmatpush1.bf16.msra.mxu1 %v2708_v50  ;;  %v2837_v50 = vunpack.c.h.s8.bf16 %v2133_v42 }
 0x5da   :  { %4335 = vmatpush1.bf16.msra.mxu0 %v2710_v41  ;;  %4181 = vmatprep.subr.bf16.mxu1 %v2725_v21  ;;  %v2839_v41 = vunpack.c.h.s8.bf16 %v2135_v20  ;;  %v2149_v21 = vld [vmem:[#allocation10 + $0x648] sm:$0xff] }
 0x5db   :  { %4345 = vmatprep.subr.bf16.mxu0 %v2727_v38  ;;  %v2836_v38 = vunpack.c.h.s8.bf16 %v2132_v39  ;;  %v2199_v39 = vld [vmem:[#allocation10 + $0x7d8] sm:$0xff] }
 0x5dc   :  { %4173 = vmatmul.mubr.bf16.vlgmr.msra.gmra.mrb[20].mxu1 %v7867_v58 }
 0x5dd   :  { %4337 = vmatmul.mubr.bf16.vlgmr.msra.gmra.mrb[24].mxu0 %v7867_v58  ;;  %4182 = vmatpush1.bf16.msra.mxu1 %v2724_v57  ;;  %v2853_v57 = vunpack.c.l.s8.bf16 %v2149_v21 }
 0x5de   :  { %4213 = vmatprep.mubr.bf16.mxu1 %v7873_v0  ;;  %4346 = vmatpush1.bf16.msra.mxu0 %v2726_v8  ;;  %v2148_v8 = vld [vmem:[#allocation10 + $0x640] sm:$0xff] }
 0x5df   :  { %4377 = vmatprep.mubr.bf16.mxu0 %v7873_v0  ;;  %4183 = vmatprep.subr.bf16.mxu1 %v2741_v59  ;;  %v2855_v59 = vunpack.c.l.s8.bf16 %v2151_v51 }
 0x5e0   :  { %4347 = vmatprep.subr.bf16.mxu0 %v2743_v53  ;;  %v2852_v53 = vunpack.c.l.s8.bf16 %v2148_v8 }
 0x5e1   :  { %4184 = vmatpush1.bf16.msra.mxu1 %v2740_v63  ;;  %v2869_v63 = vunpack.c.h.s8.bf16 %v2149_v21 }
 0x5e2   :  { %4348 = vmatpush1.bf16.msra.mxu0 %v2742_v45  ;;  %4185 = vmatprep.subr.bf16.mxu1 %v2757_v48  ;;  %v2871_v45 = vunpack.c.h.s8.bf16 %v2151_v51  ;;  %v2165_v48 = vld [vmem:[#allocation10 + $0x6c8] sm:$0xff] }
 0x5e3   :  { %4349 = vmatprep.subr.bf16.mxu0 %v2759_v3  ;;  %v2868_v3 = vunpack.c.h.s8.bf16 %v2148_v8  ;;  %v2215_v8 = vld [vmem:[#allocation10 + $0x858] sm:$0xff] }
 0x5e5   :  { %4186 = vmatpush1.bf16.msra.mxu1 %v2756_v7  ;;  %v2885_v7 = vunpack.c.l.s8.bf16 %v2165_v48 }
 0x5e6   :  { %4350 = vmatpush1.bf16.msra.mxu0 %v2758_v11  ;;  %4187 = vmatprep.subr.bf16.mxu1 %v2773_v17  ;;  %v2164_v11 = vld [vmem:[#allocation10 + $0x6c0] sm:$0xff]  ;;  %v2887_v17 = vunpack.c.l.s8.bf16 %v2167_v55 }
 0x5e7   :  { %4351 = vmatprep.subr.bf16.mxu0 %v2775_v14  ;;  %v2166_v14 = vld [vmem:[#allocation10 + $0x6d0] sm:$0xff]  ;;  %v2884_v19 = vunpack.c.l.s8.bf16 %v2164_v11 }
 0x5e8   :  { %v2886_v10 = vunpack.c.l.s8.bf16 %v2166_v14  ;;  %v2902_v31 = vunpack.c.h.s8.bf16 %v2166_v14 }
 0x5e9   :  { %4188 = vmatpush1.bf16.msra.mxu1 %v2772_v22  ;;  %v2901_v22 = vunpack.c.h.s8.bf16 %v2165_v48 }
 0x5ea   :  { %4352 = vmatpush1.bf16.msra.mxu0 %v2774_v24  ;;  %4189 = vmatprep.subr.bf16.mxu1 %v2789_v26  ;;  %v2903_v24 = vunpack.c.h.s8.bf16 %v2167_v55  ;;  %v2181_v26 = vld [vmem:[#allocation10 + $0x748] sm:$0xff] }
 0x5eb   :  { %4353 = vmatprep.subr.bf16.mxu0 %v2791_v29  ;;  %v2900_v29 = vunpack.c.h.s8.bf16 %v2164_v11  ;;  %v2231_v11 = vld [vmem:[#allocation10 + $0x8d8] sm:$0xff] }
 0x5ed   :  { %4190 = vmatpush1.bf16.msra.mxu1 %v2788_v32  ;;  %v2917_v32 = vunpack.c.l.s8.bf16 %v2181_v26 }
 0x5ee   :  { %4354 = vmatpush1.bf16.msra.mxu0 %v2790_v40  ;;  %4191 = vmatprep.subr.bf16.mxu1 %v2805_v33  ;;  %v2180_v40 = vld [vmem:[#allocation10 + $0x740] sm:$0xff]  ;;  %v2919_v33 = vunpack.c.l.s8.bf16 %v2183_v28 }
 0x5ef   :  { %4355 = vmatprep.subr.bf16.mxu0 %v2807_v52  ;;  %v2182_v52 = vld [vmem:[#allocation10 + $0x750] sm:$0xff]  ;;  %v2916_v42 = vunpack.c.l.s8.bf16 %v2180_v40 }
 0x5f0   :  { %v2918_v20 = vunpack.c.l.s8.bf16 %v2182_v52  ;;  %v2934_v46 = vunpack.c.h.s8.bf16 %v2182_v52 }
 0x5f1   :  { %4192 = vmatpush1.bf16.msra.mxu1 %v2804_v23  ;;  %v2933_v23 = vunpack.c.h.s8.bf16 %v2181_v26 }
 0x5f2   :  { %4356 = vmatpush1.bf16.msra.mxu0 %v2806_v44  ;;  %4193 = vmatprep.subr.bf16.mxu1 %v2821_v35  ;;  %v2935_v44 = vunpack.c.h.s8.bf16 %v2183_v28  ;;  %v2197_v35 = vld [vmem:[#allocation10 + $0x7c8] sm:$0xff] }
 0x5f3   :  { %4357 = vmatprep.subr.bf16.mxu0 %v2823_v30  ;;  %v2932_v30 = vunpack.c.h.s8.bf16 %v2180_v40  ;;  %v2247_v40 = vld [vmem:[#allocation10 + $0x958] sm:$0xff] }
 0x5f5   :  { %4194 = vmatpush1.bf16.msra.mxu1 %v2820_v47  ;;  %v2949_v47 = vunpack.c.l.s8.bf16 %v2197_v35 }
 0x5f6   :  { %4358 = vmatpush1.bf16.msra.mxu0 %v2822_v61  ;;  %4195 = vmatprep.subr.bf16.mxu1 %v2837_v50  ;;  %v2196_v61 = vld [vmem:[#allocation10 + $0x7c0] sm:$0xff]  ;;  %v2951_v50 = vunpack.c.l.s8.bf16 %v2199_v39 }
 0x5f7   :  { %4359 = vmatprep.subr.bf16.mxu0 %v2839_v41  ;;  %v2198_v41 = vld [vmem:[#allocation10 + $0x7d0] sm:$0xff]  ;;  %v2948_v21 = vunpack.c.l.s8.bf16 %v2196_v61 }
 0x5f8   :  { %v2950_v51 = vunpack.c.l.s8.bf16 %v2198_v41  ;;  %v2966_v62 = vunpack.c.h.s8.bf16 %v2198_v41 }
 0x5f9   :  { %4196 = vmatpush1.bf16.msra.mxu1 %v2836_v38  ;;  %v2965_v38 = vunpack.c.h.s8.bf16 %v2197_v35 }
 0x5fa   :  { %4360 = vmatpush1.bf16.msra.mxu0 %v2838_v43  ;;  %4197 = vmatprep.subr.bf16.mxu1 %v2853_v57  ;;  %v2967_v43 = vunpack.c.h.s8.bf16 %v2199_v39  ;;  %v2213_v57 = vld [vmem:[#allocation10 + $0x848] sm:$0xff] }
 0x5fb   :  { %4361 = vmatprep.subr.bf16.mxu0 %v2855_v59  ;;  %v2964_v59 = vunpack.c.h.s8.bf16 %v2196_v61  ;;  %v2263_v61 = vld [vmem:[#allocation10 + $0x9d8] sm:$0xff] }
 0x5fd   :  { %4198 = vmatpush1.bf16.msra.mxu1 %v2852_v53  ;;  %v2981_v53 = vunpack.c.l.s8.bf16 %v2213_v57 }
 0x5fe   :  { %4362 = vmatpush1.bf16.msra.mxu0 %v2854_v15  ;;  %4199 = vmatprep.subr.bf16.mxu1 %v2869_v63  ;;  %v2212_v15 = vld [vmem:[#allocation10 + $0x840] sm:$0xff]  ;;  %v2983_v63 = vunpack.c.l.s8.bf16 %v2215_v8 }
 0x5ff   :  { %4363 = vmatprep.subr.bf16.mxu0 %v2871_v45  ;;  %v2214_v45 = vld [vmem:[#allocation10 + $0x850] sm:$0xff]  ;;  %v2980_v48 = vunpack.c.l.s8.bf16 %v2212_v15 }
 0x600   :  { %v2982_v55 = vunpack.c.l.s8.bf16 %v2214_v45  ;;  %v2998_v14 = vunpack.c.h.s8.bf16 %v2214_v45 }
 0x601   :  { %4200 = vmatpush1.bf16.msra.mxu1 %v2868_v3  ;;  %v2997_v3 = vunpack.c.h.s8.bf16 %v2213_v57 }
 0x602   :  { %4364 = vmatpush1.bf16.msra.mxu0 %v2870_v4  ;;  %4201 = vmatprep.subr.bf16.mxu1 %v2885_v7  ;;  %v2229_v4 = vld [vmem:[#allocation10 + $0x8c8] sm:$0xff]  ;;  %v2999_v7 = vunpack.c.h.s8.bf16 %v2215_v8 }
 0x603   :  { %4365 = vmatprep.subr.bf16.mxu0 %v2887_v17  ;;  %v2996_v17 = vunpack.c.h.s8.bf16 %v2212_v15  ;;  %v2279_v15 = vld [vmem:[#allocation10 + $0xa58] sm:$0xff] }
 0x605   :  { %4202 = vmatpush1.bf16.msra.mxu1 %v2884_v19  ;;  %v3013_v19 = vunpack.c.l.s8.bf16 %v2229_v4 }
 0x606   :  { %4366 = vmatpush1.bf16.msra.mxu0 %v2886_v10  ;;  %4203 = vmatprep.subr.bf16.mxu1 %v2901_v22  ;;  %v2228_v10 = vld [vmem:[#allocation10 + $0x8c0] sm:$0xff]  ;;  %v3015_v22 = vunpack.c.l.s8.bf16 %v2231_v11 }
 0x607   :  { %4367 = vmatprep.subr.bf16.mxu0 %v2903_v24  ;;  %v2230_v24 = vld [vmem:[#allocation10 + $0x8d0] sm:$0xff]  ;;  %v3012_v26 = vunpack.c.l.s8.bf16 %v2228_v10 }
 0x608   :  { %v3014_v28 = vunpack.c.l.s8.bf16 %v2230_v24  ;;  %v3030_v52 = vunpack.c.h.s8.bf16 %v2230_v24 }
 0x609   :  { %4204 = vmatpush1.bf16.msra.mxu1 %v2900_v29  ;;  %v3029_v29 = vunpack.c.h.s8.bf16 %v2229_v4  ;;  %v2278_v4 = vld [vmem:[#allocation10 + $0xa50] sm:$0xff] }
 0x60a   :  { %4368 = vmatpush1.bf16.msra.mxu0 %v2902_v31  ;;  %4205 = vmatprep.subr.bf16.mxu1 %v2917_v32  ;;  %v3031_v31 = vunpack.c.h.s8.bf16 %v2231_v11  ;;  %v2245_v32 = vld [vmem:[#allocation10 + $0x948] sm:$0xff]  ;;  %v3110_v11 = vunpack.c.l.s8.bf16 %v2278_v4  ;;  %v3126_v24 = vunpack.c.h.s8.bf16 %v2278_v4 }
 0x60b   :  { %4369 = vmatprep.subr.bf16.mxu0 %v2919_v33  ;;  %v3028_v33 = vunpack.c.h.s8.bf16 %v2228_v10  ;;  %v2295_v10 = vld [vmem:[#allocation10 + $0xad8] sm:$0xff] }
 0x60d   :  { %4206 = vmatpush1.bf16.msra.mxu1 %v2916_v42  ;;  %v3045_v42 = vunpack.c.l.s8.bf16 %v2245_v32 }
 0x60e   :  { %4370 = vmatpush1.bf16.msra.mxu0 %v2918_v20  ;;  %4207 = vmatprep.subr.bf16.mxu1 %v2933_v23  ;;  %v2244_v20 = vld [vmem:[#allocation10 + $0x940] sm:$0xff]  ;;  %v3047_v23 = vunpack.c.l.s8.bf16 %v2247_v40 }
 0x60f   :  { %4371 = vmatprep.subr.bf16.mxu0 %v2935_v44  ;;  %v2246_v44 = vld [vmem:[#allocation10 + $0x950] sm:$0xff]  ;;  %v3044_v35 = vunpack.c.l.s8.bf16 %v2244_v20 }
 0x610   :  { %v3046_v39 = vunpack.c.l.s8.bf16 %v2246_v44  ;;  %v3062_v41 = vunpack.c.h.s8.bf16 %v2246_v44 }
 0x611   :  { %4208 = vmatpush1.bf16.msra.mxu1 %v2932_v30  ;;  %v3061_v30 = vunpack.c.h.s8.bf16 %v2245_v32 }
 0x612   :  { %4372 = vmatpush1.bf16.msra.mxu0 %v2934_v46  ;;  %4209 = vmatprep.subr.bf16.mxu1 %v2949_v47  ;;  %v3063_v46 = vunpack.c.h.s8.bf16 %v2247_v40  ;;  %v2261_v47 = vld [vmem:[#allocation10 + $0x9c8] sm:$0xff] }
 0x613   :  { %4373 = vmatprep.subr.bf16.mxu0 %v2951_v50  ;;  %v3060_v50 = vunpack.c.h.s8.bf16 %v2244_v20  ;;  %v2311_v20 = vld [vmem:[#allocation10 + $0xb58] sm:$0xff] }
 0x615   :  { %4210 = vmatpush1.bf16.msra.mxu1 %v2948_v21  ;;  %v3077_v21 = vunpack.c.l.s8.bf16 %v2261_v47 }
 0x616   :  { %4374 = vmatpush1.bf16.msra.mxu0 %v2950_v51  ;;  %4211 = vmatprep.subr.bf16.mxu1 %v2965_v38  ;;  %v2260_v51 = vld [vmem:[#allocation10 + $0x9c0] sm:$0xff]  ;;  %v3079_v38 = vunpack.c.l.s8.bf16 %v2263_v61 }
 0x617   :  { %4375 = vmatprep.subr.bf16.mxu0 %v2967_v43  ;;  %v2262_v43 = vld [vmem:[#allocation10 + $0x9d0] sm:$0xff]  ;;  %v3076_v57 = vunpack.c.l.s8.bf16 %v2260_v51 }
 0x618   :  { %v3078_v8 = vunpack.c.l.s8.bf16 %v2262_v43  ;;  %v3094_v45 = vunpack.c.h.s8.bf16 %v2262_v43 }
 0x619   :  { %4212 = vmatpush1.bf16.msra.mxu1 %v2964_v59  ;;  %v3093_v59 = vunpack.c.h.s8.bf16 %v2261_v47 }
 0x61a   :  { %4376 = vmatpush1.bf16.msra.mxu0 %v2966_v62  ;;  %4222 = vmatprep.subr.bf16.mxu1 %v2981_v53  ;;  %v3095_v62 = vunpack.c.h.s8.bf16 %v2263_v61  ;;  %v2277_v53 = vld [vmem:[#allocation10 + $0xa48] sm:$0xff] }
 0x61b   :  { %4386 = vmatprep.subr.bf16.mxu0 %v2983_v63  ;;  %v3092_v63 = vunpack.c.h.s8.bf16 %v2260_v51  ;;  %v2327_v51 = vld [vmem:[#allocation10 + $0xbd8] sm:$0xff] }
 0x61c   :  { %4214 = vmatmul.mubr.bf16.vlgmr.msra.gmra.mrb[20].mxu1 %v7893_v49 }
 0x61d   :  { %4378 = vmatmul.mubr.bf16.vlgmr.msra.gmra.mrb[24].mxu0 %v7893_v49  ;;  %4223 = vmatpush1.bf16.msra.mxu1 %v2980_v48  ;;  %v3109_v48 = vunpack.c.l.s8.bf16 %v2277_v53 }
 0x61e   :  { %4254 = vmatprep.mubr.bf16.mxu1 %v7963_v2  ;;  %4387 = vmatpush1.bf16.msra.mxu0 %v2982_v55  ;;  %v2276_v55 = vld [vmem:[#allocation10 + $0xa40] sm:$0xff] }
 0x61f   :  { %4418 = vmatprep.mubr.bf16.mxu0 %v7963_v2  ;;  %4224 = vmatprep.subr.bf16.mxu1 %v2997_v3  ;;  %v3111_v3 = vunpack.c.l.s8.bf16 %v2279_v15 }
 0x620   :  { %4388 = vmatprep.subr.bf16.mxu0 %v2999_v7  ;;  %v3108_v7 = vunpack.c.l.s8.bf16 %v2276_v55 }
 0x621   :  { %4225 = vmatpush1.bf16.msra.mxu1 %v2996_v17  ;;  %v3125_v17 = vunpack.c.h.s8.bf16 %v2277_v53 }
 0x622   :  { %4389 = vmatpush1.bf16.msra.mxu0 %v2998_v14  ;;  %4226 = vmatprep.subr.bf16.mxu1 %v3013_v19  ;;  %v3127_v14 = vunpack.c.h.s8.bf16 %v2279_v15  ;;  %v2293_v19 = vld [vmem:[#allocation10 + $0xac8] sm:$0xff] }
 0x623   :  { %4390 = vmatprep.subr.bf16.mxu0 %v3015_v22  ;;  %v3124_v22 = vunpack.c.h.s8.bf16 %v2276_v55  ;;  %v2343_v55 = vld [vmem:[#allocation10 + $0xc58] sm:$0xff] }
 0x625   :  { %4227 = vmatpush1.bf16.msra.mxu1 %v3012_v26  ;;  %v3141_v26 = vunpack.c.l.s8.bf16 %v2293_v19 }
 0x626   :  { %4391 = vmatpush1.bf16.msra.mxu0 %v3014_v28  ;;  %4228 = vmatprep.subr.bf16.mxu1 %v3029_v29  ;;  %v2292_v28 = vld [vmem:[#allocation10 + $0xac0] sm:$0xff]  ;;  %v3143_v29 = vunpack.c.l.s8.bf16 %v2295_v10 }
 0x627   :  { %4392 = vmatprep.subr.bf16.mxu0 %v3031_v31  ;;  %v2294_v31 = vld [vmem:[#allocation10 + $0xad0] sm:$0xff]  ;;  %v3140_v32 = vunpack.c.l.s8.bf16 %v2292_v28 }
 0x628   :  { %v3142_v40 = vunpack.c.l.s8.bf16 %v2294_v31  ;;  %v3158_v44 = vunpack.c.h.s8.bf16 %v2294_v31 }
 0x629   :  { %4229 = vmatpush1.bf16.msra.mxu1 %v3028_v33  ;;  %v3157_v33 = vunpack.c.h.s8.bf16 %v2293_v19 }
 0x62a   :  { %4393 = vmatpush1.bf16.msra.mxu0 %v3030_v52  ;;  %4230 = vmatprep.subr.bf16.mxu1 %v3045_v42  ;;  %v3159_v52 = vunpack.c.h.s8.bf16 %v2295_v10  ;;  %v2309_v42 = vld [vmem:[#allocation10 + $0xb48] sm:$0xff] }
 0x62b   :  { %4394 = vmatprep.subr.bf16.mxu0 %v3047_v23  ;;  %v3156_v23 = vunpack.c.h.s8.bf16 %v2292_v28  ;;  %v2359_v28 = vld [vmem:[#allocation10 + $0xcd8] sm:$0xff] }
 0x62d   :  { %4231 = vmatpush1.bf16.msra.mxu1 %v3044_v35  ;;  %v3173_v35 = vunpack.c.l.s8.bf16 %v2309_v42 }
 0x62e   :  { %4395 = vmatpush1.bf16.msra.mxu0 %v3046_v39  ;;  %4232 = vmatprep.subr.bf16.mxu1 %v3061_v30  ;;  %v2308_v39 = vld [vmem:[#allocation10 + $0xb40] sm:$0xff]  ;;  %v3175_v30 = vunpack.c.l.s8.bf16 %v2311_v20 }
 0x62f   :  { %4396 = vmatprep.subr.bf16.mxu0 %v3063_v46  ;;  %v2310_v46 = vld [vmem:[#allocation10 + $0xb50] sm:$0xff]  ;;  %v3172_v47 = vunpack.c.l.s8.bf16 %v2308_v39 }
 0x630   :  { %v3174_v61 = vunpack.c.l.s8.bf16 %v2310_v46  ;;  %v3190_v43 = vunpack.c.h.s8.bf16 %v2310_v46 }
 0x631   :  { %4233 = vmatpush1.bf16.msra.mxu1 %v3060_v50  ;;  %v3189_v50 = vunpack.c.h.s8.bf16 %v2309_v42 }
 0x632   :  { %4397 = vmatpush1.bf16.msra.mxu0 %v3062_v41  ;;  %4234 = vmatprep.subr.bf16.mxu1 %v3077_v21  ;;  %v3191_v41 = vunpack.c.h.s8.bf16 %v2311_v20  ;;  %v2325_v21 = vld [vmem:[#allocation10 + $0xbc8] sm:$0xff] }
 0x633   :  { %4398 = vmatprep.subr.bf16.mxu0 %v3079_v38  ;;  %v3188_v38 = vunpack.c.h.s8.bf16 %v2308_v39  ;;  %v2375_v39 = vld [vmem:[#allocation10 + $0xd58] sm:$0xff] }
 0x635   :  { %4235 = vmatpush1.bf16.msra.mxu1 %v3076_v57  ;;  %v3205_v57 = vunpack.c.l.s8.bf16 %v2325_v21 }
 0x636   :  { %4399 = vmatpush1.bf16.msra.mxu0 %v3078_v8  ;;  %4236 = vmatprep.subr.bf16.mxu1 %v3093_v59  ;;  %v2324_v8 = vld [vmem:[#allocation10 + $0xbc0] sm:$0xff]  ;;  %v3207_v59 = vunpack.c.l.s8.bf16 %v2327_v51 }
 0x637   :  { %4400 = vmatprep.subr.bf16.mxu0 %v3095_v62  ;;  %v2326_v62 = vld [vmem:[#allocation10 + $0xbd0] sm:$0xff]  ;;  %v3204_v53 = vunpack.c.l.s8.bf16 %v2324_v8 }
 0x638   :  { %v3206_v15 = vunpack.c.l.s8.bf16 %v2326_v62  ;;  %v3222_v4 = vunpack.c.h.s8.bf16 %v2326_v62 }
 0x639   :  { %4237 = vmatpush1.bf16.msra.mxu1 %v3092_v63  ;;  %v3221_v63 = vunpack.c.h.s8.bf16 %v2325_v21 }
 0x63a   :  { %4401 = vmatpush1.bf16.msra.mxu0 %v3094_v45  ;;  %4238 = vmatprep.subr.bf16.mxu1 %v3109_v48  ;;  %v3223_v45 = vunpack.c.h.s8.bf16 %v2327_v51  ;;  %v2341_v48 = vld [vmem:[#allocation10 + $0xc48] sm:$0xff] }
 0x63b   :  { %4402 = vmatprep.subr.bf16.mxu0 %v3111_v3  ;;  %v3220_v3 = vunpack.c.h.s8.bf16 %v2324_v8  ;;  %v2391_v8 = vld [vmem:[#allocation10 + $0xdd8] sm:$0xff] }
 0x63d   :  { %4239 = vmatpush1.bf16.msra.mxu1 %v3108_v7  ;;  %v3237_v7 = vunpack.c.l.s8.bf16 %v2341_v48 }
 0x63e   :  { %4403 = vmatpush1.bf16.msra.mxu0 %v3110_v11  ;;  %4240 = vmatprep.subr.bf16.mxu1 %v3125_v17  ;;  %v2340_v11 = vld [vmem:[#allocation10 + $0xc40] sm:$0xff]  ;;  %v3239_v17 = vunpack.c.l.s8.bf16 %v2343_v55 }
 0x63f   :  { %4404 = vmatprep.subr.bf16.mxu0 %v3127_v14  ;;  %v2342_v14 = vld [vmem:[#allocation10 + $0xc50] sm:$0xff]  ;;  %v3236_v19 = vunpack.c.l.s8.bf16 %v2340_v11 }
 0x640   :  { %v3238_v10 = vunpack.c.l.s8.bf16 %v2342_v14  ;;  %v3254_v31 = vunpack.c.h.s8.bf16 %v2342_v14 }
 0x641   :  { %4241 = vmatpush1.bf16.msra.mxu1 %v3124_v22  ;;  %v3253_v22 = vunpack.c.h.s8.bf16 %v2341_v48  ;;  %v2390_v48 = vld [vmem:[#allocation10 + $0xdd0] sm:$0xff] }
 0x642   :  { %4405 = vmatpush1.bf16.msra.mxu0 %v3126_v24  ;;  %4242 = vmatprep.subr.bf16.mxu1 %v3141_v26  ;;  %v2357_v24 = vld [vmem:[#allocation10 + $0xcc8] sm:$0xff]  ;;  %v3255_v26 = vunpack.c.h.s8.bf16 %v2343_v55 }
 0x643   :  { %4406 = vmatprep.subr.bf16.mxu0 %v3143_v29  ;;  %v3252_v29 = vunpack.c.h.s8.bf16 %v2340_v11 }
 0x645   :  { %4243 = vmatpush1.bf16.msra.mxu1 %v3140_v32  ;;  %v3269_v32 = vunpack.c.l.s8.bf16 %v2357_v24 }
 0x646   :  { %4407 = vmatpush1.bf16.msra.mxu0 %v3142_v40  ;;  %4244 = vmatprep.subr.bf16.mxu1 %v3157_v33  ;;  %v2356_v40 = vld [vmem:[#allocation10 + $0xcc0] sm:$0xff]  ;;  %v3271_v33 = vunpack.c.l.s8.bf16 %v2359_v28 }
 0x647   :  { %4408 = vmatprep.subr.bf16.mxu0 %v3159_v52  ;;  %v2358_v52 = vld [vmem:[#allocation10 + $0xcd0] sm:$0xff]  ;;  %v3268_v42 = vunpack.c.l.s8.bf16 %v2356_v40 }
 0x648   :  { %v3270_v20 = vunpack.c.l.s8.bf16 %v2358_v52  ;;  %v3286_v46 = vunpack.c.h.s8.bf16 %v2358_v52  ;;  %v2406_v52 = vld [vmem:[#allocation10 + $0xe50] sm:$0xff] }
 0x649   :  { %4245 = vmatpush1.bf16.msra.mxu1 %v3156_v23  ;;  %v3285_v23 = vunpack.c.h.s8.bf16 %v2357_v24  ;;  %v3351_v24 = vunpack.c.h.s8.bf16 %v2391_v8 }
 0x64a   :  { %4409 = vmatpush1.bf16.msra.mxu0 %v3158_v44  ;;  %4246 = vmatprep.subr.bf16.mxu1 %v3173_v35  ;;  %v3287_v44 = vunpack.c.h.s8.bf16 %v2359_v28  ;;  %v2373_v35 = vld [vmem:[#allocation10 + $0xd48] sm:$0xff]  ;;  %v2407_v28 = vld [vmem:[#allocation10 + $0xe58] sm:$0xff] }
 0x64b   :  { %4410 = vmatprep.subr.bf16.mxu0 %v3175_v30  ;;  %v3284_v30 = vunpack.c.h.s8.bf16 %v2356_v40  ;;  %v2404_v40 = vld [vmem:[#allocation10 + $0xe40] sm:$0xff] }
 0x64d   :  { %4247 = vmatpush1.bf16.msra.mxu1 %v3172_v47  ;;  %v3301_v47 = vunpack.c.l.s8.bf16 %v2373_v35 }
 0x64e   :  { %4411 = vmatpush1.bf16.msra.mxu0 %v3174_v61  ;;  %4248 = vmatprep.subr.bf16.mxu1 %v3189_v50  ;;  %v2372_v61 = vld [vmem:[#allocation10 + $0xd40] sm:$0xff]  ;;  %v3303_v50 = vunpack.c.l.s8.bf16 %v2375_v39 }
 0x64f   :  { %4412 = vmatprep.subr.bf16.mxu0 %v3191_v41  ;;  %v2374_v41 = vld [vmem:[#allocation10 + $0xd50] sm:$0xff]  ;;  %v3300_v21 = vunpack.c.l.s8.bf16 %v2372_v61 }
 0x650   :  { %v3302_v51 = vunpack.c.l.s8.bf16 %v2374_v41  ;;  %v3318_v62 = vunpack.c.h.s8.bf16 %v2374_v41  ;;  %v2422_v41 = vld [vmem:[#allocation10 + $0xed0] sm:$0xff] }
 0x651   :  { %4249 = vmatpush1.bf16.msra.mxu1 %v3188_v38  ;;  %v3317_v38 = vunpack.c.h.s8.bf16 %v2373_v35  ;;  %v2421_v35 = vld [vmem:[#allocation10 + $0xec8] sm:$0xff] }
 0x652   :  { %4413 = vmatpush1.bf16.msra.mxu0 %v3190_v43  ;;  %4250 = vmatprep.subr.bf16.mxu1 %v3205_v57  ;;  %v3319_v43 = vunpack.c.h.s8.bf16 %v2375_v39  ;;  %v2389_v57 = vld [vmem:[#allocation10 + $0xdc8] sm:$0xff]  ;;  %v2423_v39 = vld [vmem:[#allocation10 + $0xed8] sm:$0xff] }
 0x653   :  { %4414 = vmatprep.subr.bf16.mxu0 %v3207_v59  ;;  %v3316_v59 = vunpack.c.h.s8.bf16 %v2372_v61  ;;  %v2420_v61 = vld [vmem:[#allocation10 + $0xec0] sm:$0xff] }
 0x655   :  { %4251 = vmatpush1.bf16.msra.mxu1 %v3204_v53  ;;  %v3333_v53 = vunpack.c.l.s8.bf16 %v2389_v57 }
 0x656   :  { %4415 = vmatpush1.bf16.msra.mxu0 %v3206_v15  ;;  %4252 = vmatprep.subr.bf16.mxu1 %v3221_v63  ;;  %v2388_v15 = vld [vmem:[#allocation10 + $0xdc0] sm:$0xff] }
 0x657   :  { %4416 = vmatprep.subr.bf16.mxu0 %v3223_v45  ;;  %v3335_v45 = vunpack.c.l.s8.bf16 %v2391_v8  ;;  %v3332_v11 = vunpack.c.l.s8.bf16 %v2388_v15  ;;  %v2439_v8 = vld [vmem:[#allocation10 + $0xf58] sm:$0xff] }
 0x659   :  { %4253 = vmatpush1.bf16.msra.mxu1 %v3220_v3 }
 0x65a   :  { %4417 = vmatpush1.bf16.msra.mxu0 %v3222_v4  ;;  %4263 = vmatprep.subr.bf16.mxu1 %v3237_v7 }
 0x65b   :  { %4427 = vmatprep.subr.bf16.mxu0 %v3239_v17 }
 0x65c   :  { %4255 = vmatmul.mubr.bf16.vlgmr.msra.gmra.mrb[20].mxu1 %v7965_v6 }
 0x65d   :  { %4419 = vmatmul.mubr.bf16.vlgmr.msra.gmra.mrb[24].mxu0 %v7965_v6  ;;  %4264 = vmatpush1.bf16.msra.mxu1 %v3236_v19  ;;  %v3334_v19 = vunpack.c.l.s8.bf16 %v2390_v48 }
 0x65e   :  { %4295 = vmatprep.mubr.bf16.mxu1 %v7969_v16  ;;  %4428 = vmatpush1.bf16.msra.mxu0 %v3238_v10  ;;  %v3349_v10 = vunpack.c.h.s8.bf16 %v2389_v57  ;;  %v2437_v57 = vld [vmem:[#allocation10 + $0xf48] sm:$0xff] }
 0x65f   :  { %4459 = vmatprep.mubr.bf16.mxu0 %v7969_v16  ;;  %4265 = vmatprep.subr.bf16.mxu1 %v3253_v22 }
 0x660   :  { %4429 = vmatprep.subr.bf16.mxu0 %v3255_v26  ;;  %v2405_v26 = vld [vmem:[#allocation10 + $0xe48] sm:$0xff] }
 0x661   :  { %4266 = vmatpush1.bf16.msra.mxu1 %v3252_v29  ;;  %v3348_v29 = vunpack.c.h.s8.bf16 %v2388_v15  ;;  %v2436_v15 = vld [vmem:[#allocation10 + $0xf40] sm:$0xff] }
 0x662   :  { %4430 = vmatpush1.bf16.msra.mxu0 %v3254_v31  ;;  %4267 = vmatprep.subr.bf16.mxu1 %v3269_v32  ;;  %v3350_v31 = vunpack.c.h.s8.bf16 %v2390_v48  ;;  %v3365_v32 = vunpack.c.l.s8.bf16 %v2405_v26  ;;  %v2438_v48 = vld [vmem:[#allocation10 + $0xf50] sm:$0xff] }
 0x663   :  { %4431 = vmatprep.subr.bf16.mxu0 %v3271_v33  ;;  %v3367_v33 = vunpack.c.l.s8.bf16 %v2407_v28 }
 0x665   :  { %4268 = vmatpush1.bf16.msra.mxu1 %v3268_v42  ;;  %v3364_v42 = vunpack.c.l.s8.bf16 %v2404_v40 }
 0x666   :  { %4432 = vmatpush1.bf16.msra.mxu0 %v3270_v20  ;;  %4269 = vmatprep.subr.bf16.mxu1 %v3285_v23  ;;  %v3366_v20 = vunpack.c.l.s8.bf16 %v2406_v52  ;;  %v3381_v23 = vunpack.c.h.s8.bf16 %v2405_v26 }
 0x667   :  { %4433 = vmatprep.subr.bf16.mxu0 %v3287_v44  ;;  %v3383_v44 = vunpack.c.h.s8.bf16 %v2407_v28  ;;  %v2452_v28 = vld [vmem:[#allocation10 + $0xfc0] sm:$0xff] }
 0x669   :  { %4270 = vmatpush1.bf16.msra.mxu1 %v3284_v30  ;;  %v3380_v30 = vunpack.c.h.s8.bf16 %v2404_v40 }
 0x66a   :  { %4434 = vmatpush1.bf16.msra.mxu0 %v3286_v46  ;;  %4271 = vmatprep.subr.bf16.mxu1 %v3301_v47  ;;  %v3382_v46 = vunpack.c.h.s8.bf16 %v2406_v52  ;;  %v3397_v47 = vunpack.c.l.s8.bf16 %v2421_v35 }
 0x66b   :  { %4435 = vmatprep.subr.bf16.mxu0 %v3303_v50  ;;  %v3399_v50 = vunpack.c.l.s8.bf16 %v2423_v39 }
 0x66d   :  { %4272 = vmatpush1.bf16.msra.mxu1 %v3300_v21  ;;  %v3396_v21 = vunpack.c.l.s8.bf16 %v2420_v61 }
 0x66e   :  { %4436 = vmatpush1.bf16.msra.mxu0 %v3302_v51  ;;  %4273 = vmatprep.subr.bf16.mxu1 %v3317_v38  ;;  %v3398_v51 = vunpack.c.l.s8.bf16 %v2422_v41  ;;  %v3413_v38 = vunpack.c.h.s8.bf16 %v2421_v35 }
 0x66f   :  { %v8022_v63 = vpop.f32.mrb[16].mxu1  ;;  %4437 = vmatprep.subr.bf16.mxu0 %v3319_v43  ;;  %v3415_v43 = vunpack.c.h.s8.bf16 %v2423_v39  ;;  %v1960_v39 = vld [vmem:[#allocation10 + $0x60] sm:$0xff] }
 0x670   :  { %v8024_v55 = vpop.f32.mrb[20].mxu0  ;;  %v8026_v3 = vpop.f32.mrb[17].mxu1 }
 0x671   :  { %v8028_v4 = vpop.f32.mrb[21].mxu0  ;;  %v3973_v7 = vpop.f32.mrb[18].mxu1  ;;  %4274 = vmatpush1.bf16.msra.mxu1 %v3316_v59  ;;  %v3412_v59 = vunpack.c.h.s8.bf16 %v2420_v61 }
 0x672   :  { %v4137_v17 = vpop.f32.mrb[22].mxu0  ;;  %4438 = vmatpush1.bf16.msra.mxu0 %v3318_v62  ;;  %v3974_v14 = vpop.f32.mrb[19].mxu1  ;;  %4275 = vmatprep.subr.bf16.mxu1 %v3333_v53  ;;  %v3414_v62 = vunpack.c.h.s8.bf16 %v2422_v41  ;;  %v3429_v53 = vunpack.c.l.s8.bf16 %v2437_v57  ;;  %v3428_v7 = vunpack.c.l.s8.bf16 %v2436_v15  ;;  %v1977_v41 = vld [vmem:[#allocation10 + $0xe8] sm:$0xff] }
 0x673   :  { %v4138_v22 = vpop.f32.mrb[23].mxu0  ;;  %4439 = vmatprep.subr.bf16.mxu0 %v3335_v45  ;;  %v3431_v45 = vunpack.c.l.s8.bf16 %v2439_v8  ;;  %v3445_v17 = vunpack.c.h.s8.bf16 %v2437_v57  ;;  %v3447_v14 = vunpack.c.h.s8.bf16 %v2439_v8  ;;  %v2505_v57 = vunpack.c.l.s8.bf16 %v1977_v41  ;;  %v1976_v8 = vld [vmem:[#allocation10 + $0xe0] sm:$0xff] }
 0x674   :  { %v3444_v22 = vunpack.c.h.s8.bf16 %v2436_v15 }
 0x675   :  { %4276 = vmatpush1.bf16.msra.mxu1 %v3332_v11  ;;  %v3430_v11 = vunpack.c.l.s8.bf16 %v2438_v48 }
 0x676   :  { %4440 = vmatpush1.bf16.msra.mxu0 %v3334_v19  ;;  %4277 = vmatprep.subr.bf16.mxu1 %v3349_v10  ;;  %v2453_v19 = vld [vmem:[#allocation10 + $0xfc8] sm:$0xff]  ;;  %v2455_v10 = vld [vmem:[#allocation10 + $0xfd8] sm:$0xff] }
 0x677   :  { %4441 = vmatprep.subr.bf16.mxu0 %v3351_v24  ;;  %v3446_v24 = vunpack.c.h.s8.bf16 %v2438_v48  ;;  %v3461_v26 = vunpack.c.l.s8.bf16 %v2453_v19  ;;  %v3479_v52 = vunpack.c.h.s8.bf16 %v2455_v10 }
 0x679   :  { %4278 = vmatpush1.bf16.msra.mxu1 %v3348_v29  ;;  %v3463_v29 = vunpack.c.l.s8.bf16 %v2455_v10 }
 0x67a   :  { %4442 = vmatpush1.bf16.msra.mxu0 %v3350_v31  ;;  %4279 = vmatprep.subr.bf16.mxu1 %v3365_v32  ;;  %v2454_v31 = vld [vmem:[#allocation10 + $0xfd0] sm:$0xff]  ;;  %v3460_v32 = vunpack.c.l.s8.bf16 %v2452_v28 }
 0x67b   :  { %4443 = vmatprep.subr.bf16.mxu0 %v3367_v33  ;;  %v3462_v40 = vunpack.c.l.s8.bf16 %v2454_v31  ;;  %v3477_v33 = vunpack.c.h.s8.bf16 %v2453_v19  ;;  %v1992_v19 = vld [vmem:[#allocation10 + $0x160] sm:$0xff] }
 0x67d   :  { %4280 = vmatpush1.bf16.msra.mxu1 %v3364_v42  ;;  %v1961_v42 = vld [vmem:[#allocation10 + $0x68] sm:$0xff] }
 0x67e   :  { %4444 = vmatpush1.bf16.msra.mxu0 %v3366_v20  ;;  %4281 = vmatprep.subr.bf16.mxu1 %v3381_v23  ;;  %v1963_v20 = vld [vmem:[#allocation10 + $0x78] sm:$0xff]  ;;  %v3476_v23 = vunpack.c.h.s8.bf16 %v2452_v28  ;;  %v2473_v35 = vunpack.c.l.s8.bf16 %v1961_v42 }
 0x67f   :  { %4445 = vmatprep.subr.bf16.mxu0 %v3383_v44  ;;  %v3478_v44 = vunpack.c.h.s8.bf16 %v2454_v31  ;;  %v2009_v31 = vld [vmem:[#allocation10 + $0x1e8] sm:$0xff] }
 0x681   :  { %4282 = vmatpush1.bf16.msra.mxu1 %v3380_v30  ;;  %v2475_v30 = vunpack.c.l.s8.bf16 %v1963_v20 }
 0x682   :  { %4446 = vmatpush1.bf16.msra.mxu0 %v3382_v46  ;;  %4283 = vmatprep.subr.bf16.mxu1 %v3397_v47  ;;  %v1962_v46 = vld [vmem:[#allocation10 + $0x70] sm:$0xff]  ;;  %v2472_v47 = vunpack.c.l.s8.bf16 %v1960_v39 }
 0x683   :  { %4447 = vmatprep.subr.bf16.mxu0 %v3399_v50  ;;  %v2474_v61 = vunpack.c.l.s8.bf16 %v1962_v46  ;;  %v2489_v50 = vunpack.c.h.s8.bf16 %v1961_v42  ;;  %v2008_v42 = vld [vmem:[#allocation10 + $0x1e0] sm:$0xff] }
 0x685   :  { %4284 = vmatpush1.bf16.msra.mxu1 %v3396_v21  ;;  %v2491_v21 = vunpack.c.h.s8.bf16 %v1963_v20 }
 0x686   :  { %4448 = vmatpush1.bf16.msra.mxu0 %v3398_v51  ;;  %4285 = vmatprep.subr.bf16.mxu1 %v3413_v38  ;;  %v1979_v51 = vld [vmem:[#allocation10 + $0xf8] sm:$0xff]  ;;  %v2488_v38 = vunpack.c.h.s8.bf16 %v1960_v39  ;;  %v2585_v39 = vunpack.c.h.s8.bf16 %v2009_v31 }
 0x687   :  { %4449 = vmatprep.subr.bf16.mxu0 %v3415_v43  ;;  %v2490_v43 = vunpack.c.h.s8.bf16 %v1962_v46  ;;  %v2523_v48 = vunpack.c.h.s8.bf16 %v1979_v51  ;;  %v2025_v46 = vld [vmem:[#allocation10 + $0x268] sm:$0xff] }
 0x689   :  { %4286 = vmatpush1.bf16.msra.mxu1 %v3412_v59  ;;  %v2507_v59 = vunpack.c.l.s8.bf16 %v1979_v51 }
 0x68a   :  { %4450 = vmatpush1.bf16.msra.mxu0 %v3414_v62  ;;  %4287 = vmatprep.subr.bf16.mxu1 %v3429_v53  ;;  %v1978_v62 = vld [vmem:[#allocation10 + $0xf0] sm:$0xff]  ;;  %v2504_v53 = vunpack.c.l.s8.bf16 %v1976_v8 }
 0x68b   :  { %4451 = vmatprep.subr.bf16.mxu0 %v3431_v45  ;;  %v2506_v15 = vunpack.c.l.s8.bf16 %v1978_v62  ;;  %v2521_v45 = vunpack.c.h.s8.bf16 %v1977_v41  ;;  %v2601_v41 = vunpack.c.l.s8.bf16 %v2025_v46 }
 0x68d   :  { %4288 = vmatpush1.bf16.msra.mxu1 %v3428_v7  ;;  %v1993_v7 = vld [vmem:[#allocation10 + $0x168] sm:$0xff] }
 0x68e   :  { %4452 = vmatpush1.bf16.msra.mxu0 %v3430_v11  ;;  %4289 = vmatprep.subr.bf16.mxu1 %v3445_v17  ;;  %v1995_v11 = vld [vmem:[#allocation10 + $0x178] sm:$0xff]  ;;  %v2520_v17 = vunpack.c.h.s8.bf16 %v1976_v8  ;;  %v2553_v28 = vunpack.c.h.s8.bf16 %v1993_v7  ;;  %v2617_v8 = vunpack.c.h.s8.bf16 %v2025_v46  ;;  %v2072_v46 = vld [vmem:[#allocation10 + $0x3e0] sm:$0xff] }
 0x68f   :  { %4453 = vmatprep.subr.bf16.mxu0 %v3447_v14  ;;  %v2522_v14 = vunpack.c.h.s8.bf16 %v1978_v62  ;;  %v2539_v10 = vunpack.c.l.s8.bf16 %v1995_v11  ;;  %v2041_v62 = vld [vmem:[#allocation10 + $0x2e8] sm:$0xff] }
 0x691   :  { %4290 = vmatpush1.bf16.msra.mxu1 %v3444_v22  ;;  %v1994_v22 = vld [vmem:[#allocation10 + $0x170] sm:$0xff] }
 0x692   :  { %4454 = vmatpush1.bf16.msra.mxu0 %v3446_v24  ;;  %4291 = vmatprep.subr.bf16.mxu1 %v3461_v26  ;;  %v2536_v24 = vunpack.c.l.s8.bf16 %v1992_v19  ;;  %v2538_v26 = vunpack.c.l.s8.bf16 %v1994_v22 }
 0x693   :  { %4455 = vmatprep.subr.bf16.mxu0 %v3463_v29  ;;  %v2555_v29 = vunpack.c.h.s8.bf16 %v1995_v11 }
 0x695   :  { %4292 = vmatpush1.bf16.msra.mxu1 %v3460_v32  ;;  %v2011_v32 = vld [vmem:[#allocation10 + $0x1f8] sm:$0xff] }
 0x696   :  { %4456 = vmatpush1.bf16.msra.mxu0 %v3462_v40  ;;  %4293 = vmatprep.subr.bf16.mxu1 %v3477_v33  ;;  %v2552_v40 = vunpack.c.h.s8.bf16 %v1992_v19  ;;  %v2554_v33 = vunpack.c.h.s8.bf16 %v1994_v22  ;;  %v2571_v20 = vunpack.c.l.s8.bf16 %v2011_v32  ;;  %v2649_v19 = vunpack.c.h.s8.bf16 %v2041_v62  ;;  %v2057_v22 = vld [vmem:[#allocation10 + $0x368] sm:$0xff] }
 0x697   :  { %4457 = vmatprep.subr.bf16.mxu0 %v3479_v52  ;;  %v2569_v52 = vunpack.c.l.s8.bf16 %v2009_v31  ;;  %v2056_v31 = vld [vmem:[#allocation10 + $0x360] sm:$0xff] }
 0x699   :  { %4294 = vmatpush1.bf16.msra.mxu1 %v3476_v23  ;;  %v2010_v23 = vld [vmem:[#allocation10 + $0x1f0] sm:$0xff] }
 0x69a   :  { %4458 = vmatpush1.bf16.msra.mxu0 %v3478_v44  ;;  %4468 = vmatprep.subr.bf16.mxu1 %v2473_v35  ;;  %v2568_v44 = vunpack.c.l.s8.bf16 %v2008_v42  ;;  %v2570_v35 = vunpack.c.l.s8.bf16 %v2010_v23 }
 0x69b   :  { %4632 = vmatprep.subr.bf16.mxu0 %v2475_v30  ;;  %v2587_v30 = vunpack.c.h.s8.bf16 %v2011_v32 }
 0x69c   :  { %4296 = vmatmul.mubr.bf16.vlgmr.msra.gmra.mrb[20].mxu1 %v7980_v37 }
 0x69d   :  { %4460 = vmatmul.mubr.bf16.vlgmr.msra.gmra.mrb[24].mxu0 %v7980_v37  ;;  %4469 = vmatpush1.bf16.msra.mxu1 %v2472_v47  ;;  %v2027_v47 = vld [vmem:[#allocation10 + $0x278] sm:$0xff] }
 0x69e   :  { %4500 = vmatprep.mubr.bf16.mxu1 %v7865_v56  ;;  %4633 = vmatpush1.bf16.msra.mxu0 %v2474_v61  ;;  %v2584_v61 = vunpack.c.h.s8.bf16 %v2008_v42  ;;  %v2603_v51 = vunpack.c.l.s8.bf16 %v2027_v47  ;;  %v2681_v42 = vunpack.c.h.s8.bf16 %v2057_v22 }
 0x69f   :  { %4664 = vmatprep.mubr.bf16.mxu0 %v7865_v56  ;;  %4470 = vmatprep.subr.bf16.mxu1 %v2489_v50  ;;  %v2537_v56 = vunpack.c.l.s8.bf16 %v1993_v7  ;;  %v2586_v50 = vunpack.c.h.s8.bf16 %v2010_v23  ;;  %v2040_v7 = vld [vmem:[#allocation10 + $0x2e0] sm:$0xff]  ;;  %v2073_v23 = vld [vmem:[#allocation10 + $0x3e8] sm:$0xff] }
 0x6a0   :  { %4634 = vmatprep.subr.bf16.mxu0 %v2491_v21  ;;  %v2024_v21 = vld [vmem:[#allocation10 + $0x260] sm:$0xff] }
 0x6a1   :  { %4471 = vmatpush1.bf16.msra.mxu1 %v2488_v38  ;;  %v2026_v38 = vld [vmem:[#allocation10 + $0x270] sm:$0xff] }
 0x6a2   :  { %4635 = vmatpush1.bf16.msra.mxu0 %v2490_v43  ;;  %4472 = vmatprep.subr.bf16.mxu1 %v2505_v57  ;;  %v2600_v43 = vunpack.c.l.s8.bf16 %v2024_v21  ;;  %v2602_v57 = vunpack.c.l.s8.bf16 %v2026_v38 }
 0x6a3   :  { %4636 = vmatprep.subr.bf16.mxu0 %v2507_v59  ;;  %v2619_v59 = vunpack.c.h.s8.bf16 %v2027_v47 }
 0x6a5   :  { %4473 = vmatpush1.bf16.msra.mxu1 %v2504_v53  ;;  %v2043_v53 = vld [vmem:[#allocation10 + $0x2f8] sm:$0xff] }
 0x6a6   :  { %4637 = vmatpush1.bf16.msra.mxu0 %v2506_v15  ;;  %4474 = vmatprep.subr.bf16.mxu1 %v2521_v45  ;;  %v2616_v15 = vunpack.c.h.s8.bf16 %v2024_v21  ;;  %v2618_v45 = vunpack.c.h.s8.bf16 %v2026_v38  ;;  %v2635_v11 = vunpack.c.l.s8.bf16 %v2043_v53  ;;  %v2713_v21 = vunpack.c.h.s8.bf16 %v2073_v23  ;;  %v2089_v38 = vld [vmem:[#allocation10 + $0x468] sm:$0xff] }
 0x6a7   :  { %4638 = vmatprep.subr.bf16.mxu0 %v2523_v48  ;;  %v2633_v48 = vunpack.c.l.s8.bf16 %v2041_v62  ;;  %v2088_v62 = vld [vmem:[#allocation10 + $0x460] sm:$0xff] }
 0x6a9   :  { %4475 = vmatpush1.bf16.msra.mxu1 %v2520_v17  ;;  %v2042_v17 = vld [vmem:[#allocation10 + $0x2f0] sm:$0xff] }
 0x6aa   :  { %4639 = vmatpush1.bf16.msra.mxu0 %v2522_v14  ;;  %4476 = vmatprep.subr.bf16.mxu1 %v2537_v56  ;;  %v2632_v14 = vunpack.c.l.s8.bf16 %v2040_v7  ;;  %v2634_v56 = vunpack.c.l.s8.bf16 %v2042_v17 }
 0x6ab   :  { %4640 = vmatprep.subr.bf16.mxu0 %v2539_v10  ;;  %v2651_v10 = vunpack.c.h.s8.bf16 %v2043_v53 }
 0x6ad   :  { %4477 = vmatpush1.bf16.msra.mxu1 %v2536_v24  ;;  %v2059_v24 = vld [vmem:[#allocation10 + $0x378] sm:$0xff] }
 0x6ae   :  { %4641 = vmatpush1.bf16.msra.mxu0 %v2538_v26  ;;  %4478 = vmatprep.subr.bf16.mxu1 %v2553_v28  ;;  %v2648_v26 = vunpack.c.h.s8.bf16 %v2040_v7  ;;  %v2650_v28 = vunpack.c.h.s8.bf16 %v2042_v17  ;;  %v2667_v32 = vunpack.c.l.s8.bf16 %v2059_v24  ;;  %v2745_v7 = vunpack.c.h.s8.bf16 %v2089_v38 }
 0x6af   :  { %4642 = vmatprep.subr.bf16.mxu0 %v2555_v29  ;;  %v2665_v29 = vunpack.c.l.s8.bf16 %v2057_v22  ;;  %v2104_v22 = vld [vmem:[#allocation10 + $0x4e0] sm:$0xff] }
 0x6b1   :  { %4479 = vmatpush1.bf16.msra.mxu1 %v2552_v40  ;;  %v2058_v40 = vld [vmem:[#allocation10 + $0x370] sm:$0xff] }
 0x6b2   :  { %4643 = vmatpush1.bf16.msra.mxu0 %v2554_v33  ;;  %4480 = vmatprep.subr.bf16.mxu1 %v2569_v52  ;;  %v2664_v33 = vunpack.c.l.s8.bf16 %v2056_v31  ;;  %v2666_v52 = vunpack.c.l.s8.bf16 %v2058_v40 }
 0x6b3   :  { %4644 = vmatprep.subr.bf16.mxu0 %v2571_v20  ;;  %v2683_v20 = vunpack.c.h.s8.bf16 %v2059_v24 }
 0x6b5   :  { %4481 = vmatpush1.bf16.msra.mxu1 %v2568_v44  ;;  %v2075_v44 = vld [vmem:[#allocation10 + $0x3f8] sm:$0xff] }
 0x6b6   :  { %4645 = vmatpush1.bf16.msra.mxu0 %v2570_v35  ;;  %4482 = vmatprep.subr.bf16.mxu1 %v2585_v39  ;;  %v2680_v35 = vunpack.c.h.s8.bf16 %v2056_v31  ;;  %v2682_v39 = vunpack.c.h.s8.bf16 %v2058_v40  ;;  %v2699_v47 = vunpack.c.l.s8.bf16 %v2075_v44  ;;  %v2123_v40 = vld [vmem:[#allocation10 + $0x578] sm:$0xff] }
 0x6b7   :  { %4646 = vmatprep.subr.bf16.mxu0 %v2587_v30  ;;  %v2697_v30 = vunpack.c.l.s8.bf16 %v2073_v23  ;;  %v2122_v23 = vld [vmem:[#allocation10 + $0x570] sm:$0xff] }
 0x6b9   :  { %4483 = vmatpush1.bf16.msra.mxu1 %v2584_v61  ;;  %v2074_v61 = vld [vmem:[#allocation10 + $0x3f0] sm:$0xff] }
 0x6ba   :  { %4647 = vmatpush1.bf16.msra.mxu0 %v2586_v50  ;;  %4484 = vmatprep.subr.bf16.mxu1 %v2601_v41  ;;  %v2696_v50 = vunpack.c.l.s8.bf16 %v2072_v46  ;;  %v2698_v41 = vunpack.c.l.s8.bf16 %v2074_v61 }
 0x6bb   :  { %4648 = vmatprep.subr.bf16.mxu0 %v2603_v51  ;;  %v2715_v51 = vunpack.c.h.s8.bf16 %v2075_v44 }
 0x6bd   :  { %4485 = vmatpush1.bf16.msra.mxu1 %v2600_v43  ;;  %v2091_v43 = vld [vmem:[#allocation10 + $0x478] sm:$0xff] }
 0x6be   :  { %4649 = vmatpush1.bf16.msra.mxu0 %v2602_v57  ;;  %4486 = vmatprep.subr.bf16.mxu1 %v2617_v8  ;;  %v2712_v57 = vunpack.c.h.s8.bf16 %v2072_v46  ;;  %v2714_v8 = vunpack.c.h.s8.bf16 %v2074_v61  ;;  %v2731_v53 = vunpack.c.l.s8.bf16 %v2091_v43  ;;  %v2747_v17 = vunpack.c.h.s8.bf16 %v2091_v43  ;;  %v2137_v46 = vld [vmem:[#allocation10 + $0x5e8] sm:$0xff] }
 0x6bf   :  { %4650 = vmatprep.subr.bf16.mxu0 %v2619_v59  ;;  %v2729_v59 = vunpack.c.l.s8.bf16 %v2089_v38  ;;  %v2138_v38 = vld [vmem:[#allocation10 + $0x5f0] sm:$0xff] }
 0x6c1   :  { %4487 = vmatpush1.bf16.msra.mxu1 %v2616_v15  ;;  %v2090_v15 = vld [vmem:[#allocation10 + $0x470] sm:$0xff] }
 0x6c2   :  { %4651 = vmatpush1.bf16.msra.mxu0 %v2618_v45  ;;  %4488 = vmatprep.subr.bf16.mxu1 %v2633_v48  ;;  %v2728_v45 = vunpack.c.l.s8.bf16 %v2088_v62  ;;  %v2730_v48 = vunpack.c.l.s8.bf16 %v2090_v15 }
 0x6c3   :  { %4652 = vmatprep.subr.bf16.mxu0 %v2635_v11  ;;  %v2105_v11 = vld [vmem:[#allocation10 + $0x4e8] sm:$0xff] }
 0x6c5   :  { %4489 = vmatpush1.bf16.msra.mxu1 %v2632_v14  ;;  %v2107_v14 = vld [vmem:[#allocation10 + $0x4f8] sm:$0xff] }
 0x6c6   :  { %4653 = vmatpush1.bf16.msra.mxu0 %v2634_v56  ;;  %4490 = vmatprep.subr.bf16.mxu1 %v2649_v19  ;;  %v2744_v56 = vunpack.c.h.s8.bf16 %v2088_v62  ;;  %v2746_v19 = vunpack.c.h.s8.bf16 %v2090_v15  ;;  %v2763_v24 = vunpack.c.l.s8.bf16 %v2107_v14  ;;  %v2779_v31 = vunpack.c.h.s8.bf16 %v2107_v14  ;;  %v2153_v62 = vld [vmem:[#allocation10 + $0x668] sm:$0xff] }
 0x6c7   :  { %4654 = vmatprep.subr.bf16.mxu0 %v2651_v10  ;;  %v2761_v10 = vunpack.c.l.s8.bf16 %v2105_v11 }
 0x6c9   :  { %4491 = vmatpush1.bf16.msra.mxu1 %v2648_v26  ;;  %v2106_v26 = vld [vmem:[#allocation10 + $0x4f0] sm:$0xff] }
 0x6ca   :  { %4655 = vmatpush1.bf16.msra.mxu0 %v2650_v28  ;;  %4492 = vmatprep.subr.bf16.mxu1 %v2665_v29  ;;  %v2760_v28 = vunpack.c.l.s8.bf16 %v2104_v22  ;;  %v2762_v29 = vunpack.c.l.s8.bf16 %v2106_v26 }
 0x6cb   :  { %4656 = vmatprep.subr.bf16.mxu0 %v2667_v32  ;;  %v2121_v32 = vld [vmem:[#allocation10 + $0x568] sm:$0xff] }
 0x6cd   :  { %4493 = vmatpush1.bf16.msra.mxu1 %v2664_v33  ;;  %v2776_v33 = vunpack.c.h.s8.bf16 %v2104_v22  ;;  %v2169_v22 = vld [vmem:[#allocation10 + $0x6e8] sm:$0xff] }
 0x6ce   :  { %4657 = vmatpush1.bf16.msra.mxu0 %v2666_v52  ;;  %4494 = vmatprep.subr.bf16.mxu1 %v2681_v42  ;;  %v2778_v52 = vunpack.c.h.s8.bf16 %v2106_v26  ;;  %v2120_v42 = vld [vmem:[#allocation10 + $0x560] sm:$0xff] }
 0x6cf   :  { %4658 = vmatprep.subr.bf16.mxu0 %v2683_v20  ;;  %v2795_v20 = vunpack.c.l.s8.bf16 %v2123_v40  ;;  %v2792_v44 = vunpack.c.l.s8.bf16 %v2120_v42  ;;  %v2808_v61 = vunpack.c.h.s8.bf16 %v2120_v42  ;;  %v2185_v42 = vld [vmem:[#allocation10 + $0x768] sm:$0xff] }
 0x6d1   :  { %4495 = vmatpush1.bf16.msra.mxu1 %v2680_v35  ;;  %v2794_v35 = vunpack.c.l.s8.bf16 %v2122_v23 }
 0x6d2   :  { %4659 = vmatpush1.bf16.msra.mxu0 %v2682_v39  ;;  %4496 = vmatprep.subr.bf16.mxu1 %v2697_v30  ;;  %v2809_v39 = vunpack.c.h.s8.bf16 %v2121_v32  ;;  %v2811_v30 = vunpack.c.h.s8.bf16 %v2123_v40 }
 0x6d3   :  { %4660 = vmatprep.subr.bf16.mxu0 %v2699_v47  ;;  %v2139_v47 = vld [vmem:[#allocation10 + $0x5f8] sm:$0xff] }
 0x6d5   :  { %4497 = vmatpush1.bf16.msra.mxu1 %v2696_v50  ;;  %v2810_v50 = vunpack.c.h.s8.bf16 %v2122_v23 }
 0x6d6   :  { %4661 = vmatpush1.bf16.msra.mxu0 %v2698_v41  ;;  %4498 = vmatprep.subr.bf16.mxu1 %v2713_v21  ;;  %v2825_v41 = vunpack.c.l.s8.bf16 %v2137_v46  ;;  %v2136_v21 = vld [vmem:[#allocation10 + $0x5e0] sm:$0xff] }
 0x6d7   :  { %4662 = vmatprep.subr.bf16.mxu0 %v2715_v51  ;;  %v2827_v51 = vunpack.c.l.s8.bf16 %v2139_v47  ;;  %v2824_v43 = vunpack.c.l.s8.bf16 %v2136_v21  ;;  %v2840_v15 = vunpack.c.h.s8.bf16 %v2136_v21  ;;  %v2201_v21 = vld [vmem:[#allocation10 + $0x7e8] sm:$0xff] }
 0x6d9   :  { %4499 = vmatpush1.bf16.msra.mxu1 %v2712_v57  ;;  %v2826_v57 = vunpack.c.l.s8.bf16 %v2138_v38 }
 0x6da   :  { %4663 = vmatpush1.bf16.msra.mxu0 %v2714_v8  ;;  %4509 = vmatprep.subr.bf16.mxu1 %v2729_v59  ;;  %v2841_v8 = vunpack.c.h.s8.bf16 %v2137_v46  ;;  %v2843_v59 = vunpack.c.h.s8.bf16 %v2139_v47  ;;  %v2186_v46 = vld [vmem:[#allocation10 + $0x770] sm:$0xff] }
 0x6db   :  { %4673 = vmatprep.subr.bf16.mxu0 %v2731_v53  ;;  %v2155_v53 = vld [vmem:[#allocation10 + $0x678] sm:$0xff] }
 0x6dc   :  { %4501 = vmatmul.mubr.bf16.vlgmr.msra.gmra.mrb[24].mxu1 %v7867_v58 }
 0x6dd   :  { %4665 = vmatmul.mubr.bf16.vlgmr.msra.gmra.mrb[28].mxu0 %v7867_v58  ;;  %4510 = vmatpush1.bf16.msra.mxu1 %v2728_v45  ;;  %v2777_v58 = vunpack.c.h.s8.bf16 %v2105_v11  ;;  %v2842_v45 = vunpack.c.h.s8.bf16 %v2138_v38  ;;  %v2859_v11 = vunpack.c.l.s8.bf16 %v2155_v53 }
 0x6de   :  { %4541 = vmatprep.mubr.bf16.mxu1 %v7873_v0  ;;  %4674 = vmatpush1.bf16.msra.mxu0 %v2730_v48  ;;  %v2857_v48 = vunpack.c.l.s8.bf16 %v2153_v62 }
 0x6df   :  { %4705 = vmatprep.mubr.bf16.mxu0 %v7873_v0  ;;  %4511 = vmatprep.subr.bf16.mxu1 %v2745_v7  ;;  %v2793_v0 = vunpack.c.l.s8.bf16 %v2121_v32  ;;  %v2152_v7 = vld [vmem:[#allocation10 + $0x660] sm:$0xff]  ;;  %v2170_v32 = vld [vmem:[#allocation10 + $0x6f0] sm:$0xff] }
 0x6e0   :  { %4675 = vmatprep.subr.bf16.mxu0 %v2747_v17  ;;  %v2154_v17 = vld [vmem:[#allocation10 + $0x670] sm:$0xff]  ;;  %v2856_v14 = vunpack.c.l.s8.bf16 %v2152_v7  ;;  %v2872_v26 = vunpack.c.h.s8.bf16 %v2152_v7  ;;  %v2217_v7 = vld [vmem:[#allocation10 + $0x868] sm:$0xff] }
 0x6e1   :  { %4512 = vmatpush1.bf16.msra.mxu1 %v2744_v56  ;;  %v2858_v56 = vunpack.c.l.s8.bf16 %v2154_v17 }
 0x6e2   :  { %4676 = vmatpush1.bf16.msra.mxu0 %v2746_v19  ;;  %4513 = vmatprep.subr.bf16.mxu1 %v2761_v10  ;;  %v2873_v19 = vunpack.c.h.s8.bf16 %v2153_v62  ;;  %v2875_v10 = vunpack.c.h.s8.bf16 %v2155_v53  ;;  %v2202_v62 = vld [vmem:[#allocation10 + $0x7f0] sm:$0xff] }
 0x6e3   :  { %4677 = vmatprep.subr.bf16.mxu0 %v2763_v24  ;;  %v2171_v24 = vld [vmem:[#allocation10 + $0x6f8] sm:$0xff] }
 0x6e5   :  { %4514 = vmatpush1.bf16.msra.mxu1 %v2760_v28  ;;  %v2874_v28 = vunpack.c.h.s8.bf16 %v2154_v17 }
 0x6e6   :  { %4678 = vmatpush1.bf16.msra.mxu0 %v2762_v29  ;;  %4515 = vmatprep.subr.bf16.mxu1 %v2777_v58  ;;  %v2889_v29 = vunpack.c.l.s8.bf16 %v2169_v22  ;;  %v2168_v58 = vld [vmem:[#allocation10 + $0x6e0] sm:$0xff] }
 0x6e7   :  { %4679 = vmatprep.subr.bf16.mxu0 %v2779_v31  ;;  %v2891_v31 = vunpack.c.l.s8.bf16 %v2171_v24  ;;  %v2888_v40 = vunpack.c.l.s8.bf16 %v2168_v58  ;;  %v2904_v23 = vunpack.c.h.s8.bf16 %v2168_v58 }
 0x6e9   :  { %4516 = vmatpush1.bf16.msra.mxu1 %v2776_v33  ;;  %v2890_v33 = vunpack.c.l.s8.bf16 %v2170_v32 }
 0x6ea   :  { %4680 = vmatpush1.bf16.msra.mxu0 %v2778_v52  ;;  %4517 = vmatprep.subr.bf16.mxu1 %v2793_v0  ;;  %v2905_v52 = vunpack.c.h.s8.bf16 %v2169_v22  ;;  %v2907_v0 = vunpack.c.h.s8.bf16 %v2171_v24  ;;  %v2218_v22 = vld [vmem:[#allocation10 + $0x870] sm:$0xff] }
 0x6eb   :  { %4681 = vmatprep.subr.bf16.mxu0 %v2795_v20  ;;  %v2187_v20 = vld [vmem:[#allocation10 + $0x778] sm:$0xff] }
 0x6ed   :  { %4518 = vmatpush1.bf16.msra.mxu1 %v2792_v44  ;;  %v2906_v44 = vunpack.c.h.s8.bf16 %v2170_v32 }
 0x6ee   :  { %4682 = vmatpush1.bf16.msra.mxu0 %v2794_v35  ;;  %4519 = vmatprep.subr.bf16.mxu1 %v2809_v39  ;;  %v2921_v35 = vunpack.c.l.s8.bf16 %v2185_v42  ;;  %v2184_v39 = vld [vmem:[#allocation10 + $0x760] sm:$0xff] }
 0x6ef   :  { %4683 = vmatprep.subr.bf16.mxu0 %v2811_v30  ;;  %v2923_v30 = vunpack.c.l.s8.bf16 %v2187_v20  ;;  %v2920_v47 = vunpack.c.l.s8.bf16 %v2184_v39  ;;  %v2936_v38 = vunpack.c.h.s8.bf16 %v2184_v39  ;;  %v2251_v39 = vld [vmem:[#allocation10 + $0x978] sm:$0xff] }
 0x6f1   :  { %4520 = vmatpush1.bf16.msra.mxu1 %v2808_v61  ;;  %v2922_v61 = vunpack.c.l.s8.bf16 %v2186_v46 }
 0x6f2   :  { %4684 = vmatpush1.bf16.msra.mxu0 %v2810_v50  ;;  %4521 = vmatprep.subr.bf16.mxu1 %v2825_v41  ;;  %v2937_v50 = vunpack.c.h.s8.bf16 %v2185_v42  ;;  %v2939_v41 = vunpack.c.h.s8.bf16 %v2187_v20  ;;  %v2234_v42 = vld [vmem:[#allocation10 + $0x8f0] sm:$0xff] }
 0x6f3   :  { %4685 = vmatprep.subr.bf16.mxu0 %v2827_v51  ;;  %v2203_v51 = vld [vmem:[#allocation10 + $0x7f8] sm:$0xff] }
 0x6f5   :  { %4522 = vmatpush1.bf16.msra.mxu1 %v2824_v43  ;;  %v2938_v43 = vunpack.c.h.s8.bf16 %v2186_v46  ;;  %v3034_v46 = vunpack.c.h.s8.bf16 %v2234_v42 }
 0x6f6   :  { %4686 = vmatpush1.bf16.msra.mxu0 %v2826_v57  ;;  %4523 = vmatprep.subr.bf16.mxu1 %v2841_v8  ;;  %v2953_v57 = vunpack.c.l.s8.bf16 %v2201_v21  ;;  %v2200_v8 = vld [vmem:[#allocation10 + $0x7e0] sm:$0xff] }
 0x6f7   :  { %4687 = vmatprep.subr.bf16.mxu0 %v2843_v59  ;;  %v2955_v59 = vunpack.c.l.s8.bf16 %v2203_v51  ;;  %v2952_v53 = vunpack.c.l.s8.bf16 %v2200_v8  ;;  %v2968_v17 = vunpack.c.h.s8.bf16 %v2200_v8  ;;  %v2265_v8 = vld [vmem:[#allocation10 + $0x9e8] sm:$0xff] }
 0x6f9   :  { %4524 = vmatpush1.bf16.msra.mxu1 %v2840_v15  ;;  %v2954_v15 = vunpack.c.l.s8.bf16 %v2202_v62 }
 0x6fa   :  { %4688 = vmatpush1.bf16.msra.mxu0 %v2842_v45  ;;  %4525 = vmatprep.subr.bf16.mxu1 %v2857_v48  ;;  %v2969_v45 = vunpack.c.h.s8.bf16 %v2201_v21  ;;  %v2971_v48 = vunpack.c.h.s8.bf16 %v2203_v51  ;;  %v4798_v21 = vld [vmem:[#allocation13 + $0x81] ss:$8 sm:$0xf0] }
 0x6fb   :  { %4689 = vmatprep.subr.bf16.mxu0 %v2859_v11  ;;  %v2219_v11 = vld [vmem:[#allocation10 + $0x878] sm:$0xff] }
 0x6fc   :  { %v3003_v58 = vunpack.c.h.s8.bf16 %v2219_v11 }
 0x6fd   :  { %4526 = vmatpush1.bf16.msra.mxu1 %v2856_v14  ;;  %v2970_v14 = vunpack.c.h.s8.bf16 %v2202_v62  ;;  %v2267_v62 = vld [vmem:[#allocation10 + $0x9f8] sm:$0xff] }
 0x6fe   :  { %4690 = vmatpush1.bf16.msra.mxu0 %v2858_v56  ;;  %4527 = vmatprep.subr.bf16.mxu1 %v2873_v19  ;;  %v2985_v56 = vunpack.c.l.s8.bf16 %v2217_v7  ;;  %v2216_v19 = vld [vmem:[#allocation10 + $0x860] sm:$0xff] }
 0x6ff   :  { %4691 = vmatprep.subr.bf16.mxu0 %v2875_v10  ;;  %v2987_v10 = vunpack.c.l.s8.bf16 %v2219_v11  ;;  %v2984_v24 = vunpack.c.l.s8.bf16 %v2216_v19  ;;  %v3000_v32 = vunpack.c.h.s8.bf16 %v2216_v19  ;;  %v2266_v11 = vld [vmem:[#allocation10 + $0x9f0] sm:$0xff]  ;;  %v3097_v19 = vunpack.c.h.s8.bf16 %v2265_v8 }
 0x701   :  { %4528 = vmatpush1.bf16.msra.mxu1 %v2872_v26  ;;  %v2986_v26 = vunpack.c.l.s8.bf16 %v2218_v22 }
 0x702   :  { %4692 = vmatpush1.bf16.msra.mxu0 %v2874_v28  ;;  %4529 = vmatprep.subr.bf16.mxu1 %v2889_v29  ;;  %v3001_v28 = vunpack.c.h.s8.bf16 %v2217_v7  ;;  %v2233_v29 = vld [vmem:[#allocation10 + $0x8e8] sm:$0xff]  ;;  %v3083_v7 = vunpack.c.l.s8.bf16 %v2267_v62 }
 0x703   :  { %4693 = vmatprep.subr.bf16.mxu0 %v2891_v31  ;;  %v2235_v31 = vld [vmem:[#allocation10 + $0x8f8] sm:$0xff] }
 0x705   :  { %4530 = vmatpush1.bf16.msra.mxu1 %v2888_v40  ;;  %v3002_v40 = vunpack.c.h.s8.bf16 %v2218_v22  ;;  %v2281_v22 = vld [vmem:[#allocation10 + $0xa68] sm:$0xff] }
 0x706   :  { %4694 = vmatpush1.bf16.msra.mxu0 %v2890_v33  ;;  %4531 = vmatprep.subr.bf16.mxu1 %v2905_v52  ;;  %v3017_v33 = vunpack.c.l.s8.bf16 %v2233_v29  ;;  %v2232_v52 = vld [vmem:[#allocation10 + $0x8e0] sm:$0xff] }
 0x707   :  { %4695 = vmatprep.subr.bf16.mxu0 %v2907_v0  ;;  %v3019_v0 = vunpack.c.l.s8.bf16 %v2235_v31  ;;  %v3016_v20 = vunpack.c.l.s8.bf16 %v2232_v52 }
 0x709   :  { %4532 = vmatpush1.bf16.msra.mxu1 %v2904_v23  ;;  %v3018_v23 = vunpack.c.l.s8.bf16 %v2234_v42 }
 0x70a   :  { %4696 = vmatpush1.bf16.msra.mxu0 %v2906_v44  ;;  %4533 = vmatprep.subr.bf16.mxu1 %v2921_v35  ;;  %v3035_v44 = vunpack.c.h.s8.bf16 %v2235_v31  ;;  %v2249_v35 = vld [vmem:[#allocation10 + $0x968] sm:$0xff]  ;;  %v2280_v31 = vld [vmem:[#allocation10 + $0xa60] sm:$0xff] }
 0x70b   :  { %4697 = vmatprep.subr.bf16.mxu0 %v2923_v30  ;;  %v3032_v30 = vunpack.c.h.s8.bf16 %v2232_v52  ;;  %v3112_v52 = vunpack.c.l.s8.bf16 %v2280_v31 }
 0x70d   :  { %4534 = vmatpush1.bf16.msra.mxu1 %v2920_v47  ;;  %v2248_v47 = vld [vmem:[#allocation10 + $0x960] sm:$0xff] }
 0x70e   :  { %4698 = vmatpush1.bf16.msra.mxu0 %v2922_v61  ;;  %4535 = vmatprep.subr.bf16.mxu1 %v2937_v50  ;;  %v3051_v61 = vunpack.c.l.s8.bf16 %v2251_v39  ;;  %v2250_v50 = vld [vmem:[#allocation10 + $0x970] sm:$0xff]  ;;  %v3048_v51 = vunpack.c.l.s8.bf16 %v2248_v47 }
 0x70f   :  { %4699 = vmatprep.subr.bf16.mxu0 %v2939_v41  ;;  %v4797_v41 = vld [vmem:[#allocation13 + $0x81] ss:$8 sm:$0xf] }
 0x711   :  { %4536 = vmatpush1.bf16.msra.mxu1 %v2936_v38  ;;  %v3050_v38 = vunpack.c.l.s8.bf16 %v2250_v50 }
 0x712   :  { %4700 = vmatpush1.bf16.msra.mxu0 %v2938_v43  ;;  %4537 = vmatprep.subr.bf16.mxu1 %v2953_v57  ;;  %v3065_v43 = vunpack.c.h.s8.bf16 %v2249_v35  ;;  %v3067_v57 = vunpack.c.h.s8.bf16 %v2251_v39 }
 0x713   :  { %4701 = vmatprep.subr.bf16.mxu0 %v2955_v59  ;;  %v8042_v59 = vor.u32 %v4798_v21, %v4797_v41 }
 0x715   :  { %4538 = vmatpush1.bf16.msra.mxu1 %v2952_v53  ;;  %v3064_v53 = vunpack.c.h.s8.bf16 %v2248_v47 }
 0x716   :  { %4702 = vmatpush1.bf16.msra.mxu0 %v2954_v15  ;;  %4539 = vmatprep.subr.bf16.mxu1 %v2969_v45  ;;  %v3066_v15 = vunpack.c.h.s8.bf16 %v2250_v50  ;;  %v3081_v45 = vunpack.c.l.s8.bf16 %v2265_v8 }
 0x717   :  { %4703 = vmatprep.subr.bf16.mxu0 %v2971_v48  ;;  %v2264_v48 = vld [vmem:[#allocation10 + $0x9e0] sm:$0xff] }
 0x719   :  { %4540 = vmatpush1.bf16.msra.mxu1 %v2968_v17  ;;  %v4813_v17 = vrot.slane %v8042_v59, %v7774_v27 }
 0x71a   :  { %4704 = vmatpush1.bf16.msra.mxu0 %v2970_v14  ;;  %4550 = vmatprep.subr.bf16.mxu1 %v2985_v56  ;;  %v3080_v14 = vunpack.c.l.s8.bf16 %v2264_v48  ;;  %v3082_v56 = vunpack.c.l.s8.bf16 %v2266_v11 }
 0x71b   :  { %4714 = vmatprep.subr.bf16.mxu0 %v2987_v10  ;;  %v3099_v10 = vunpack.c.h.s8.bf16 %v2267_v62 }
 0x71c   :  { %4542 = vmatmul.mubr.bf16.vlgmr.msra.gmra.mrb[24].mxu1 %v7893_v49 }
 0x71d   :  { %4706 = vmatmul.mubr.bf16.vlgmr.msra.gmra.mrb[28].mxu0 %v7893_v49  ;;  %4551 = vmatpush1.bf16.msra.mxu1 %v2984_v24  ;;  %v3033_v49 = vunpack.c.h.s8.bf16 %v2233_v29  ;;  %v8047_v24 = vmul.f32 %v4813_v17, %v8002_v18  ;;  %v3098_v29 = vunpack.c.h.s8.bf16 %v2266_v11  ;;  %v3129_v18 = vunpack.c.h.s8.bf16 %v2281_v22 }
 0x71e   :  { %4582 = vmatprep.mubr.bf16.mxu1 %v7963_v2  ;;  %4715 = vmatpush1.bf16.msra.mxu0 %v2986_v26  ;;  %v2283_v26 = vld [vmem:[#allocation10 + $0xa78] sm:$0xff] }
 0x71f   :  { %4746 = vmatprep.mubr.bf16.mxu0 %v7963_v2  ;;  %4552 = vmatprep.subr.bf16.mxu1 %v3001_v28  ;;  %v3049_v2 = vunpack.c.l.s8.bf16 %v2249_v35  ;;  %v3096_v28 = vunpack.c.h.s8.bf16 %v2264_v48  ;;  %v3131_v42 = vunpack.c.h.s8.bf16 %v2283_v26 }
 0x720   :  { %4716 = vmatprep.subr.bf16.mxu0 %v3003_v58  ;;  %v3113_v58 = vunpack.c.l.s8.bf16 %v2281_v22 }
 0x721   :  { %4553 = vmatpush1.bf16.msra.mxu1 %v3000_v32  ;;  %v3115_v32 = vunpack.c.l.s8.bf16 %v2283_v26 }
 0x722   :  { %4717 = vmatpush1.bf16.msra.mxu0 %v3002_v40  ;;  %4554 = vmatprep.subr.bf16.mxu1 %v3017_v33  ;;  %v2282_v40 = vld [vmem:[#allocation10 + $0xa70] sm:$0xff]  ;;  %v4924_v33 = vrot.slane %v8047_v24, 4 }
 0x723   :  { %4718 = vmatprep.subr.bf16.mxu0 %v3019_v0  ;;  %v3114_v0 = vunpack.c.l.s8.bf16 %v2282_v40  ;;  %v3130_v35 = vunpack.c.h.s8.bf16 %v2282_v40 }
 0x725   :  { %4555 = vmatpush1.bf16.msra.mxu1 %v3016_v20  ;;  %v2297_v20 = vld [vmem:[#allocation10 + $0xae8] sm:$0xff] }
 0x726   :  { %4719 = vmatpush1.bf16.msra.mxu0 %v3018_v23  ;;  %4556 = vmatprep.subr.bf16.mxu1 %v3033_v49  ;;  %v4925_v23 = vadd.f32 %v4924_v33, %v8047_v24  ;;  %v2299_v49 = vld [vmem:[#allocation10 + $0xaf8] sm:$0xff]  ;;  %v3145_v39 = vunpack.c.l.s8.bf16 %v2297_v20  ;;  %v3161_v41 = vunpack.c.h.s8.bf16 %v2297_v20 }
 0x727   :  { %4720 = vmatprep.subr.bf16.mxu0 %v3035_v44  ;;  %v3128_v44 = vunpack.c.h.s8.bf16 %v2280_v31  ;;  %v3163_v21 = vunpack.c.h.s8.bf16 %v2299_v49  ;;  %v2330_v31 = vld [vmem:[#allocation10 + $0xbf0] sm:$0xff]  ;;  %v2347_v20 = vld [vmem:[#allocation10 + $0xc78] sm:$0xff] }
 0x728   :  { %v4926_v47 = vrot.slane %v4925_v23, 2  ;;  %v3210_v33 = vunpack.c.l.s8.bf16 %v2330_v31 }
 0x729   :  { %4557 = vmatpush1.bf16.msra.mxu1 %v3032_v30  ;;  %v2296_v30 = vld [vmem:[#allocation10 + $0xae0] sm:$0xff] }
 0x72a   :  { %4721 = vmatpush1.bf16.msra.mxu0 %v3034_v46  ;;  %4558 = vmatprep.subr.bf16.mxu1 %v3049_v2  ;;  %v3147_v46 = vunpack.c.l.s8.bf16 %v2299_v49  ;;  %v2298_v2 = vld [vmem:[#allocation10 + $0xaf0] sm:$0xff]  ;;  %v3226_v49 = vunpack.c.h.s8.bf16 %v2330_v31 }
 0x72b   :  { %4722 = vmatprep.subr.bf16.mxu0 %v3051_v61  ;;  %v3144_v61 = vunpack.c.l.s8.bf16 %v2296_v30  ;;  %v3146_v50 = vunpack.c.l.s8.bf16 %v2298_v2  ;;  %v3162_v8 = vunpack.c.h.s8.bf16 %v2298_v2 }
 0x72d   :  { %4559 = vmatpush1.bf16.msra.mxu1 %v3048_v51  ;;  %v2313_v51 = vld [vmem:[#allocation10 + $0xb68] sm:$0xff] }
 0x72e   :  { %4723 = vmatpush1.bf16.msra.mxu0 %v3050_v38  ;;  %4560 = vmatprep.subr.bf16.mxu1 %v3065_v43  ;;  %v4927_v38 = vadd.f32 %v4926_v47, %v4925_v23  ;;  %v2315_v43 = vld [vmem:[#allocation10 + $0xb78] sm:$0xff]  ;;  %v3177_v62 = vunpack.c.l.s8.bf16 %v2313_v51  ;;  %v3193_v17 = vunpack.c.h.s8.bf16 %v2313_v51 }
 0x72f   :  { %4724 = vmatprep.subr.bf16.mxu0 %v3067_v57  ;;  %v3160_v57 = vunpack.c.h.s8.bf16 %v2296_v30  ;;  %v2346_v30 = vld [vmem:[#allocation10 + $0xc70] sm:$0xff] }
 0x730   :  { %v4928_v48 = vrot.slane %v4927_v38, 1 }
 0x731   :  { %4561 = vmatpush1.bf16.msra.mxu1 %v3064_v53  ;;  %v2312_v53 = vld [vmem:[#allocation10 + $0xb60] sm:$0xff] }
 0x732   :  { %4725 = vmatpush1.bf16.msra.mxu0 %v3066_v15  ;;  %4562 = vmatprep.subr.bf16.mxu1 %v3081_v45  ;;  %v3179_v15 = vunpack.c.l.s8.bf16 %v2315_v43  ;;  %v2314_v45 = vld [vmem:[#allocation10 + $0xb70] sm:$0xff]  ;;  %v3192_v22 = vunpack.c.h.s8.bf16 %v2312_v53 }
 0x733   :  { %4726 = vmatprep.subr.bf16.mxu0 %v3083_v7  ;;  %v3176_v7 = vunpack.c.l.s8.bf16 %v2312_v53  ;;  %v3178_v11 = vunpack.c.l.s8.bf16 %v2314_v45  ;;  %v3194_v26 = vunpack.c.h.s8.bf16 %v2314_v45 }
 0x735   :  { %4563 = vmatpush1.bf16.msra.mxu1 %v3080_v14  ;;  %v3195_v14 = vunpack.c.h.s8.bf16 %v2315_v43 }
 0x736   :  { %4727 = vmatpush1.bf16.msra.mxu0 %v3082_v56  ;;  %4564 = vmatprep.subr.bf16.mxu1 %v3097_v19  ;;  %v2329_v56 = vld [vmem:[#allocation10 + $0xbe8] sm:$0xff]  ;;  %v4929_v19 = vadd.f32 %v4928_v48, %v4927_v38  ;;  %v3258_v38 = vunpack.c.h.s8.bf16 %v2346_v30 }
 0x737   :  { %4728 = vmatprep.subr.bf16.mxu0 %v3099_v10  ;;  %v2331_v10 = vld [vmem:[#allocation10 + $0xbf8] sm:$0xff] }
 0x739   :  { %4565 = vmatpush1.bf16.msra.mxu1 %v3096_v28  ;;  %v3209_v28 = vunpack.c.l.s8.bf16 %v2329_v56 }
 0x73a   :  { %4729 = vmatpush1.bf16.msra.mxu0 %v3098_v29  ;;  %4566 = vmatprep.subr.bf16.mxu1 %v3113_v58  ;;  %v2328_v29 = vld [vmem:[#allocation10 + $0xbe0] sm:$0xff]  ;;  %v3211_v58 = vunpack.c.l.s8.bf16 %v2331_v10 }
 0x73b   :  { %4730 = vmatprep.subr.bf16.mxu0 %v3115_v32  ;;  %v5015_v32 = vmul.f32 0.125, %v4929_v19  ;;  %v3208_v40 = vunpack.c.l.s8.bf16 %v2328_v29  ;;  %v3224_v23 = vunpack.c.h.s8.bf16 %v2328_v29  ;;  %v2376_v19 = vld [vmem:[#allocation10 + $0xd60] sm:$0xff] }
 0x73d   :  { %4567 = vmatpush1.bf16.msra.mxu1 %v3112_v52  ;;  %v3225_v52 = vunpack.c.h.s8.bf16 %v2329_v56 }
 0x73e   :  { %4731 = vmatpush1.bf16.msra.mxu0 %v3114_v0  ;;  %4568 = vmatprep.subr.bf16.mxu1 %v3129_v18  ;;  %v3227_v0 = vunpack.c.h.s8.bf16 %v2331_v10  ;;  %v2345_v18 = vld [vmem:[#allocation10 + $0xc68] sm:$0xff] }
 0x73f   :  { %4732 = vmatprep.subr.bf16.mxu0 %v3131_v42  ;;  %v8052_v42 = vsub.f32 %v8047_v24, %v5015_v32  ;;  %v3242_v24 = vunpack.c.l.s8.bf16 %v2346_v30  ;;  %v3257_v47 = vunpack.c.h.s8.bf16 %v2345_v18  ;;  %v2393_v32 = vld [vmem:[#allocation10 + $0xde8] sm:$0xff]  ;;  %v4821_v30 = vrot.slane %v8042_v59, %v7788_v36 }
 0x741   :  { %4569 = vmatpush1.bf16.msra.mxu1 %v3128_v44  ;;  %v3241_v44 = vunpack.c.l.s8.bf16 %v2345_v18 }
 0x742   :  { %4733 = vmatpush1.bf16.msra.mxu0 %v3130_v35  ;;  %4570 = vmatprep.subr.bf16.mxu1 %v3145_v39  ;;  %v2344_v35 = vld [vmem:[#allocation10 + $0xc60] sm:$0xff]  ;;  %v3243_v39 = vunpack.c.l.s8.bf16 %v2347_v20 }
 0x743   :  { %4734 = vmatprep.subr.bf16.mxu0 %v3147_v46  ;;  %v5047_v46 = vmul.f32 %v8052_v42, %v8052_v42  ;;  %v3240_v2 = vunpack.c.l.s8.bf16 %v2344_v35  ;;  %v3256_v51 = vunpack.c.h.s8.bf16 %v2344_v35  ;;  %v2394_v35 = vld [vmem:[#allocation10 + $0xdf0] sm:$0xff] }
 0x745   :  { %4571 = vmatpush1.bf16.msra.mxu1 %v3144_v61  ;;  %v2361_v61 = vld [vmem:[#allocation10 + $0xce8] sm:$0xff] }
 0x746   :  { %4735 = vmatpush1.bf16.msra.mxu0 %v3146_v50  ;;  %4572 = vmatprep.subr.bf16.mxu1 %v3161_v41  ;;  %v5068_v50 = vrot.slane %v5047_v46, 4  ;;  %v3259_v41 = vunpack.c.h.s8.bf16 %v2347_v20  ;;  %v3273_v43 = vunpack.c.l.s8.bf16 %v2361_v61  ;;  %v3289_v45 = vunpack.c.h.s8.bf16 %v2361_v61 }
 0x747   :  { %4736 = vmatprep.subr.bf16.mxu0 %v3163_v21  ;;  %v2363_v21 = vld [vmem:[#allocation10 + $0xcf8] sm:$0xff]  ;;  %v3337_v20 = vunpack.c.l.s8.bf16 %v2393_v32 }
 0x748   :  { %v5069_v53 = vadd.f32 %v5068_v50, %v5047_v46  ;;  %v3291_v48 = vunpack.c.h.s8.bf16 %v2363_v21 }
 0x749   :  { %4573 = vmatpush1.bf16.msra.mxu1 %v3160_v57  ;;  %v2360_v57 = vld [vmem:[#allocation10 + $0xce0] sm:$0xff] }
 0x74a   :  { %4737 = vmatpush1.bf16.msra.mxu0 %v3162_v8  ;;  %4574 = vmatprep.subr.bf16.mxu1 %v3177_v62  ;;  %v3275_v8 = vunpack.c.l.s8.bf16 %v2363_v21  ;;  %v2362_v62 = vld [vmem:[#allocation10 + $0xcf0] sm:$0xff] }
 0x74b   :  { %4738 = vmatprep.subr.bf16.mxu0 %v3179_v15  ;;  %v3272_v15 = vunpack.c.l.s8.bf16 %v2360_v57 }
 0x74d   :  { %4575 = vmatpush1.bf16.msra.mxu1 %v3176_v7  ;;  %v2377_v7 = vld [vmem:[#allocation10 + $0xd68] sm:$0xff] }
 0x74e   :  { %4739 = vmatpush1.bf16.msra.mxu0 %v3178_v11  ;;  %4576 = vmatprep.subr.bf16.mxu1 %v3193_v17  ;;  %v5070_v11 = vrot.slane %v5069_v53, 2  ;;  %v2379_v17 = vld [vmem:[#allocation10 + $0xd78] sm:$0xff]  ;;  %v3305_v56 = vunpack.c.l.s8.bf16 %v2377_v7 }
 0x74f   :  { %4740 = vmatprep.subr.bf16.mxu0 %v3195_v14  ;;  %v3288_v14 = vunpack.c.h.s8.bf16 %v2360_v57  ;;  %v3307_v10 = vunpack.c.l.s8.bf16 %v2379_v17  ;;  %v3323_v31 = vunpack.c.h.s8.bf16 %v2379_v17  ;;  %v2410_v17 = vld [vmem:[#allocation10 + $0xe70] sm:$0xff] }
 0x751   :  { %4577 = vmatpush1.bf16.msra.mxu1 %v3192_v22  ;;  %v2378_v22 = vld [vmem:[#allocation10 + $0xd70] sm:$0xff] }
 0x752   :  { %4741 = vmatpush1.bf16.msra.mxu0 %v3194_v26  ;;  %4578 = vmatprep.subr.bf16.mxu1 %v3209_v28  ;;  %v5071_v26 = vadd.f32 %v5070_v11, %v5069_v53  ;;  %v3304_v28 = vunpack.c.l.s8.bf16 %v2376_v19  ;;  %v3306_v29 = vunpack.c.l.s8.bf16 %v2378_v22  ;;  %v3322_v18 = vunpack.c.h.s8.bf16 %v2378_v22 }
 0x753   :  { %4742 = vmatprep.subr.bf16.mxu0 %v3211_v58  ;;  %v3321_v58 = vunpack.c.h.s8.bf16 %v2377_v7  ;;  %v8076_v53 = vmul.f32 %v4821_v30, %v8004_v9  ;;  %v2408_v7 = vld [vmem:[#allocation10 + $0xe60] sm:$0xff] }
 0x755   :  { %4579 = vmatpush1.bf16.msra.mxu1 %v3208_v40  ;;  %v5072_v40 = vrot.slane %v5071_v26, 1 }
 0x756   :  { %4743 = vmatpush1.bf16.msra.mxu0 %v3210_v33  ;;  %4580 = vmatprep.subr.bf16.mxu1 %v3225_v52  ;;  %v2395_v33 = vld [vmem:[#allocation10 + $0xdf8] sm:$0xff]  ;;  %v3320_v52 = vunpack.c.h.s8.bf16 %v2376_v19  ;;  %v3370_v19 = vunpack.c.l.s8.bf16 %v2410_v17 }
 0x757   :  { %4744 = vmatprep.subr.bf16.mxu0 %v3227_v0  ;;  %v4809_v0 = vrot.slane %v8042_v59, %v7771_v25  ;;  %v3355_v57 = vunpack.c.h.s8.bf16 %v2395_v33 }
 0x759   :  { %4581 = vmatpush1.bf16.msra.mxu1 %v3224_v23  ;;  %v2392_v23 = vld [vmem:[#allocation10 + $0xde0] sm:$0xff]  ;;  %v8073_v50 = vmul.f32 %v4809_v0, %v7998_v12  ;;  %v2426_v0 = vld [vmem:[#allocation10 + $0xef0] sm:$0xff] }
 0x75a   :  { %4745 = vmatpush1.bf16.msra.mxu0 %v3226_v49  ;;  %4591 = vmatprep.subr.bf16.mxu1 %v3241_v44  ;;  %v3339_v44 = vunpack.c.l.s8.bf16 %v2395_v33  ;;  %v3336_v61 = vunpack.c.l.s8.bf16 %v2392_v23  ;;  %v2424_v33 = vld [vmem:[#allocation10 + $0xee0] sm:$0xff] }
 0x75b   :  { %4755 = vmatprep.subr.bf16.mxu0 %v3243_v39  ;;  %v5073_v39 = vadd.f32 %v5072_v40, %v5071_v26  ;;  %v4918_v12 = vrot.slane %v8073_v50, 4  ;;  %v2425_v26 = vld [vmem:[#allocation10 + $0xee8] sm:$0xff] }
 0x75c   :  { %4583 = vmatmul.mubr.bf16.vlgmr.msra.gmra.mrb[24].mxu1 %v7965_v6  ;;  %v3401_v40 = vunpack.c.l.s8.bf16 %v2425_v26  ;;  %v3417_v30 = vunpack.c.h.s8.bf16 %v2425_v26 }
 0x75d   :  { %4747 = vmatmul.mubr.bf16.vlgmr.msra.gmra.mrb[28].mxu0 %v7965_v6  ;;  %4592 = vmatpush1.bf16.msra.mxu1 %v3240_v2  ;;  %v3274_v6 = vunpack.c.l.s8.bf16 %v2362_v62  ;;  %v4919_v9 = vadd.f32 %v4918_v12, %v8073_v50  ;;  %v2440_v12 = vld [vmem:[#allocation10 + $0xf60] sm:$0xff] }
 0x75e   :  { %4623 = vmatprep.mubr.bf16.mxu1 %v7969_v16  ;;  %4756 = vmatpush1.bf16.msra.mxu0 %v3242_v24 }
 0x75f   :  { %4787 = vmatprep.mubr.bf16.mxu0 %v7969_v16  ;;  %4593 = vmatprep.subr.bf16.mxu1 %v3257_v47  ;;  %v3290_v16 = vunpack.c.h.s8.bf16 %v2362_v62  ;;  %v5159_v62 = vmul.f32 0.125, %v5073_v39  ;;  %v3402_v39 = vunpack.c.l.s8.bf16 %v2426_v0 }
 0x760   :  { %4757 = vmatprep.subr.bf16.mxu0 %v3259_v41 }
 0x761   :  { %4594 = vmatpush1.bf16.msra.mxu1 %v3256_v51  ;;  %v3338_v51 = vunpack.c.l.s8.bf16 %v2394_v35 }
 0x762   :  { %4758 = vmatpush1.bf16.msra.mxu0 %v3258_v38  ;;  %4595 = vmatprep.subr.bf16.mxu1 %v3273_v43  ;;  %v3353_v38 = vunpack.c.h.s8.bf16 %v2393_v32  ;;  %v3386_v32 = vunpack.c.h.s8.bf16 %v2410_v17 }
 0x763   :  { %4759 = vmatprep.subr.bf16.mxu0 %v3275_v8  ;;  %v2409_v8 = vld [vmem:[#allocation10 + $0xe68] sm:$0xff] }
 0x765   :  { %4596 = vmatpush1.bf16.msra.mxu1 %v3272_v15  ;;  %v2411_v15 = vld [vmem:[#allocation10 + $0xe78] sm:$0xff] }
 0x766   :  { %4760 = vmatpush1.bf16.msra.mxu0 %v3274_v6  ;;  %4597 = vmatprep.subr.bf16.mxu1 %v3289_v45  ;;  %v3352_v6 = vunpack.c.h.s8.bf16 %v2392_v23  ;;  %v3354_v45 = vunpack.c.h.s8.bf16 %v2394_v35  ;;  %v3371_v11 = vunpack.c.l.s8.bf16 %v2411_v15  ;;  %v3387_v22 = vunpack.c.h.s8.bf16 %v2411_v15  ;;  %v4903_v23 = vld [vmem:[#allocation13 + $0x5] ss:$8 sm:$0xf] }
 0x767   :  { %4761 = vmatprep.subr.bf16.mxu0 %v3291_v48  ;;  %v3369_v48 = vunpack.c.l.s8.bf16 %v2409_v8  ;;  %v3418_v15 = vunpack.c.h.s8.bf16 %v2426_v0  ;;  %v2458_v0 = vld [vmem:[#allocation10 + $0xff0] sm:$0xff] }
 0x769   :  { %4598 = vmatpush1.bf16.msra.mxu1 %v3288_v14  ;;  %v5175_v14 = vadd.f32 0.8, %v5159_v62 }
 0x76a   :  { %4762 = vmatpush1.bf16.msra.mxu0 %v3290_v16  ;;  %4599 = vmatprep.subr.bf16.mxu1 %v3305_v56  ;;  %v4936_v16 = vrot.slane %v8076_v53, 4  ;;  %v3368_v56 = vunpack.c.l.s8.bf16 %v2408_v7 }
 0x76b   :  { %4763 = vmatprep.subr.bf16.mxu0 %v3307_v10  ;;  %v3385_v10 = vunpack.c.h.s8.bf16 %v2409_v8  ;;  %7396 = vrsqrt.f32 %v5175_v14  ;;  %v4912_v8 = vld [vmem:[#allocation13 + $0x6] ss:$8 sm:$0xf0] }
 0x76d   :  { %4600 = vmatpush1.bf16.msra.mxu1 %v3304_v28  ;;  %v4937_v28 = vadd.f32 %v4936_v16, %v8076_v53  ;;  %v3432_v16 = vunpack.c.l.s8.bf16 %v2440_v12 }
 0x76e   :  { %4764 = vmatpush1.bf16.msra.mxu0 %v3306_v29  ;;  %4601 = vmatprep.subr.bf16.mxu1 %v3321_v58  ;;  %v2427_v29 = vld [vmem:[#allocation10 + $0xef8] sm:$0xff]  ;;  %v3384_v58 = vunpack.c.h.s8.bf16 %v2408_v7 }
 0x76f   :  { %v8062_v49 = vpop.f32.mrb[20].mxu1  ;;  %4765 = vmatprep.subr.bf16.mxu0 %v3323_v31  ;;  %v4920_v31 = vrot.slane %v4919_v9, 2 }
 0x770   :  { %v8066_v46 = vpop.f32.mrb[24].mxu0  ;;  %v8068_v2 = vpop.f32.mrb[21].mxu1 }
 0x771   :  { %v8070_v24 = vpop.f32.mrb[25].mxu0  ;;  %v4301_v47 = vpop.f32.mrb[22].mxu1  ;;  %4602 = vmatpush1.bf16.msra.mxu1 %v3320_v52  ;;  %v3403_v52 = vunpack.c.l.s8.bf16 %v2427_v29  ;;  %v4921_v35 = vadd.f32 %v4920_v31, %v4919_v9 }
 0x772   :  { %v4465_v41 = vpop.f32.mrb[26].mxu0  ;;  %4766 = vmatpush1.bf16.msra.mxu0 %v3322_v18  ;;  %v4302_v21 = vpop.f32.mrb[23].mxu1  ;;  %4603 = vmatprep.subr.bf16.mxu1 %v3337_v20  ;;  %v4938_v18 = vrot.slane %v4937_v28, 2  ;;  %v3400_v20 = vunpack.c.l.s8.bf16 %v2424_v33  ;;  %v3419_v47 = vunpack.c.h.s8.bf16 %v2427_v29 }
 0x773   :  { %v4466_v43 = vpop.f32.mrb[27].mxu0  ;;  %4767 = vmatprep.subr.bf16.mxu0 %v3339_v44  ;;  %v4904_v44 = vld [vmem:[#allocation13 + $0x5] ss:$8 sm:$0xf0]  ;;  %v4922_v62 = vrot.slane %v4921_v35, 1 }
 0x774   :  { %v4939_v41 = vadd.f32 %v4938_v18, %v4937_v28  ;;  %v2443_v21 = vld [vmem:[#allocation10 + $0xf78] sm:$0xff]  ;;  %v3416_v43 = vunpack.c.h.s8.bf16 %v2424_v33  ;;  %v2456_v33 = vld [vmem:[#allocation10 + $0xfe0] sm:$0xff] }
 0x775   :  { %4604 = vmatpush1.bf16.msra.mxu1 %v3336_v61  ;;  %v2441_v61 = vld [vmem:[#allocation10 + $0xf68] sm:$0xff]  ;;  %v2459_v28 = vld [vmem:[#allocation10 + $0xff8] sm:$0xff] }
 0x776   :  { %4768 = vmatpush1.bf16.msra.mxu0 %v3338_v51  ;;  %4605 = vmatprep.subr.bf16.mxu1 %v3353_v38  ;;  %v8082_v51 = vor.u32 %v4904_v44, %v4903_v23  ;;  %v4911_v38 = vld [vmem:[#allocation13 + $0x6] ss:$8 sm:$0xf]  ;;  %v4940_v7 = vrot.slane %v4939_v41, 1 }
 0x777   :  { %4769 = vmatprep.subr.bf16.mxu0 %v3355_v57  ;;  %v7397_v57 = vpop.eup %7396 }
 0x778   :  { %v5207_v17 = vmul.f32 %v7397_v57, %v8052_v42  ;;  %v5231_v14 = vrot.slane %v8082_v51, %v7774_v27  ;;  %v4941_v26 = vadd.f32 %v4940_v7, %v4939_v41  ;;  %v5485_v41 = vld [vmem:[#allocation11 + $0x18] sm:$0xff] }
 0x779   :  { %4606 = vmatpush1.bf16.msra.mxu1 %v3352_v6  ;;  %v3433_v6 = vunpack.c.l.s8.bf16 %v2441_v61 }
 0x77a   :  { %4770 = vmatpush1.bf16.msra.mxu0 %v3354_v45  ;;  %4607 = vmatprep.subr.bf16.mxu1 %v3369_v48  ;;  %v3435_v45 = vunpack.c.l.s8.bf16 %v2443_v21  ;;  %v2442_v48 = vld [vmem:[#allocation10 + $0xf70] sm:$0xff]  ;;  %v5305_v29 = vmul.f32 %v5231_v14, %v5207_v17  ;;  %v5017_v18 = vmul.f32 0.125, %v4941_v26  ;;  %v5487_v17 = vld [vmem:[#allocation11 + $0x28] sm:$0xff] }
 0x77b   :  { %4771 = vmatprep.subr.bf16.mxu0 %v3371_v11  ;;  %v8084_v11 = vor.u32 %v4912_v8, %v4911_v38  ;;  %v3434_v9 = vunpack.c.l.s8.bf16 %v2442_v48  ;;  %v5482_v8 = vld [vmem:[#allocation11] sm:$0xff]  ;;  %v5747_v26 = vunpack.c.l.s8.bf16 %v5487_v17 }
 0x77d   :  { %4608 = vmatpush1.bf16.msra.mxu1 %v3368_v56  ;;  %v4923_v56 = vadd.f32 %v4922_v62, %v4921_v35  ;;  %v5329_v42 = vrot.slane %v8084_v11, %v7774_v27  ;;  %v3466_v35 = vunpack.c.l.s8.bf16 %v2458_v0  ;;  %v5741_v62 = vunpack.c.l.s8.bf16 %v5485_v41 }
 0x77e   :  { %4772 = vmatpush1.bf16.msra.mxu0 %v3370_v19  ;;  %4609 = vmatprep.subr.bf16.mxu1 %v3385_v10  ;;  %v3449_v19 = vunpack.c.h.s8.bf16 %v2441_v61  ;;  %v3451_v10 = vunpack.c.h.s8.bf16 %v2443_v21  ;;  %v8095_v61 = vsub.f32 %v8076_v53, %v5017_v18  ;;  %v3480_v21 = vunpack.c.h.s8.bf16 %v2456_v33  ;;  %v5493_v18 = vld [vmem:[#allocation11 + $0x58] sm:$0xff] }
 0x77f   :  { %4773 = vmatprep.subr.bf16.mxu0 %v3387_v22  ;;  %v2457_v22 = vld [vmem:[#allocation10 + $0xfe8] sm:$0xff]  ;;  %v5014_v31 = vmul.f32 0.125, %v4923_v56  ;;  %v5403_v23 = vadd.f32 %v5329_v42, %v5305_v29  ;;  %v5745_v56 = vunpack.c.h.s8.bf16 %v5485_v41  ;;  %v5492_v41 = vld [vmem:[#allocation11 + $0x50] sm:$0xff] }
 0x780   :  { %v5049_v53 = vmul.f32 %v8095_v61, %v8095_v61 }
 0x781   :  { %4610 = vmatpush1.bf16.msra.mxu1 %v3384_v58  ;;  %v3448_v58 = vunpack.c.h.s8.bf16 %v2440_v12  ;;  %v8092_v44 = vsub.f32 %v8073_v50, %v5014_v31  ;;  %v5435_v38 = vmul.f32 0.2, %v5403_v23  ;;  %v3482_v50 = vunpack.c.h.s8.bf16 %v2458_v0 }
 0x782   :  { %4774 = vmatpush1.bf16.msra.mxu0 %v3386_v32  ;;  %4611 = vmatprep.subr.bf16.mxu1 %v3401_v40  ;;  %v3450_v32 = vunpack.c.h.s8.bf16 %v2442_v48  ;;  %v3465_v40 = vunpack.c.l.s8.bf16 %v2457_v22  ;;  %vm5419_vm14 = vcmp.ge.f32.partialorder %v5403_v23, 0.0  ;;  %v5080_v14 = vrot.slane %v5049_v53, 4 }
 0x783   :  { %4775 = vmatprep.subr.bf16.mxu0 %v3403_v52  ;;  %v3467_v52 = vunpack.c.l.s8.bf16 %v2459_v28  ;;  %v5451_v12 = vsel %vm5419_vm14, %v5403_v23, %v5435_v38 }
 0x784   :  { %v5081_v42 = vadd.f32 %v5080_v14, %v5049_v53  ;;  %v5497_v53 = vld [vmem:[#allocation11 + $0x78] sm:$0xff] }
 0x785   :  { %4612 = vmatpush1.bf16.msra.mxu1 %v3400_v20  ;;  %v3464_v20 = vunpack.c.l.s8.bf16 %v2456_v33  ;;  %v5765_v14 = vunpack.c.l.s8.bf16 %v5497_v53 }
 0x786   :  { %4776 = vmatpush1.bf16.msra.mxu0 %v3402_v39  ;;  %4613 = vmatprep.subr.bf16.mxu1 %v3417_v30  ;;  %v3481_v39 = vunpack.c.h.s8.bf16 %v2457_v22  ;;  %v3483_v30 = vunpack.c.h.s8.bf16 %v2459_v28  ;;  %v5486_v28 = vld [vmem:[#allocation11 + $0x20] sm:$0xff]  ;;  %v5082_v0 = vrot.slane %v5081_v42, 2 }
 0x787   :  { %4777 = vmatprep.subr.bf16.mxu0 %v3419_v47  ;;  %v5483_v47 = vld [vmem:[#allocation11 + $0x8] sm:$0xff]  ;;  %v5746_v31 = vunpack.c.l.s8.bf16 %v5486_v28 }
 0x788   :  { %v5739_v57 = vunpack.c.l.s8.bf16 %v5483_v47  ;;  %v5743_v7 = vunpack.c.h.s8.bf16 %v5483_v47  ;;  %v5757_v47 = vunpack.c.l.s8.bf16 %v5493_v18 }
 0x789   :  { %4614 = vmatpush1.bf16.msra.mxu1 %v3416_v43  ;;  %v5046_v43 = vmul.f32 %v8092_v44, %v8092_v44 }
 0x78a   :  { %4778 = vmatpush1.bf16.msra.mxu0 %v3418_v15  ;;  %4615 = vmatprep.subr.bf16.mxu1 %v3433_v6  ;;  %v5484_v15 = vld [vmem:[#allocation11 + $0x10] sm:$0xff]  ;;  %v5738_v6 = vunpack.c.l.s8.bf16 %v5482_v8 }
 0x78b   :  { %4779 = vmatprep.subr.bf16.mxu0 %v3435_v45  ;;  %v5062_v45 = vrot.slane %v5046_v43, 4  ;;  %v5740_v48 = vunpack.c.l.s8.bf16 %v5484_v15  ;;  %v5744_v22 = vunpack.c.h.s8.bf16 %v5484_v15 }
 0x78d   :  { %4616 = vmatpush1.bf16.msra.mxu1 %v3432_v16  ;;  %v5467_v16 = vpack.c.bf16 %v5451_v12, %v5451_v12 }
 0x78e   :  { %4780 = vmatpush1.bf16.msra.mxu0 %v3434_v9  ;;  %4617 = vmatprep.subr.bf16.mxu1 %v3449_v19  ;;  %v5489_v9 = vld [vmem:[#allocation11 + $0x38] sm:$0xff]  ;;  %v5742_v19 = vunpack.c.h.s8.bf16 %v5482_v8  ;;  %v5761_v8 = vunpack.c.h.s8.bf16 %v5493_v18 }
 0x78f   :  { %4781 = vmatprep.subr.bf16.mxu0 %v3451_v10  ;;  %v5063_v10 = vadd.f32 %v5062_v45, %v5046_v43  ;;  %v5749_v29 = vunpack.c.l.s8.bf16 %v5489_v9  ;;  %v5753_v33 = vunpack.c.h.s8.bf16 %v5489_v9  ;;  %v4817_v45 = vrot.slane %v8042_v59, %v7785_v34 }
 0x790   :  { %v4829_v9 = vrot.slane %v8042_v59, %v7888_v60 }
 0x791   :  { %4618 = vmatpush1.bf16.msra.mxu1 %v3448_v58  ;;  %v5488_v58 = vld [vmem:[#allocation11 + $0x30] sm:$0xff] }
 0x792   :  { %4782 = vmatpush1.bf16.msra.mxu0 %v3450_v32  ;;  %4619 = vmatprep.subr.bf16.mxu1 %v3465_v40  ;;  %v5064_v32 = vrot.slane %v5063_v10, 2  ;;  %v5751_v40 = vunpack.c.h.s8.bf16 %v5487_v17  ;;  %v5494_v17 = vld [vmem:[#allocation11 + $0x60] sm:$0xff] }
 0x793   :  { %4783 = vmatprep.subr.bf16.mxu0 %v3467_v52  ;;  %v5491_v52 = vld [vmem:[#allocation11 + $0x48] sm:$0xff] }
 0x794   :  { %v5065_v23 = vadd.f32 %v5064_v32, %v5063_v10  ;;  %v5501_v32 = vld [vmem:[#allocation11 + $0x98] sm:$0xff] }
 0x795   :  { %4620 = vmatpush1.bf16.msra.mxu1 %v3464_v20  ;;  %v5750_v20 = vunpack.c.h.s8.bf16 %v5486_v28  ;;  %v5773_v18 = vunpack.c.l.s8.bf16 %v5501_v32 }
 0x796   :  { %4784 = vmatpush1.bf16.msra.mxu0 %v3466_v35  ;;  %4621 = vmatprep.subr.bf16.mxu1 %v3481_v39  ;;  %v5752_v35 = vunpack.c.h.s8.bf16 %v5488_v58  ;;  %v5755_v39 = vunpack.c.l.s8.bf16 %v5491_v52  ;;  %v5066_v43 = vrot.slane %v5065_v23, 1 }
 0x797   :  { %4785 = vmatprep.subr.bf16.mxu0 %v3483_v30  ;;  %v5490_v30 = vld [vmem:[#allocation11 + $0x40] sm:$0xff] }
 0x798   :  { %v5754_v38 = vunpack.c.l.s8.bf16 %v5490_v30  ;;  %v5067_v12 = vadd.f32 %v5066_v43, %v5065_v23  ;;  %v5505_v43 = vld [vmem:[#allocation11 + $0xb8] sm:$0xff] }
 0x799   :  { %4622 = vmatpush1.bf16.msra.mxu1 %v3480_v21  ;;  %v5083_v21 = vadd.f32 %v5082_v0, %v5081_v42  ;;  %v5498_v0 = vld [vmem:[#allocation11 + $0x80] sm:$0xff] }
 0x79a   :  { %4786 = vmatpush1.bf16.msra.mxu0 %v3482_v50  ;;  %6250 = vmatprep.subr.bf16.mxu1 %v5739_v57  ;;  %v5756_v50 = vunpack.c.l.s8.bf16 %v5492_v41  ;;  %v5759_v57 = vunpack.c.h.s8.bf16 %v5491_v52  ;;  %v5158_v10 = vmul.f32 0.125, %v5067_v12 }
 0x79b   :  { %6578 = vmatprep.subr.bf16.mxu0 %v5741_v62  ;;  %v5495_v62 = vld [vmem:[#allocation11 + $0x68] sm:$0xff]  ;;  %v5084_v15 = vrot.slane %v5083_v21, 1 }
 0x79c   :  { %4624 = vmatmul.mubr.bf16.vlgmr.msra.gmra.mrb[24].mxu1 %v7980_v37  ;;  %v5767_v28 = vunpack.c.h.s8.bf16 %v5495_v62 }
 0x79d   :  { %4788 = vmatmul.mubr.bf16.vlgmr.msra.gmra.mrb[28].mxu0 %v7980_v37  ;;  %6251 = vmatpush1.bf16.msra.mxu1 %v5738_v6  ;;  %v5748_v37 = vunpack.c.l.s8.bf16 %v5488_v58  ;;  %v5758_v6 = vunpack.c.h.s8.bf16 %v5490_v30  ;;  %v5499_v58 = vld [vmem:[#allocation11 + $0x88] sm:$0xff] }
 0x79e   :  { %6282 = vmatprep.mubr.bf16.mxu1 %v5467_v16  ;;  %6579 = vmatpush1.bf16.msra.mxu0 %v5740_v48  ;;  %v5760_v48 = vunpack.c.h.s8.bf16 %v5492_v41  ;;  %v5771_v52 = vunpack.c.l.s8.bf16 %v5499_v58  ;;  %v5777_v41 = vunpack.c.h.s8.bf16 %v5501_v32 }
 0x79f   :  { %6610 = vmatprep.mubr.bf16.mxu0 %v5467_v16  ;;  %6252 = vmatprep.subr.bf16.mxu1 %v5743_v7  ;;  %v5763_v7 = vunpack.c.l.s8.bf16 %v5495_v62  ;;  %v5496_v16 = vld [vmem:[#allocation11 + $0x70] sm:$0xff] }
 0x7a0   :  { %6580 = vmatprep.subr.bf16.mxu0 %v5745_v56  ;;  %v5085_v56 = vadd.f32 %v5084_v15, %v5083_v21  ;;  %v5503_v21 = vld [vmem:[#allocation11 + $0xa8] sm:$0xff]  ;;  %v5502_v15 = vld [vmem:[#allocation11 + $0xa0] sm:$0xff] }
 0x7a1   :  { %6253 = vmatpush1.bf16.msra.mxu1 %v5742_v19  ;;  %v5762_v19 = vunpack.c.l.s8.bf16 %v5494_v17  ;;  %v5779_v62 = vunpack.c.l.s8.bf16 %v5503_v21 }
 0x7a2   :  { %6581 = vmatpush1.bf16.msra.mxu0 %v5744_v22  ;;  %6254 = vmatprep.subr.bf16.mxu1 %v5747_v26  ;;  %v8108_v22 = vmul.f32 %v4817_v45, %v8000_v13  ;;  %v5764_v26 = vunpack.c.l.s8.bf16 %v5496_v16  ;;  %v5161_v42 = vmul.f32 0.125, %v5085_v56  ;;  %v5768_v13 = vunpack.c.h.s8.bf16 %v5496_v16  ;;  %v5507_v16 = vld [vmem:[#allocation11 + $0xc8] sm:$0xff] }
 0x7a3   :  { %6582 = vmatprep.subr.bf16.mxu0 %v5749_v29  ;;  %v5769_v29 = vunpack.c.h.s8.bf16 %v5497_v53  ;;  %v5781_v53 = vunpack.c.l.s8.bf16 %v5505_v43  ;;  %v5778_v45 = vunpack.c.l.s8.bf16 %v5502_v15 }
 0x7a4   :  { %v5177_v23 = vadd.f32 0.8, %v5161_v42  ;;  %v5506_v42 = vld [vmem:[#allocation11 + $0xc0] sm:$0xff] }
 0x7a5   :  { %6255 = vmatpush1.bf16.msra.mxu1 %v5746_v31  ;;  %v8111_v31 = vmul.f32 %v4829_v9, %v8026_v3  ;;  %v5770_v3 = vunpack.c.l.s8.bf16 %v5498_v0 }
 0x7a6   :  { %6583 = vmatpush1.bf16.msra.mxu0 %v5748_v37  ;;  %6256 = vmatprep.subr.bf16.mxu1 %v5751_v40  ;;  %v5766_v37 = vunpack.c.h.s8.bf16 %v5494_v17  ;;  %v5174_v40 = vadd.f32 0.8, %v5158_v10  ;;  %v5783_v17 = vunpack.c.h.s8.bf16 %v5503_v21  ;;  %v5782_v10 = vunpack.c.h.s8.bf16 %v5502_v15 }
 0x7a7   :  { %6584 = vmatprep.subr.bf16.mxu0 %v5753_v33  ;;  %v4930_v33 = vrot.slane %v8108_v22, 4  ;;  %v5790_v21 = vunpack.c.h.s8.bf16 %v5506_v42 }
 0x7a8   :  { %7398 = vrsqrt.f32 %v5174_v40 }
 0x7a9   :  { %6257 = vmatpush1.bf16.msra.mxu1 %v5750_v20  ;;  %v5500_v20 = vld [vmem:[#allocation11 + $0x90] sm:$0xff]  ;;  %7400 = vrsqrt.f32 %v5177_v23 }
 0x7aa   :  { %6585 = vmatpush1.bf16.msra.mxu0 %v5752_v35  ;;  %6258 = vmatprep.subr.bf16.mxu1 %v5755_v39  ;;  %v4948_v35 = vrot.slane %v8111_v31, 4  ;;  %v4931_v39 = vadd.f32 %v4930_v33, %v8108_v22  ;;  %v5772_v30 = vunpack.c.l.s8.bf16 %v5500_v20  ;;  %v5508_v33 = vld [vmem:[#allocation11 + $0xd0] sm:$0xff] }
 0x7ab   :  { %6586 = vmatprep.subr.bf16.mxu0 %v5757_v47  ;;  %v5775_v47 = vunpack.c.h.s8.bf16 %v5499_v58  ;;  %v5787_v58 = vunpack.c.l.s8.bf16 %v5507_v16  ;;  %v5788_v23 = vunpack.c.l.s8.bf16 %v5508_v33 }
 0x7ad   :  { %6259 = vmatpush1.bf16.msra.mxu1 %v5754_v38  ;;  %v4949_v38 = vadd.f32 %v4948_v35, %v8111_v31  ;;  %v5791_v35 = vunpack.c.h.s8.bf16 %v5507_v16 }
 0x7ae   :  { %6587 = vmatpush1.bf16.msra.mxu0 %v5756_v50  ;;  %6260 = vmatprep.subr.bf16.mxu1 %v5759_v57  ;;  %v5774_v50 = vunpack.c.h.s8.bf16 %v5498_v0  ;;  %v4932_v57 = vrot.slane %v4931_v39, 2  ;;  %v5239_v0 = vrot.slane %v8082_v51, %v7788_v36 }
 0x7af   :  { %6588 = vmatprep.subr.bf16.mxu0 %v5761_v8  ;;  %v5776_v8 = vunpack.c.h.s8.bf16 %v5500_v20  ;;  %v4950_v12 = vrot.slane %v4949_v38, 2 }
 0x7b1   :  { %6261 = vmatpush1.bf16.msra.mxu1 %v5758_v6  ;;  %v5504_v6 = vld [vmem:[#allocation11 + $0xb0] sm:$0xff]  ;;  %v4951_v9 = vadd.f32 %v4950_v12, %v4949_v38  ;;  %v5337_v38 = vrot.slane %v8084_v11, %v7788_v36 }
 0x7b2   :  { %6589 = vmatpush1.bf16.msra.mxu0 %v5760_v48  ;;  %6262 = vmatprep.subr.bf16.mxu1 %v5763_v7  ;;  %v4933_v48 = vadd.f32 %v4932_v57, %v4931_v39  ;;  %v5780_v7 = vunpack.c.l.s8.bf16 %v5504_v6  ;;  %v7399_v56 = vpop.eup %7398 }
 0x7b3   :  { %6590 = vmatprep.subr.bf16.mxu0 %v5765_v14  ;;  %v5785_v14 = vunpack.c.h.s8.bf16 %v5505_v43  ;;  %v5206_v32 = vmul.f32 %v7399_v56, %v8092_v44  ;;  %v5515_v56 = vld [vmem:[#allocation11 + $0x108] sm:$0xff] }
 0x7b5   :  { %6263 = vmatpush1.bf16.msra.mxu1 %v5762_v19  ;;  %v5509_v19 = vld [vmem:[#allocation11 + $0xd8] sm:$0xff] }
 0x7b6   :  { %6591 = vmatpush1.bf16.msra.mxu0 %v5764_v26  ;;  %6264 = vmatprep.subr.bf16.mxu1 %v5767_v28  ;;  %v7401_v26 = vpop.eup %7400  ;;  %v4934_v28 = vrot.slane %v4933_v48, 1  ;;  %v5789_v40 = vunpack.c.l.s8.bf16 %v5509_v19  ;;  %v5793_v39 = vunpack.c.h.s8.bf16 %v5509_v19  ;;  %v5517_v19 = vld [vmem:[#allocation11 + $0x118] sm:$0xff] }
 0x7b7   :  { %6592 = vmatprep.subr.bf16.mxu0 %v5769_v29  ;;  %v5784_v29 = vunpack.c.h.s8.bf16 %v5504_v6 }
 0x7b8   :  { %v4935_v20 = vadd.f32 %v4934_v28, %v4933_v48 }
 0x7b9   :  { %6265 = vmatpush1.bf16.msra.mxu1 %v5766_v37  ;;  %v5227_v37 = vrot.slane %v8082_v51, %v7771_v25 }
 0x7ba   :  { %6593 = vmatpush1.bf16.msra.mxu0 %v5768_v13  ;;  %6266 = vmatprep.subr.bf16.mxu1 %v5771_v52  ;;  %v4952_v13 = vrot.slane %v4951_v9, 1  ;;  %v5209_v52 = vmul.f32 %v7401_v26, %v8095_v61  ;;  %v5016_v43 = vmul.f32 0.125, %v4935_v20  ;;  %v5519_v20 = vld [vmem:[#allocation11 + $0x128] sm:$0xff] }
 0x7bb   :  { %6594 = vmatprep.subr.bf16.mxu0 %v5773_v18  ;;  %v5786_v18 = vunpack.c.l.s8.bf16 %v5506_v42  ;;  %v5304_v44 = vmul.f32 %v5227_v37, %v5206_v32  ;;  %v5805_v32 = vunpack.c.l.s8.bf16 %v5517_v19  ;;  %v5516_v37 = vld [vmem:[#allocation11 + $0x110] sm:$0xff] }
 0x7bc   :  { %v5307_v61 = vmul.f32 %v5239_v0, %v5209_v52  ;;  %v8128_v48 = vsub.f32 %v8108_v22, %v5016_v43  ;;  %v5804_v0 = vunpack.c.l.s8.bf16 %v5516_v37 }
 0x7bd   :  { %6267 = vmatpush1.bf16.msra.mxu1 %v5770_v3  ;;  %v5325_v3 = vrot.slane %v8084_v11, %v7771_v25 }
 0x7be   :  { %6595 = vmatpush1.bf16.msra.mxu0 %v5772_v30  ;;  %6268 = vmatprep.subr.bf16.mxu1 %v5775_v47  ;;  %v5511_v30 = vld [vmem:[#allocation11 + $0xe8] sm:$0xff]  ;;  %v4953_v47 = vadd.f32 %v4952_v13, %v4951_v9  ;;  %v5048_v22 = vmul.f32 %v8128_v48, %v8128_v48 }
 0x7bf   :  { %6596 = vmatprep.subr.bf16.mxu0 %v5777_v41  ;;  %v5513_v41 = vld [vmem:[#allocation11 + $0xf8] sm:$0xff]  ;;  %v5795_v57 = vunpack.c.l.s8.bf16 %v5511_v30 }
 0x7c0   :  { %v5797_v15 = vunpack.c.l.s8.bf16 %v5513_v41  ;;  %v5019_v6 = vmul.f32 0.125, %v4953_v47  ;;  %v5074_v13 = vrot.slane %v5048_v22, 4  ;;  %v5808_v47 = vunpack.c.h.s8.bf16 %v5516_v37  ;;  %v5529_v37 = vld [vmem:[#allocation11 + $0x178] sm:$0xff] }
 0x7c1   :  { %6269 = vmatpush1.bf16.msra.mxu1 %v5774_v50  ;;  %v5792_v50 = vunpack.c.h.s8.bf16 %v5508_v33 }
 0x7c2   :  { %6597 = vmatpush1.bf16.msra.mxu0 %v5776_v8  ;;  %6270 = vmatprep.subr.bf16.mxu1 %v5779_v62  ;;  %v5510_v8 = vld [vmem:[#allocation11 + $0xe0] sm:$0xff]  ;;  %v5402_v62 = vadd.f32 %v5325_v3, %v5304_v44  ;;  %v8131_v9 = vsub.f32 %v8111_v31, %v5019_v6  ;;  %v5809_v44 = vunpack.c.h.s8.bf16 %v5517_v19  ;;  %v5521_v3 = vld [vmem:[#allocation11 + $0x138] sm:$0xff]  ;;  %v5524_v19 = vld [vmem:[#allocation11 + $0x150] sm:$0xff] }
 0x7c3   :  { %6598 = vmatprep.subr.bf16.mxu0 %v5781_v53  ;;  %v5512_v53 = vld [vmem:[#allocation11 + $0xf0] sm:$0xff]  ;;  %v5794_v12 = vunpack.c.l.s8.bf16 %v5510_v8 }
 0x7c4   :  { %v5434_v16 = vmul.f32 0.2, %v5402_v62  ;;  %vm5418_vm15 = vcmp.ge.f32.partialorder %v5402_v62, 0.0  ;;  %v5800_v28 = vunpack.c.h.s8.bf16 %v5512_v53  ;;  %v5051_v31 = vmul.f32 %v8131_v9, %v8131_v9 }
 0x7c5   :  { %6271 = vmatpush1.bf16.msra.mxu1 %v5778_v45  ;;  %v5405_v45 = vadd.f32 %v5337_v38, %v5307_v61  ;;  %v5518_v61 = vld [vmem:[#allocation11 + $0x120] sm:$0xff]  ;;  %v5520_v38 = vld [vmem:[#allocation11 + $0x130] sm:$0xff] }
 0x7c6   :  { %6599 = vmatpush1.bf16.msra.mxu0 %v5780_v7  ;;  %6272 = vmatprep.subr.bf16.mxu1 %v5783_v17  ;;  %v5796_v7 = vunpack.c.l.s8.bf16 %v5512_v53  ;;  %v5799_v17 = vunpack.c.h.s8.bf16 %v5511_v30  ;;  %v5450_v42 = vsel %vm5418_vm15, %v5402_v62, %v5434_v16  ;;  %v5075_v30 = vadd.f32 %v5074_v13, %v5048_v22  ;;  %v5523_v53 = vld [vmem:[#allocation11 + $0x148] sm:$0xff]  ;;  %v5522_v16 = vld [vmem:[#allocation11 + $0x140] sm:$0xff] }
 0x7c7   :  { %6600 = vmatprep.subr.bf16.mxu0 %v5785_v14  ;;  %v5801_v14 = vunpack.c.h.s8.bf16 %v5513_v41  ;;  %v5437_v26 = vmul.f32 0.2, %v5405_v45  ;;  %vm5421_vm0 = vcmp.ge.f32.partialorder %v5405_v45, 0.0  ;;  %v5466_v52 = vpack.c.bf16 %v5450_v42, %v5450_v42  ;;  %v5527_v42 = vld [vmem:[#allocation11 + $0x168] sm:$0xff] }
 0x7c8   :  { %v5811_v41 = vunpack.c.l.s8.bf16 %v5519_v20  ;;  %v5815_v62 = vunpack.c.h.s8.bf16 %v5519_v20  ;;  %v5824_v13 = vunpack.c.h.s8.bf16 %v5524_v19  ;;  %v5528_v20 = vld [vmem:[#allocation11 + $0x170] sm:$0xff] }
 0x7c9   :  { %6273 = vmatpush1.bf16.msra.mxu1 %v5782_v10  ;;  %v5798_v10 = vunpack.c.h.s8.bf16 %v5510_v8  ;;  %v5453_v33 = vsel %vm5421_vm0, %v5405_v45, %v5437_v26  ;;  %v5812_v8 = vunpack.c.l.s8.bf16 %v5520_v38  ;;  %v5814_v45 = vunpack.c.h.s8.bf16 %v5518_v61 }
 0x7ca   :  { %6601 = vmatpush1.bf16.msra.mxu0 %v5784_v29  ;;  %6274 = vmatprep.subr.bf16.mxu1 %v5787_v58  ;;  %v5803_v29 = vunpack.c.l.s8.bf16 %v5515_v56  ;;  %v5514_v58 = vld [vmem:[#allocation11 + $0x100] sm:$0xff]  ;;  %v5818_v26 = vunpack.c.l.s8.bf16 %v5522_v16 }
 0x7cb   :  { %6602 = vmatprep.subr.bf16.mxu0 %v5789_v40  ;;  %v5802_v40 = vunpack.c.l.s8.bf16 %v5514_v58 }
 0x7cd   :  { %6275 = vmatpush1.bf16.msra.mxu1 %v5786_v18  ;;  %v5807_v18 = vunpack.c.h.s8.bf16 %v5515_v56 }
 0x7ce   :  { %6603 = vmatpush1.bf16.msra.mxu0 %v5788_v23  ;;  %6276 = vmatprep.subr.bf16.mxu1 %v5791_v35  ;;  %v5092_v23 = vrot.slane %v5051_v31, 4  ;;  %v5469_v35 = vpack.c.bf16 %v5453_v33, %v5453_v33  ;;  %v4825_v33 = vrot.slane %v8042_v59, %v7885_v1 }
 0x7cf   :  { %6604 = vmatprep.subr.bf16.mxu0 %v5793_v39  ;;  %v5806_v39 = vunpack.c.h.s8.bf16 %v5514_v58 }
 0x7d0   :  { %v5093_v43 = vadd.f32 %v5092_v23, %v5051_v31  ;;  %v5822_v31 = vunpack.c.h.s8.bf16 %v5522_v16 }
 0x7d1   :  { %6277 = vmatpush1.bf16.msra.mxu1 %v5790_v21  ;;  %v5813_v21 = vunpack.c.l.s8.bf16 %v5521_v3 }
 0x7d2   :  { %6605 = vmatpush1.bf16.msra.mxu0 %v5792_v50  ;;  %6278 = vmatprep.subr.bf16.mxu1 %v5795_v57  ;;  %v5810_v50 = vunpack.c.l.s8.bf16 %v5518_v61  ;;  %v5076_v57 = vrot.slane %v5075_v30, 2  ;;  %v5094_v6 = vrot.slane %v5093_v43, 2  ;;  %v5531_v61 = vld [vmem:[#allocation11 + $0x188] sm:$0xff] }
 0x7d3   :  { %6606 = vmatprep.subr.bf16.mxu0 %v5797_v15  ;;  %v5817_v15 = vunpack.c.h.s8.bf16 %v5521_v3 }
 0x7d5   :  { %6279 = vmatpush1.bf16.msra.mxu1 %v5794_v12  ;;  %v5525_v12 = vld [vmem:[#allocation11 + $0x158] sm:$0xff] }
 0x7d6   :  { %6607 = vmatpush1.bf16.msra.mxu0 %v5796_v7  ;;  %6280 = vmatprep.subr.bf16.mxu1 %v5799_v17  ;;  %v5077_v7 = vadd.f32 %v5076_v57, %v5075_v30  ;;  %v5816_v17 = vunpack.c.h.s8.bf16 %v5520_v38  ;;  %v5821_v56 = vunpack.c.l.s8.bf16 %v5525_v12  ;;  %v5825_v58 = vunpack.c.h.s8.bf16 %v5525_v12 }
 0x7d7   :  { %6608 = vmatprep.subr.bf16.mxu0 %v5801_v14  ;;  %v5819_v14 = vunpack.c.l.s8.bf16 %v5523_v53  ;;  %v5828_v30 = vunpack.c.l.s8.bf16 %v5528_v20 }
 0x7d8   :  { %v5078_v22 = vrot.slane %v5077_v7, 1 }
 0x7d9   :  { %6281 = vmatpush1.bf16.msra.mxu1 %v5798_v10  ;;  %v5095_v10 = vadd.f32 %v5094_v6, %v5093_v43  ;;  %v5533_v43 = vld [vmem:[#allocation11 + $0x198] sm:$0xff]  ;;  %v5532_v6 = vld [vmem:[#allocation11 + $0x190] sm:$0xff] }
 0x7da   :  { %6609 = vmatpush1.bf16.msra.mxu0 %v5800_v28  ;;  %6291 = vmatprep.subr.bf16.mxu1 %v5803_v29  ;;  %v5820_v28 = vunpack.c.l.s8.bf16 %v5524_v19  ;;  %v5823_v29 = vunpack.c.h.s8.bf16 %v5523_v53  ;;  %v5837_v53 = vunpack.c.l.s8.bf16 %v5533_v43  ;;  %v5841_v16 = vunpack.c.h.s8.bf16 %v5533_v43 }
 0x7db   :  { %6619 = vmatprep.subr.bf16.mxu0 %v5805_v32  ;;  %v5096_v32 = vrot.slane %v5095_v10, 1 }
 0x7dc   :  { %6283 = vmatmul.mubr.bf16.vlgmr.msra.gmra.mrb[28].mxu1 %v5466_v52 }
 0x7dd   :  { %6611 = vmatmul.mubr.bf16.vlgmr.msra.gmra.mrb[32].mxu0 %v5466_v52  ;;  %6292 = vmatpush1.bf16.msra.mxu1 %v5802_v40  ;;  %v5079_v40 = vadd.f32 %v5078_v22, %v5077_v7  ;;  %v5827_v52 = vunpack.c.l.s8.bf16 %v5527_v42  ;;  %v5097_v23 = vadd.f32 %v5096_v32, %v5095_v10  ;;  %v5537_v10 = vld [vmem:[#allocation11 + $0x1b8] sm:$0xff]  ;;  %v5536_v32 = vld [vmem:[#allocation11 + $0x1b0] sm:$0xff] }
 0x7de   :  { %6323 = vmatprep.mubr.bf16.mxu1 %v5469_v35  ;;  %6620 = vmatpush1.bf16.msra.mxu0 %v5804_v0  ;;  %v5526_v0 = vld [vmem:[#allocation11 + $0x160] sm:$0xff] }
 0x7df   :  { %6651 = vmatprep.mubr.bf16.mxu0 %v5469_v35  ;;  %6293 = vmatprep.subr.bf16.mxu1 %v5807_v18  ;;  %v5829_v18 = vunpack.c.l.s8.bf16 %v5529_v37  ;;  %v4837_v35 = vrot.slane %v8042_v59, %v7891_v54  ;;  %v5160_v3 = vmul.f32 0.125, %v5079_v40 }
 0x7e0   :  { %6621 = vmatprep.subr.bf16.mxu0 %v5809_v44  ;;  %v5826_v44 = vunpack.c.l.s8.bf16 %v5526_v0 }
 0x7e1   :  { %6294 = vmatpush1.bf16.msra.mxu1 %v5806_v39  ;;  %v8142_v39 = vmul.f32 %v4825_v33, %v8022_v63  ;;  %v8145_v38 = vmul.f32 %v4837_v35, %v8028_v4  ;;  %v5176_v57 = vadd.f32 0.8, %v5160_v3  ;;  %v5832_v63 = vunpack.c.h.s8.bf16 %v5528_v20 }
 0x7e2   :  { %6622 = vmatpush1.bf16.msra.mxu0 %v5808_v47  ;;  %6295 = vmatprep.subr.bf16.mxu1 %v5811_v41  ;;  %v5831_v47 = vunpack.c.h.s8.bf16 %v5527_v42  ;;  %v5833_v41 = vunpack.c.h.s8.bf16 %v5529_v37  ;;  %v5845_v42 = vunpack.c.l.s8.bf16 %v5537_v10  ;;  %v5844_v33 = vunpack.c.l.s8.bf16 %v5536_v32 }
 0x7e3   :  { %6623 = vmatprep.subr.bf16.mxu0 %v5813_v21  ;;  %v5163_v21 = vmul.f32 0.125, %v5097_v23  ;;  %7402 = vrsqrt.f32 %v5176_v57  ;;  %v5541_v23 = vld [vmem:[#allocation11 + $0x1d8] sm:$0xff] }
 0x7e4   :  { %v5853_v43 = vunpack.c.l.s8.bf16 %v5541_v23 }
 0x7e5   :  { %6296 = vmatpush1.bf16.msra.mxu1 %v5810_v50  ;;  %v5830_v50 = vunpack.c.h.s8.bf16 %v5526_v0  ;;  %v5179_v12 = vadd.f32 0.8, %v5163_v21  ;;  %v5539_v0 = vld [vmem:[#allocation11 + $0x1c8] sm:$0xff]  ;;  %v5235_v21 = vrot.slane %v8082_v51, %v7785_v34 }
 0x7e6   :  { %6624 = vmatpush1.bf16.msra.mxu0 %v5812_v8  ;;  %6297 = vmatprep.subr.bf16.mxu1 %v5815_v62  ;;  %v4942_v8 = vrot.slane %v8142_v39, 4  ;;  %v5835_v62 = vunpack.c.l.s8.bf16 %v5531_v61 }
 0x7e7   :  { %6625 = vmatprep.subr.bf16.mxu0 %v5817_v15  ;;  %v5530_v15 = vld [vmem:[#allocation11 + $0x180] sm:$0xff]  ;;  %7404 = vrsqrt.f32 %v5179_v12  ;;  %v5333_v12 = vrot.slane %v8084_v11, %v7785_v34 }
 0x7e8   :  { %v5834_v4 = vunpack.c.l.s8.bf16 %v5530_v15  ;;  %v4943_v7 = vadd.f32 %v4942_v8, %v8142_v39 }
 0x7e9   :  { %6298 = vmatpush1.bf16.msra.mxu1 %v5814_v45  ;;  %v4960_v45 = vrot.slane %v8145_v38, 4 }
 0x7ea   :  { %6626 = vmatpush1.bf16.msra.mxu0 %v5816_v17  ;;  %6299 = vmatprep.subr.bf16.mxu1 %v5819_v14  ;;  %v5836_v17 = vunpack.c.l.s8.bf16 %v5532_v6  ;;  %v5839_v14 = vunpack.c.h.s8.bf16 %v5531_v61  ;;  %v4944_v22 = vrot.slane %v4943_v7, 2 }
 0x7eb   :  { %6627 = vmatprep.subr.bf16.mxu0 %v5821_v56  ;;  %v5535_v56 = vld [vmem:[#allocation11 + $0x1a8] sm:$0xff]  ;;  %v4961_v19 = vadd.f32 %v4960_v45, %v8145_v38  ;;  %v5857_v45 = vunpack.c.h.s8.bf16 %v5541_v23 }
 0x7ec   :  { %v4945_v40 = vadd.f32 %v4944_v22, %v4943_v7 }
 0x7ed   :  { %6300 = vmatpush1.bf16.msra.mxu1 %v5818_v26  ;;  %v5838_v26 = vunpack.c.h.s8.bf16 %v5530_v15  ;;  %v4962_v37 = vrot.slane %v4961_v19, 2 }
 0x7ee   :  { %6628 = vmatpush1.bf16.msra.mxu0 %v5820_v28  ;;  %6301 = vmatprep.subr.bf16.mxu1 %v5823_v29  ;;  %v5840_v28 = vunpack.c.h.s8.bf16 %v5532_v6  ;;  %v5843_v29 = vunpack.c.l.s8.bf16 %v5535_v56  ;;  %v4946_v3 = vrot.slane %v4945_v40, 1  ;;  %v5855_v6 = vunpack.c.h.s8.bf16 %v5539_v0 }
 0x7ef   :  { %6629 = vmatprep.subr.bf16.mxu0 %v5825_v58  ;;  %v5534_v58 = vld [vmem:[#allocation11 + $0x1a0] sm:$0xff]  ;;  %v4963_v20 = vadd.f32 %v4962_v37, %v4961_v19 }
 0x7f0   :  { %v5846_v35 = vunpack.c.h.s8.bf16 %v5534_v58  ;;  %v4947_v15 = vadd.f32 %v4946_v3, %v4945_v40  ;;  %v5546_v3 = vld [vmem:[#allocation11 + $0x200] sm:$0xff] }
 0x7f1   :  { %6302 = vmatpush1.bf16.msra.mxu1 %v5822_v31  ;;  %v5842_v31 = vunpack.c.l.s8.bf16 %v5534_v58  ;;  %v4964_v57 = vrot.slane %v4963_v20, 1 }
 0x7f2   :  { %6630 = vmatpush1.bf16.msra.mxu0 %v5824_v13  ;;  %6303 = vmatprep.subr.bf16.mxu1 %v5827_v52  ;;  %v5847_v13 = vunpack.c.h.s8.bf16 %v5535_v56  ;;  %v5849_v52 = vunpack.c.h.s8.bf16 %v5537_v10  ;;  %v5018_v56 = vmul.f32 0.125, %v4947_v15 }
 0x7f3   :  { %6631 = vmatprep.subr.bf16.mxu0 %v5829_v18  ;;  %v7403_v18 = vpop.eup %7402  ;;  %v4965_v7 = vadd.f32 %v4964_v57, %v4963_v20 }
 0x7f4   :  { %v5208_v61 = vmul.f32 %v7403_v18, %v8128_v48  ;;  %v8162_v37 = vsub.f32 %v8142_v39, %v5018_v56  ;;  %v5549_v18 = vld [vmem:[#allocation11 + $0x218] sm:$0xff] }
 0x7f5   :  { %6304 = vmatpush1.bf16.msra.mxu1 %v5826_v44  ;;  %v7405_v44 = vpop.eup %7404  ;;  %v5021_v58 = vmul.f32 0.125, %v4965_v7  ;;  %v5550_v7 = vld [vmem:[#allocation11 + $0x220] sm:$0xff] }
 0x7f6   :  { %6632 = vmatpush1.bf16.msra.mxu0 %v5828_v30  ;;  %6305 = vmatprep.subr.bf16.mxu1 %v5831_v47  ;;  %v5848_v30 = vunpack.c.h.s8.bf16 %v5536_v32  ;;  %v5851_v47 = vunpack.c.l.s8.bf16 %v5539_v0  ;;  %v5211_v8 = vmul.f32 %v7405_v44, %v8131_v9  ;;  %v5306_v48 = vmul.f32 %v5235_v21, %v5208_v61 }
 0x7f7   :  { %6633 = vmatprep.subr.bf16.mxu0 %v5833_v41  ;;  %v5538_v41 = vld [vmem:[#allocation11 + $0x1c0] sm:$0xff]  ;;  %v8165_v0 = vsub.f32 %v8145_v38, %v5021_v58  ;;  %v5050_v39 = vmul.f32 %v8162_v37, %v8162_v37  ;;  %v5866_v61 = vunpack.c.l.s8.bf16 %v5546_v3  ;;  %v5878_v58 = vunpack.c.h.s8.bf16 %v5550_v7 }
 0x7f8   :  { %v5404_v22 = vadd.f32 %v5333_v12, %v5306_v48  ;;  %v5870_v48 = vunpack.c.h.s8.bf16 %v5546_v3 }
 0x7f9   :  { %6306 = vmatpush1.bf16.msra.mxu1 %v5830_v50  ;;  %v5540_v50 = vld [vmem:[#allocation11 + $0x1d0] sm:$0xff]  ;;  %v5053_v38 = vmul.f32 %v8165_v0, %v8165_v0 }
 0x7fa   :  { %6634 = vmatpush1.bf16.msra.mxu0 %v5832_v63  ;;  %6307 = vmatprep.subr.bf16.mxu1 %v5835_v62  ;;  %v5247_v63 = vrot.slane %v8082_v51, %v7888_v60  ;;  %v5850_v62 = vunpack.c.l.s8.bf16 %v5538_v41  ;;  %v5856_v19 = vunpack.c.h.s8.bf16 %v5540_v50  ;;  %vm5420_vm1 = vcmp.ge.f32.partialorder %v5404_v22, 0.0 }
 0x7fb   :  { %6635 = vmatprep.subr.bf16.mxu0 %v5837_v53  ;;  %v5852_v53 = vunpack.c.l.s8.bf16 %v5540_v50 }
 0x7fc   :  { %v5309_v9 = vmul.f32 %v5247_v63, %v5211_v8  ;;  %v5551_v63 = vld [vmem:[#allocation11 + $0x228] sm:$0xff] }
 0x7fd   :  { %6308 = vmatpush1.bf16.msra.mxu1 %v5834_v4  ;;  %v5543_v4 = vld [vmem:[#allocation11 + $0x1e8] sm:$0xff] }
 0x7fe   :  { %6636 = vmatpush1.bf16.msra.mxu0 %v5836_v17  ;;  %6309 = vmatprep.subr.bf16.mxu1 %v5839_v14  ;;  %v5545_v17 = vld [vmem:[#allocation11 + $0x1f8] sm:$0xff]  ;;  %v5854_v14 = vunpack.c.h.s8.bf16 %v5538_v41  ;;  %v5859_v10 = vunpack.c.l.s8.bf16 %v5543_v4  ;;  %v5863_v40 = vunpack.c.h.s8.bf16 %v5543_v4  ;;  %v5548_v41 = vld [vmem:[#allocation11 + $0x210] sm:$0xff]  ;;  %v5875_v4 = vunpack.c.l.s8.bf16 %v5551_v63 }
 0x7ff   :  { %6637 = vmatprep.subr.bf16.mxu0 %v5841_v16  ;;  %v5345_v16 = vrot.slane %v8084_v11, %v7888_v60  ;;  %v5868_v57 = vunpack.c.l.s8.bf16 %v5548_v41 }
 0x801   :  { %6310 = vmatpush1.bf16.msra.mxu1 %v5838_v26  ;;  %v5542_v26 = vld [vmem:[#allocation11 + $0x1e0] sm:$0xff]  ;;  %v5407_v32 = vadd.f32 %v5345_v16, %v5309_v9  ;;  %v5552_v9 = vld [vmem:[#allocation11 + $0x230] sm:$0xff]  ;;  %v5874_v16 = vunpack.c.l.s8.bf16 %v5550_v7  ;;  %v5563_v7 = vld [vmem:[#allocation11 + $0x288] sm:$0xff] }
 0x802   :  { %6638 = vmatpush1.bf16.msra.mxu0 %v5840_v28  ;;  %6311 = vmatprep.subr.bf16.mxu1 %v5843_v29  ;;  %v5861_v28 = vunpack.c.l.s8.bf16 %v5545_v17  ;;  %v5544_v29 = vld [vmem:[#allocation11 + $0x1f0] sm:$0xff]  ;;  %v5862_v20 = vunpack.c.h.s8.bf16 %v5542_v26 }
 0x803   :  { %6639 = vmatprep.subr.bf16.mxu0 %v5845_v42  ;;  %v5858_v42 = vunpack.c.l.s8.bf16 %v5542_v26  ;;  %v5439_v23 = vmul.f32 0.2, %v5407_v32  ;;  %vm5423_vm2 = vcmp.ge.f32.partialorder %v5407_v32, 0.0 }
 0x805   :  { %6312 = vmatpush1.bf16.msra.mxu1 %v5842_v31  ;;  %v5860_v31 = vunpack.c.l.s8.bf16 %v5544_v29  ;;  %v5455_v21 = vsel %vm5423_vm2, %v5407_v32, %v5439_v23  ;;  %v5880_v32 = vunpack.c.h.s8.bf16 %v5552_v9 }
 0x806   :  { %6640 = vmatpush1.bf16.msra.mxu0 %v5844_v33  ;;  %6313 = vmatprep.subr.bf16.mxu1 %v5847_v13  ;;  %v5865_v33 = vunpack.c.h.s8.bf16 %v5545_v17  ;;  %v5436_v13 = vmul.f32 0.2, %v5404_v22  ;;  %v5471_v15 = vpack.c.bf16 %v5455_v21, %v5455_v21 }
 0x807   :  { %6641 = vmatprep.subr.bf16.mxu0 %v5849_v52  ;;  %v5547_v52 = vld [vmem:[#allocation11 + $0x208] sm:$0xff] }
 0x808   :  { %v5867_v44 = vunpack.c.l.s8.bf16 %v5547_v52  ;;  %v5871_v8 = vunpack.c.h.s8.bf16 %v5547_v52 }
 0x809   :  { %6314 = vmatpush1.bf16.msra.mxu1 %v5846_v35  ;;  %v5864_v35 = vunpack.c.h.s8.bf16 %v5544_v29  ;;  %v5557_v29 = vld [vmem:[#allocation11 + $0x258] sm:$0xff] }
 0x80a   :  { %6642 = vmatpush1.bf16.msra.mxu0 %v5848_v30  ;;  %6315 = vmatprep.subr.bf16.mxu1 %v5851_v47  ;;  %v5452_v30 = vsel %vm5420_vm1, %v5404_v22, %v5436_v13  ;;  %v5869_v47 = vunpack.c.l.s8.bf16 %v5549_v18  ;;  %v5555_v22 = vld [vmem:[#allocation11 + $0x248] sm:$0xff]  ;;  %v5556_v13 = vld [vmem:[#allocation11 + $0x250] sm:$0xff]  ;;  %v5889_v3 = vunpack.c.h.s8.bf16 %v5557_v29 }
 0x80b   :  { %6643 = vmatprep.subr.bf16.mxu0 %v5853_v43  ;;  %v5086_v43 = vrot.slane %v5050_v39, 4  ;;  %v5468_v50 = vpack.c.bf16 %v5452_v30, %v5452_v30  ;;  %v5559_v30 = vld [vmem:[#allocation11 + $0x268] sm:$0xff] }
 0x80d   :  { %6316 = vmatpush1.bf16.msra.mxu1 %v5850_v62  ;;  %v5104_v62 = vrot.slane %v5053_v38, 4  ;;  %v5087_v12 = vadd.f32 %v5086_v43, %v5050_v39  ;;  %v4833_v43 = vrot.slane %v8042_v59, %v7918_v5 }
 0x80e   :  { %6644 = vmatpush1.bf16.msra.mxu0 %v5852_v53  ;;  %6317 = vmatprep.subr.bf16.mxu1 %v5855_v6  ;;  %v5873_v53 = vunpack.c.h.s8.bf16 %v5549_v18  ;;  %v5553_v6 = vld [vmem:[#allocation11 + $0x238] sm:$0xff] }
 0x80f   :  { %6645 = vmatprep.subr.bf16.mxu0 %v5857_v45  ;;  %v5872_v45 = vunpack.c.h.s8.bf16 %v5548_v41  ;;  %v5877_v17 = vunpack.c.l.s8.bf16 %v5553_v6  ;;  %v5088_v56 = vrot.slane %v5087_v12, 2  ;;  %v5881_v26 = vunpack.c.h.s8.bf16 %v5553_v6  ;;  %v4801_v18 = vld [vmem:[#allocation13 + $0xc1] ss:$8 sm:$0xf] }
 0x811   :  { %6318 = vmatpush1.bf16.msra.mxu1 %v5854_v14  ;;  %v5105_v14 = vadd.f32 %v5104_v62, %v5053_v38  ;;  %v5561_v38 = vld [vmem:[#allocation11 + $0x278] sm:$0xff]  ;;  %v5560_v62 = vld [vmem:[#allocation11 + $0x270] sm:$0xff] }
 0x812   :  { %6646 = vmatpush1.bf16.msra.mxu0 %v5856_v19  ;;  %6319 = vmatprep.subr.bf16.mxu1 %v5859_v10  ;;  %v5876_v19 = vunpack.c.l.s8.bf16 %v5552_v9  ;;  %v5879_v10 = vunpack.c.h.s8.bf16 %v5551_v63  ;;  %v5893_v63 = vunpack.c.l.s8.bf16 %v5561_v38  ;;  %v5892_v59 = vunpack.c.l.s8.bf16 %v5560_v62 }
 0x813   :  { %6647 = vmatprep.subr.bf16.mxu0 %v5861_v28  ;;  %v5106_v28 = vrot.slane %v5105_v14, 2 }
 0x815   :  { %6320 = vmatpush1.bf16.msra.mxu1 %v5858_v42  ;;  %v5089_v42 = vadd.f32 %v5088_v56, %v5087_v12  ;;  %v5107_v52 = vadd.f32 %v5106_v28, %v5105_v14  ;;  %v8178_v12 = vmul.f32 %v4833_v43, %v8024_v55  ;;  %v5565_v14 = vld [vmem:[#allocation11 + $0x298] sm:$0xff]  ;;  %v5896_v55 = vunpack.c.h.s8.bf16 %v5560_v62  ;;  %v5564_v28 = vld [vmem:[#allocation11 + $0x290] sm:$0xff] }
 0x816   :  { %6648 = vmatpush1.bf16.msra.mxu0 %v5860_v31  ;;  %6321 = vmatprep.subr.bf16.mxu1 %v5863_v40  ;;  %v5883_v31 = vunpack.c.l.s8.bf16 %v5555_v22  ;;  %v5554_v40 = vld [vmem:[#allocation11 + $0x240] sm:$0xff] }
 0x817   :  { %6649 = vmatprep.subr.bf16.mxu0 %v5865_v33  ;;  %v5885_v33 = vunpack.c.l.s8.bf16 %v5557_v29  ;;  %v5882_v23 = vunpack.c.l.s8.bf16 %v5554_v40  ;;  %v5090_v39 = vrot.slane %v5089_v42, 1 }
 0x819   :  { %6322 = vmatpush1.bf16.msra.mxu1 %v5862_v20  ;;  %v4802_v20 = vld [vmem:[#allocation13 + $0xc1] ss:$8 sm:$0xf0]  ;;  %v5091_v21 = vadd.f32 %v5090_v39, %v5089_v42 }
 0x81a   :  { %6650 = vmatpush1.bf16.msra.mxu0 %v5864_v35  ;;  %6332 = vmatprep.subr.bf16.mxu1 %v5867_v44  ;;  %v5884_v35 = vunpack.c.l.s8.bf16 %v5556_v13  ;;  %v5887_v44 = vunpack.c.h.s8.bf16 %v5555_v22  ;;  %v8171_v41 = vor.u32 %v4802_v20, %v4801_v18  ;;  %v5901_v22 = vunpack.c.l.s8.bf16 %v5565_v14 }
 0x81b   :  { %6660 = vmatprep.subr.bf16.mxu0 %v5869_v47  ;;  %v5108_v47 = vrot.slane %v5107_v52, 1 }
 0x81c   :  { %6324 = vmatmul.mubr.bf16.vlgmr.msra.gmra.mrb[28].mxu1 %v5468_v50 }
 0x81d   :  { %6652 = vmatmul.mubr.bf16.vlgmr.msra.gmra.mrb[32].mxu0 %v5468_v50  ;;  %6333 = vmatpush1.bf16.msra.mxu1 %v5866_v61  ;;  %v5886_v61 = vunpack.c.h.s8.bf16 %v5554_v40  ;;  %v5888_v50 = vunpack.c.h.s8.bf16 %v5556_v13  ;;  %v5905_v40 = vunpack.c.h.s8.bf16 %v5565_v14 }
 0x81e   :  { %6364 = vmatprep.mubr.bf16.mxu1 %v5471_v15  ;;  %6661 = vmatpush1.bf16.msra.mxu0 %v5868_v57  ;;  %v5891_v57 = vunpack.c.l.s8.bf16 %v5559_v30 }
 0x81f   :  { %6692 = vmatprep.mubr.bf16.mxu0 %v5471_v15  ;;  %6334 = vmatprep.subr.bf16.mxu1 %v5871_v8  ;;  %v5558_v8 = vld [vmem:[#allocation11 + $0x260] sm:$0xff]  ;;  %v5109_v15 = vadd.f32 %v5108_v47, %v5107_v52  ;;  %v5569_v52 = vld [vmem:[#allocation11 + $0x2b8] sm:$0xff] }
 0x820   :  { %6662 = vmatprep.subr.bf16.mxu0 %v5873_v53  ;;  %v4845_v53 = vrot.slane %v8171_v41, %v7774_v27  ;;  %v5890_v6 = vunpack.c.l.s8.bf16 %v5558_v8  ;;  %v5913_v43 = vunpack.c.h.s8.bf16 %v5569_v52 }
 0x821   :  { %6335 = vmatpush1.bf16.msra.mxu1 %v5870_v48  ;;  %v5162_v48 = vmul.f32 0.125, %v5091_v21 }
 0x822   :  { %6663 = vmatpush1.bf16.msra.mxu0 %v5872_v45  ;;  %6336 = vmatprep.subr.bf16.mxu1 %v5875_v4  ;;  %v5895_v45 = vunpack.c.h.s8.bf16 %v5559_v30  ;;  %v5897_v4 = vunpack.c.h.s8.bf16 %v5561_v38  ;;  %v8181_v9 = vmul.f32 %v4845_v53, %v8068_v2 }
 0x823   :  { %6664 = vmatprep.subr.bf16.mxu0 %v5877_v17  ;;  %v5165_v17 = vmul.f32 0.125, %v5109_v15  ;;  %v5178_v56 = vadd.f32 0.8, %v5162_v48 }
 0x825   :  { %6337 = vmatpush1.bf16.msra.mxu1 %v5874_v16  ;;  %v5894_v16 = vunpack.c.h.s8.bf16 %v5558_v8  ;;  %v5181_v29 = vadd.f32 0.8, %v5165_v17  ;;  %7406 = vrsqrt.f32 %v5178_v56  ;;  %v5572_v17 = vld [vmem:[#allocation11 + $0x2d0] sm:$0xff]  ;;  %v5255_v56 = vrot.slane %v8082_v51, %v7891_v54 }
 0x826   :  { %6665 = vmatpush1.bf16.msra.mxu0 %v5876_v19  ;;  %6338 = vmatprep.subr.bf16.mxu1 %v5879_v10  ;;  %v4954_v19 = vrot.slane %v8178_v12, 4  ;;  %v5899_v10 = vunpack.c.l.s8.bf16 %v5563_v7 }
 0x827   :  { %6666 = vmatprep.subr.bf16.mxu0 %v5881_v26  ;;  %v5562_v26 = vld [vmem:[#allocation11 + $0x280] sm:$0xff]  ;;  %7408 = vrsqrt.f32 %v5181_v29  ;;  %v5575_v29 = vld [vmem:[#allocation11 + $0x2e8] sm:$0xff] }
 0x828   :  { %v5898_v2 = vunpack.c.l.s8.bf16 %v5562_v26  ;;  %v4955_v42 = vadd.f32 %v4954_v19, %v8178_v12  ;;  %v5902_v18 = vunpack.c.h.s8.bf16 %v5562_v26 }
 0x829   :  { %6339 = vmatpush1.bf16.msra.mxu1 %v5878_v58  ;;  %v4972_v58 = vrot.slane %v8181_v9, 4 }
 0x82a   :  { %6667 = vmatpush1.bf16.msra.mxu0 %v5880_v32  ;;  %6340 = vmatprep.subr.bf16.mxu1 %v5883_v31  ;;  %v5900_v32 = vunpack.c.l.s8.bf16 %v5564_v28  ;;  %v5903_v31 = vunpack.c.h.s8.bf16 %v5563_v7  ;;  %v4956_v20 = vrot.slane %v4955_v42, 2 }
 0x82b   :  { %6668 = vmatprep.subr.bf16.mxu0 %v5885_v33  ;;  %v5567_v33 = vld [vmem:[#allocation11 + $0x2a8] sm:$0xff]  ;;  %v4973_v13 = vadd.f32 %v4972_v58, %v8181_v9 }
 0x82c   :  { %v5907_v39 = vunpack.c.l.s8.bf16 %v5567_v33  ;;  %v4957_v38 = vadd.f32 %v4956_v20, %v4955_v42  ;;  %v5911_v21 = vunpack.c.h.s8.bf16 %v5567_v33  ;;  %v5923_v33 = vunpack.c.l.s8.bf16 %v5575_v29  ;;  %v5576_v20 = vld [vmem:[#allocation11 + $0x2f0] sm:$0xff] }
 0x82d   :  { %6341 = vmatpush1.bf16.msra.mxu1 %v5882_v23  ;;  %v5904_v23 = vunpack.c.h.s8.bf16 %v5564_v28  ;;  %v4974_v30 = vrot.slane %v4973_v13, 2 }
 0x82e   :  { %6669 = vmatpush1.bf16.msra.mxu0 %v5884_v35  ;;  %6342 = vmatprep.subr.bf16.mxu1 %v5887_v44  ;;  %v5566_v35 = vld [vmem:[#allocation11 + $0x2a0] sm:$0xff]  ;;  %v5909_v44 = vunpack.c.l.s8.bf16 %v5569_v52  ;;  %v4958_v53 = vrot.slane %v4957_v38, 1 }
 0x82f   :  { %6670 = vmatprep.subr.bf16.mxu0 %v5889_v3  ;;  %v5568_v3 = vld [vmem:[#allocation11 + $0x2b0] sm:$0xff]  ;;  %v5906_v47 = vunpack.c.l.s8.bf16 %v5566_v35  ;;  %v4975_v8 = vadd.f32 %v4974_v30, %v4973_v13  ;;  %v5910_v62 = vunpack.c.h.s8.bf16 %v5566_v35  ;;  %v5574_v13 = vld [vmem:[#allocation11 + $0x2e0] sm:$0xff]  ;;  %v5927_v30 = vunpack.c.h.s8.bf16 %v5575_v29 }
 0x831   :  { %6343 = vmatpush1.bf16.msra.mxu1 %v5886_v61  ;;  %v5908_v61 = vunpack.c.l.s8.bf16 %v5568_v3  ;;  %v4976_v14 = vrot.slane %v4975_v8, 1 }
 0x832   :  { %6671 = vmatpush1.bf16.msra.mxu0 %v5888_v50  ;;  %6344 = vmatprep.subr.bf16.mxu1 %v5891_v57  ;;  %v5571_v50 = vld [vmem:[#allocation11 + $0x2c8] sm:$0xff]  ;;  %v7407_v57 = vpop.eup %7406 }
 0x833   :  { %6672 = vmatprep.subr.bf16.mxu0 %v5893_v63  ;;  %v5573_v63 = vld [vmem:[#allocation11 + $0x2d8] sm:$0xff]  ;;  %v7409_v15 = vpop.eup %7408  ;;  %v5915_v48 = vunpack.c.l.s8.bf16 %v5571_v50  ;;  %v5919_v26 = vunpack.c.h.s8.bf16 %v5571_v50  ;;  %v4977_v58 = vadd.f32 %v4976_v14, %v4975_v8  ;;  %v5926_v50 = vunpack.c.h.s8.bf16 %v5574_v13  ;;  %v5583_v14 = vld [vmem:[#allocation11 + $0x328] sm:$0xff] }
 0x834   :  { %v5917_v7 = vunpack.c.l.s8.bf16 %v5573_v63  ;;  %v5921_v28 = vunpack.c.h.s8.bf16 %v5573_v63  ;;  %v5928_v8 = vunpack.c.h.s8.bf16 %v5576_v20 }
 0x835   :  { %6345 = vmatpush1.bf16.msra.mxu1 %v5890_v6  ;;  %v5912_v6 = vunpack.c.h.s8.bf16 %v5568_v3  ;;  %v5924_v3 = vunpack.c.l.s8.bf16 %v5576_v20 }
 0x836   :  { %6673 = vmatpush1.bf16.msra.mxu0 %v5892_v59  ;;  %6346 = vmatprep.subr.bf16.mxu1 %v5895_v45  ;;  %v5570_v59 = vld [vmem:[#allocation11 + $0x2c0] sm:$0xff]  ;;  %v5210_v45 = vmul.f32 %v7407_v57, %v8162_v37 }
 0x837   :  { %6674 = vmatprep.subr.bf16.mxu0 %v5897_v4  ;;  %v5243_v4 = vrot.slane %v8082_v51, %v7885_v1  ;;  %v5914_v19 = vunpack.c.l.s8.bf16 %v5570_v59  ;;  %v5918_v42 = vunpack.c.h.s8.bf16 %v5570_v59 }
 0x839   :  { %6347 = vmatpush1.bf16.msra.mxu1 %v5894_v16  ;;  %v5213_v16 = vmul.f32 %v7409_v15, %v8165_v0  ;;  %v5308_v37 = vmul.f32 %v5243_v4, %v5210_v45 }
 0x83a   :  { %6675 = vmatpush1.bf16.msra.mxu0 %v5896_v55  ;;  %6348 = vmatprep.subr.bf16.mxu1 %v5899_v10  ;;  %v4959_v55 = vadd.f32 %v4958_v53, %v4957_v38  ;;  %v5916_v10 = vunpack.c.l.s8.bf16 %v5572_v17 }
 0x83b   :  { %6676 = vmatprep.subr.bf16.mxu0 %v5901_v22  ;;  %v5341_v22 = vrot.slane %v8084_v11, %v7885_v1  ;;  %v5311_v0 = vmul.f32 %v5255_v56, %v5213_v16 }
 0x83d   :  { %6349 = vmatpush1.bf16.msra.mxu1 %v5898_v2  ;;  %v5577_v2 = vld [vmem:[#allocation11 + $0x2f8] sm:$0xff]  ;;  %v5406_v52 = vadd.f32 %v5341_v22, %v5308_v37  ;;  %v5939_v22 = vunpack.c.l.s8.bf16 %v5583_v14 }
 0x83e   :  { %6677 = vmatpush1.bf16.msra.mxu0 %v5900_v32  ;;  %6350 = vmatprep.subr.bf16.mxu1 %v5903_v31  ;;  %v5353_v32 = vrot.slane %v8084_v11, %v7891_v54  ;;  %v5020_v31 = vmul.f32 0.125, %v4959_v55  ;;  %v5585_v55 = vld [vmem:[#allocation11 + $0x338] sm:$0xff] }
 0x83f   :  { %6678 = vmatprep.subr.bf16.mxu0 %v5905_v40  ;;  %v5920_v40 = vunpack.c.h.s8.bf16 %v5572_v17  ;;  %v5438_v38 = vmul.f32 0.2, %v5406_v52  ;;  %vm5422_vm3 = vcmp.ge.f32.partialorder %v5406_v52, 0.0  ;;  %v5941_v29 = vunpack.c.l.s8.bf16 %v5585_v55 }
 0x840   :  { %v5409_v35 = vadd.f32 %v5353_v32, %v5311_v0 }
 0x841   :  { %6351 = vmatpush1.bf16.msra.mxu1 %v5902_v18  ;;  %v5925_v18 = vunpack.c.l.s8.bf16 %v5577_v2  ;;  %v5454_v15 = vsel %vm5422_vm3, %v5406_v52, %v5438_v38  ;;  %v5589_v52 = vld [vmem:[#allocation11 + $0x358] sm:$0xff] }
 0x842   :  { %6679 = vmatpush1.bf16.msra.mxu0 %v5904_v23  ;;  %6352 = vmatprep.subr.bf16.mxu1 %v5907_v39  ;;  %v5023_v23 = vmul.f32 0.125, %v4977_v58  ;;  %v5922_v39 = vunpack.c.l.s8.bf16 %v5574_v13  ;;  %v5441_v57 = vmul.f32 0.2, %v5409_v35  ;;  %vm5425_vm4 = vcmp.ge.f32.partialorder %v5409_v35, 0.0  ;;  %v5584_v58 = vld [vmem:[#allocation11 + $0x330] sm:$0xff] }
 0x843   :  { %6680 = vmatprep.subr.bf16.mxu0 %v5909_v44  ;;  %v8198_v44 = vsub.f32 %v8178_v12, %v5020_v31  ;;  %v5470_v4 = vpack.c.bf16 %v5454_v15, %v5454_v15  ;;  %v5940_v32 = vunpack.c.l.s8.bf16 %v5584_v58  ;;  %v5943_v31 = vunpack.c.h.s8.bf16 %v5583_v14 }
 0x844   :  { %v5457_v59 = vsel %vm5425_vm4, %v5409_v35, %v5441_v57  ;;  %v5586_v35 = vld [vmem:[#allocation11 + $0x340] sm:$0xff]  ;;  %v5953_v57 = vunpack.c.h.s8.bf16 %v5589_v52 }
 0x845   :  { %6353 = vmatpush1.bf16.msra.mxu1 %v5906_v47  ;;  %v5929_v47 = vunpack.c.h.s8.bf16 %v5577_v2  ;;  %v5052_v12 = vmul.f32 %v8198_v44, %v8198_v44  ;;  %v5473_v56 = vpack.c.bf16 %v5457_v59, %v5457_v59  ;;  %v5946_v38 = vunpack.c.l.s8.bf16 %v5586_v35 }
 0x846   :  { %6681 = vmatpush1.bf16.msra.mxu0 %v5908_v61  ;;  %6354 = vmatprep.subr.bf16.mxu1 %v5911_v21  ;;  %v5579_v61 = vld [vmem:[#allocation11 + $0x308] sm:$0xff]  ;;  %v8201_v21 = vsub.f32 %v8181_v9, %v5023_v23  ;;  %v5944_v23 = vunpack.c.h.s8.bf16 %v5584_v58 }
 0x847   :  { %6682 = vmatprep.subr.bf16.mxu0 %v5913_v43  ;;  %v5581_v43 = vld [vmem:[#allocation11 + $0x318] sm:$0xff]  ;;  %v5931_v63 = vunpack.c.l.s8.bf16 %v5579_v61  ;;  %v5098_v45 = vrot.slane %v5052_v12, 4  ;;  %v5935_v17 = vunpack.c.h.s8.bf16 %v5579_v61 }
 0x848   :  { %v5933_v53 = vunpack.c.l.s8.bf16 %v5581_v43  ;;  %v5055_v9 = vmul.f32 %v8201_v21, %v8201_v21 }
 0x849   :  { %6355 = vmatpush1.bf16.msra.mxu1 %v5910_v62  ;;  %v5578_v62 = vld [vmem:[#allocation11 + $0x300] sm:$0xff] }
 0x84a   :  { %6683 = vmatpush1.bf16.msra.mxu0 %v5912_v6  ;;  %6356 = vmatprep.subr.bf16.mxu1 %v5915_v48  ;;  %v5580_v6 = vld [vmem:[#allocation11 + $0x310] sm:$0xff]  ;;  %v5930_v48 = vunpack.c.l.s8.bf16 %v5578_v62  ;;  %v5116_v16 = vrot.slane %v5055_v9, 4 }
 0x84b   :  { %6684 = vmatprep.subr.bf16.mxu0 %v5917_v7  ;;  %v5932_v7 = vunpack.c.l.s8.bf16 %v5580_v6  ;;  %v5936_v37 = vunpack.c.h.s8.bf16 %v5580_v6 }
 0x84c   :  { %v5117_v2 = vadd.f32 %v5116_v16, %v5055_v9 }
 0x84d   :  { %6357 = vmatpush1.bf16.msra.mxu1 %v5914_v19  ;;  %v5937_v19 = vunpack.c.h.s8.bf16 %v5581_v43 }
 0x84e   :  { %6685 = vmatpush1.bf16.msra.mxu0 %v5916_v10  ;;  %6358 = vmatprep.subr.bf16.mxu1 %v5919_v26  ;;  %v5934_v10 = vunpack.c.h.s8.bf16 %v5578_v62  ;;  %v5099_v26 = vadd.f32 %v5098_v45, %v5052_v12  ;;  %v5118_v13 = vrot.slane %v5117_v2, 2  ;;  %v5591_v12 = vld [vmem:[#allocation11 + $0x368] sm:$0xff]  ;;  %v5950_v62 = vunpack.c.h.s8.bf16 %v5586_v35 }
 0x84f   :  { %6686 = vmatprep.subr.bf16.mxu0 %v5921_v28  ;;  %v5582_v28 = vld [vmem:[#allocation11 + $0x320] sm:$0xff]  ;;  %v5955_v9 = vunpack.c.l.s8.bf16 %v5591_v12 }
 0x850   :  { %v5938_v0 = vunpack.c.l.s8.bf16 %v5582_v28 }
 0x851   :  { %6359 = vmatpush1.bf16.msra.mxu1 %v5918_v42  ;;  %v5100_v42 = vrot.slane %v5099_v26, 2 }
 0x852   :  { %6687 = vmatpush1.bf16.msra.mxu0 %v5920_v40  ;;  %6360 = vmatprep.subr.bf16.mxu1 %v5923_v33  ;;  %v5945_v40 = vunpack.c.h.s8.bf16 %v5585_v55  ;;  %v5587_v33 = vld [vmem:[#allocation11 + $0x348] sm:$0xff] }
 0x853   :  { %6688 = vmatprep.subr.bf16.mxu0 %v5925_v18  ;;  %v5942_v18 = vunpack.c.h.s8.bf16 %v5582_v28  ;;  %v5101_v20 = vadd.f32 %v5100_v42, %v5099_v26 }
 0x855   :  { %6361 = vmatpush1.bf16.msra.mxu1 %v5922_v39  ;;  %v5947_v39 = vunpack.c.l.s8.bf16 %v5587_v33  ;;  %v5102_v61 = vrot.slane %v5101_v20, 1 }
 0x856   :  { %6689 = vmatpush1.bf16.msra.mxu0 %v5924_v3  ;;  %6362 = vmatprep.subr.bf16.mxu1 %v5927_v30  ;;  %v5949_v3 = vunpack.c.l.s8.bf16 %v5589_v52  ;;  %v5588_v30 = vld [vmem:[#allocation11 + $0x350] sm:$0xff] }
 0x857   :  { %6690 = vmatprep.subr.bf16.mxu0 %v5929_v47  ;;  %v5119_v47 = vadd.f32 %v5118_v13, %v5117_v2  ;;  %v5948_v43 = vunpack.c.l.s8.bf16 %v5588_v30  ;;  %v5103_v15 = vadd.f32 %v5102_v61, %v5101_v20  ;;  %v5952_v6 = vunpack.c.h.s8.bf16 %v5588_v30  ;;  %v5599_v61 = vld [vmem:[#allocation11 + $0x3a8] sm:$0xff] }
 0x859   :  { %6363 = vmatpush1.bf16.msra.mxu1 %v5926_v50  ;;  %v5951_v50 = vunpack.c.h.s8.bf16 %v5587_v33 }
 0x85a   :  { %6691 = vmatpush1.bf16.msra.mxu0 %v5928_v8  ;;  %6373 = vmatprep.subr.bf16.mxu1 %v5931_v63  ;;  %v5120_v8 = vrot.slane %v5119_v47, 1  ;;  %v5593_v63 = vld [vmem:[#allocation11 + $0x378] sm:$0xff] }
 0x85b   :  { %6701 = vmatprep.subr.bf16.mxu0 %v5933_v53  ;;  %v4841_v53 = vrot.slane %v8171_v41, %v7771_v25  ;;  %v5957_v45 = vunpack.c.l.s8.bf16 %v5593_v63  ;;  %v5961_v2 = vunpack.c.h.s8.bf16 %v5593_v63  ;;  %v5971_v63 = vunpack.c.l.s8.bf16 %v5599_v61 }
 0x85c   :  { %6365 = vmatmul.mubr.bf16.vlgmr.msra.gmra.mrb[28].mxu1 %v5470_v4 }
 0x85d   :  { %6693 = vmatmul.mubr.bf16.vlgmr.msra.gmra.mrb[32].mxu0 %v5470_v4  ;;  %6374 = vmatpush1.bf16.msra.mxu1 %v5930_v48  ;;  %v5590_v48 = vld [vmem:[#allocation11 + $0x360] sm:$0xff]  ;;  %v5592_v4 = vld [vmem:[#allocation11 + $0x370] sm:$0xff]  ;;  %v8220_v26 = vmul.f32 %v4841_v53, %v8062_v49 }
 0x85e   :  { %6405 = vmatprep.mubr.bf16.mxu1 %v5473_v56  ;;  %6702 = vmatpush1.bf16.msra.mxu0 %v5932_v7  ;;  %v5121_v7 = vadd.f32 %v5120_v8, %v5119_v47  ;;  %v5954_v55 = vunpack.c.l.s8.bf16 %v5590_v48  ;;  %v5956_v28 = vunpack.c.l.s8.bf16 %v5592_v4  ;;  %v5960_v13 = vunpack.c.h.s8.bf16 %v5592_v4  ;;  %v5600_v53 = vld [vmem:[#allocation11 + $0x3b0] sm:$0xff] }
 0x85f   :  { %6733 = vmatprep.mubr.bf16.mxu0 %v5473_v56  ;;  %6375 = vmatprep.subr.bf16.mxu1 %v5935_v17  ;;  %v4853_v17 = vrot.slane %v8171_v41, %v7788_v36  ;;  %v4966_v49 = vrot.slane %v8220_v26, 4 }
 0x860   :  { %6703 = vmatprep.subr.bf16.mxu0 %v5937_v19  ;;  %v5167_v42 = vmul.f32 0.125, %v5121_v7  ;;  %v5972_v7 = vunpack.c.l.s8.bf16 %v5600_v53 }
 0x861   :  { %6376 = vmatpush1.bf16.msra.mxu1 %v5934_v10  ;;  %v5164_v10 = vmul.f32 0.125, %v5103_v15 }
 0x862   :  { %6704 = vmatpush1.bf16.msra.mxu0 %v5936_v37  ;;  %6377 = vmatprep.subr.bf16.mxu1 %v5939_v22 }
 0x863   :  { %6705 = vmatprep.subr.bf16.mxu0 %v5941_v29  ;;  %v5959_v29 = vunpack.c.h.s8.bf16 %v5591_v12  ;;  %v5180_v33 = vadd.f32 0.8, %v5164_v10 }
 0x865   :  { %6378 = vmatpush1.bf16.msra.mxu1 %v5938_v0  ;;  %v5595_v0 = vld [vmem:[#allocation11 + $0x388] sm:$0xff]  ;;  %7410 = vrsqrt.f32 %v5180_v33  ;;  %v5602_v33 = vld [vmem:[#allocation11 + $0x3c0] sm:$0xff] }
 0x866   :  { %6706 = vmatpush1.bf16.msra.mxu0 %v5940_v32  ;;  %6379 = vmatprep.subr.bf16.mxu1 %v5943_v31  ;;  %v8223_v32 = vmul.f32 %v4853_v17, %v8070_v24  ;;  %v5597_v31 = vld [vmem:[#allocation11 + $0x398] sm:$0xff]  ;;  %v5963_v52 = vunpack.c.l.s8.bf16 %v5595_v0  ;;  %v5967_v47 = vunpack.c.h.s8.bf16 %v5595_v0  ;;  %v5975_v17 = vunpack.c.h.s8.bf16 %v5599_v61  ;;  %v5607_v61 = vld [vmem:[#allocation11 + $0x3e8] sm:$0xff] }
 0x867   :  { %6707 = vmatprep.subr.bf16.mxu0 %v5945_v40  ;;  %v5958_v40 = vunpack.c.h.s8.bf16 %v5590_v48  ;;  %v5965_v20 = vunpack.c.l.s8.bf16 %v5597_v31  ;;  %v4907_v48 = vld [vmem:[#allocation13 + $0x45] ss:$8 sm:$0xf]  ;;  %v4916_v0 = vld [vmem:[#allocation13 + $0x46] ss:$8 sm:$0xf0] }
 0x868   :  { %v4984_v35 = vrot.slane %v8223_v32, 4 }
 0x869   :  { %6380 = vmatpush1.bf16.msra.mxu1 %v5942_v18  ;;  %v5594_v18 = vld [vmem:[#allocation11 + $0x380] sm:$0xff] }
 0x86a   :  { %6708 = vmatpush1.bf16.msra.mxu0 %v5944_v23  ;;  %6381 = vmatprep.subr.bf16.mxu1 %v5947_v39  ;;  %v5596_v23 = vld [vmem:[#allocation11 + $0x390] sm:$0xff]  ;;  %v5183_v39 = vadd.f32 0.8, %v5167_v42  ;;  %v5962_v24 = vunpack.c.l.s8.bf16 %v5594_v18 }
 0x86b   :  { %6709 = vmatprep.subr.bf16.mxu0 %v5949_v3  ;;  %v4967_v3 = vadd.f32 %v4966_v49, %v8220_v26  ;;  %v5964_v30 = vunpack.c.l.s8.bf16 %v5596_v23  ;;  %v5968_v8 = vunpack.c.h.s8.bf16 %v5596_v23 }
 0x86c   :  { %7412 = vrsqrt.f32 %v5183_v39 }
 0x86d   :  { %6382 = vmatpush1.bf16.msra.mxu1 %v5946_v38  ;;  %v5969_v38 = vunpack.c.h.s8.bf16 %v5597_v31  ;;  %v4968_v12 = vrot.slane %v4967_v3, 2  ;;  %v5976_v31 = vunpack.c.h.s8.bf16 %v5600_v53 }
 0x86e   :  { %6710 = vmatpush1.bf16.msra.mxu0 %v5948_v43  ;;  %6383 = vmatprep.subr.bf16.mxu1 %v5951_v50  ;;  %v4985_v43 = vadd.f32 %v4984_v35, %v8223_v32  ;;  %v5601_v50 = vld [vmem:[#allocation11 + $0x3b8] sm:$0xff] }
 0x86f   :  { %v8209_v59 = vpop.f32.mrb[24].mxu1  ;;  %6711 = vmatprep.subr.bf16.mxu0 %v5953_v57  ;;  %v5966_v57 = vunpack.c.h.s8.bf16 %v5594_v18  ;;  %v5973_v15 = vunpack.c.l.s8.bf16 %v5601_v50  ;;  %v4969_v4 = vadd.f32 %v4968_v12, %v4967_v3  ;;  %v7411_v10 = vpop.eup %7410  ;;  %v5604_v18 = vld [vmem:[#allocation11 + $0x3d0] sm:$0xff] }
 0x870   :  { %v8213_v14 = vpop.f32.mrb[28].mxu0  ;;  %v8215_v16 = vpop.f32.mrb[25].mxu1  ;;  %v5212_v49 = vmul.f32 %v7411_v10, %v8198_v44  ;;  %v5980_v44 = vunpack.c.l.s8.bf16 %v5604_v18  ;;  %v5611_v10 = vld [vmem:[#allocation11 + $0x408] sm:$0xff] }
 0x871   :  { %v8217_v56 = vpop.f32.mrb[29].mxu0  ;;  %v4629_v19 = vpop.f32.mrb[26].mxu1  ;;  %6384 = vmatpush1.bf16.msra.mxu1 %v5950_v62  ;;  %v5598_v62 = vld [vmem:[#allocation11 + $0x3a0] sm:$0xff]  ;;  %v4970_v42 = vrot.slane %v4969_v4, 1 }
 0x872   :  { %v4793_v37 = vpop.f32.mrb[30].mxu0  ;;  %6712 = vmatpush1.bf16.msra.mxu0 %v5952_v6  ;;  %v4630_v22 = vpop.f32.mrb[27].mxu1  ;;  %6385 = vmatprep.subr.bf16.mxu1 %v5955_v9  ;;  %v4986_v6 = vrot.slane %v4985_v43, 2  ;;  %v5970_v9 = vunpack.c.l.s8.bf16 %v5598_v62  ;;  %v5977_v19 = vunpack.c.h.s8.bf16 %v5601_v50  ;;  %v5609_v50 = vld [vmem:[#allocation11 + $0x3f8] sm:$0xff] }
 0x873   :  { %v4794_v58 = vpop.f32.mrb[31].mxu0  ;;  %6713 = vmatprep.subr.bf16.mxu0 %v5957_v45  ;;  %v4908_v45 = vld [vmem:[#allocation13 + $0x45] ss:$8 sm:$0xf0]  ;;  %v4971_v3 = vadd.f32 %v4970_v42, %v4969_v4 }
 0x874   :  { %v4987_v37 = vadd.f32 %v4986_v6, %v4985_v43  ;;  %v5605_v22 = vld [vmem:[#allocation11 + $0x3d8] sm:$0xff]  ;;  %v5974_v58 = vunpack.c.h.s8.bf16 %v5598_v62  ;;  %v5987_v62 = vunpack.c.l.s8.bf16 %v5607_v61  ;;  %v5608_v6 = vld [vmem:[#allocation11 + $0x3f0] sm:$0xff]  ;;  %v5610_v42 = vld [vmem:[#allocation11 + $0x400] sm:$0xff] }
 0x875   :  { %6386 = vmatpush1.bf16.msra.mxu1 %v5954_v55  ;;  %v5603_v55 = vld [vmem:[#allocation11 + $0x3c8] sm:$0xff] }
 0x876   :  { %6714 = vmatpush1.bf16.msra.mxu0 %v5956_v28  ;;  %6387 = vmatprep.subr.bf16.mxu1 %v5959_v29  ;;  %v8229_v28 = vor.u32 %v4908_v45, %v4907_v48  ;;  %v4915_v29 = vld [vmem:[#allocation13 + $0x46] ss:$8 sm:$0xf] }
 0x877   :  { %6715 = vmatprep.subr.bf16.mxu0 %v5961_v2  ;;  %v7413_v2 = vpop.eup %7412  ;;  %v8234_v23 = vor.u32 %v4916_v0, %v4915_v29  ;;  %v5995_v0 = vunpack.c.l.s8.bf16 %v5611_v10 }
 0x878   :  { %v5215_v39 = vmul.f32 %v7413_v2, %v8201_v21  ;;  %v5263_v35 = vrot.slane %v8229_v28, %v7774_v27  ;;  %v5992_v2 = vunpack.c.h.s8.bf16 %v5608_v6 }
 0x879   :  { %6388 = vmatpush1.bf16.msra.mxu1 %v5958_v40  ;;  %v5979_v40 = vunpack.c.l.s8.bf16 %v5603_v55  ;;  %v5361_v12 = vrot.slane %v8234_v23, %v7774_v27 }
 0x87a   :  { %6716 = vmatpush1.bf16.msra.mxu0 %v5960_v13  ;;  %6389 = vmatprep.subr.bf16.mxu1 %v5963_v52  ;;  %v5251_v13 = vrot.slane %v8082_v51, %v7918_v5  ;;  %v5981_v52 = vunpack.c.l.s8.bf16 %v5605_v22  ;;  %v5349_v51 = vrot.slane %v8084_v11, %v7918_v5  ;;  %v5313_v21 = vmul.f32 %v5263_v35, %v5215_v39  ;;  %v5615_v35 = vld [vmem:[#allocation11 + $0x428] sm:$0xff] }
 0x87b   :  { %6717 = vmatprep.subr.bf16.mxu0 %v5965_v20  ;;  %v4988_v20 = vrot.slane %v4987_v37, 1  ;;  %v5989_v11 = vunpack.c.l.s8.bf16 %v5609_v50  ;;  %v5999_v39 = vunpack.c.h.s8.bf16 %v5611_v10 }
 0x87c   :  { %v5411_v45 = vadd.f32 %v5361_v12, %v5313_v21  ;;  %v5616_v21 = vld [vmem:[#allocation11 + $0x430] sm:$0xff] }
 0x87d   :  { %6390 = vmatpush1.bf16.msra.mxu1 %v5962_v24  ;;  %v5978_v24 = vunpack.c.l.s8.bf16 %v5602_v33  ;;  %v4989_v43 = vadd.f32 %v4988_v20, %v4987_v37 }
 0x87e   :  { %6718 = vmatpush1.bf16.msra.mxu0 %v5964_v30  ;;  %6391 = vmatprep.subr.bf16.mxu1 %v5967_v47  ;;  %v5983_v30 = vunpack.c.h.s8.bf16 %v5603_v55  ;;  %v5310_v47 = vmul.f32 %v5251_v13, %v5212_v49  ;;  %vm5427_vm6 = vcmp.ge.f32.partialorder %v5411_v45, 0.0  ;;  %v5994_v49 = vunpack.c.l.s8.bf16 %v5610_v42 }
 0x87f   :  { %6719 = vmatprep.subr.bf16.mxu0 %v5969_v38  ;;  %v5985_v38 = vunpack.c.h.s8.bf16 %v5605_v22  ;;  %v5613_v22 = vld [vmem:[#allocation11 + $0x418] sm:$0xff] }
 0x880   :  { %v5408_v53 = vadd.f32 %v5349_v51, %v5310_v47  ;;  %v5998_v47 = vunpack.c.h.s8.bf16 %v5610_v42 }
 0x881   :  { %6392 = vmatpush1.bf16.msra.mxu1 %v5966_v57  ;;  %v5982_v57 = vunpack.c.h.s8.bf16 %v5602_v33  ;;  %v5612_v33 = vld [vmem:[#allocation11 + $0x410] sm:$0xff] }
 0x882   :  { %6720 = vmatpush1.bf16.msra.mxu0 %v5968_v8  ;;  %6393 = vmatprep.subr.bf16.mxu1 %v5971_v63  ;;  %v5022_v8 = vmul.f32 0.125, %v4971_v3  ;;  %v5984_v63 = vunpack.c.h.s8.bf16 %v5604_v18  ;;  %v5440_v55 = vmul.f32 0.2, %v5408_v53  ;;  %vm5424_vm5 = vcmp.ge.f32.partialorder %v5408_v53, 0.0 }
 0x883   :  { %6721 = vmatprep.subr.bf16.mxu0 %v5973_v15  ;;  %v5606_v15 = vld [vmem:[#allocation11 + $0x3e0] sm:$0xff]  ;;  %v5996_v20 = vunpack.c.l.s8.bf16 %v5612_v33 }
 0x884   :  { %v5986_v48 = vunpack.c.l.s8.bf16 %v5606_v15  ;;  %v8244_v4 = vsub.f32 %v8220_v26, %v5022_v8  ;;  %v5990_v29 = vunpack.c.h.s8.bf16 %v5606_v15 }
 0x885   :  { %6394 = vmatpush1.bf16.msra.mxu1 %v5970_v9  ;;  %v5025_v9 = vmul.f32 0.125, %v4989_v43  ;;  %v5614_v43 = vld [vmem:[#allocation11 + $0x420] sm:$0xff] }
 0x886   :  { %6722 = vmatpush1.bf16.msra.mxu0 %v5972_v7  ;;  %6395 = vmatprep.subr.bf16.mxu1 %v5975_v17  ;;  %v5988_v7 = vunpack.c.l.s8.bf16 %v5608_v6  ;;  %v5991_v17 = vunpack.c.h.s8.bf16 %v5607_v61  ;;  %v5054_v26 = vmul.f32 %v8244_v4, %v8244_v4  ;;  %v6003_v61 = vunpack.c.l.s8.bf16 %v5615_v35  ;;  %v5621_v6 = vld [vmem:[#allocation11 + $0x458] sm:$0xff] }
 0x887   :  { %6723 = vmatprep.subr.bf16.mxu0 %v5977_v19  ;;  %v5993_v19 = vunpack.c.h.s8.bf16 %v5609_v50  ;;  %v8247_v37 = vsub.f32 %v8223_v32, %v5025_v9  ;;  %v6002_v12 = vunpack.c.l.s8.bf16 %v5614_v43  ;;  %v6006_v9 = vunpack.c.h.s8.bf16 %v5614_v43 }
 0x889   :  { %6396 = vmatpush1.bf16.msra.mxu1 %v5974_v58  ;;  %v5443_v58 = vmul.f32 0.2, %v5411_v45  ;;  %v5057_v32 = vmul.f32 %v8247_v37, %v8247_v37 }
 0x88a   :  { %6724 = vmatpush1.bf16.msra.mxu0 %v5976_v31  ;;  %6397 = vmatprep.subr.bf16.mxu1 %v5979_v40  ;;  %v5456_v31 = vsel %vm5424_vm5, %v5408_v53, %v5440_v55  ;;  %v5997_v40 = vunpack.c.l.s8.bf16 %v5613_v22  ;;  %v5619_v53 = vld [vmem:[#allocation11 + $0x448] sm:$0xff]  ;;  %v5620_v55 = vld [vmem:[#allocation11 + $0x450] sm:$0xff] }
 0x88b   :  { %6725 = vmatprep.subr.bf16.mxu0 %v5981_v52  ;;  %v5459_v13 = vsel %vm5427_vm6, %v5411_v45, %v5443_v58  ;;  %v5110_v52 = vrot.slane %v5054_v26, 4  ;;  %v5472_v18 = vpack.c.bf16 %v5456_v31, %v5456_v31  ;;  %v6008_v45 = vunpack.c.h.s8.bf16 %v5616_v21  ;;  %v5625_v31 = vld [vmem:[#allocation11 + $0x478] sm:$0xff] }
 0x88c   :  { %v5475_v3 = vpack.c.bf16 %v5459_v13, %v5459_v13  ;;  %v6012_v58 = vunpack.c.l.s8.bf16 %v5620_v55 }
 0x88d   :  { %6398 = vmatpush1.bf16.msra.mxu1 %v5978_v24  ;;  %v5128_v24 = vrot.slane %v5057_v32, 4  ;;  %v5111_v51 = vadd.f32 %v5110_v52, %v5054_v26  ;;  %v6015_v26 = vunpack.c.h.s8.bf16 %v5619_v53  ;;  %v5622_v52 = vld [vmem:[#allocation11 + $0x460] sm:$0xff] }
 0x88e   :  { %6726 = vmatpush1.bf16.msra.mxu0 %v5980_v44  ;;  %6399 = vmatprep.subr.bf16.mxu1 %v5983_v30  ;;  %v6001_v44 = vunpack.c.h.s8.bf16 %v5613_v22  ;;  %v5617_v30 = vld [vmem:[#allocation11 + $0x438] sm:$0xff] }
 0x88f   :  { %6727 = vmatprep.subr.bf16.mxu0 %v5985_v38  ;;  %v6000_v38 = vunpack.c.h.s8.bf16 %v5612_v33  ;;  %v6005_v50 = vunpack.c.l.s8.bf16 %v5617_v30  ;;  %v5112_v8 = vrot.slane %v5111_v51, 2  ;;  %v6009_v15 = vunpack.c.h.s8.bf16 %v5617_v30 }
 0x891   :  { %6400 = vmatpush1.bf16.msra.mxu1 %v5982_v57  ;;  %v5129_v57 = vadd.f32 %v5128_v24, %v5057_v32  ;;  %v4849_v32 = vrot.slane %v8171_v41, %v7785_v34  ;;  %v6018_v24 = vunpack.c.l.s8.bf16 %v5622_v52 }
 0x892   :  { %6728 = vmatpush1.bf16.msra.mxu0 %v5984_v63  ;;  %6401 = vmatprep.subr.bf16.mxu1 %v5987_v62  ;;  %v6004_v63 = vunpack.c.l.s8.bf16 %v5616_v21  ;;  %v6007_v62 = vunpack.c.h.s8.bf16 %v5615_v35  ;;  %v4861_v35 = vrot.slane %v8171_v41, %v7888_v60  ;;  %v6022_v21 = vunpack.c.h.s8.bf16 %v5622_v52 }
 0x893   :  { %6729 = vmatprep.subr.bf16.mxu0 %v5989_v11  ;;  %v5130_v11 = vrot.slane %v5129_v57, 2 }
 0x894   :  { %v8261_v43 = vmul.f32 %v4861_v35, %v8215_v16 }
 0x895   :  { %6402 = vmatpush1.bf16.msra.mxu1 %v5986_v48  ;;  %v5113_v48 = vadd.f32 %v5112_v8, %v5111_v51  ;;  %v5131_v10 = vadd.f32 %v5130_v11, %v5129_v57  ;;  %v6025_v51 = vunpack.c.h.s8.bf16 %v5625_v31 }
 0x896   :  { %6730 = vmatpush1.bf16.msra.mxu0 %v5988_v7  ;;  %6403 = vmatprep.subr.bf16.mxu1 %v5991_v17  ;;  %v6011_v7 = vunpack.c.l.s8.bf16 %v5619_v53  ;;  %v5618_v17 = vld [vmem:[#allocation11 + $0x440] sm:$0xff]  ;;  %v4996_v11 = vrot.slane %v8261_v43, 4 }
 0x897   :  { %6731 = vmatprep.subr.bf16.mxu0 %v5993_v19  ;;  %v6013_v19 = vunpack.c.l.s8.bf16 %v5621_v6  ;;  %v6010_v22 = vunpack.c.l.s8.bf16 %v5618_v17  ;;  %v5132_v42 = vrot.slane %v5131_v10, 1 }
 0x899   :  { %6404 = vmatpush1.bf16.msra.mxu1 %v5990_v29  ;;  %v5114_v29 = vrot.slane %v5113_v48, 1 }
 0x89a   :  { %6732 = vmatpush1.bf16.msra.mxu0 %v5992_v2  ;;  %6414 = vmatprep.subr.bf16.mxu1 %v5995_v0  ;;  %v6017_v2 = vunpack.c.h.s8.bf16 %v5621_v6  ;;  %v5623_v0 = vld [vmem:[#allocation11 + $0x468] sm:$0xff] }
 0x89b   :  { %6742 = vmatprep.subr.bf16.mxu0 %v5997_v40  ;;  %v6014_v40 = vunpack.c.h.s8.bf16 %v5618_v17  ;;  %v5115_v33 = vadd.f32 %v5114_v29, %v5113_v48  ;;  %v6019_v13 = vunpack.c.l.s8.bf16 %v5623_v0  ;;  %v4997_v17 = vadd.f32 %v4996_v11, %v8261_v43 }
 0x89c   :  { %6406 = vmatmul.mubr.bf16.vlgmr.msra.gmra.mrb[28].mxu1 %v5472_v18 }
 0x89d   :  { %6734 = vmatmul.mubr.bf16.vlgmr.msra.gmra.mrb[32].mxu0 %v5472_v18  ;;  %6415 = vmatpush1.bf16.msra.mxu1 %v5994_v49  ;;  %v6016_v49 = vunpack.c.h.s8.bf16 %v5620_v55  ;;  %v6021_v18 = vunpack.c.l.s8.bf16 %v5625_v31 }
 0x89e   :  { %6446 = vmatprep.mubr.bf16.mxu1 %v5475_v3  ;;  %6743 = vmatpush1.bf16.msra.mxu0 %v5996_v20  ;;  %v5624_v20 = vld [vmem:[#allocation11 + $0x470] sm:$0xff] }
 0x89f   :  { %6774 = vmatprep.mubr.bf16.mxu0 %v5475_v3  ;;  %6416 = vmatprep.subr.bf16.mxu1 %v5999_v39  ;;  %v5133_v39 = vadd.f32 %v5132_v42, %v5131_v10  ;;  %v5166_v3 = vmul.f32 0.125, %v5115_v33  ;;  %v6020_v30 = vunpack.c.l.s8.bf16 %v5624_v20 }
 0x8a0   :  { %6744 = vmatprep.subr.bf16.mxu0 %v6001_v44  ;;  %v8258_v44 = vmul.f32 %v4849_v32, %v8066_v46  ;;  %v6024_v46 = vunpack.c.h.s8.bf16 %v5624_v20 }
 0x8a1   :  { %6417 = vmatpush1.bf16.msra.mxu1 %v5998_v47  ;;  %v6023_v47 = vunpack.c.h.s8.bf16 %v5623_v0  ;;  %v5182_v57 = vadd.f32 0.8, %v5166_v3  ;;  %v4998_v0 = vrot.slane %v4997_v17, 2 }
 0x8a2   :  { %6745 = vmatpush1.bf16.msra.mxu0 %v6000_v38  ;;  %6418 = vmatprep.subr.bf16.mxu1 %v6003_v61  ;;  %v5627_v38 = vld [vmem:[#allocation11 + $0x488] sm:$0xff]  ;;  %v5169_v61 = vmul.f32 0.125, %v5133_v39 }
 0x8a3   :  { %6746 = vmatprep.subr.bf16.mxu0 %v6005_v50  ;;  %v5629_v50 = vld [vmem:[#allocation11 + $0x498] sm:$0xff]  ;;  %v6027_v8 = vunpack.c.l.s8.bf16 %v5627_v38  ;;  %7414 = vrsqrt.f32 %v5182_v57  ;;  %v6031_v48 = vunpack.c.h.s8.bf16 %v5627_v38  ;;  %v4999_v52 = vadd.f32 %v4998_v0, %v4997_v17  ;;  %v5638_v17 = vld [vmem:[#allocation11 + $0x4e0] sm:$0xff] }
 0x8a4   :  { %v5185_v53 = vadd.f32 0.8, %v5169_v61  ;;  %v5636_v61 = vld [vmem:[#allocation11 + $0x4d0] sm:$0xff]  ;;  %v5271_v57 = vrot.slane %v8229_v28, %v7788_v36 }
 0x8a5   :  { %6419 = vmatpush1.bf16.msra.mxu1 %v6002_v12  ;;  %v4978_v12 = vrot.slane %v8258_v44, 4 }
 0x8a6   :  { %6747 = vmatpush1.bf16.msra.mxu0 %v6004_v63  ;;  %6420 = vmatprep.subr.bf16.mxu1 %v6007_v62  ;;  %v5626_v63 = vld [vmem:[#allocation11 + $0x480] sm:$0xff]  ;;  %v6029_v62 = vunpack.c.l.s8.bf16 %v5629_v50  ;;  %7416 = vrsqrt.f32 %v5185_v53  ;;  %v5639_v53 = vld [vmem:[#allocation11 + $0x4e8] sm:$0xff] }
 0x8a7   :  { %6748 = vmatprep.subr.bf16.mxu0 %v6009_v15  ;;  %v5628_v15 = vld [vmem:[#allocation11 + $0x490] sm:$0xff]  ;;  %v6026_v16 = vunpack.c.l.s8.bf16 %v5626_v63  ;;  %v4979_v6 = vadd.f32 %v4978_v12, %v8258_v44  ;;  %v6030_v55 = vunpack.c.h.s8.bf16 %v5626_v63  ;;  %v6055_v0 = vunpack.c.h.s8.bf16 %v5639_v53 }
 0x8a9   :  { %6421 = vmatpush1.bf16.msra.mxu1 %v6006_v9  ;;  %v6028_v9 = vunpack.c.l.s8.bf16 %v5628_v15  ;;  %v4980_v10 = vrot.slane %v4979_v6, 2 }
 0x8aa   :  { %6749 = vmatpush1.bf16.msra.mxu0 %v6008_v45  ;;  %6422 = vmatprep.subr.bf16.mxu1 %v6011_v7  ;;  %v6033_v45 = vunpack.c.h.s8.bf16 %v5629_v50  ;;  %v5631_v7 = vld [vmem:[#allocation11 + $0x4a8] sm:$0xff]  ;;  %v5000_v50 = vrot.slane %v4999_v52, 1 }
 0x8ab   :  { %6750 = vmatprep.subr.bf16.mxu0 %v6013_v19  ;;  %v5633_v19 = vld [vmem:[#allocation11 + $0x4b8] sm:$0xff]  ;;  %v6035_v29 = vunpack.c.l.s8.bf16 %v5631_v7  ;;  %v4981_v31 = vadd.f32 %v4980_v10, %v4979_v6  ;;  %v6039_v33 = vunpack.c.h.s8.bf16 %v5631_v7  ;;  %v6051_v7 = vunpack.c.l.s8.bf16 %v5639_v53  ;;  %v5640_v10 = vld [vmem:[#allocation11 + $0x4f0] sm:$0xff] }
 0x8ac   :  { %v6041_v32 = vunpack.c.h.s8.bf16 %v5633_v19  ;;  %v5001_v11 = vadd.f32 %v5000_v50, %v4999_v52  ;;  %v6056_v52 = vunpack.c.h.s8.bf16 %v5640_v10  ;;  %v5647_v50 = vld [vmem:[#allocation11 + $0x528] sm:$0xff] }
 0x8ad   :  { %6423 = vmatpush1.bf16.msra.mxu1 %v6010_v22  ;;  %v6032_v22 = vunpack.c.h.s8.bf16 %v5628_v15  ;;  %v4982_v35 = vrot.slane %v4981_v31, 1 }
 0x8ae   :  { %6751 = vmatpush1.bf16.msra.mxu0 %v6012_v58  ;;  %6424 = vmatprep.subr.bf16.mxu1 %v6015_v26  ;;  %v5630_v58 = vld [vmem:[#allocation11 + $0x4a0] sm:$0xff]  ;;  %v6037_v26 = vunpack.c.l.s8.bf16 %v5633_v19 }
 0x8af   :  { %6752 = vmatprep.subr.bf16.mxu0 %v6017_v2  ;;  %v5632_v2 = vld [vmem:[#allocation11 + $0x4b0] sm:$0xff]  ;;  %v6034_v42 = vunpack.c.l.s8.bf16 %v5630_v58  ;;  %v6038_v20 = vunpack.c.h.s8.bf16 %v5630_v58 }
 0x8b1   :  { %6425 = vmatpush1.bf16.msra.mxu1 %v6014_v40  ;;  %v6036_v40 = vunpack.c.l.s8.bf16 %v5632_v2 }
 0x8b2   :  { %6753 = vmatpush1.bf16.msra.mxu0 %v6016_v49  ;;  %6426 = vmatprep.subr.bf16.mxu1 %v6019_v13  ;;  %v5635_v49 = vld [vmem:[#allocation11 + $0x4c8] sm:$0xff]  ;;  %v7415_v13 = vpop.eup %7414 }
 0x8b3   :  { %6754 = vmatprep.subr.bf16.mxu0 %v6021_v18  ;;  %v5637_v18 = vld [vmem:[#allocation11 + $0x4d8] sm:$0xff]  ;;  %v7417_v39 = vpop.eup %7416  ;;  %v6043_v3 = vunpack.c.l.s8.bf16 %v5635_v49  ;;  %v6047_v63 = vunpack.c.h.s8.bf16 %v5635_v49  ;;  %v6054_v49 = vunpack.c.h.s8.bf16 %v5638_v17 }
 0x8b4   :  { %v6045_v38 = vunpack.c.l.s8.bf16 %v5637_v18  ;;  %v6049_v15 = vunpack.c.h.s8.bf16 %v5637_v18 }
 0x8b5   :  { %6427 = vmatpush1.bf16.msra.mxu1 %v6018_v24  ;;  %v6040_v24 = vunpack.c.h.s8.bf16 %v5632_v2  ;;  %v6052_v2 = vunpack.c.l.s8.bf16 %v5640_v10 }
 0x8b6   :  { %6755 = vmatpush1.bf16.msra.mxu0 %v6020_v30  ;;  %6428 = vmatprep.subr.bf16.mxu1 %v6023_v47  ;;  %v5634_v30 = vld [vmem:[#allocation11 + $0x4c0] sm:$0xff]  ;;  %v5214_v47 = vmul.f32 %v7415_v13, %v8244_v4 }
 0x8b7   :  { %6756 = vmatprep.subr.bf16.mxu0 %v6025_v51  ;;  %v5259_v51 = vrot.slane %v8229_v28, %v7771_v25  ;;  %v6042_v12 = vunpack.c.l.s8.bf16 %v5634_v30  ;;  %v6046_v6 = vunpack.c.h.s8.bf16 %v5634_v30 }
 0x8b9   :  { %6429 = vmatpush1.bf16.msra.mxu1 %v6022_v21  ;;  %v5217_v21 = vmul.f32 %v7417_v39, %v8247_v37  ;;  %v5312_v4 = vmul.f32 %v5259_v51, %v5214_v47 }
 0x8ba   :  { %6757 = vmatpush1.bf16.msra.mxu0 %v6024_v46  ;;  %6430 = vmatprep.subr.bf16.mxu1 %v6027_v8  ;;  %v4983_v46 = vadd.f32 %v4982_v35, %v4981_v31  ;;  %v6044_v8 = vunpack.c.l.s8.bf16 %v5636_v61 }
 0x8bb   :  { %6758 = vmatprep.subr.bf16.mxu0 %v6029_v62  ;;  %v5357_v62 = vrot.slane %v8234_v23, %v7771_v25  ;;  %v5315_v37 = vmul.f32 %v5271_v57, %v5217_v21 }
 0x8bd   :  { %6431 = vmatpush1.bf16.msra.mxu1 %v6026_v16  ;;  %v5641_v16 = vld [vmem:[#allocation11 + $0x4f8] sm:$0xff]  ;;  %v5410_v19 = vadd.f32 %v5357_v62, %v5312_v4  ;;  %v6067_v62 = vunpack.c.l.s8.bf16 %v5647_v50 }
 0x8be   :  { %6759 = vmatpush1.bf16.msra.mxu0 %v6028_v9  ;;  %6432 = vmatprep.subr.bf16.mxu1 %v6031_v48  ;;  %v5369_v9 = vrot.slane %v8234_v23, %v7788_v36  ;;  %v5024_v48 = vmul.f32 0.125, %v4983_v46  ;;  %v5649_v46 = vld [vmem:[#allocation11 + $0x538] sm:$0xff] }
 0x8bf   :  { %6760 = vmatprep.subr.bf16.mxu0 %v6033_v45  ;;  %v6048_v45 = vunpack.c.h.s8.bf16 %v5636_v61  ;;  %v5442_v31 = vmul.f32 0.2, %v5410_v19  ;;  %vm5426_vm7 = vcmp.ge.f32.partialorder %v5410_v19, 0.0  ;;  %v6069_v53 = vunpack.c.l.s8.bf16 %v5649_v46 }
 0x8c0   :  { %v5413_v58 = vadd.f32 %v5369_v9, %v5315_v37 }
 0x8c1   :  { %6433 = vmatpush1.bf16.msra.mxu1 %v6030_v55  ;;  %v6053_v55 = vunpack.c.l.s8.bf16 %v5641_v16  ;;  %v5458_v39 = vsel %vm5426_vm7, %v5410_v19, %v5442_v31  ;;  %v5653_v19 = vld [vmem:[#allocation11 + $0x558] sm:$0xff] }
 0x8c2   :  { %6761 = vmatpush1.bf16.msra.mxu0 %v6032_v22  ;;  %6434 = vmatprep.subr.bf16.mxu1 %v6035_v29  ;;  %v5027_v22 = vmul.f32 0.125, %v5001_v11  ;;  %v6050_v29 = vunpack.c.l.s8.bf16 %v5638_v17  ;;  %v5445_v13 = vmul.f32 0.2, %v5413_v58  ;;  %vm5429_vm8 = vcmp.ge.f32.partialorder %v5413_v58, 0.0  ;;  %v5648_v11 = vld [vmem:[#allocation11 + $0x530] sm:$0xff] }
 0x8c3   :  { %6762 = vmatprep.subr.bf16.mxu0 %v6037_v26  ;;  %v8278_v26 = vsub.f32 %v8258_v44, %v5024_v48  ;;  %v5474_v51 = vpack.c.bf16 %v5458_v39, %v5458_v39  ;;  %v6068_v9 = vunpack.c.l.s8.bf16 %v5648_v11  ;;  %v6071_v48 = vunpack.c.h.s8.bf16 %v5647_v50 }
 0x8c4   :  { %v5461_v30 = vsel %vm5429_vm8, %v5413_v58, %v5445_v13  ;;  %v5650_v58 = vld [vmem:[#allocation11 + $0x540] sm:$0xff]  ;;  %v6081_v13 = vunpack.c.h.s8.bf16 %v5653_v19 }
 0x8c5   :  { %6435 = vmatpush1.bf16.msra.mxu1 %v6034_v42  ;;  %v6057_v42 = vunpack.c.h.s8.bf16 %v5641_v16  ;;  %v5056_v44 = vmul.f32 %v8278_v26, %v8278_v26  ;;  %v5477_v57 = vpack.c.bf16 %v5461_v30, %v5461_v30  ;;  %v6074_v31 = vunpack.c.l.s8.bf16 %v5650_v58 }
 0x8c6   :  { %6763 = vmatpush1.bf16.msra.mxu0 %v6036_v40  ;;  %6436 = vmatprep.subr.bf16.mxu1 %v6039_v33  ;;  %v5643_v40 = vld [vmem:[#allocation11 + $0x508] sm:$0xff]  ;;  %v8281_v33 = vsub.f32 %v8261_v43, %v5027_v22  ;;  %v6072_v22 = vunpack.c.h.s8.bf16 %v5648_v11 }
 0x8c7   :  { %6764 = vmatprep.subr.bf16.mxu0 %v6041_v32  ;;  %v5645_v32 = vld [vmem:[#allocation11 + $0x518] sm:$0xff]  ;;  %v6059_v18 = vunpack.c.l.s8.bf16 %v5643_v40  ;;  %v5122_v47 = vrot.slane %v5056_v44, 4  ;;  %v6063_v61 = vunpack.c.h.s8.bf16 %v5643_v40 }
 0x8c8   :  { %v6061_v35 = vunpack.c.l.s8.bf16 %v5645_v32  ;;  %v5059_v43 = vmul.f32 %v8281_v33, %v8281_v33 }
 0x8c9   :  { %6437 = vmatpush1.bf16.msra.mxu1 %v6038_v20  ;;  %v5642_v20 = vld [vmem:[#allocation11 + $0x500] sm:$0xff] }
 0x8ca   :  { %6765 = vmatpush1.bf16.msra.mxu0 %v6040_v24  ;;  %6438 = vmatprep.subr.bf16.mxu1 %v6043_v3  ;;  %v5644_v24 = vld [vmem:[#allocation11 + $0x510] sm:$0xff]  ;;  %v6058_v3 = vunpack.c.l.s8.bf16 %v5642_v20  ;;  %v5140_v21 = vrot.slane %v5059_v43, 4 }
 0x8cb   :  { %6766 = vmatprep.subr.bf16.mxu0 %v6045_v38  ;;  %v6060_v38 = vunpack.c.l.s8.bf16 %v5644_v24  ;;  %v6064_v4 = vunpack.c.h.s8.bf16 %v5644_v24 }
 0x8cc   :  { %v5141_v16 = vadd.f32 %v5140_v21, %v5059_v43 }
 0x8cd   :  { %6439 = vmatpush1.bf16.msra.mxu1 %v6042_v12  ;;  %v6065_v12 = vunpack.c.h.s8.bf16 %v5645_v32 }
 0x8ce   :  { %6767 = vmatpush1.bf16.msra.mxu0 %v6044_v8  ;;  %6440 = vmatprep.subr.bf16.mxu1 %v6047_v63  ;;  %v6062_v8 = vunpack.c.h.s8.bf16 %v5642_v20  ;;  %v5123_v63 = vadd.f32 %v5122_v47, %v5056_v44  ;;  %v5142_v17 = vrot.slane %v5141_v16, 2  ;;  %v5655_v44 = vld [vmem:[#allocation11 + $0x568] sm:$0xff]  ;;  %v6078_v20 = vunpack.c.h.s8.bf16 %v5650_v58  ;;  %v5656_v47 = vld [vmem:[#allocation11 + $0x570] sm:$0xff] }
 0x8cf   :  { %6768 = vmatprep.subr.bf16.mxu0 %v6049_v15  ;;  %v5646_v15 = vld [vmem:[#allocation11 + $0x520] sm:$0xff]  ;;  %v6083_v43 = vunpack.c.l.s8.bf16 %v5655_v44 }
 0x8d0   :  { %v6066_v37 = vunpack.c.l.s8.bf16 %v5646_v15 }
 0x8d1   :  { %6441 = vmatpush1.bf16.msra.mxu1 %v6046_v6  ;;  %v5124_v6 = vrot.slane %v5123_v63, 2 }
 0x8d2   :  { %6769 = vmatpush1.bf16.msra.mxu0 %v6048_v45  ;;  %6442 = vmatprep.subr.bf16.mxu1 %v6051_v7  ;;  %v6073_v45 = vunpack.c.h.s8.bf16 %v5649_v46  ;;  %v5651_v7 = vld [vmem:[#allocation11 + $0x548] sm:$0xff] }
 0x8d3   :  { %6770 = vmatprep.subr.bf16.mxu0 %v6053_v55  ;;  %v6070_v55 = vunpack.c.h.s8.bf16 %v5646_v15  ;;  %v5125_v10 = vadd.f32 %v5124_v6, %v5123_v63 }
 0x8d5   :  { %6443 = vmatpush1.bf16.msra.mxu1 %v6050_v29  ;;  %v6075_v29 = vunpack.c.l.s8.bf16 %v5651_v7  ;;  %v5126_v40 = vrot.slane %v5125_v10, 1 }
 0x8d6   :  { %6771 = vmatpush1.bf16.msra.mxu0 %v6052_v2  ;;  %6444 = vmatprep.subr.bf16.mxu1 %v6055_v0  ;;  %v6077_v2 = vunpack.c.l.s8.bf16 %v5653_v19  ;;  %v5652_v0 = vld [vmem:[#allocation11 + $0x550] sm:$0xff] }
 0x8d7   :  { %6772 = vmatprep.subr.bf16.mxu0 %v6057_v42  ;;  %v5143_v42 = vadd.f32 %v5142_v17, %v5141_v16  ;;  %v6076_v32 = vunpack.c.l.s8.bf16 %v5652_v0  ;;  %v5127_v39 = vadd.f32 %v5126_v40, %v5125_v10  ;;  %v6080_v24 = vunpack.c.h.s8.bf16 %v5652_v0  ;;  %v5663_v10 = vld [vmem:[#allocation11 + $0x5a8] sm:$0xff] }
 0x8d9   :  { %6445 = vmatpush1.bf16.msra.mxu1 %v6054_v49  ;;  %v6079_v49 = vunpack.c.h.s8.bf16 %v5651_v7  ;;  %v5168_v50 = vmul.f32 0.125, %v5127_v39  ;;  %v5667_v39 = vld [vmem:[#allocation11 + $0x5c8] sm:$0xff] }
 0x8da   :  { %6773 = vmatpush1.bf16.msra.mxu0 %v6056_v52  ;;  %6455 = vmatprep.subr.bf16.mxu1 %v6059_v18  ;;  %v5144_v52 = vrot.slane %v5143_v42, 1  ;;  %v5657_v18 = vld [vmem:[#allocation11 + $0x578] sm:$0xff] }
 0x8db   :  { %6783 = vmatprep.subr.bf16.mxu0 %v6061_v35  ;;  %v4857_v35 = vrot.slane %v8171_v41, %v7885_v1  ;;  %v6085_v30 = vunpack.c.l.s8.bf16 %v5657_v18  ;;  %v6089_v46 = vunpack.c.h.s8.bf16 %v5657_v18  ;;  %v6103_v18 = vunpack.c.h.s8.bf16 %v5663_v10 }
 0x8dc   :  { %6447 = vmatmul.mubr.bf16.vlgmr.msra.gmra.mrb[28].mxu1 %v5474_v51 }
 0x8dd   :  { %6775 = vmatmul.mubr.bf16.vlgmr.msra.gmra.mrb[32].mxu0 %v5474_v51  ;;  %6456 = vmatpush1.bf16.msra.mxu1 %v6058_v3  ;;  %v5654_v3 = vld [vmem:[#allocation11 + $0x560] sm:$0xff]  ;;  %v5145_v51 = vadd.f32 %v5144_v52, %v5143_v42  ;;  %v8292_v21 = vmul.f32 %v4857_v35, %v8209_v59  ;;  %v6088_v59 = vunpack.c.h.s8.bf16 %v5656_v47  ;;  %v6099_v42 = vunpack.c.l.s8.bf16 %v5663_v10 }
 0x8de   :  { %6487 = vmatprep.mubr.bf16.mxu1 %v5477_v57  ;;  %6784 = vmatpush1.bf16.msra.mxu0 %v6060_v38  ;;  %v4869_v38 = vrot.slane %v8171_v41, %v7891_v54  ;;  %v6086_v15 = vunpack.c.h.s8.bf16 %v5654_v3 }
 0x8df   :  { %6815 = vmatprep.mubr.bf16.mxu0 %v5477_v57  ;;  %6457 = vmatprep.subr.bf16.mxu1 %v6063_v61  ;;  %v6082_v61 = vunpack.c.l.s8.bf16 %v5654_v3  ;;  %v6084_v57 = vunpack.c.l.s8.bf16 %v5656_v47  ;;  %v5171_v63 = vmul.f32 0.125, %v5145_v51  ;;  %v4990_v11 = vrot.slane %v8292_v21, 4 }
 0x8e0   :  { %6785 = vmatprep.subr.bf16.mxu0 %v6065_v12  ;;  %v6087_v12 = vunpack.c.h.s8.bf16 %v5655_v44 }
 0x8e1   :  { %6458 = vmatpush1.bf16.msra.mxu1 %v6062_v8  ;;  %v5659_v8 = vld [vmem:[#allocation11 + $0x588] sm:$0xff]  ;;  %v4991_v7 = vadd.f32 %v4990_v11, %v8292_v21 }
 0x8e2   :  { %6786 = vmatpush1.bf16.msra.mxu0 %v6064_v4  ;;  %6459 = vmatprep.subr.bf16.mxu1 %v6067_v62  ;;  %v8295_v4 = vmul.f32 %v4869_v38, %v8217_v56  ;;  %v5661_v62 = vld [vmem:[#allocation11 + $0x598] sm:$0xff]  ;;  %v6091_v16 = vunpack.c.l.s8.bf16 %v5659_v8  ;;  %v6095_v19 = vunpack.c.h.s8.bf16 %v5659_v8  ;;  %v6107_v38 = vunpack.c.l.s8.bf16 %v5667_v39 }
 0x8e3   :  { %6787 = vmatprep.subr.bf16.mxu0 %v6069_v53  ;;  %v5184_v53 = vadd.f32 0.8, %v5168_v50  ;;  %v6093_v6 = vunpack.c.l.s8.bf16 %v5661_v62 }
 0x8e5   :  { %6460 = vmatpush1.bf16.msra.mxu1 %v6066_v37  ;;  %v5658_v37 = vld [vmem:[#allocation11 + $0x580] sm:$0xff]  ;;  %7418 = vrsqrt.f32 %v5184_v53 }
 0x8e6   :  { %6788 = vmatpush1.bf16.msra.mxu0 %v6068_v9  ;;  %6461 = vmatprep.subr.bf16.mxu1 %v6071_v48  ;;  %v5660_v9 = vld [vmem:[#allocation11 + $0x590] sm:$0xff]  ;;  %v5187_v48 = vadd.f32 0.8, %v5171_v63  ;;  %v6090_v56 = vunpack.c.l.s8.bf16 %v5658_v37  ;;  %v6094_v58 = vunpack.c.h.s8.bf16 %v5658_v37 }
 0x8e7   :  { %6789 = vmatprep.subr.bf16.mxu0 %v6073_v45  ;;  %v5008_v45 = vrot.slane %v8295_v4, 4  ;;  %v6092_v17 = vunpack.c.l.s8.bf16 %v5660_v9  ;;  %v6096_v0 = vunpack.c.h.s8.bf16 %v5660_v9 }
 0x8e8   :  { %7420 = vrsqrt.f32 %v5187_v48  ;;  %v5673_v48 = vld [vmem:[#allocation11 + $0x5f8] sm:$0xff] }
 0x8e9   :  { %6462 = vmatpush1.bf16.msra.mxu1 %v6070_v55  ;;  %v6097_v55 = vunpack.c.h.s8.bf16 %v5661_v62  ;;  %v5279_v62 = vrot.slane %v8229_v28, %v7888_v60 }
 0x8ea   :  { %6790 = vmatpush1.bf16.msra.mxu0 %v6072_v22  ;;  %6463 = vmatprep.subr.bf16.mxu1 %v6075_v29  ;;  %v5009_v22 = vadd.f32 %v5008_v45, %v8295_v4  ;;  %v5665_v29 = vld [vmem:[#allocation11 + $0x5b8] sm:$0xff] }
 0x8eb   :  { %6791 = vmatprep.subr.bf16.mxu0 %v6077_v2  ;;  %v4992_v2 = vrot.slane %v4991_v7, 2  ;;  %v6101_v40 = vunpack.c.l.s8.bf16 %v5665_v29 }
 0x8ed   :  { %6464 = vmatpush1.bf16.msra.mxu1 %v6074_v31  ;;  %v5662_v31 = vld [vmem:[#allocation11 + $0x5a0] sm:$0xff]  ;;  %v4993_v44 = vadd.f32 %v4992_v2, %v4991_v7 }
 0x8ee   :  { %6792 = vmatpush1.bf16.msra.mxu0 %v6076_v32  ;;  %6465 = vmatprep.subr.bf16.mxu1 %v6079_v49  ;;  %v5664_v32 = vld [vmem:[#allocation11 + $0x5b0] sm:$0xff]  ;;  %v5010_v49 = vrot.slane %v5009_v22, 2  ;;  %v6102_v3 = vunpack.c.h.s8.bf16 %v5662_v31 }
 0x8ef   :  { %6793 = vmatprep.subr.bf16.mxu0 %v6081_v13  ;;  %v6098_v13 = vunpack.c.l.s8.bf16 %v5662_v31  ;;  %v6100_v52 = vunpack.c.l.s8.bf16 %v5664_v32  ;;  %v7419_v35 = vpop.eup %7418  ;;  %v4994_v47 = vrot.slane %v4993_v44, 1  ;;  %v6104_v51 = vunpack.c.h.s8.bf16 %v5664_v32 }
 0x8f0   :  { %v5216_v50 = vmul.f32 %v7419_v35, %v8278_v26  ;;  %v5674_v35 = vld [vmem:[#allocation11 + $0x600] sm:$0xff] }
 0x8f1   :  { %6466 = vmatpush1.bf16.msra.mxu1 %v6078_v20  ;;  %v6105_v20 = vunpack.c.h.s8.bf16 %v5665_v29  ;;  %v4995_v53 = vadd.f32 %v4994_v47, %v4993_v44  ;;  %v5672_v29 = vld [vmem:[#allocation11 + $0x5f0] sm:$0xff]  ;;  %v5677_v44 = vld [vmem:[#allocation11 + $0x618] sm:$0xff] }
 0x8f2   :  { %6794 = vmatpush1.bf16.msra.mxu0 %v6080_v24  ;;  %6467 = vmatprep.subr.bf16.mxu1 %v6083_v43  ;;  %v5011_v24 = vadd.f32 %v5010_v49, %v5009_v22  ;;  %v5669_v43 = vld [vmem:[#allocation11 + $0x5d8] sm:$0xff]  ;;  %v6117_v22 = vunpack.c.l.s8.bf16 %v5673_v48  ;;  %v5675_v49 = vld [vmem:[#allocation11 + $0x608] sm:$0xff] }
 0x8f3   :  { %6795 = vmatprep.subr.bf16.mxu0 %v6085_v30  ;;  %v7421_v30 = vpop.eup %7420  ;;  %v6113_v37 = vunpack.c.h.s8.bf16 %v5669_v43  ;;  %v5026_v7 = vmul.f32 0.125, %v4995_v53 }
 0x8f4   :  { %v5012_v8 = vrot.slane %v5011_v24, 1  ;;  %v5219_v63 = vmul.f32 %v7421_v30, %v8281_v33  ;;  %v6122_v30 = vunpack.c.l.s8.bf16 %v5674_v35 }
 0x8f5   :  { %6468 = vmatpush1.bf16.msra.mxu1 %v6082_v61  ;;  %v5666_v61 = vld [vmem:[#allocation11 + $0x5c0] sm:$0xff] }
 0x8f6   :  { %6796 = vmatpush1.bf16.msra.mxu0 %v6084_v57  ;;  %6469 = vmatprep.subr.bf16.mxu1 %v6087_v12  ;;  %v5267_v57 = vrot.slane %v8229_v28, %v7785_v34  ;;  %v6109_v12 = vunpack.c.l.s8.bf16 %v5669_v43  ;;  %v5013_v9 = vadd.f32 %v5012_v8, %v5011_v24  ;;  %v5317_v33 = vmul.f32 %v5279_v62, %v5219_v63  ;;  %v5681_v63 = vld [vmem:[#allocation11 + $0x638] sm:$0xff] }
 0x8f7   :  { %6797 = vmatprep.subr.bf16.mxu0 %v6089_v46  ;;  %v5668_v46 = vld [vmem:[#allocation11 + $0x5d0] sm:$0xff]  ;;  %v6110_v45 = vunpack.c.h.s8.bf16 %v5666_v61  ;;  %v6125_v43 = vunpack.c.l.s8.bf16 %v5677_v44  ;;  %v6129_v8 = vunpack.c.h.s8.bf16 %v5677_v44  ;;  %v6126_v62 = vunpack.c.h.s8.bf16 %v5674_v35  ;;  %v5687_v44 = vld [vmem:[#allocation11 + $0x668] sm:$0xff] }
 0x8f8   :  { %v6108_v11 = vunpack.c.l.s8.bf16 %v5668_v46  ;;  %v5314_v26 = vmul.f32 %v5267_v57, %v5216_v50  ;;  %v6127_v50 = vunpack.c.h.s8.bf16 %v5675_v49  ;;  %v5679_v57 = vld [vmem:[#allocation11 + $0x628] sm:$0xff] }
 0x8f9   :  { %6470 = vmatpush1.bf16.msra.mxu1 %v6086_v15  ;;  %v6106_v15 = vunpack.c.l.s8.bf16 %v5666_v61 }
 0x8fa   :  { %6798 = vmatpush1.bf16.msra.mxu0 %v6088_v59  ;;  %6471 = vmatprep.subr.bf16.mxu1 %v6091_v16  ;;  %v6111_v59 = vunpack.c.h.s8.bf16 %v5667_v39  ;;  %v5365_v16 = vrot.slane %v8234_v23, %v7785_v34  ;;  %v6123_v39 = vunpack.c.l.s8.bf16 %v5675_v49 }
 0x8fb   :  { %6799 = vmatprep.subr.bf16.mxu0 %v6093_v6  ;;  %v5671_v6 = vld [vmem:[#allocation11 + $0x5e8] sm:$0xff] }
 0x8fc   :  { %v5412_v10 = vadd.f32 %v5365_v16, %v5314_v26  ;;  %v6119_v31 = vunpack.c.h.s8.bf16 %v5671_v6  ;;  %v6133_v26 = vunpack.c.l.s8.bf16 %v5681_v63  ;;  %v5680_v16 = vld [vmem:[#allocation11 + $0x630] sm:$0xff] }
 0x8fd   :  { %6472 = vmatpush1.bf16.msra.mxu1 %v6090_v56  ;;  %v5377_v56 = vrot.slane %v8234_v23, %v7888_v60  ;;  %v6116_v60 = vunpack.c.l.s8.bf16 %v5672_v29 }
 0x8fe   :  { %6800 = vmatpush1.bf16.msra.mxu0 %v6092_v17  ;;  %6473 = vmatprep.subr.bf16.mxu1 %v6095_v19  ;;  %v6112_v17 = vunpack.c.h.s8.bf16 %v5668_v46  ;;  %v6115_v19 = vunpack.c.l.s8.bf16 %v5671_v6  ;;  %v5444_v32 = vmul.f32 0.2, %v5412_v10  ;;  %vm5428_vm9 = vcmp.ge.f32.partialorder %v5412_v10, 0.0 }
 0x8ff   :  { %6801 = vmatprep.subr.bf16.mxu0 %v6097_v55  ;;  %v5670_v55 = vld [vmem:[#allocation11 + $0x5e0] sm:$0xff] }
 0x900   :  { %v6114_v2 = vunpack.c.l.s8.bf16 %v5670_v55  ;;  %v5460_v24 = vsel %vm5428_vm9, %v5412_v10, %v5444_v32  ;;  %v6136_v10 = vunpack.c.h.s8.bf16 %v5680_v16 }
 0x901   :  { %6474 = vmatpush1.bf16.msra.mxu1 %v6094_v58  ;;  %v5029_v58 = vmul.f32 0.125, %v5013_v9 }
 0x902   :  { %6802 = vmatpush1.bf16.msra.mxu0 %v6096_v0  ;;  %6475 = vmatprep.subr.bf16.mxu1 %v6099_v42  ;;  %v5415_v0 = vadd.f32 %v5377_v56, %v5317_v33  ;;  %v8312_v42 = vsub.f32 %v8292_v21, %v5026_v7  ;;  %v6135_v33 = vunpack.c.h.s8.bf16 %v5679_v57  ;;  %v5683_v56 = vld [vmem:[#allocation11 + $0x648] sm:$0xff] }
 0x903   :  { %6803 = vmatprep.subr.bf16.mxu0 %v6101_v40  ;;  %v6121_v40 = vunpack.c.h.s8.bf16 %v5673_v48  ;;  %v6132_v48 = vunpack.c.l.s8.bf16 %v5680_v16  ;;  %v6143_v32 = vunpack.c.h.s8.bf16 %v5683_v56 }
 0x904   :  { %v5058_v21 = vmul.f32 %v8312_v42, %v8312_v42  ;;  %vm5431_vm10 = vcmp.ge.f32.partialorder %v5415_v0, 0.0 }
 0x905   :  { %6476 = vmatpush1.bf16.msra.mxu1 %v6098_v13  ;;  %v8315_v13 = vsub.f32 %v8295_v4, %v5029_v58 }
 0x906   :  { %6804 = vmatpush1.bf16.msra.mxu0 %v6100_v52  ;;  %6477 = vmatprep.subr.bf16.mxu1 %v6103_v18  ;;  %v6118_v52 = vunpack.c.h.s8.bf16 %v5670_v55  ;;  %v5447_v18 = vmul.f32 0.2, %v5415_v0 }
 0x907   :  { %6805 = vmatprep.subr.bf16.mxu0 %v6105_v20  ;;  %v6120_v20 = vunpack.c.h.s8.bf16 %v5672_v29  ;;  %v5061_v4 = vmul.f32 %v8315_v13, %v8315_v13  ;;  %v5682_v29 = vld [vmem:[#allocation11 + $0x640] sm:$0xff] }
 0x908   :  { %v5463_v47 = vsel %vm5431_vm10, %v5415_v0, %v5447_v18  ;;  %v5689_v18 = vld [vmem:[#allocation11 + $0x678] sm:$0xff] }
 0x909   :  { %6478 = vmatpush1.bf16.msra.mxu1 %v6102_v3  ;;  %v5676_v3 = vld [vmem:[#allocation11 + $0x610] sm:$0xff]  ;;  %v5479_v46 = vpack.c.bf16 %v5463_v47, %v5463_v47 }
 0x90a   :  { %6806 = vmatpush1.bf16.msra.mxu0 %v6104_v51  ;;  %6479 = vmatprep.subr.bf16.mxu1 %v6107_v38  ;;  %v5134_v51 = vrot.slane %v5058_v21, 4  ;;  %v5476_v38 = vpack.c.bf16 %v5460_v24, %v5460_v24  ;;  %v6124_v61 = vunpack.c.l.s8.bf16 %v5676_v3  ;;  %v6128_v53 = vunpack.c.h.s8.bf16 %v5676_v3 }
 0x90b   :  { %6807 = vmatprep.subr.bf16.mxu0 %v6109_v12  ;;  %v5152_v12 = vrot.slane %v5061_v4, 4  ;;  %v6147_v24 = vunpack.c.l.s8.bf16 %v5687_v44  ;;  %v6149_v3 = vunpack.c.l.s8.bf16 %v5689_v18 }
 0x90d   :  { %6480 = vmatpush1.bf16.msra.mxu1 %v6106_v15  ;;  %v5135_v15 = vadd.f32 %v5134_v51, %v5058_v21  ;;  %v6142_v21 = vunpack.c.h.s8.bf16 %v5682_v29 }
 0x90e   :  { %6808 = vmatpush1.bf16.msra.mxu0 %v6108_v11  ;;  %6481 = vmatprep.subr.bf16.mxu1 %v6111_v59  ;;  %v6131_v11 = vunpack.c.l.s8.bf16 %v5679_v57  ;;  %v5678_v59 = vld [vmem:[#allocation11 + $0x620] sm:$0xff]  ;;  %v5691_v57 = vld [vmem:[#allocation11 + $0x688] sm:$0xff] }
 0x90f   :  { %6809 = vmatprep.subr.bf16.mxu0 %v6113_v37  ;;  %v5153_v37 = vadd.f32 %v5152_v12, %v5061_v4  ;;  %v6130_v6 = vunpack.c.l.s8.bf16 %v5678_v59  ;;  %v5136_v9 = vrot.slane %v5135_v15, 2  ;;  %v5688_v4 = vld [vmem:[#allocation11 + $0x670] sm:$0xff] }
 0x911   :  { %6482 = vmatpush1.bf16.msra.mxu1 %v6110_v45  ;;  %v6137_v45 = vunpack.c.h.s8.bf16 %v5681_v63  ;;  %v5154_v7 = vrot.slane %v5153_v37, 2  ;;  %v5137_v55 = vadd.f32 %v5136_v9, %v5135_v15  ;;  %v6152_v15 = vunpack.c.h.s8.bf16 %v5688_v4 }
 0x912   :  { %6810 = vmatpush1.bf16.msra.mxu0 %v6112_v17  ;;  %6483 = vmatprep.subr.bf16.mxu1 %v6115_v19  ;;  %v5685_v17 = vld [vmem:[#allocation11 + $0x658] sm:$0xff]  ;;  %v6134_v19 = vunpack.c.h.s8.bf16 %v5678_v59  ;;  %v5692_v59 = vld [vmem:[#allocation11 + $0x690] sm:$0xff]  ;;  %v6159_v9 = vunpack.c.h.s8.bf16 %v5691_v57 }
 0x913   :  { %6811 = vmatprep.subr.bf16.mxu0 %v6117_v22  ;;  %v6139_v22 = vunpack.c.l.s8.bf16 %v5683_v56  ;;  %v6141_v58 = vunpack.c.l.s8.bf16 %v5685_v17  ;;  %v5155_v0 = vadd.f32 %v5154_v7, %v5153_v37  ;;  %v6145_v49 = vunpack.c.h.s8.bf16 %v5685_v17 }
 0x914   :  { %v6160_v17 = vunpack.c.h.s8.bf16 %v5692_v59 }
 0x915   :  { %6484 = vmatpush1.bf16.msra.mxu1 %v6114_v2  ;;  %v5684_v2 = vld [vmem:[#allocation11 + $0x650] sm:$0xff] }
 0x916   :  { %6812 = vmatpush1.bf16.msra.mxu0 %v6116_v60  ;;  %6485 = vmatprep.subr.bf16.mxu1 %v6119_v31  ;;  %v6138_v60 = vunpack.c.l.s8.bf16 %v5682_v29  ;;  %v5138_v31 = vrot.slane %v5137_v55, 1  ;;  %v6144_v35 = vunpack.c.h.s8.bf16 %v5684_v2 }
 0x917   :  { %6813 = vmatprep.subr.bf16.mxu0 %v6121_v40  ;;  %v6140_v40 = vunpack.c.l.s8.bf16 %v5684_v2 }
 0x919   :  { %6486 = vmatpush1.bf16.msra.mxu1 %v6118_v52  ;;  %v5156_v52 = vrot.slane %v5155_v0, 1 }
 0x91a   :  { %6814 = vmatpush1.bf16.msra.mxu0 %v6120_v20  ;;  %6496 = vmatprep.subr.bf16.mxu1 %v6123_v39  ;;  %v5139_v20 = vadd.f32 %v5138_v31, %v5137_v55  ;;  %v4865_v39 = vrot.slane %v8171_v41, %v7918_v5  ;;  %v6153_v41 = vunpack.c.h.s8.bf16 %v5689_v18  ;;  %v5694_v55 = vld [vmem:[#allocation11 + $0x6a0] sm:$0xff]  ;;  %v5699_v31 = vld [vmem:[#allocation11 + $0x6c8] sm:$0xff] }
 0x91b   :  { %6824 = vmatprep.subr.bf16.mxu0 %v6125_v43  ;;  %v5686_v43 = vld [vmem:[#allocation11 + $0x660] sm:$0xff]  ;;  %v6162_v29 = vunpack.c.l.s8.bf16 %v5694_v55 }
 0x91c   :  { %6488 = vmatmul.mubr.bf16.vlgmr.msra.gmra.mrb[28].mxu1 %v5476_v38  ;;  %v6146_v47 = vunpack.c.l.s8.bf16 %v5686_v43  ;;  %v5170_v51 = vmul.f32 0.125, %v5139_v20  ;;  %v5698_v20 = vld [vmem:[#allocation11 + $0x6c0] sm:$0xff] }
 0x91d   :  { %6816 = vmatmul.mubr.bf16.vlgmr.msra.gmra.mrb[32].mxu0 %v5476_v38  ;;  %6497 = vmatpush1.bf16.msra.mxu1 %v6122_v30  ;;  %v5157_v30 = vadd.f32 %v5156_v52, %v5155_v0  ;;  %v8324_v38 = vmul.f32 %v4865_v39, %v8213_v14  ;;  %v5690_v14 = vld [vmem:[#allocation11 + $0x680] sm:$0xff] }
 0x91e   :  { %6528 = vmatprep.mubr.bf16.mxu1 %v5479_v46  ;;  %6825 = vmatpush1.bf16.msra.mxu0 %v6124_v61  ;;  %v6148_v61 = vunpack.c.l.s8.bf16 %v5688_v4  ;;  %v5186_v63 = vadd.f32 0.8, %v5170_v51  ;;  %v6154_v16 = vunpack.c.l.s8.bf16 %v5690_v14  ;;  %v6158_v56 = vunpack.c.h.s8.bf16 %v5690_v14 }
 0x91f   :  { %6856 = vmatprep.mubr.bf16.mxu0 %v5479_v46  ;;  %6498 = vmatprep.subr.bf16.mxu1 %v6127_v50  ;;  %v6151_v50 = vunpack.c.h.s8.bf16 %v5687_v44  ;;  %v5173_v12 = vmul.f32 0.125, %v5157_v30  ;;  %v5693_v46 = vld [vmem:[#allocation11 + $0x698] sm:$0xff]  ;;  %v5287_v4 = vrot.slane %v8229_v28, %v7891_v54  ;;  %v6170_v30 = vunpack.c.l.s8.bf16 %v5698_v20 }
 0x920   :  { %6826 = vmatprep.subr.bf16.mxu0 %v6129_v8  ;;  %v6150_v8 = vunpack.c.h.s8.bf16 %v5686_v43  ;;  %7422 = vrsqrt.f32 %v5186_v63  ;;  %v5700_v43 = vld [vmem:[#allocation11 + $0x6d0] sm:$0xff] }
 0x921   :  { %6499 = vmatpush1.bf16.msra.mxu1 %v6126_v62  ;;  %v5002_v62 = vrot.slane %v8324_v38, 4  ;;  %v6172_v51 = vunpack.c.l.s8.bf16 %v5700_v43 }
 0x922   :  { %6827 = vmatpush1.bf16.msra.mxu0 %v6128_v53  ;;  %6500 = vmatprep.subr.bf16.mxu1 %v6131_v11  ;;  %v6155_v53 = vunpack.c.l.s8.bf16 %v5691_v57  ;;  %v6157_v11 = vunpack.c.l.s8.bf16 %v5693_v46  ;;  %v5703_v57 = vld [vmem:[#allocation11 + $0x6e8] sm:$0xff] }
 0x923   :  { %6828 = vmatprep.subr.bf16.mxu0 %v6133_v26  ;;  %v5189_v26 = vadd.f32 0.8, %v5173_v12  ;;  %v5003_v37 = vadd.f32 %v5002_v62, %v8324_v38  ;;  %v5705_v12 = vld [vmem:[#allocation11 + $0x6f8] sm:$0xff]  ;;  %v6176_v62 = vunpack.c.h.s8.bf16 %v5700_v43 }
 0x925   :  { %6501 = vmatpush1.bf16.msra.mxu1 %v6130_v6  ;;  %v6156_v6 = vunpack.c.l.s8.bf16 %v5692_v59  ;;  %7424 = vrsqrt.f32 %v5189_v26  ;;  %v5004_v7 = vrot.slane %v5003_v37, 2 }
 0x926   :  { %6829 = vmatpush1.bf16.msra.mxu0 %v6132_v48  ;;  %6502 = vmatprep.subr.bf16.mxu1 %v6135_v33  ;;  %v6161_v48 = vunpack.c.h.s8.bf16 %v5693_v46  ;;  %v5695_v33 = vld [vmem:[#allocation11 + $0x6a8] sm:$0xff] }
 0x927   :  { %6830 = vmatprep.subr.bf16.mxu0 %v6137_v45  ;;  %v5697_v45 = vld [vmem:[#allocation11 + $0x6b8] sm:$0xff]  ;;  %v6167_v0 = vunpack.c.h.s8.bf16 %v5695_v33 }
 0x929   :  { %6503 = vmatpush1.bf16.msra.mxu1 %v6134_v19  ;;  %v6163_v19 = vunpack.c.l.s8.bf16 %v5695_v33  ;;  %v5709_v33 = vld [vmem:[#allocation11 + $0x718] sm:$0xff] }
 0x92a   :  { %6831 = vmatpush1.bf16.msra.mxu0 %v6136_v10  ;;  %6504 = vmatprep.subr.bf16.mxu1 %v6139_v22  ;;  %v6165_v10 = vunpack.c.l.s8.bf16 %v5697_v45  ;;  %v5696_v22 = vld [vmem:[#allocation11 + $0x6b0] sm:$0xff] }
 0x92b   :  { %6832 = vmatprep.subr.bf16.mxu0 %v6141_v58  ;;  %v5005_v58 = vadd.f32 %v5004_v7, %v5003_v37  ;;  %v6164_v2 = vunpack.c.l.s8.bf16 %v5696_v22  ;;  %v6168_v18 = vunpack.c.h.s8.bf16 %v5696_v22  ;;  %v5708_v22 = vld [vmem:[#allocation11 + $0x710] sm:$0xff] }
 0x92d   :  { %6505 = vmatpush1.bf16.msra.mxu1 %v6138_v60  ;;  %v6169_v60 = vunpack.c.h.s8.bf16 %v5697_v45  ;;  %v5006_v52 = vrot.slane %v5005_v58, 1 }
 0x92e   :  { %6833 = vmatpush1.bf16.msra.mxu0 %v6140_v40  ;;  %6506 = vmatprep.subr.bf16.mxu1 %v6143_v32  ;;  %v7423_v40 = vpop.eup %7422  ;;  %v5701_v32 = vld [vmem:[#allocation11 + $0x6d8] sm:$0xff] }
 0x92f   :  { %6834 = vmatprep.subr.bf16.mxu0 %v6145_v49  ;;  %v6166_v49 = vunpack.c.h.s8.bf16 %v5694_v55  ;;  %v7425_v44 = vpop.eup %7424  ;;  %v5218_v39 = vmul.f32 %v7423_v40, %v8312_v42  ;;  %v5373_v42 = vrot.slane %v8234_v23, %v7885_v1  ;;  %v5711_v40 = vld [vmem:[#allocation11 + $0x728] sm:$0xff] }
 0x931   :  { %6507 = vmatpush1.bf16.msra.mxu1 %v6142_v21  ;;  %v6171_v21 = vunpack.c.l.s8.bf16 %v5699_v31 }
 0x932   :  { %6835 = vmatpush1.bf16.msra.mxu0 %v6144_v35  ;;  %6508 = vmatprep.subr.bf16.mxu1 %v6147_v24  ;;  %v5275_v35 = vrot.slane %v8229_v28, %v7885_v1  ;;  %v6173_v24 = vunpack.c.l.s8.bf16 %v5701_v32  ;;  %v5704_v1 = vld [vmem:[#allocation11 + $0x6f0] sm:$0xff] }
 0x933   :  { %6836 = vmatprep.subr.bf16.mxu0 %v6149_v3  ;;  %v5221_v3 = vmul.f32 %v7425_v44, %v8315_v13  ;;  %v6174_v13 = vunpack.c.h.s8.bf16 %v5698_v20  ;;  %v6180_v37 = vunpack.c.l.s8.bf16 %v5704_v1  ;;  %v5713_v44 = vld [vmem:[#allocation11 + $0x738] sm:$0xff]  ;;  %v6195_v20 = vunpack.c.l.s8.bf16 %v5711_v40 }
 0x935   :  { %6509 = vmatpush1.bf16.msra.mxu1 %v6146_v47  ;;  %v5007_v47 = vadd.f32 %v5006_v52, %v5005_v58  ;;  %v5319_v46 = vmul.f32 %v5287_v4, %v5221_v3 }
 0x936   :  { %6837 = vmatpush1.bf16.msra.mxu0 %v6148_v61  ;;  %6510 = vmatprep.subr.bf16.mxu1 %v6151_v50  ;;  %v6175_v61 = vunpack.c.h.s8.bf16 %v5699_v31  ;;  %v5316_v50 = vmul.f32 %v5275_v35, %v5218_v39  ;;  %v5710_v39 = vld [vmem:[#allocation11 + $0x720] sm:$0xff]  ;;  %v6197_v35 = vunpack.c.l.s8.bf16 %v5713_v44 }
 0x937   :  { %6838 = vmatprep.subr.bf16.mxu0 %v6153_v41  ;;  %v6177_v41 = vunpack.c.h.s8.bf16 %v5701_v32  ;;  %v5028_v63 = vmul.f32 0.125, %v5007_v47  ;;  %v6194_v43 = vunpack.c.l.s8.bf16 %v5710_v39  ;;  %v6201_v47 = vunpack.c.h.s8.bf16 %v5713_v44 }
 0x938   :  { %v5414_v14 = vadd.f32 %v5373_v42, %v5316_v50  ;;  %v6198_v50 = vunpack.c.h.s8.bf16 %v5710_v39  ;;  %v5728_v39 = vld [vmem:[#allocation11 + $0x7b0] sm:$0xff] }
 0x939   :  { %6511 = vmatpush1.bf16.msra.mxu1 %v6150_v8  ;;  %v5385_v8 = vrot.slane %v8234_v23, %v7891_v54  ;;  %v6183_v54 = vunpack.c.h.s8.bf16 %v5703_v57 }
 0x93a   :  { %6839 = vmatpush1.bf16.msra.mxu0 %v6152_v15  ;;  %6512 = vmatprep.subr.bf16.mxu1 %v6155_v53  ;;  %v6179_v15 = vunpack.c.l.s8.bf16 %v5703_v57  ;;  %v5702_v53 = vld [vmem:[#allocation11 + $0x6e0] sm:$0xff]  ;;  %vm5430_vm11 = vcmp.ge.f32.partialorder %v5414_v14, 0.0 }
 0x93b   :  { %6840 = vmatprep.subr.bf16.mxu0 %v6157_v11  ;;  %v6181_v11 = vunpack.c.l.s8.bf16 %v5705_v12  ;;  %v6178_v59 = vunpack.c.l.s8.bf16 %v5702_v53  ;;  %v5417_v26 = vadd.f32 %v5385_v8, %v5319_v46  ;;  %v6182_v45 = vunpack.c.h.s8.bf16 %v5702_v53 }
 0x93d   :  { %6513 = vmatpush1.bf16.msra.mxu1 %v6154_v16  ;;  %v8339_v16 = vsub.f32 %v8324_v38, %v5028_v63  ;;  %v6184_v38 = vunpack.c.h.s8.bf16 %v5704_v1  ;;  %vm5433_vm12 = vcmp.ge.f32.partialorder %v5417_v26, 0.0 }
 0x93e   :  { %6841 = vmatpush1.bf16.msra.mxu0 %v6156_v6  ;;  %6514 = vmatprep.subr.bf16.mxu1 %v6159_v9  ;;  %v6185_v6 = vunpack.c.h.s8.bf16 %v5705_v12  ;;  %v5446_v9 = vmul.f32 0.2, %v5414_v14  ;;  %v5714_v12 = vld [vmem:[#allocation11 + $0x740] sm:$0xff] }
 0x93f   :  { %6842 = vmatprep.subr.bf16.mxu0 %v6161_v48  ;;  %v5707_v48 = vld [vmem:[#allocation11 + $0x708] sm:$0xff]  ;;  %v5060_v7 = vmul.f32 %v8339_v16, %v8339_v16  ;;  %v6202_v8 = vunpack.c.l.s8.bf16 %v5714_v12  ;;  %v6206_v1 = vunpack.c.h.s8.bf16 %v5714_v12 }
 0x940   :  { %v5462_v55 = vsel %vm5430_vm11, %v5414_v14, %v5446_v9  ;;  %v6191_v31 = vunpack.c.h.s8.bf16 %v5707_v48  ;;  %v5719_v14 = vld [vmem:[#allocation11 + $0x768] sm:$0xff]  ;;  %v5720_v9 = vld [vmem:[#allocation11 + $0x770] sm:$0xff] }
 0x941   :  { %6515 = vmatpush1.bf16.msra.mxu1 %v6158_v56  ;;  %v5449_v56 = vmul.f32 0.2, %v5417_v26 }
 0x942   :  { %6843 = vmatpush1.bf16.msra.mxu0 %v6160_v17  ;;  %6516 = vmatprep.subr.bf16.mxu1 %v6163_v19  ;;  %v6187_v17 = vunpack.c.l.s8.bf16 %v5707_v48  ;;  %v5706_v19 = vld [vmem:[#allocation11 + $0x700] sm:$0xff] }
 0x943   :  { %6844 = vmatprep.subr.bf16.mxu0 %v6165_v10  ;;  %v6189_v10 = vunpack.c.l.s8.bf16 %v5709_v33  ;;  %v5465_v58 = vsel %vm5433_vm12, %v5417_v26, %v5449_v56  ;;  %v6190_v52 = vunpack.c.h.s8.bf16 %v5706_v19  ;;  %v6215_v56 = vunpack.c.h.s8.bf16 %v5719_v14 }
 0x944   :  { %v5481_v32 = vpack.c.bf16 %v5465_v58, %v5465_v58 }
 0x945   :  { %6517 = vmatpush1.bf16.msra.mxu1 %v6162_v29  ;;  %v6186_v29 = vunpack.c.l.s8.bf16 %v5706_v19 }
 0x946   :  { %6845 = vmatpush1.bf16.msra.mxu0 %v6164_v2  ;;  %6518 = vmatprep.subr.bf16.mxu1 %v6167_v0  ;;  %v5146_v2 = vrot.slane %v5060_v7, 4  ;;  %v5478_v0 = vpack.c.bf16 %v5462_v55, %v5462_v55 }
 0x947   :  { %6846 = vmatprep.subr.bf16.mxu0 %v6169_v60  ;;  %v6188_v60 = vunpack.c.l.s8.bf16 %v5708_v22 }
 0x949   :  { %6519 = vmatpush1.bf16.msra.mxu1 %v6166_v49  ;;  %v6193_v49 = vunpack.c.h.s8.bf16 %v5709_v33 }
 0x94a   :  { %6847 = vmatpush1.bf16.msra.mxu0 %v6168_v18  ;;  %6520 = vmatprep.subr.bf16.mxu1 %v6171_v21  ;;  %v5147_v18 = vadd.f32 %v5146_v2, %v5060_v7  ;;  %v6192_v21 = vunpack.c.h.s8.bf16 %v5708_v22  ;;  %v5724_v2 = vld [vmem:[#allocation11 + $0x790] sm:$0xff] }
 0x94b   :  { %6848 = vmatprep.subr.bf16.mxu0 %v6173_v24  ;;  %v5712_v24 = vld [vmem:[#allocation11 + $0x730] sm:$0xff] }
 0x94c   :  { %v5148_v3 = vrot.slane %v5147_v18, 2  ;;  %v6196_v4 = vunpack.c.l.s8.bf16 %v5712_v24 }
 0x94d   :  { %6521 = vmatpush1.bf16.msra.mxu1 %v6170_v30  ;;  %v6199_v30 = vunpack.c.h.s8.bf16 %v5711_v40 }
 0x94e   :  { %6849 = vmatpush1.bf16.msra.mxu0 %v6172_v51  ;;  %6522 = vmatprep.subr.bf16.mxu1 %v6175_v61  ;;  %v5715_v51 = vld [vmem:[#allocation11 + $0x748] sm:$0xff]  ;;  %v5717_v61 = vld [vmem:[#allocation11 + $0x758] sm:$0xff]  ;;  %v5149_v42 = vadd.f32 %v5148_v3, %v5147_v18 }
 0x94f   :  { %6850 = vmatprep.subr.bf16.mxu0 %v6177_v41  ;;  %v6200_v41 = vunpack.c.h.s8.bf16 %v5712_v24  ;;  %v6203_v57 = vunpack.c.l.s8.bf16 %v5715_v51  ;;  %v6205_v46 = vunpack.c.l.s8.bf16 %v5717_v61  ;;  %v6209_v53 = vunpack.c.h.s8.bf16 %v5717_v61 }
 0x950   :  { %v5150_v63 = vrot.slane %v5149_v42, 1  ;;  %v6228_v24 = vunpack.c.l.s8.bf16 %v5728_v39  ;;  %v6232_v61 = vunpack.c.h.s8.bf16 %v5728_v39 }
 0x951   :  { %6523 = vmatpush1.bf16.msra.mxu1 %v6174_v13  ;;  %v5716_v13 = vld [vmem:[#allocation11 + $0x750] sm:$0xff] }
 0x952   :  { %6851 = vmatpush1.bf16.msra.mxu0 %v6176_v62  ;;  %6524 = vmatprep.subr.bf16.mxu1 %v6179_v15  ;;  %v6204_v62 = vunpack.c.l.s8.bf16 %v5716_v13  ;;  %v6207_v15 = vunpack.c.h.s8.bf16 %v5715_v51  ;;  %v6208_v26 = vunpack.c.h.s8.bf16 %v5716_v13 }
 0x953   :  { %6852 = vmatprep.subr.bf16.mxu0 %v6181_v11  ;;  %v5721_v11 = vld [vmem:[#allocation11 + $0x778] sm:$0xff] }
 0x954   :  { %v6217_v7 = vunpack.c.h.s8.bf16 %v5721_v11 }
 0x955   :  { %6525 = vmatpush1.bf16.msra.mxu1 %v6178_v59  ;;  %v5151_v59 = vadd.f32 %v5150_v63, %v5149_v42  ;;  %v5730_v42 = vld [vmem:[#allocation11 + $0x7c0] sm:$0xff] }
 0x956   :  { %6853 = vmatpush1.bf16.msra.mxu0 %v6180_v37  ;;  %6526 = vmatprep.subr.bf16.mxu1 %v6183_v54  ;;  %v6211_v37 = vunpack.c.l.s8.bf16 %v5719_v14  ;;  %v5718_v54 = vld [vmem:[#allocation11 + $0x760] sm:$0xff]  ;;  %v6234_v13 = vunpack.c.l.s8.bf16 %v5730_v42  ;;  %v5735_v14 = vld [vmem:[#allocation11 + $0x7e8] sm:$0xff] }
 0x957   :  { %6854 = vmatprep.subr.bf16.mxu0 %v6185_v6  ;;  %v6213_v6 = vunpack.c.l.s8.bf16 %v5721_v11  ;;  %v6210_v48 = vunpack.c.l.s8.bf16 %v5718_v54  ;;  %v5172_v33 = vmul.f32 0.125, %v5151_v59  ;;  %v6214_v19 = vunpack.c.h.s8.bf16 %v5718_v54  ;;  %v5734_v59 = vld [vmem:[#allocation11 + $0x7e0] sm:$0xff]  ;;  %v5736_v54 = vld [vmem:[#allocation11 + $0x7f0] sm:$0xff] }
 0x958   :  { %v6238_v11 = vunpack.c.h.s8.bf16 %v5730_v42 }
 0x959   :  { %6527 = vmatpush1.bf16.msra.mxu1 %v6182_v45  ;;  %v6212_v45 = vunpack.c.l.s8.bf16 %v5720_v9  ;;  %v5188_v55 = vadd.f32 0.8, %v5172_v33  ;;  %v6246_v33 = vunpack.c.h.s8.bf16 %v5734_v59 }
 0x95a   :  { %6855 = vmatpush1.bf16.msra.mxu0 %v6184_v38  ;;  %6537 = vmatprep.subr.bf16.mxu1 %v6187_v17  ;;  %v5723_v38 = vld [vmem:[#allocation11 + $0x788] sm:$0xff]  ;;  %v5725_v17 = vld [vmem:[#allocation11 + $0x798] sm:$0xff] }
 0x95b   :  { %6865 = vmatprep.subr.bf16.mxu0 %v6189_v10  ;;  %v6216_v10 = vunpack.c.h.s8.bf16 %v5720_v9  ;;  %v6219_v22 = vunpack.c.l.s8.bf16 %v5723_v38  ;;  %v6221_v58 = vunpack.c.l.s8.bf16 %v5725_v17  ;;  %7426 = vrsqrt.f32 %v5188_v55 }
 0x95c   :  { %6529 = vmatmul.mubr.bf16.vlgmr.msra.gmra.mrb[28].mxu1 %v5478_v0  ;;  %v6225_v40 = vunpack.c.h.s8.bf16 %v5725_v17  ;;  %v6934_v17 = vld [vmem:[#allocation13 + $0x7] ss:$8 sm:$0xf] }
 0x95d   :  { %6857 = vmatmul.mubr.bf16.vlgmr.msra.gmra.mrb[32].mxu0 %v5478_v0  ;;  %6538 = vmatpush1.bf16.msra.mxu1 %v6186_v29  ;;  %v5722_v29 = vld [vmem:[#allocation11 + $0x780] sm:$0xff] }
 0x95e   :  { %6569 = vmatprep.mubr.bf16.mxu1 %v5481_v32  ;;  %6866 = vmatpush1.bf16.msra.mxu0 %v6188_v60  ;;  %v6218_v0 = vunpack.c.l.s8.bf16 %v5722_v29  ;;  %v6220_v60 = vunpack.c.l.s8.bf16 %v5724_v2  ;;  %v6222_v44 = vunpack.c.h.s8.bf16 %v5722_v29 }
 0x95f   :  { %6897 = vmatprep.mubr.bf16.mxu0 %v5481_v32  ;;  %6539 = vmatprep.subr.bf16.mxu1 %v6191_v31  ;;  %v6223_v31 = vunpack.c.h.s8.bf16 %v5723_v38  ;;  %v5727_v32 = vld [vmem:[#allocation11 + $0x7a8] sm:$0xff] }
 0x960   :  { %6867 = vmatprep.subr.bf16.mxu0 %v6193_v49  ;;  %v5729_v49 = vld [vmem:[#allocation11 + $0x7b8] sm:$0xff]  ;;  %v6227_v18 = vunpack.c.l.s8.bf16 %v5727_v32 }
 0x961   :  { %6540 = vmatpush1.bf16.msra.mxu1 %v6190_v52  ;;  %v6224_v52 = vunpack.c.h.s8.bf16 %v5724_v2  ;;  %v6233_v3 = vunpack.c.h.s8.bf16 %v5729_v49  ;;  %v6907_v38 = vld [vmem:[#allocation13 + $0x82] ss:$8 sm:$0xf]  ;;  %v6947_v2 = vrot.slane %v6934_v17, %v7785_v34 }
 0x962   :  { %6868 = vmatpush1.bf16.msra.mxu0 %v6192_v21  ;;  %6541 = vmatprep.subr.bf16.mxu1 %v6195_v20  ;;  %v5726_v21 = vld [vmem:[#allocation11 + $0x7a0] sm:$0xff]  ;;  %v6229_v20 = vunpack.c.l.s8.bf16 %v5729_v49  ;;  %v6920_v55 = vrot.slane %v6907_v38, %v7785_v34  ;;  %v6924_v29 = vrot.slane %v6907_v38, %v7788_v36 }
 0x963   :  { %6869 = vmatprep.subr.bf16.mxu0 %v6197_v35  ;;  %v6226_v35 = vunpack.c.l.s8.bf16 %v5726_v21  ;;  %v6230_v51 = vunpack.c.h.s8.bf16 %v5726_v21 }
 0x965   :  { %6542 = vmatpush1.bf16.msra.mxu1 %v6194_v43  ;;  %v6231_v43 = vunpack.c.h.s8.bf16 %v5727_v32  ;;  %v6951_v32 = vrot.slane %v6934_v17, %v7788_v36 }
 0x966   :  { %6870 = vmatpush1.bf16.msra.mxu0 %v6196_v4  ;;  %6543 = vmatprep.subr.bf16.mxu1 %v6199_v30  ;;  %v5731_v4 = vld [vmem:[#allocation11 + $0x7c8] sm:$0xff]  ;;  %v7427_v30 = vpop.eup %7426 }
 0x967   :  { %6871 = vmatprep.subr.bf16.mxu0 %v6201_v47  ;;  %v5733_v47 = vld [vmem:[#allocation11 + $0x7d8] sm:$0xff]  ;;  %v6239_v63 = vunpack.c.h.s8.bf16 %v5731_v4 }
 0x968   :  { %v6237_v12 = vunpack.c.l.s8.bf16 %v5733_v47 }
 0x969   :  { %6544 = vmatpush1.bf16.msra.mxu1 %v6198_v50  ;;  %v6235_v50 = vunpack.c.l.s8.bf16 %v5731_v4 }
 0x96a   :  { %6872 = vmatpush1.bf16.msra.mxu0 %v6200_v41  ;;  %6545 = vmatprep.subr.bf16.mxu1 %v6203_v57  ;;  %v5220_v41 = vmul.f32 %v7427_v30, %v8339_v16  ;;  %v5283_v57 = vrot.slane %v8229_v28, %v7918_v5  ;;  %v5737_v16 = vld [vmem:[#allocation11 + $0x7f8] sm:$0xff] }
 0x96b   :  { %6873 = vmatprep.subr.bf16.mxu0 %v6205_v46  ;;  %v5732_v46 = vld [vmem:[#allocation11 + $0x7d0] sm:$0xff]  ;;  %v6249_v9 = vunpack.c.h.s8.bf16 %v5737_v16 }
 0x96c   :  { %v6240_v28 = vunpack.c.h.s8.bf16 %v5732_v46 }
 0x96d   :  { %6546 = vmatpush1.bf16.msra.mxu1 %v6202_v8  ;;  %v6236_v8 = vunpack.c.l.s8.bf16 %v5732_v46 }
 0x96e   :  { %6874 = vmatpush1.bf16.msra.mxu0 %v6204_v62  ;;  %6547 = vmatprep.subr.bf16.mxu1 %v6207_v15  ;;  %v5318_v62 = vmul.f32 %v5283_v57, %v5220_v41  ;;  %v5381_v15 = vrot.slane %v8234_v23, %v7918_v5  ;;  %v6244_v5 = vunpack.c.l.s8.bf16 %v5736_v54  ;;  %v6247_v23 = vunpack.c.h.s8.bf16 %v5735_v14 }
 0x96f   :  { %6875 = vmatprep.subr.bf16.mxu0 %v6209_v53  ;;  %v6241_v53 = vunpack.c.h.s8.bf16 %v5733_v47 }
 0x971   :  { %6548 = vmatpush1.bf16.msra.mxu1 %v6206_v1  ;;  %v6243_v1 = vunpack.c.l.s8.bf16 %v5735_v14 }
 0x972   :  { %6876 = vmatpush1.bf16.msra.mxu0 %v6208_v26  ;;  %6549 = vmatprep.subr.bf16.mxu1 %v6211_v37  ;;  %v5416_v26 = vadd.f32 %v5381_v15, %v5318_v62  ;;  %v6245_v37 = vunpack.c.l.s8.bf16 %v5737_v16 }
 0x973   :  { %6877 = vmatprep.subr.bf16.mxu0 %v6213_v6  ;;  %v6242_v6 = vunpack.c.l.s8.bf16 %v5734_v59 }
 0x974   :  { %vm5432_vm13 = vcmp.ge.f32.partialorder %v5416_v26, 0.0 }
 0x975   :  { %6550 = vmatpush1.bf16.msra.mxu1 %v6210_v48  ;;  %v5448_v48 = vmul.f32 0.2, %v5416_v26 }
 0x976   :  { %6878 = vmatpush1.bf16.msra.mxu0 %v6212_v45  ;;  %6551 = vmatprep.subr.bf16.mxu1 %v6215_v56  ;;  %v6248_v45 = vunpack.c.h.s8.bf16 %v5736_v54 }
 0x977   :  { %6879 = vmatprep.subr.bf16.mxu0 %v6217_v7  ;;  %v5464_v56 = vsel %vm5432_vm13, %v5416_v26, %v5448_v48 }
 0x978   :  { %v5480_v7 = vpack.c.bf16 %v5464_v56, %v5464_v56 }
 0x979   :  { %6552 = vmatpush1.bf16.msra.mxu1 %v6214_v19  ;;  %v6912_v19 = vrot.slane %v6907_v38, %v7771_v25 }
 0x97a   :  { %6880 = vmatpush1.bf16.msra.mxu0 %v6216_v10  ;;  %6553 = vmatprep.subr.bf16.mxu1 %v6219_v22  ;;  %v6916_v10 = vrot.slane %v6907_v38, %v7774_v27  ;;  %v6939_v22 = vrot.slane %v6934_v17, %v7771_v25 }
 0x97b   :  { %6881 = vmatprep.subr.bf16.mxu0 %v6221_v58 }
 0x97d   :  { %6554 = vmatpush1.bf16.msra.mxu1 %v6218_v0  ;;  %v6943_v0 = vrot.slane %v6934_v17, %v7774_v27 }
 0x97e   :  { %6882 = vmatpush1.bf16.msra.mxu0 %v6220_v60  ;;  %6555 = vmatprep.subr.bf16.mxu1 %v6223_v31 }
 0x97f   :  { %6883 = vmatprep.subr.bf16.mxu0 %v6225_v40 }
 0x981   :  { %6556 = vmatpush1.bf16.msra.mxu1 %v6222_v44 }
 0x982   :  { %6884 = vmatpush1.bf16.msra.mxu0 %v6224_v52  ;;  %6557 = vmatprep.subr.bf16.mxu1 %v6227_v18 }
 0x983   :  { %6885 = vmatprep.subr.bf16.mxu0 %v6229_v20 }
 0x985   :  { %6558 = vmatpush1.bf16.msra.mxu1 %v6226_v35 }
 0x986   :  { %6886 = vmatpush1.bf16.msra.mxu0 %v6228_v24  ;;  %6559 = vmatprep.subr.bf16.mxu1 %v6231_v43 }
 0x987   :  { %6887 = vmatprep.subr.bf16.mxu0 %v6233_v3 }
 0x989   :  { %6560 = vmatpush1.bf16.msra.mxu1 %v6230_v51 }
 0x98a   :  { %6888 = vmatpush1.bf16.msra.mxu0 %v6232_v61  ;;  %6561 = vmatprep.subr.bf16.mxu1 %v6235_v50 }
 0x98b   :  { %6889 = vmatprep.subr.bf16.mxu0 %v6237_v12 }
 0x98d   :  { %6562 = vmatpush1.bf16.msra.mxu1 %v6234_v13 }
 0x98e   :  { %6890 = vmatpush1.bf16.msra.mxu0 %v6236_v8  ;;  %6563 = vmatprep.subr.bf16.mxu1 %v6239_v63 }
 0x98f   :  { %6891 = vmatprep.subr.bf16.mxu0 %v6241_v53 }
 0x991   :  { %6564 = vmatpush1.bf16.msra.mxu1 %v6238_v11 }
 0x992   :  { %6892 = vmatpush1.bf16.msra.mxu0 %v6240_v28  ;;  %6565 = vmatprep.subr.bf16.mxu1 %v6243_v1 }
 0x993   :  { %6893 = vmatprep.subr.bf16.mxu0 %v6245_v37 }
 0x995   :  { %6566 = vmatpush1.bf16.msra.mxu1 %v6242_v6 }
 0x996   :  { %6894 = vmatpush1.bf16.msra.mxu0 %v6244_v5  ;;  %6567 = vmatprep.subr.bf16.mxu1 %v6247_v23 }
 0x997   :  { %6895 = vmatprep.subr.bf16.mxu0 %v6249_v9 }
 0x999   :  { %6568 = vmatpush1.bf16.msra.mxu1 %v6246_v33 }
 0x99a   :  { %6896 = vmatpush1.bf16.msra.mxu0 %v6248_v45 }
 0x99c   :  { %6570 = vmatmul.mubr.bf16.vlgmr.msra.gmra.mrb[28].mxu1 %v5480_v7 }
 0x99d   :  { %6898 = vmatmul.mubr.bf16.vlgmr.msra.gmra.mrb[32].mxu0 %v5480_v7 }
 0xa6f   :  { %v6571_v58 = vpop.f32.mrb[28].mxu1 }
 0xa70   :  { %v6929_v60 = vmul.f32 %v6912_v19, %v6571_v58  ;;  %v6899_v31 = vpop.f32.mrb[32].mxu0  ;;  %v6573_v40 = vpop.f32.mrb[29].mxu1 }
 0xa71   :  { %v6931_v49 = vmul.f32 %v6920_v55, %v6899_v31  ;;  %v6930_v44 = vmul.f32 %v6916_v10, %v6573_v40  ;;  %v6901_v52 = vpop.f32.mrb[33].mxu0  ;;  %v6575_v18 = vpop.f32.mrb[30].mxu1 }
 0xa72   :  { %v6956_v21 = vadd.f32 %v6939_v22, %v6929_v60  ;;  %v6932_v20 = vmul.f32 %v6924_v29, %v6901_v52  ;;  %v6903_v39 = vpop.f32.mrb[34].mxu0  ;;  %v6576_v25 = vpop.f32.mrb[31].mxu1 }
 0xa73   :  { %v6958_v35 = vadd.f32 %v6947_v2, %v6931_v49  ;;  %v6957_v24 = vadd.f32 %v6943_v0, %v6930_v44  ;;  %v6904_v43 = vpop.f32.mrb[35].mxu0 }
 0xa74   :  { %7428 = vtanh.f32 %v6956_v21  ;;  %v6959_v34 = vadd.f32 %v6951_v32, %v6932_v20 }
 0xa75   :  { %7430 = vtanh.f32 %v6958_v35 }
 0xa76   :  { %7432 = vtanh.f32 %v6957_v24 }
 0xa77   :  { %7434 = vtanh.f32 %v6959_v34 }
 0xa7e   :  { %v7429_v27 = vpop.eup %7428 }
 0xa7f   :  { %v7431_v36 = vpop.eup %7430  ;;  %6964 = vst [vmem:[#allocation14] sm:$0xff] %v7429_v27 }
 0xa80   :  { %v7433_v3 = vpop.eup %7432  ;;  %6966 = vst [vmem:[#allocation14 + $0x10] sm:$0xff] %v7431_v36 }
 0xa81   :  { %v7435_v4 = vpop.eup %7434  ;;  %6965 = vst [vmem:[#allocation14 + $0x8] sm:$0xff] %v7433_v3 }
 0xa82   :  { %6967 = vst [vmem:[#allocation14 + $0x18] sm:$0xff] %v7435_v4 }
 0xa83   :  { %7601 = shalt.err (!%p7598_p4)
}
 0xa84   :  { %s7602_s19 = scalar_lea.hbm %s8375_s7, 512 }
 0xa85   :  { %p7603_p5 = scmp.ne.s32.totalorder %s8375_s7, %s7602_s19  ;;  %p7606_p6 = scmp.lt.u32.totalorder %s7602_s19, %s8375_s7 }
 0xa87   :  { %p7608_p7 = pnand %p7606_p6, %p7603_p5 }
 0xa89   :  { %7611 = shalt.err (!%p7608_p7)
}
 0xa8a   :  { %6977 = dma.vmem_to_hbm [thread:$0]  %s6975_s11, 512, %s8375_s7, [#allocation4]  }
 0xa8b   :  { %7620 = dma.done.wait [#allocation4], 512  }
 0xa8c   :  { %7621 = vsyncadd [#allocation4], 4294966784 }
 0xa8d   :  { %6981 = vsyncpa [#allocation3], 1 }
 0xa8e   :  { %6982 = vsyncpa [#allocation6], 1 }
 0xa8f   :  { %6983 = vsyncpa [#allocation9], 1 }
 0xa90   :  { %6984 = vsyncpa [#allocation12], 1 }
 0xa91   :  { %6985 = vsyncpa [#allocation4], 1 }

</bundles_post_ra>
